<compile_context>
chip_gen: v7x
topology: tpu7x:2x2x1
jax: 0.10.0
libtpu: 0.0.40
codegen_flags: <defaults>
</compile_context>

<pallas_src>
import numpy as np
import jax
import jax.numpy as jnp
from jax import lax
from jax.experimental import pallas as pl
from jax.experimental.pallas import tpu as pltpu


def _round_up(v, m):
    return ((v + m - 1) // m) * m


def _pick_co_blk(c_out):
    """Largest divisor of c_out that is <= 256 and a multiple of 8 (falls back to c_out)."""
    for d in range(min(c_out, 256), 7, -1):
        if d % 8 == 0 and c_out % d == 0:
            return d
    return c_out


def _make_kernel(taps, c_in, co_blk, hp, wp, s_tile, halo, use_mxu, n_s):
    """Fused max-pool (over `taps`) + 3x3 conv (pad 1) + bias on lane-dense (c, s_tile) slabs."""
    single = (n_s == 1)

    def kernel(*refs):
        # refs: w, b, hw, [x_prev_edge,] x_center, [x_next_edge,] out, [stack_scratch]
        if use_mxu:
            refs, stack_ref = list(refs[:-1]), refs[-1]
        else:
            refs, stack_ref = list(refs), None
        if single:
            w_ref, b_ref, hw_ref, xc_ref, o_ref = refs
            xp_ref = xn_ref = None
        else:
            w_ref, b_ref, hw_ref, xp_ref, xc_ref, xn_ref, o_ref = refs

        def pool(ref):
            v = ref[0, 0]
            for t in range(1, taps):
                v = jnp.maximum(v, ref[0, t])
            return v

        pc = pool(xc_ref)                                   # (c_in, s_tile)
        if not single:
            # Halo-wide slab: [prev-edge | center | next-edge]; all pieces 128-lane aligned.
            wide = jnp.concatenate([pool(xp_ref), pc, pool(xn_ref)], axis=1)

        # Image-boundary compares, hoisted out of the tap loop (broadcast over channels).
        hw = hw_ref[...]
        hh = hw[0:1, :]
        ww = hw[1:2, :]
        m_h_minus = hh >= 1
        m_h_plus = hh <= hp - 2
        m_w_minus = ww >= 1
        m_w_plus = ww <= wp - 2

        def shifted(d):
            # slab[p] = pooled[p + d], p = flattened position inside this tile.
            if d == 0:
                return pc
            if single:
                if abs(d) >= s_tile:                        # degenerate 1-row / 1-col images
                    return jnp.zeros_like(pc)
                return pltpu.roll(pc, shift=(-d) % s_tile, axis=1)
            return wide[:, halo + d: halo + d + s_tile]     # static, halo-covered slice

        if not use_mxu:
            w_all = w_ref[...]
            acc = jnp.zeros((co_blk, s_tile), jnp.float32)

        for kh in range(3):
            for kw in range(3):
                dh, dw = kh - 1, kw - 1
                sl = shifted(dh * wp + dw)
                conds = []
                if dh == -1:
                    conds.append(m_h_minus)
                elif dh == 1:
                    conds.append(m_h_plus)
                if dw == -1:
                    conds.append(m_w_minus)
                elif dw == 1:
                    conds.append(m_w_plus)
                if conds:
                    m = conds[0]
                    for c in conds[1:]:
                        m = jnp.logical_and(m, c)
                    sl = jnp.where(m, sl, jnp.zeros_like(sl))
                t = kh * 3 + kw
                if use_mxu:
                    # Stack the slab -> one deep-contraction matmul below.
                    stack_ref[t * c_in:(t + 1) * c_in, :] = sl
                else:
                    # Tiny-channel path: VPU broadcast multiply-adds in f32.
                    for ci in range(c_in):
                        col = w_all[:, t * c_in + ci: t * c_in + ci + 1]
                        acc = acc + col * sl[ci:ci + 1, :]

        if use_mxu:
            # Single MXU contraction of depth 9*c_in (bf16 operands, f32 accumulation).
            acc = jnp.dot(w_ref[...], stack_ref[...], preferred_element_type=jnp.float32)

        # Bias added once at the final lane-dense, unmasked store.
        o_ref[0] = (acc + b_ref[...]).astype(o_ref.dtype)

    return kernel


def _bilinear_upsample(x, s):
    """nn.UpsamplingBilinear2d (align_corners=True) for integer scale, plain JAX."""
    n, c, h, w = x.shape
    ho, wo = h * s, w * s

    def coords(n_in, n_out):
        if n_out == 1 or n_in == 1:
            return jnp.zeros((n_out,), jnp.float32)
        return jnp.arange(n_out, dtype=jnp.float32) * (n_in - 1) / (n_out - 1)

    yy, xx = coords(h, ho), coords(w, wo)
    y0 = jnp.floor(yy).astype(jnp.int32)
    y1 = jnp.minimum(y0 + 1, h - 1)
    wy = (yy - y0.astype(jnp.float32))[None, None, :, None]
    x0 = jnp.floor(xx).astype(jnp.int32)
    x1 = jnp.minimum(x0 + 1, w - 1)
    wx = (xx - x0.astype(jnp.float32))[None, None, None, :]
    rows = x[:, :, y0, :] * (1.0 - wy) + x[:, :, y1, :] * wy
    return rows[:, :, :, x0] * (1.0 - wx) + rows[:, :, :, x1] * wx


def reshape_conv2d(x, weight, bias, scale_factor):
    """Forward pass of ReshapeConv2D. x: (N, Cin, H, W); weight: (Cout, Cin, 3, 3); bias: (Cout,)."""
    n, c_in, h, w_dim = x.shape
    c_out = weight.shape[0]
    out_dtype = x.dtype

    # MXU deep-contraction path for non-trivial channel counts; bf16 operands, f32 accumulation.
    use_mxu = (c_in % 8 == 0) and (c_in >= 8)
    compute_dtype = jnp.bfloat16 if use_mxu else jnp.float32

    if scale_factor > 0:
        k = int(scale_factor)
        hp, wp = h // k, w_dim // k
        taps = k * k
        xs = x[:, :, :hp * k, :wp * k].astype(compute_dtype)    # MaxPool2d truncates ragged edges
        # Pure-layout tap extraction (tap-major, spatial flattened); the max itself is fused in-kernel.
        # TODO(synk): an in-kernel strided-tap DMA (memory_space=pl.ANY) would remove this HBM pass.
        xr = xs.reshape(n, c_in, hp, k, wp, k).transpose(0, 3, 5, 1, 2, 4).reshape(n, taps, c_in, hp * wp)
    elif scale_factor < 0:
        # TODO(synk): fuse the bilinear upsample as two small interpolation matmuls on the MXU
        # instead of materializing the upsampled tensor in HBM.
        xu = _bilinear_upsample(x, -int(scale_factor))
        _, _, hp, wp = xu.shape
        taps = 1
        xr = xu.astype(compute_dtype).reshape(n, 1, c_in, hp * wp)
    else:
        hp, wp, taps = h, w_dim, 1
        xr = x.astype(compute_dtype).reshape(n, 1, c_in, hp * wp)

    s = hp * wp

    # --- Spatial tiling (lane axis): bounds per-step VMEM (v7x-safe) and adds grid parallelism.
    max_tile = 2048 if c_in * taps <= 512 else 1024
    halo_need = _round_up(wp + 1, 128)
    s_tile = max(max_tile, 4 * halo_need)                   # halo stays <= s_tile / 4
    s_pad_min = _round_up(s, 128)
    if s_pad_min <= s_tile:
        s_tile, n_s, halo = s_pad_min, 1, 0
    else:
        n_s, halo = pl.cdiv(s, s_tile), halo_need
    L = n_s * s_tile
    if L != s:
        # TODO(synk): handle the ragged tail in-kernel instead of a wrapper-side jnp.pad.
        xr = jnp.pad(xr, ((0, 0), (0, 0), (0, 0), (0, L - s)))

    # --- c_out blocking: largest divisor <= 256 that is a multiple of 8.
    co_blk = _pick_co_blk(c_out)
    n_co = c_out // co_blk

    # Weights as (c_out, 9*c_in) with (kh, kw, ci) minor ordering -> one deep matmul per tile.
    w_r = weight.transpose(0, 2, 3, 1).reshape(c_out, 9 * c_in).astype(compute_dtype)
    b_r = bias.reshape(c_out, 1).astype(jnp.float32)
    p = np.arange(L)
    hw = jnp.asarray(np.stack([p // wp, p % wp]), dtype=jnp.int32)      # (2, L) row/col per position

    kernel = _make_kernel(taps, c_in, co_blk, hp, wp, s_tile, halo, use_mxu, n_s)

    in_specs = [
        pl.BlockSpec((co_blk, 9 * c_in), lambda i, j, t: (j, 0)),       # weights (resident per j)
        pl.BlockSpec((co_blk, 1), lambda i, j, t: (j, 0)),              # bias
        pl.BlockSpec((2, s_tile), lambda i, j, t: (0, t)),              # row/col indices of the tile
    ]
    if n_s == 1:
        x_args = (xr,)
        in_specs.append(pl.BlockSpec((1, taps, c_in, s_tile), lambda i, j, t: (i, 0, 0, t)))
    else:
        # Halo edges: the `halo` elements just before / after each tile (zeros at the image ends).
        xt = xr.reshape(n, taps, c_in, n_s, s_tile)
        prev_e = xt[..., s_tile - halo:]
        prev_e = jnp.concatenate([jnp.zeros_like(prev_e[:, :, :, :1]), prev_e[:, :, :, :-1]], axis=3)
        next_e = xt[..., :halo]
        next_e = jnp.concatenate([next_e[:, :, :, 1:], jnp.zeros_like(next_e[:, :, :, :1])], axis=3)
        x_args = (prev_e.reshape(n, taps, c_in, n_s * halo), xr,
                  next_e.reshape(n, taps, c_in, n_s * halo))
        in_specs += [
            pl.BlockSpec((1, taps, c_in, halo), lambda i, j, t: (i, 0, 0, t)),
            pl.BlockSpec((1, taps, c_in, s_tile), lambda i, j, t: (i, 0, 0, t)),
            pl.BlockSpec((1, taps, c_in, halo), lambda i, j, t: (i, 0, 0, t)),
        ]

    scratch = [pltpu.VMEM((9 * c_in, s_tile), compute_dtype)] if use_mxu else []

    out_flat = pl.pallas_call(
        kernel,
        out_shape=jax.ShapeDtypeStruct((n, c_out, L), out_dtype),
        grid_spec=pltpu.PrefetchScalarGridSpec(
            num_scalar_prefetch=0,
            grid=(n, n_co, n_s),
            in_specs=in_specs,
            out_specs=pl.BlockSpec((1, co_blk, s_tile), lambda i, j, t: (i, j, t)),
            scratch_shapes=scratch,
        ),
        compiler_params=pltpu.CompilerParams(
            dimension_semantics=("parallel", "parallel", "parallel"),
            vmem_limit_bytes=48 * 1024 * 1024),
    )(w_r, b_r, hw, *x_args)

    return out_flat[:, :, :s].reshape(n, c_out, hp, wp)


def _reference(x, weight, bias, scale_factor):
    """Pure-JAX reference matching the PyTorch module (true-f32 conv)."""
    if scale_factor > 0:
        k = int(scale_factor)
        n, c, h, w = x.shape
        hp, wp = h // k, w // k
        x = x[:, :, :hp * k, :wp * k].reshape(n, c, hp, k, wp, k).max(axis=(3, 5))
    elif scale_factor < 0:
        x = _bilinear_upsample(x, -int(scale_factor))
    y = lax.conv_general_dilated(
        x, weight, window_strides=(1, 1), padding=((1, 1), (1, 1)),
        dimension_numbers=("NCHW", "OIHW", "NCHW"),
        precision=lax.Precision.HIGHEST)
    return y + bias[None, :, None, None]


if __name__ == "__main__":
    keys = jax.random.split(jax.random.PRNGKey(0), 9)

    # 1) MaxPool2d(2) -> Conv2d(4->8) at 96x96: tiny-channel VPU path (f32), multi-tile spatial grid.
    x1 = jax.random.normal(keys[0], (2, 4, 96, 96), dtype=jnp.float32)
    w1 = 0.1 * jax.random.normal(keys[1], (8, 4, 3, 3), dtype=jnp.float32)
    b1 = 0.1 * jax.random.normal(keys[2], (8,), dtype=jnp.float32)
    out1 = jax.block_until_ready(reshape_conv2d(x1, w1, b1, 2))
    ref1 = _reference(x1, w1, b1, 2)
    assert out1.shape == ref1.shape == (2, 8, 48, 48), out1.shape
    if not bool(jnp.allclose(out1, ref1, rtol=1e-4, atol=1e-4)):
        raise AssertionError("maxpool+conv (VPU / multi-tile) kernel does not match reference")

    # 2) Identity -> Conv2d(32->32) at 80x80: MXU deep-contraction path (bf16 operands, f32 acc),
    #    multi-tile; N=1 so the spatial grid axis supplies the parallel grid points (v7x both TCs).
    x2 = jax.random.normal(keys[3], (1, 32, 80, 80), dtype=jnp.float32)
    w2 = 0.1 * jax.random.normal(keys[4], (32, 32, 3, 3), dtype=jnp.float32)
    b2 = 0.1 * jax.random.normal(keys[5], (32,), dtype=jnp.float32)
    out2 = jax.block_until_ready(reshape_conv2d(x2, w2, b2, 0))
    ref2 = _reference(x2, w2, b2, 0)
    assert out2.shape == ref2.shape == (1, 32, 80, 80), out2.shape
    if not bool(jnp.allclose(out2, ref2, rtol=5e-2, atol=5e-2)):   # bf16-operand accuracy contract
        raise AssertionError("identity+conv (MXU / multi-tile) kernel does not match reference")

    # 3) UpsamplingBilinear2d(2) -> Conv2d(16->16) at 8x8: upsample path, single-tile, MXU.
    x3 = jax.random.normal(keys[6], (2, 16, 8, 8), dtype=jnp.float32)
    w3 = 0.1 * jax.random.normal(keys[7], (16, 16, 3, 3), dtype=jnp.float32)
    b3 = 0.1 * jax.random.normal(keys[8], (16,), dtype=jnp.float32)
    out3 = jax.block_until_ready(reshape_conv2d(x3, w3, b3, -2))
    ref3 = _reference(x3, w3, b3, -2)
    assert out3.shape == ref3.shape == (2, 16, 16, 16), out3.shape
    if not bool(jnp.allclose(out3, ref3, rtol=5e-2, atol=5e-2)):
        raise AssertionError("upsample+conv (MXU / single-tile) kernel does not match reference")

    print("KERNEL_OK")
</pallas_src>

<mosaic_0001>
module attributes {stable_mosaic.version = 11 : i64} {
  func.func @kernel(%arg0: i32, %arg1: i32, %arg2: i32, %arg3: memref<8x36xf32, #tpu.memory_space<vmem>>, %arg4: memref<8x1xf32, #tpu.memory_space<vmem>>, %arg5: memref<2x2048xi32, #tpu.memory_space<vmem>>, %arg6: memref<1x4x4x128xf32, #tpu.memory_space<vmem>>, %arg7: memref<1x4x4x2048xf32, #tpu.memory_space<vmem>>, %arg8: memref<1x4x4x128xf32, #tpu.memory_space<vmem>>, %arg9: memref<1x8x2048xf32, #tpu.memory_space<vmem>>) attributes {dimension_semantics = [#tpu.dimension_semantics<parallel>, #tpu.dimension_semantics<parallel>, #tpu.dimension_semantics<parallel>], iteration_bounds = array<i64: 2, 1, 2>, scalar_prefetch = 0 : i64, scratch_operands = 0 : i64, tpu.core_type = #tpu.core_type<tc>, window_params = [{transform_indices = @transform_0, window_bounds = array<i64: 8, 36>}, {transform_indices = @transform_1, window_bounds = array<i64: 8, 1>}, {transform_indices = @transform_2, window_bounds = array<i64: 2, 2048>}, {transform_indices = @transform_3, window_bounds = array<i64: 1, 4, 4, 128>}, {transform_indices = @transform_4, window_bounds = array<i64: 1, 4, 4, 2048>}, {transform_indices = @transform_5, window_bounds = array<i64: 1, 4, 4, 128>}, {transform_indices = @transform_6, window_bounds = array<i64: 1, 8, 2048>}]} {
    %c0 = arith.constant 0 : index
    %c0_0 = arith.constant 0 : index
    %c0_1 = arith.constant 0 : index
    %c0_2 = arith.constant 0 : index
    %0 = vector.load %arg7[%c0, %c0_0, %c0_1, %c0_2] : memref<1x4x4x2048xf32, #tpu.memory_space<vmem>>, vector<1x1x4x2048xf32>
    %1 = vector.shape_cast %0 : vector<1x1x4x2048xf32> to vector<4x2048xf32>
    %c0_3 = arith.constant 0 : index
    %c1 = arith.constant 1 : index
    %c0_4 = arith.constant 0 : index
    %c0_5 = arith.constant 0 : index
    %2 = vector.load %arg7[%c0_3, %c1, %c0_4, %c0_5] : memref<1x4x4x2048xf32, #tpu.memory_space<vmem>>, vector<1x1x4x2048xf32>
    %3 = vector.shape_cast %2 : vector<1x1x4x2048xf32> to vector<4x2048xf32>
    %4 = arith.maximumf %1, %3 : vector<4x2048xf32>
    %c0_6 = arith.constant 0 : index
    %c2 = arith.constant 2 : index
    %c0_7 = arith.constant 0 : index
    %c0_8 = arith.constant 0 : index
    %5 = vector.load %arg7[%c0_6, %c2, %c0_7, %c0_8] : memref<1x4x4x2048xf32, #tpu.memory_space<vmem>>, vector<1x1x4x2048xf32>
    %6 = vector.shape_cast %5 : vector<1x1x4x2048xf32> to vector<4x2048xf32>
    %7 = arith.maximumf %4, %6 : vector<4x2048xf32>
    %c0_9 = arith.constant 0 : index
    %c3 = arith.constant 3 : index
    %c0_10 = arith.constant 0 : index
    %c0_11 = arith.constant 0 : index
    %8 = vector.load %arg7[%c0_9, %c3, %c0_10, %c0_11] : memref<1x4x4x2048xf32, #tpu.memory_space<vmem>>, vector<1x1x4x2048xf32>
    %9 = vector.shape_cast %8 : vector<1x1x4x2048xf32> to vector<4x2048xf32>
    %10 = arith.maximumf %7, %9 : vector<4x2048xf32>
    %c0_12 = arith.constant 0 : index
    %c0_13 = arith.constant 0 : index
    %c0_14 = arith.constant 0 : index
    %c0_15 = arith.constant 0 : index
    %11 = vector.load %arg6[%c0_12, %c0_13, %c0_14, %c0_15] : memref<1x4x4x128xf32, #tpu.memory_space<vmem>>, vector<1x1x4x128xf32>
    %12 = vector.shape_cast %11 : vector<1x1x4x128xf32> to vector<4x128xf32>
    %c0_16 = arith.constant 0 : index
    %c1_17 = arith.constant 1 : index
    %c0_18 = arith.constant 0 : index
    %c0_19 = arith.constant 0 : index
    %13 = vector.load %arg6[%c0_16, %c1_17, %c0_18, %c0_19] : memref<1x4x4x128xf32, #tpu.memory_space<vmem>>, vector<1x1x4x128xf32>
    %14 = vector.shape_cast %13 : vector<1x1x4x128xf32> to vector<4x128xf32>
    %15 = arith.maximumf %12, %14 : vector<4x128xf32>
    %c0_20 = arith.constant 0 : index
    %c2_21 = arith.constant 2 : index
    %c0_22 = arith.constant 0 : index
    %c0_23 = arith.constant 0 : index
    %16 = vector.load %arg6[%c0_20, %c2_21, %c0_22, %c0_23] : memref<1x4x4x128xf32, #tpu.memory_space<vmem>>, vector<1x1x4x128xf32>
    %17 = vector.shape_cast %16 : vector<1x1x4x128xf32> to vector<4x128xf32>
    %18 = arith.maximumf %15, %17 : vector<4x128xf32>
    %c0_24 = arith.constant 0 : index
    %c3_25 = arith.constant 3 : index
    %c0_26 = arith.constant 0 : index
    %c0_27 = arith.constant 0 : index
    %19 = vector.load %arg6[%c0_24, %c3_25, %c0_26, %c0_27] : memref<1x4x4x128xf32, #tpu.memory_space<vmem>>, vector<1x1x4x128xf32>
    %20 = vector.shape_cast %19 : vector<1x1x4x128xf32> to vector<4x128xf32>
    %21 = arith.maximumf %18, %20 : vector<4x128xf32>
    %c0_28 = arith.constant 0 : index
    %c0_29 = arith.constant 0 : index
    %c0_30 = arith.constant 0 : index
    %c0_31 = arith.constant 0 : index
    %22 = vector.load %arg8[%c0_28, %c0_29, %c0_30, %c0_31] : memref<1x4x4x128xf32, #tpu.memory_space<vmem>>, vector<1x1x4x128xf32>
    %23 = vector.shape_cast %22 : vector<1x1x4x128xf32> to vector<4x128xf32>
    %c0_32 = arith.constant 0 : index
    %c1_33 = arith.constant 1 : index
    %c0_34 = arith.constant 0 : index
    %c0_35 = arith.constant 0 : index
    %24 = vector.load %arg8[%c0_32, %c1_33, %c0_34, %c0_35] : memref<1x4x4x128xf32, #tpu.memory_space<vmem>>, vector<1x1x4x128xf32>
    %25 = vector.shape_cast %24 : vector<1x1x4x128xf32> to vector<4x128xf32>
    %26 = arith.maximumf %23, %25 : vector<4x128xf32>
    %c0_36 = arith.constant 0 : index
    %c2_37 = arith.constant 2 : index
    %c0_38 = arith.constant 0 : index
    %c0_39 = arith.constant 0 : index
    %27 = vector.load %arg8[%c0_36, %c2_37, %c0_38, %c0_39] : memref<1x4x4x128xf32, #tpu.memory_space<vmem>>, vector<1x1x4x128xf32>
    %28 = vector.shape_cast %27 : vector<1x1x4x128xf32> to vector<4x128xf32>
    %29 = arith.maximumf %26, %28 : vector<4x128xf32>
    %c0_40 = arith.constant 0 : index
    %c3_41 = arith.constant 3 : index
    %c0_42 = arith.constant 0 : index
    %c0_43 = arith.constant 0 : index
    %30 = vector.load %arg8[%c0_40, %c3_41, %c0_42, %c0_43] : memref<1x4x4x128xf32, #tpu.memory_space<vmem>>, vector<1x1x4x128xf32>
    %31 = vector.shape_cast %30 : vector<1x1x4x128xf32> to vector<4x128xf32>
    %32 = arith.maximumf %29, %31 : vector<4x128xf32>
    %33 = tpu.concatenate %21, %10, %32 in 1 : vector<4x128xf32>, vector<4x2048xf32>, vector<4x128xf32> -> vector<4x2304xf32>
    %c0_44 = arith.constant 0 : index
    %c0_45 = arith.constant 0 : index
    %34 = vector.load %arg5[%c0_44, %c0_45] : memref<2x2048xi32, #tpu.memory_space<vmem>>, vector<2x2048xi32>
    %35 = vector.extract_strided_slice %34 {offsets = [0, 0], sizes = [1, 2048], strides = [1, 1]} : vector<2x2048xi32> to vector<1x2048xi32>
    %36 = vector.extract_strided_slice %34 {offsets = [1, 0], sizes = [1, 2048], strides = [1, 1]} : vector<2x2048xi32> to vector<1x2048xi32>
    %c1_i32 = arith.constant 1 : i32
    %37 = vector.broadcast %c1_i32 : i32 to vector<1x2048xi32>
    %38 = arith.cmpi sge, %35, %37 : vector<1x2048xi32>
    %c46_i32 = arith.constant 46 : i32
    %39 = vector.broadcast %c46_i32 : i32 to vector<1x2048xi32>
    %40 = arith.cmpi sle, %35, %39 : vector<1x2048xi32>
    %c1_i32_46 = arith.constant 1 : i32
    %41 = vector.broadcast %c1_i32_46 : i32 to vector<1x2048xi32>
    %42 = arith.cmpi sge, %36, %41 : vector<1x2048xi32>
    %c46_i32_47 = arith.constant 46 : i32
    %43 = vector.broadcast %c46_i32_47 : i32 to vector<1x2048xi32>
    %44 = arith.cmpi sle, %36, %43 : vector<1x2048xi32>
    %c0_48 = arith.constant 0 : index
    %c0_49 = arith.constant 0 : index
    %45 = vector.load %arg3[%c0_48, %c0_49] : memref<8x36xf32, #tpu.memory_space<vmem>>, vector<8x36xf32>
    %cst = arith.constant 0.000000e+00 : f32
    %46 = vector.broadcast %cst : f32 to vector<8x2048xf32>
    %47 = vector.extract_strided_slice %33 {offsets = [0, 79], sizes = [4, 2048], strides = [1, 1]} : vector<4x2304xf32> to vector<4x2048xf32>
    %48 = arith.andi %38, %42 : vector<1x2048xi1>
    %cst_50 = arith.constant 0.000000e+00 : f32
    %49 = vector.broadcast %cst_50 : f32 to vector<4x2048xf32>
    %50 = vector.shape_cast %48 : vector<1x2048xi1> to vector<1x2048xi1>
    %51 = vector.broadcast %50 : vector<1x2048xi1> to vector<4x2048xi1>
    %52 = arith.select %51, %47, %49 : vector<4x2048xi1>, vector<4x2048xf32>
    %53 = vector.extract_strided_slice %45 {offsets = [0, 0], sizes = [8, 1], strides = [1, 1]} : vector<8x36xf32> to vector<8x1xf32>
    %54 = vector.extract_strided_slice %52 {offsets = [0, 0], sizes = [1, 2048], strides = [1, 1]} : vector<4x2048xf32> to vector<1x2048xf32>
    %55 = vector.broadcast %53 : vector<8x1xf32> to vector<8x2048xf32>
    %56 = vector.broadcast %54 : vector<1x2048xf32> to vector<8x2048xf32>
    %57 = arith.mulf %55, %56 : vector<8x2048xf32>
    %58 = arith.addf %46, %57 : vector<8x2048xf32>
    %59 = vector.extract_strided_slice %45 {offsets = [0, 1], sizes = [8, 1], strides = [1, 1]} : vector<8x36xf32> to vector<8x1xf32>
    %60 = vector.extract_strided_slice %52 {offsets = [1, 0], sizes = [1, 2048], strides = [1, 1]} : vector<4x2048xf32> to vector<1x2048xf32>
    %61 = vector.broadcast %59 : vector<8x1xf32> to vector<8x2048xf32>
    %62 = vector.broadcast %60 : vector<1x2048xf32> to vector<8x2048xf32>
    %63 = arith.mulf %61, %62 : vector<8x2048xf32>
    %64 = arith.addf %58, %63 : vector<8x2048xf32>
    %65 = vector.extract_strided_slice %45 {offsets = [0, 2], sizes = [8, 1], strides = [1, 1]} : vector<8x36xf32> to vector<8x1xf32>
    %66 = vector.extract_strided_slice %52 {offsets = [2, 0], sizes = [1, 2048], strides = [1, 1]} : vector<4x2048xf32> to vector<1x2048xf32>
    %67 = vector.broadcast %65 : vector<8x1xf32> to vector<8x2048xf32>
    %68 = vector.broadcast %66 : vector<1x2048xf32> to vector<8x2048xf32>
    %69 = arith.mulf %67, %68 : vector<8x2048xf32>
    %70 = arith.addf %64, %69 : vector<8x2048xf32>
    %71 = vector.extract_strided_slice %45 {offsets = [0, 3], sizes = [8, 1], strides = [1, 1]} : vector<8x36xf32> to vector<8x1xf32>
    %72 = vector.extract_strided_slice %52 {offsets = [3, 0], sizes = [1, 2048], strides = [1, 1]} : vector<4x2048xf32> to vector<1x2048xf32>
    %73 = vector.broadcast %71 : vector<8x1xf32> to vector<8x2048xf32>
    %74 = vector.broadcast %72 : vector<1x2048xf32> to vector<8x2048xf32>
    %75 = arith.mulf %73, %74 : vector<8x2048xf32>
    %76 = arith.addf %70, %75 : vector<8x2048xf32>
    %77 = vector.extract_strided_slice %33 {offsets = [0, 80], sizes = [4, 2048], strides = [1, 1]} : vector<4x2304xf32> to vector<4x2048xf32>
    %cst_51 = arith.constant 0.000000e+00 : f32
    %78 = vector.broadcast %cst_51 : f32 to vector<4x2048xf32>
    %79 = vector.shape_cast %38 : vector<1x2048xi1> to vector<1x2048xi1>
    %80 = vector.broadcast %79 : vector<1x2048xi1> to vector<4x2048xi1>
    %81 = arith.select %80, %77, %78 : vector<4x2048xi1>, vector<4x2048xf32>
    %82 = vector.extract_strided_slice %45 {offsets = [0, 4], sizes = [8, 1], strides = [1, 1]} : vector<8x36xf32> to vector<8x1xf32>
    %83 = vector.extract_strided_slice %81 {offsets = [0, 0], sizes = [1, 2048], strides = [1, 1]} : vector<4x2048xf32> to vector<1x2048xf32>
    %84 = vector.broadcast %82 : vector<8x1xf32> to vector<8x2048xf32>
    %85 = vector.broadcast %83 : vector<1x2048xf32> to vector<8x2048xf32>
    %86 = arith.mulf %84, %85 : vector<8x2048xf32>
    %87 = arith.addf %76, %86 : vector<8x2048xf32>
    %88 = vector.extract_strided_slice %45 {offsets = [0, 5], sizes = [8, 1], strides = [1, 1]} : vector<8x36xf32> to vector<8x1xf32>
    %89 = vector.extract_strided_slice %81 {offsets = [1, 0], sizes = [1, 2048], strides = [1, 1]} : vector<4x2048xf32> to vector<1x2048xf32>
    %90 = vector.broadcast %88 : vector<8x1xf32> to vector<8x2048xf32>
    %91 = vector.broadcast %89 : vector<1x2048xf32> to vector<8x2048xf32>
    %92 = arith.mulf %90, %91 : vector<8x2048xf32>
    %93 = arith.addf %87, %92 : vector<8x2048xf32>
    %94 = vector.extract_strided_slice %45 {offsets = [0, 6], sizes = [8, 1], strides = [1, 1]} : vector<8x36xf32> to vector<8x1xf32>
    %95 = vector.extract_strided_slice %81 {offsets = [2, 0], sizes = [1, 2048], strides = [1, 1]} : vector<4x2048xf32> to vector<1x2048xf32>
    %96 = vector.broadcast %94 : vector<8x1xf32> to vector<8x2048xf32>
    %97 = vector.broadcast %95 : vector<1x2048xf32> to vector<8x2048xf32>
    %98 = arith.mulf %96, %97 : vector<8x2048xf32>
    %99 = arith.addf %93, %98 : vector<8x2048xf32>
    %100 = vector.extract_strided_slice %45 {offsets = [0, 7], sizes = [8, 1], strides = [1, 1]} : vector<8x36xf32> to vector<8x1xf32>
    %101 = vector.extract_strided_slice %81 {offsets = [3, 0], sizes = [1, 2048], strides = [1, 1]} : vector<4x2048xf32> to vector<1x2048xf32>
    %102 = vector.broadcast %100 : vector<8x1xf32> to vector<8x2048xf32>
    %103 = vector.broadcast %101 : vector<1x2048xf32> to vector<8x2048xf32>
    %104 = arith.mulf %102, %103 : vector<8x2048xf32>
    %105 = arith.addf %99, %104 : vector<8x2048xf32>
    %106 = vector.extract_strided_slice %33 {offsets = [0, 81], sizes = [4, 2048], strides = [1, 1]} : vector<4x2304xf32> to vector<4x2048xf32>
    %107 = arith.andi %38, %44 : vector<1x2048xi1>
    %cst_52 = arith.constant 0.000000e+00 : f32
    %108 = vector.broadcast %cst_52 : f32 to vector<4x2048xf32>
    %109 = vector.shape_cast %107 : vector<1x2048xi1> to vector<1x2048xi1>
    %110 = vector.broadcast %109 : vector<1x2048xi1> to vector<4x2048xi1>
    %111 = arith.select %110, %106, %108 : vector<4x2048xi1>, vector<4x2048xf32>
    %112 = vector.extract_strided_slice %45 {offsets = [0, 8], sizes = [8, 1], strides = [1, 1]} : vector<8x36xf32> to vector<8x1xf32>
    %113 = vector.extract_strided_slice %111 {offsets = [0, 0], sizes = [1, 2048], strides = [1, 1]} : vector<4x2048xf32> to vector<1x2048xf32>
    %114 = vector.broadcast %112 : vector<8x1xf32> to vector<8x2048xf32>
    %115 = vector.broadcast %113 : vector<1x2048xf32> to vector<8x2048xf32>
    %116 = arith.mulf %114, %115 : vector<8x2048xf32>
    %117 = arith.addf %105, %116 : vector<8x2048xf32>
    %118 = vector.extract_strided_slice %45 {offsets = [0, 9], sizes = [8, 1], strides = [1, 1]} : vector<8x36xf32> to vector<8x1xf32>
    %119 = vector.extract_strided_slice %111 {offsets = [1, 0], sizes = [1, 2048], strides = [1, 1]} : vector<4x2048xf32> to vector<1x2048xf32>
    %120 = vector.broadcast %118 : vector<8x1xf32> to vector<8x2048xf32>
    %121 = vector.broadcast %119 : vector<1x2048xf32> to vector<8x2048xf32>
    %122 = arith.mulf %120, %121 : vector<8x2048xf32>
    %123 = arith.addf %117, %122 : vector<8x2048xf32>
    %124 = vector.extract_strided_slice %45 {offsets = [0, 10], sizes = [8, 1], strides = [1, 1]} : vector<8x36xf32> to vector<8x1xf32>
    %125 = vector.extract_strided_slice %111 {offsets = [2, 0], sizes = [1, 2048], strides = [1, 1]} : vector<4x2048xf32> to vector<1x2048xf32>
    %126 = vector.broadcast %124 : vector<8x1xf32> to vector<8x2048xf32>
    %127 = vector.broadcast %125 : vector<1x2048xf32> to vector<8x2048xf32>
    %128 = arith.mulf %126, %127 : vector<8x2048xf32>
    %129 = arith.addf %123, %128 : vector<8x2048xf32>
    %130 = vector.extract_strided_slice %45 {offsets = [0, 11], sizes = [8, 1], strides = [1, 1]} : vector<8x36xf32> to vector<8x1xf32>
    %131 = vector.extract_strided_slice %111 {offsets = [3, 0], sizes = [1, 2048], strides = [1, 1]} : vector<4x2048xf32> to vector<1x2048xf32>
    %132 = vector.broadcast %130 : vector<8x1xf32> to vector<8x2048xf32>
    %133 = vector.broadcast %131 : vector<1x2048xf32> to vector<8x2048xf32>
    %134 = arith.mulf %132, %133 : vector<8x2048xf32>
    %135 = arith.addf %129, %134 : vector<8x2048xf32>
    %136 = vector.extract_strided_slice %33 {offsets = [0, 127], sizes = [4, 2048], strides = [1, 1]} : vector<4x2304xf32> to vector<4x2048xf32>
    %cst_53 = arith.constant 0.000000e+00 : f32
    %137 = vector.broadcast %cst_53 : f32 to vector<4x2048xf32>
    %138 = vector.shape_cast %42 : vector<1x2048xi1> to vector<1x2048xi1>
    %139 = vector.broadcast %138 : vector<1x2048xi1> to vector<4x2048xi1>
    %140 = arith.select %139, %136, %137 : vector<4x2048xi1>, vector<4x2048xf32>
    %141 = vector.extract_strided_slice %45 {offsets = [0, 12], sizes = [8, 1], strides = [1, 1]} : vector<8x36xf32> to vector<8x1xf32>
    %142 = vector.extract_strided_slice %140 {offsets = [0, 0], sizes = [1, 2048], strides = [1, 1]} : vector<4x2048xf32> to vector<1x2048xf32>
    %143 = vector.broadcast %141 : vector<8x1xf32> to vector<8x2048xf32>
    %144 = vector.broadcast %142 : vector<1x2048xf32> to vector<8x2048xf32>
    %145 = arith.mulf %143, %144 : vector<8x2048xf32>
    %146 = arith.addf %135, %145 : vector<8x2048xf32>
    %147 = vector.extract_strided_slice %45 {offsets = [0, 13], sizes = [8, 1], strides = [1, 1]} : vector<8x36xf32> to vector<8x1xf32>
    %148 = vector.extract_strided_slice %140 {offsets = [1, 0], sizes = [1, 2048], strides = [1, 1]} : vector<4x2048xf32> to vector<1x2048xf32>
    %149 = vector.broadcast %147 : vector<8x1xf32> to vector<8x2048xf32>
    %150 = vector.broadcast %148 : vector<1x2048xf32> to vector<8x2048xf32>
    %151 = arith.mulf %149, %150 : vector<8x2048xf32>
    %152 = arith.addf %146, %151 : vector<8x2048xf32>
    %153 = vector.extract_strided_slice %45 {offsets = [0, 14], sizes = [8, 1], strides = [1, 1]} : vector<8x36xf32> to vector<8x1xf32>
    %154 = vector.extract_strided_slice %140 {offsets = [2, 0], sizes = [1, 2048], strides = [1, 1]} : vector<4x2048xf32> to vector<1x2048xf32>
    %155 = vector.broadcast %153 : vector<8x1xf32> to vector<8x2048xf32>
    %156 = vector.broadcast %154 : vector<1x2048xf32> to vector<8x2048xf32>
    %157 = arith.mulf %155, %156 : vector<8x2048xf32>
    %158 = arith.addf %152, %157 : vector<8x2048xf32>
    %159 = vector.extract_strided_slice %45 {offsets = [0, 15], sizes = [8, 1], strides = [1, 1]} : vector<8x36xf32> to vector<8x1xf32>
    %160 = vector.extract_strided_slice %140 {offsets = [3, 0], sizes = [1, 2048], strides = [1, 1]} : vector<4x2048xf32> to vector<1x2048xf32>
    %161 = vector.broadcast %159 : vector<8x1xf32> to vector<8x2048xf32>
    %162 = vector.broadcast %160 : vector<1x2048xf32> to vector<8x2048xf32>
    %163 = arith.mulf %161, %162 : vector<8x2048xf32>
    %164 = arith.addf %158, %163 : vector<8x2048xf32>
    %165 = vector.extract_strided_slice %45 {offsets = [0, 16], sizes = [8, 1], strides = [1, 1]} : vector<8x36xf32> to vector<8x1xf32>
    %166 = vector.extract_strided_slice %10 {offsets = [0, 0], sizes = [1, 2048], strides = [1, 1]} : vector<4x2048xf32> to vector<1x2048xf32>
    %167 = vector.broadcast %165 : vector<8x1xf32> to vector<8x2048xf32>
    %168 = vector.broadcast %166 : vector<1x2048xf32> to vector<8x2048xf32>
    %169 = arith.mulf %167, %168 : vector<8x2048xf32>
    %170 = arith.addf %164, %169 : vector<8x2048xf32>
    %171 = vector.extract_strided_slice %45 {offsets = [0, 17], sizes = [8, 1], strides = [1, 1]} : vector<8x36xf32> to vector<8x1xf32>
    %172 = vector.extract_strided_slice %10 {offsets = [1, 0], sizes = [1, 2048], strides = [1, 1]} : vector<4x2048xf32> to vector<1x2048xf32>
    %173 = vector.broadcast %171 : vector<8x1xf32> to vector<8x2048xf32>
    %174 = vector.broadcast %172 : vector<1x2048xf32> to vector<8x2048xf32>
    %175 = arith.mulf %173, %174 : vector<8x2048xf32>
    %176 = arith.addf %170, %175 : vector<8x2048xf32>
    %177 = vector.extract_strided_slice %45 {offsets = [0, 18], sizes = [8, 1], strides = [1, 1]} : vector<8x36xf32> to vector<8x1xf32>
    %178 = vector.extract_strided_slice %10 {offsets = [2, 0], sizes = [1, 2048], strides = [1, 1]} : vector<4x2048xf32> to vector<1x2048xf32>
    %179 = vector.broadcast %177 : vector<8x1xf32> to vector<8x2048xf32>
    %180 = vector.broadcast %178 : vector<1x2048xf32> to vector<8x2048xf32>
    %181 = arith.mulf %179, %180 : vector<8x2048xf32>
    %182 = arith.addf %176, %181 : vector<8x2048xf32>
    %183 = vector.extract_strided_slice %45 {offsets = [0, 19], sizes = [8, 1], strides = [1, 1]} : vector<8x36xf32> to vector<8x1xf32>
    %184 = vector.extract_strided_slice %10 {offsets = [3, 0], sizes = [1, 2048], strides = [1, 1]} : vector<4x2048xf32> to vector<1x2048xf32>
    %185 = vector.broadcast %183 : vector<8x1xf32> to vector<8x2048xf32>
    %186 = vector.broadcast %184 : vector<1x2048xf32> to vector<8x2048xf32>
    %187 = arith.mulf %185, %186 : vector<8x2048xf32>
    %188 = arith.addf %182, %187 : vector<8x2048xf32>
    %189 = vector.extract_strided_slice %33 {offsets = [0, 129], sizes = [4, 2048], strides = [1, 1]} : vector<4x2304xf32> to vector<4x2048xf32>
    %cst_54 = arith.constant 0.000000e+00 : f32
    %190 = vector.broadcast %cst_54 : f32 to vector<4x2048xf32>
    %191 = vector.shape_cast %44 : vector<1x2048xi1> to vector<1x2048xi1>
    %192 = vector.broadcast %191 : vector<1x2048xi1> to vector<4x2048xi1>
    %193 = arith.select %192, %189, %190 : vector<4x2048xi1>, vector<4x2048xf32>
    %194 = vector.extract_strided_slice %45 {offsets = [0, 20], sizes = [8, 1], strides = [1, 1]} : vector<8x36xf32> to vector<8x1xf32>
    %195 = vector.extract_strided_slice %193 {offsets = [0, 0], sizes = [1, 2048], strides = [1, 1]} : vector<4x2048xf32> to vector<1x2048xf32>
    %196 = vector.broadcast %194 : vector<8x1xf32> to vector<8x2048xf32>
    %197 = vector.broadcast %195 : vector<1x2048xf32> to vector<8x2048xf32>
    %198 = arith.mulf %196, %197 : vector<8x2048xf32>
    %199 = arith.addf %188, %198 : vector<8x2048xf32>
    %200 = vector.extract_strided_slice %45 {offsets = [0, 21], sizes = [8, 1], strides = [1, 1]} : vector<8x36xf32> to vector<8x1xf32>
    %201 = vector.extract_strided_slice %193 {offsets = [1, 0], sizes = [1, 2048], strides = [1, 1]} : vector<4x2048xf32> to vector<1x2048xf32>
    %202 = vector.broadcast %200 : vector<8x1xf32> to vector<8x2048xf32>
    %203 = vector.broadcast %201 : vector<1x2048xf32> to vector<8x2048xf32>
    %204 = arith.mulf %202, %203 : vector<8x2048xf32>
    %205 = arith.addf %199, %204 : vector<8x2048xf32>
    %206 = vector.extract_strided_slice %45 {offsets = [0, 22], sizes = [8, 1], strides = [1, 1]} : vector<8x36xf32> to vector<8x1xf32>
    %207 = vector.extract_strided_slice %193 {offsets = [2, 0], sizes = [1, 2048], strides = [1, 1]} : vector<4x2048xf32> to vector<1x2048xf32>
    %208 = vector.broadcast %206 : vector<8x1xf32> to vector<8x2048xf32>
    %209 = vector.broadcast %207 : vector<1x2048xf32> to vector<8x2048xf32>
    %210 = arith.mulf %208, %209 : vector<8x2048xf32>
    %211 = arith.addf %205, %210 : vector<8x2048xf32>
    %212 = vector.extract_strided_slice %45 {offsets = [0, 23], sizes = [8, 1], strides = [1, 1]} : vector<8x36xf32> to vector<8x1xf32>
    %213 = vector.extract_strided_slice %193 {offsets = [3, 0], sizes = [1, 2048], strides = [1, 1]} : vector<4x2048xf32> to vector<1x2048xf32>
    %214 = vector.broadcast %212 : vector<8x1xf32> to vector<8x2048xf32>
    %215 = vector.broadcast %213 : vector<1x2048xf32> to vector<8x2048xf32>
    %216 = arith.mulf %214, %215 : vector<8x2048xf32>
    %217 = arith.addf %211, %216 : vector<8x2048xf32>
    %218 = vector.extract_strided_slice %33 {offsets = [0, 175], sizes = [4, 2048], strides = [1, 1]} : vector<4x2304xf32> to vector<4x2048xf32>
    %219 = arith.andi %40, %42 : vector<1x2048xi1>
    %cst_55 = arith.constant 0.000000e+00 : f32
    %220 = vector.broadcast %cst_55 : f32 to vector<4x2048xf32>
    %221 = vector.shape_cast %219 : vector<1x2048xi1> to vector<1x2048xi1>
    %222 = vector.broadcast %221 : vector<1x2048xi1> to vector<4x2048xi1>
    %223 = arith.select %222, %218, %220 : vector<4x2048xi1>, vector<4x2048xf32>
    %224 = vector.extract_strided_slice %45 {offsets = [0, 24], sizes = [8, 1], strides = [1, 1]} : vector<8x36xf32> to vector<8x1xf32>
    %225 = vector.extract_strided_slice %223 {offsets = [0, 0], sizes = [1, 2048], strides = [1, 1]} : vector<4x2048xf32> to vector<1x2048xf32>
    %226 = vector.broadcast %224 : vector<8x1xf32> to vector<8x2048xf32>
    %227 = vector.broadcast %225 : vector<1x2048xf32> to vector<8x2048xf32>
    %228 = arith.mulf %226, %227 : vector<8x2048xf32>
    %229 = arith.addf %217, %228 : vector<8x2048xf32>
    %230 = vector.extract_strided_slice %45 {offsets = [0, 25], sizes = [8, 1], strides = [1, 1]} : vector<8x36xf32> to vector<8x1xf32>
    %231 = vector.extract_strided_slice %223 {offsets = [1, 0], sizes = [1, 2048], strides = [1, 1]} : vector<4x2048xf32> to vector<1x2048xf32>
    %232 = vector.broadcast %230 : vector<8x1xf32> to vector<8x2048xf32>
    %233 = vector.broadcast %231 : vector<1x2048xf32> to vector<8x2048xf32>
    %234 = arith.mulf %232, %233 : vector<8x2048xf32>
    %235 = arith.addf %229, %234 : vector<8x2048xf32>
    %236 = vector.extract_strided_slice %45 {offsets = [0, 26], sizes = [8, 1], strides = [1, 1]} : vector<8x36xf32> to vector<8x1xf32>
    %237 = vector.extract_strided_slice %223 {offsets = [2, 0], sizes = [1, 2048], strides = [1, 1]} : vector<4x2048xf32> to vector<1x2048xf32>
    %238 = vector.broadcast %236 : vector<8x1xf32> to vector<8x2048xf32>
    %239 = vector.broadcast %237 : vector<1x2048xf32> to vector<8x2048xf32>
    %240 = arith.mulf %238, %239 : vector<8x2048xf32>
    %241 = arith.addf %235, %240 : vector<8x2048xf32>
    %242 = vector.extract_strided_slice %45 {offsets = [0, 27], sizes = [8, 1], strides = [1, 1]} : vector<8x36xf32> to vector<8x1xf32>
    %243 = vector.extract_strided_slice %223 {offsets = [3, 0], sizes = [1, 2048], strides = [1, 1]} : vector<4x2048xf32> to vector<1x2048xf32>
    %244 = vector.broadcast %242 : vector<8x1xf32> to vector<8x2048xf32>
    %245 = vector.broadcast %243 : vector<1x2048xf32> to vector<8x2048xf32>
    %246 = arith.mulf %244, %245 : vector<8x2048xf32>
    %247 = arith.addf %241, %246 : vector<8x2048xf32>
    %248 = vector.extract_strided_slice %33 {offsets = [0, 176], sizes = [4, 2048], strides = [1, 1]} : vector<4x2304xf32> to vector<4x2048xf32>
    %cst_56 = arith.constant 0.000000e+00 : f32
    %249 = vector.broadcast %cst_56 : f32 to vector<4x2048xf32>
    %250 = vector.shape_cast %40 : vector<1x2048xi1> to vector<1x2048xi1>
    %251 = vector.broadcast %250 : vector<1x2048xi1> to vector<4x2048xi1>
    %252 = arith.select %251, %248, %249 : vector<4x2048xi1>, vector<4x2048xf32>
    %253 = vector.extract_strided_slice %45 {offsets = [0, 28], sizes = [8, 1], strides = [1, 1]} : vector<8x36xf32> to vector<8x1xf32>
    %254 = vector.extract_strided_slice %252 {offsets = [0, 0], sizes = [1, 2048], strides = [1, 1]} : vector<4x2048xf32> to vector<1x2048xf32>
    %255 = vector.broadcast %253 : vector<8x1xf32> to vector<8x2048xf32>
    %256 = vector.broadcast %254 : vector<1x2048xf32> to vector<8x2048xf32>
    %257 = arith.mulf %255, %256 : vector<8x2048xf32>
    %258 = arith.addf %247, %257 : vector<8x2048xf32>
    %259 = vector.extract_strided_slice %45 {offsets = [0, 29], sizes = [8, 1], strides = [1, 1]} : vector<8x36xf32> to vector<8x1xf32>
    %260 = vector.extract_strided_slice %252 {offsets = [1, 0], sizes = [1, 2048], strides = [1, 1]} : vector<4x2048xf32> to vector<1x2048xf32>
    %261 = vector.broadcast %259 : vector<8x1xf32> to vector<8x2048xf32>
    %262 = vector.broadcast %260 : vector<1x2048xf32> to vector<8x2048xf32>
    %263 = arith.mulf %261, %262 : vector<8x2048xf32>
    %264 = arith.addf %258, %263 : vector<8x2048xf32>
    %265 = vector.extract_strided_slice %45 {offsets = [0, 30], sizes = [8, 1], strides = [1, 1]} : vector<8x36xf32> to vector<8x1xf32>
    %266 = vector.extract_strided_slice %252 {offsets = [2, 0], sizes = [1, 2048], strides = [1, 1]} : vector<4x2048xf32> to vector<1x2048xf32>
    %267 = vector.broadcast %265 : vector<8x1xf32> to vector<8x2048xf32>
    %268 = vector.broadcast %266 : vector<1x2048xf32> to vector<8x2048xf32>
    %269 = arith.mulf %267, %268 : vector<8x2048xf32>
    %270 = arith.addf %264, %269 : vector<8x2048xf32>
    %271 = vector.extract_strided_slice %45 {offsets = [0, 31], sizes = [8, 1], strides = [1, 1]} : vector<8x36xf32> to vector<8x1xf32>
    %272 = vector.extract_strided_slice %252 {offsets = [3, 0], sizes = [1, 2048], strides = [1, 1]} : vector<4x2048xf32> to vector<1x2048xf32>
    %273 = vector.broadcast %271 : vector<8x1xf32> to vector<8x2048xf32>
    %274 = vector.broadcast %272 : vector<1x2048xf32> to vector<8x2048xf32>
    %275 = arith.mulf %273, %274 : vector<8x2048xf32>
    %276 = arith.addf %270, %275 : vector<8x2048xf32>
    %277 = vector.extract_strided_slice %33 {offsets = [0, 177], sizes = [4, 2048], strides = [1, 1]} : vector<4x2304xf32> to vector<4x2048xf32>
    %278 = arith.andi %40, %44 : vector<1x2048xi1>
    %cst_57 = arith.constant 0.000000e+00 : f32
    %279 = vector.broadcast %cst_57 : f32 to vector<4x2048xf32>
    %280 = vector.shape_cast %278 : vector<1x2048xi1> to vector<1x2048xi1>
    %281 = vector.broadcast %280 : vector<1x2048xi1> to vector<4x2048xi1>
    %282 = arith.select %281, %277, %279 : vector<4x2048xi1>, vector<4x2048xf32>
    %283 = vector.extract_strided_slice %45 {offsets = [0, 32], sizes = [8, 1], strides = [1, 1]} : vector<8x36xf32> to vector<8x1xf32>
    %284 = vector.extract_strided_slice %282 {offsets = [0, 0], sizes = [1, 2048], strides = [1, 1]} : vector<4x2048xf32> to vector<1x2048xf32>
    %285 = vector.broadcast %283 : vector<8x1xf32> to vector<8x2048xf32>
    %286 = vector.broadcast %284 : vector<1x2048xf32> to vector<8x2048xf32>
    %287 = arith.mulf %285, %286 : vector<8x2048xf32>
    %288 = arith.addf %276, %287 : vector<8x2048xf32>
    %289 = vector.extract_strided_slice %45 {offsets = [0, 33], sizes = [8, 1], strides = [1, 1]} : vector<8x36xf32> to vector<8x1xf32>
    %290 = vector.extract_strided_slice %282 {offsets = [1, 0], sizes = [1, 2048], strides = [1, 1]} : vector<4x2048xf32> to vector<1x2048xf32>
    %291 = vector.broadcast %289 : vector<8x1xf32> to vector<8x2048xf32>
    %292 = vector.broadcast %290 : vector<1x2048xf32> to vector<8x2048xf32>
    %293 = arith.mulf %291, %292 : vector<8x2048xf32>
    %294 = arith.addf %288, %293 : vector<8x2048xf32>
    %295 = vector.extract_strided_slice %45 {offsets = [0, 34], sizes = [8, 1], strides = [1, 1]} : vector<8x36xf32> to vector<8x1xf32>
    %296 = vector.extract_strided_slice %282 {offsets = [2, 0], sizes = [1, 2048], strides = [1, 1]} : vector<4x2048xf32> to vector<1x2048xf32>
    %297 = vector.broadcast %295 : vector<8x1xf32> to vector<8x2048xf32>
    %298 = vector.broadcast %296 : vector<1x2048xf32> to vector<8x2048xf32>
    %299 = arith.mulf %297, %298 : vector<8x2048xf32>
    %300 = arith.addf %294, %299 : vector<8x2048xf32>
    %301 = vector.extract_strided_slice %45 {offsets = [0, 35], sizes = [8, 1], strides = [1, 1]} : vector<8x36xf32> to vector<8x1xf32>
    %302 = vector.extract_strided_slice %282 {offsets = [3, 0], sizes = [1, 2048], strides = [1, 1]} : vector<4x2048xf32> to vector<1x2048xf32>
    %303 = vector.broadcast %301 : vector<8x1xf32> to vector<8x2048xf32>
    %304 = vector.broadcast %302 : vector<1x2048xf32> to vector<8x2048xf32>
    %305 = arith.mulf %303, %304 : vector<8x2048xf32>
    %306 = arith.addf %300, %305 : vector<8x2048xf32>
    %c0_58 = arith.constant 0 : index
    %c0_59 = arith.constant 0 : index
    %307 = vector.load %arg4[%c0_58, %c0_59] : memref<8x1xf32, #tpu.memory_space<vmem>>, vector<8x1xf32>
    %308 = vector.broadcast %307 : vector<8x1xf32> to vector<8x2048xf32>
    %309 = arith.addf %306, %308 : vector<8x2048xf32>
    %c0_60 = arith.constant 0 : index
    %c0_61 = arith.constant 0 : index
    %c0_62 = arith.constant 0 : index
    %310 = vector.load %arg9[%c0_60, %c0_61, %c0_62] : memref<1x8x2048xf32, #tpu.memory_space<vmem>>, vector<1x8x2048xf32>
    %311 = vector.shape_cast %310 : vector<1x8x2048xf32> to vector<8x2048xf32>
    %312 = vector.shape_cast %309 : vector<8x2048xf32> to vector<1x8x2048xf32>
    tpu.vector_store %arg9[%c0_60, %c0_61, %c0_62], %312 {strides = array<i32>} : memref<1x8x2048xf32, #tpu.memory_space<vmem>>, vector<1x8x2048xf32>,
    return
  }
  func.func @transform_0(%arg0: i32, %arg1: i32, %arg2: i32) -> (i32, i32) {
    %c0_i32 = arith.constant 0 : i32
    %c0_i32_0 = arith.constant 0 : i32
    return %arg1, %c0_i32 : i32, i32
  }
  func.func @transform_1(%arg0: i32, %arg1: i32, %arg2: i32) -> (i32, i32) {
    %c0_i32 = arith.constant 0 : i32
    %c0_i32_0 = arith.constant 0 : i32
    return %arg1, %c0_i32 : i32, i32
  }
  func.func @transform_2(%arg0: i32, %arg1: i32, %arg2: i32) -> (i32, i32) {
    %c0_i32 = arith.constant 0 : i32
    %c0_i32_0 = arith.constant 0 : i32
    return %c0_i32, %arg2 : i32, i32
  }
  func.func @transform_3(%arg0: i32, %arg1: i32, %arg2: i32) -> (i32, i32, i32, i32) {
    %c0_i32 = arith.constant 0 : i32
    %c0_i32_0 = arith.constant 0 : i32
    %c0_i32_1 = arith.constant 0 : i32
    return %arg0, %c0_i32, %c0_i32_0, %arg2 : i32, i32, i32, i32
  }
  func.func @transform_4(%arg0: i32, %arg1: i32, %arg2: i32) -> (i32, i32, i32, i32) {
    %c0_i32 = arith.constant 0 : i32
    %c0_i32_0 = arith.constant 0 : i32
    %c0_i32_1 = arith.constant 0 : i32
    return %arg0, %c0_i32, %c0_i32_0, %arg2 : i32, i32, i32, i32
  }
  func.func @transform_5(%arg0: i32, %arg1: i32, %arg2: i32) -> (i32, i32, i32, i32) {
    %c0_i32 = arith.constant 0 : i32
    %c0_i32_0 = arith.constant 0 : i32
    %c0_i32_1 = arith.constant 0 : i32
    return %arg0, %c0_i32, %c0_i32_0, %arg2 : i32, i32, i32, i32
  }
  func.func @transform_6(%arg0: i32, %arg1: i32, %arg2: i32) -> (i32, i32, i32) {
    %c0_i32 = arith.constant 0 : i32
    return %arg0, %arg1, %arg2 : i32, i32, i32
  }
}

</mosaic_0001>

<bundles_post_ra>
// kernel: tpu_custom_call.1
= control target key start
LH: loop header
LB: loop body
LE: loop exit
PB: predicated region body
PF: predicated region fallthrough
CT: control target
= control target key end

     0   :  { %s13547_s0 = inlined_call_operand.vmem [shape: f32[8,36], index: 0, kind: input, shape index: {}]   ;;  %s13548_s1 = inlined_call_operand.vmem [shape: f32[8,1], index: 1, kind: input, shape index: {}]   ;;  %s13549_s2 = inlined_call_operand.hbm [shape: s32[2,4096], index: 2, kind: input, shape index: {}]   ;;  %s13550_s3 = inlined_call_operand.hbm [shape: f32[2,4,4,256], index: 3, kind: input, shape index: {}]   ;;  %s13551_s4 = inlined_call_operand.hbm [shape: f32[2,4,4,4096], index: 4, kind: input, shape index: {}]   ;;  %s13552_s5 = inlined_call_operand.hbm [shape: f32[2,4,4,256], index: 5, kind: input, shape index: {}]   ;;  %s13553_s6 = inlined_call_operand.hbm [shape: f32[2,8,4096], index: 6, kind: output, shape index: {}]  }
   0x1   :  { %14055 = sst [smem:[#allocation178_spill]] %s13547_s0 }
   0x2   :  { %14056 = sst [smem:[#allocation179_spill]] %s13548_s1 }
   0x3   :  { %14057 = sst [smem:[#allocation180_spill]] %s13549_s2 }
   0x4   :  { %14058 = sst [smem:[#allocation181_spill]] %s13550_s3 }
   0x5   :  { %14059 = sst [smem:[#allocation182_spill]] %s13553_s6 }
   0x6   :  { %11 = vsyncpa [#allocation3], 0 }
   0x7   :  { %13 = vsyncpa [#allocation3 + $0x1], 0 }
   0x8   :  { %14 = vsyncpa [#allocation6], 0 }
   0x9   :  { %16 = vsyncpa [#allocation6 + $0x1], 0 }
   0xa   :  { %17 = vsyncpa [#allocation9], 0 }
   0xb   :  { %19 = vsyncpa [#allocation9 + $0x1], 0 }
   0xc   :  { %20 = vsyncpa [#allocation4], 0 }
   0xd   :  { %22 = vsyncpa [#allocation4 + $0x1], 0  ;;  %s7232_s21 = smov 0   ;;  %s7234_s22 = smov 0  }
   0xe   :  { %s7236_s23 = smov 0   ;;  %s7238_s24 = smov 0  }
   0xf   :  { %s7240_s25 = smov 0   ;;  %s7242_s26 = smov 0  }
  0x10   :  { %s7244_s27 = smov 0   ;;  %s7246_s28 = smov 0  }
  0x11   :  { %s7248_s29 = smov 0   ;;  %s7250_s30 = smov 0  }
  0x12   :  { %s7252_s7 = smov 0  }
  0x13 LB: > { %14060 = sst [smem:[#allocation15_spill]] %s7101_s21  ;;  %p13559_p0 = scmp.eq.s32.totalorder %s7141_s7, 0  ;;  %s7141_s7 = sphi %s7252_s7, %s28_s7   ;;  %s7137_s30 = sphi %s7250_s30, %s15280_s30   ;;  %s7133_s29 = sphi %s7248_s29, %s15279_s29   ;;  %s7129_s28 = sphi %s7246_s28, %s15278_s28   ;;  %s7125_s27 = sphi %s7244_s27, %s15277_s27   ;;  %s7121_s26 = sphi %s7242_s26, %s15270_s26   ;;  %s7117_s25 = sphi %s7240_s25, %s15276_s25   ;;  %s7113_s24 = sphi %s7238_s24, %s15275_s24   ;;  %s7109_s23 = sphi %s7236_s23, %s15268_s23   ;;  %s7105_s22 = sphi %s7234_s22, %s15274_s22   ;;  %s7101_s21 = sphi %s7232_s21, %s15273_s21  }
  0x14   : > { %14061 = sst [smem:[#allocation16_spill]] %s7109_s23  ;;  %p13558_p1 = scmp.ne.s32.totalorder %s7109_s23, %s7105_s22 }
  0x15   : > { %14062 = sst [smem:[#allocation17_spill]] %s7121_s26  ;;  %p13557_p2 = scmp.lt.s32.totalorder %s7141_s7, 4 }
  0x16   : > { %14063 = sst [smem:[#allocation18_spill]] %s7125_s27  ;;  %s290_s9 = sand.u32 1, %s7141_s7  }
  0x17   : > { %14064 = sst [smem:[#allocation19_spill]] %s7129_s28  ;;  %p143_p3 = por %p13558_p1, %p13559_p0 }
  0x18   : > { %s7299_s10 = sand.u32 1, %s7109_s23   ;;  %s6625_s11 = sshll.u32 %s7137_s30, 3 }
  0x19   : > { %s13554_s12 = sshll.u32 %s7299_s10, 4  ;;  %s7304_s13 = sadd.s32 %s7133_s29, %s6625_s11 }
  0x1a   : > { %s13555_s14 = sshll.u32 %s7304_s13, 6  ;;  %s14065_s3 = sld [smem:[#allocation181_spill]] }
  0x1b   : > { %s294_s18 = scalar_lea.vmem [#allocation5], %s13554_s12  ;;  %p7320_p4 = pnand %p13557_p2, %p143_p3 }
  0x1c   : > { %s302_s19 = sshll.u32 %s294_s18, 4  ;;  %s7324_s11 = scalar_lea.sflag [#allocation6], %s290_s9  ;;  %s7316_s19 = int_to_ptr.vmem [resolvable:$true] %s302_s19 }
  0x1d   : > { %s14066_s20 = scalar_select %p7320_p4, 1, 0 }
  0x1e   : > { %p7330_p6 = pneg %p7320_p4 }
  0x20   : > { %s7312_s17 = scalar_lea.hbm %s14065_s3, %s13555_s14  ;;  %s6896_s14 = scalar_lea.hbm %s14065_s3, 1024 }
  0x21   : > { %s6891_s15 = scalar_lea.hbm %s7312_s17, 256  ;;  %p6897_p9 = scmp.lt.u32.totalorder %s7312_s17, %s14065_s3 }
  0x22   : > { %p6892_p5 = scmp.ne.s32.totalorder %s7312_s17, %s6891_s15  ;;  %p6898_p10 = scmp.lt.u32.totalorder %s6896_s14, %s6891_s15 }
  0x23   : > { %p6900_p12 = scmp.lt.u32.totalorder %s6891_s15, %s7312_s17 }
  0x24   : > { %p6894_p7 = pnand %p7330_p6, %p6892_p5  ;;  %p6899_p11 = por %p6898_p10, %p6897_p9 }
  0x26   : > { %p6895_p8 = pneg %p6894_p7  ;;  %p6901_p13 = por %p6900_p12, %p6899_p11 }
  0x28   : > { %p6902_p3 = pnand %p6901_p13, %p6895_p8 }
  0x2a   : > { %6905 = shalt.err (!%p6902_p3)
}
  0x2b   : > { %s6906_s9 = scalar_lea.vmem %s7316_s19, 256  ;;  %s7143_s12 = smov [#allocation5]  }
  0x2c   : > { %p6907_p5 = scmp.ne.s32.totalorder %s7316_s19, %s6906_s9  ;;  %s6911_s18 = sshll.u32 %s7143_s12, 4  ;;  %s6912_s18 = int_to_ptr.vmem [resolvable:$false] %s6911_s18 }
  0x2d   : > { %s6913_s6 = scalar_lea.vmem %s6912_s18, 512  ;;  %p6914_p1 = scmp.lt.s32.totalorder %s7316_s19, %s6912_s18 }
  0x2e   : > { %p6909_p7 = pnand %p6907_p5, %p7330_p6  ;;  %p6915_p0 = scmp.lt.s32.totalorder %s6913_s6, %s6906_s9 }
  0x30   : > { %p6910_p2 = pneg %p6909_p7  ;;  %p6916_p9 = por %p6915_p0, %p6914_p1 }
  0x32   : > { %p6917_p10 = pnand %p6916_p9, %p6910_p2 }
  0x34   : > { %6920 = shalt.err (!%p6917_p10)
}
  0x35   : > { %s13560_s8 = smov 128   ;;  %s13562_s14 = smov 64  }
  0x36   : > { %s13561_s15 = smov 4   ;;  %p6634_p0 = scmp.ge.s32.totalorder %s7141_s7, 1 }
  0x37   : > { %6701 = dma.hbm_to_vmem [thread:$0]  (!%p7320_p4), %s7312_s17, 256, %s7316_s19, %s7324_s11, %s13560_s8, %s13562_s14, %s13561_s15  }
  0x38   : > { %p355_p1 = scmp.lt.s32.totalorder %s7141_s7, 5  ;;  %s7364_s12 = sadd.s32 4294967295, %s7141_s7  }
  0x39   : > { %s6616_s18 = sadd.s32 4294967294, %s7141_s7   ;;  %s40_s6 = sadd.s32 1, %s7133_s29 }
  0x3a   : > { %p7359_p2 = pnand %p6634_p0, %p355_p1  ;;  %p41_p8 = scmp.ge.s32.totalorder %s40_s6, 2 }
  0x3b   : > { %s47_s3 = sadd.s32 1, %s7137_s30  ;;  %s106_s17 = sadd.s32 1, %s7121_s26 }
  0x3c   : > { %s14068_s9 = scalar_select %p7359_p2, 1, 0 }
  0x3d   : > { %p113_p11 = scmp.ne.s32.totalorder %s7121_s26, %s7117_s25  ;;  %s15282_s6 = smov (%p41_p8, %s40_s6), 0 }
  0x3e   : > { %14069 = sst [smem:[#allocation20_spill]] %s15282_s6  ;;  %s15284_s3 = smov (!%p41_p8, %s47_s3), %s7137_s30 }
  0x3f   : > { %s103_s19 = ssub.s32 %s7133_s29, %s15282_s6  ;;  %p14070_p12 = scmp.eq.s32.totalorder %s7141_s7, 0 }
  0x40   : > { %p49_p3 = scmp.ge.s32.totalorder %s15284_s3, 2  ;;  %p104_p5 = scmp.eq.s32.totalorder %s103_s19, 0 }
  0x41   : > { %p7379_p13 = por %p14070_p12, %p113_p11  ;;  %p119_p7 = scmp.ne.s32.totalorder %s7117_s25, %s7113_s24 }
  0x42   : > { %p120_p9 = scmp.eq.s32.totalorder %s7364_s12, 0  ;;  %s15286_s3 = smov (%p49_p3, %s15284_s3), 0 }
  0x43   : > { %14072 = sst [smem:[#allocation21_spill]] %s15286_s3  ;;  %s129_s6 = ssub.s32 %s7137_s30, %s15286_s3 }
  0x44   : > { %s7389_s15 = scalar_select %p104_p5, %s7121_s26, %s106_s17  }
  0x45   : > { %p7391_p10 = por %p120_p9, %p119_p7  ;;  %s131_s28 = sor.u32 %s129_s6, %s103_s19 }
  0x46   : > { %14073 = sst [smem:[#allocation22_spill]] %s7389_s15  ;;  %p147_p0 = scmp.ne.s32.totalorder %s7105_s22, %s7101_s21 }
  0x47   : > { %s14074_s14 = scalar_select %p7391_p10, 1, 0 }
  0x48   : > { %p132_p1 = scmp.eq.s32.totalorder %s131_s28, 0  ;;  %p231_p8 = scmp.eq.s32.totalorder %s7364_s12, 3 }
  0x49   : > { %p7400_p11 = por %p147_p0, %p120_p9  ;;  %p237_p12 = scmp.eq.s32.totalorder %s6616_s18, 3 }
  0x4a   : > { %s14076_s27 = sadd.s32 1, %s7109_s23  ;;  %p14078_p3 = scmp.ne.s32.totalorder %s7109_s23, %s7105_s22 }
  0x4b   : > { %s14075_s24 = scalar_select %p7400_p11, 1, 0 }
  0x4c   : > { %s7407_s17 = scalar_select %p132_p1, %s7109_s23, %s14076_s27  }
  0x4d   : > { %p7412_p5 = por %p231_p8, %p14078_p3  ;;  %p7416_p7 = por %p237_p12, %p147_p0 }
  0x4e   : > { %14077 = sst [smem:[#allocation23_spill]] %s7407_s17  ;;  %s271_s6 = sand.u32 1, %s7121_s26  }
  0x4f   : > { %s14079_s15 = scalar_select %p7412_p5, 1, 0 }
  0x50   : > { %s14080_s3 = scalar_select %p7416_p7, 1, 0 }
  0x51   : > { %s6684_s28 = sshll.u32 %s7133_s29, 9  ;;  %s6621_s19 = sshll.u32 %s271_s6, 5 }
  0x52   : > { %14081 = sst [smem:[#allocation24_spill]] %s14080_s3  ;;  %s14082_s2 = sld [smem:[#allocation180_spill]] }
  0x53   : > { %s275_s27 = scalar_lea.vmem [#allocation2], %s6621_s19  ;;  %p14083_p9 = scmp.lt.s32.totalorder %s7141_s7, 4 }
  0x54   : > { %s283_s18 = sshll.u32 %s275_s27, 4  ;;  %s6627_s26 = sshll.u32 %s7299_s10, 8  ;;  %s7435_s18 = int_to_ptr.vmem [resolvable:$true] %s283_s18 }
  0x55   : > { %p7431_p0 = pnand %p14083_p9, %p7379_p13  ;;  %s272_s1 = scalar_lea.sflag [#allocation3], %s271_s6 }
  0x57   : > { %p6923_p8 = pneg %p7431_p0 }
  0x58   : > { %s7425_s0 = scalar_lea.hbm %s14082_s2, %s6684_s28  ;;  %s6926_s19 = scalar_lea.hbm %s14082_s2, 1024 }
  0x59   : > { %s6921_s21 = scalar_lea.hbm %s7425_s0, 512  ;;  %p6927_p13 = scmp.lt.u32.totalorder %s7425_s0, %s14082_s2 }
  0x5a   : > { %p6922_p1 = scmp.ne.s32.totalorder %s7425_s0, %s6921_s21  ;;  %p6928_p9 = scmp.lt.u32.totalorder %s6926_s19, %s6921_s21 }
  0x5b   : > { %p6930_p5 = scmp.lt.u32.totalorder %s6921_s21, %s7425_s0 }
  0x5c   : > { %p6924_p12 = pnand %p6923_p8, %p6922_p1  ;;  %p6929_p7 = por %p6928_p9, %p6927_p13 }
  0x5e   : > { %p6925_p3 = pneg %p6924_p12  ;;  %p6931_p11 = por %p6930_p5, %p6929_p7 }
  0x60   : > { %p6932_p10 = pnand %p6931_p11, %p6925_p3 }
  0x62   : > { %6935 = shalt.err (!%p6932_p10)
}
  0x63   : > { %s6936_s6 = scalar_lea.vmem %s7435_s18, 512  ;;  %s7147_s8 = smov [#allocation2]  }
  0x64   : > { %p6937_p1 = scmp.ne.s32.totalorder %s7435_s18, %s6936_s6  ;;  %s6941_s28 = sshll.u32 %s7147_s8, 4  ;;  %s6942_s28 = int_to_ptr.vmem [resolvable:$false] %s6941_s28 }
  0x65   : > { %s6943_s23 = scalar_lea.vmem %s6942_s28, 1024  ;;  %p6944_p4 = scmp.lt.s32.totalorder %s7435_s18, %s6942_s28 }
  0x66   : > { %p6939_p12 = pnand %p6937_p1, %p6923_p8  ;;  %p6945_p13 = scmp.lt.s32.totalorder %s6943_s23, %s6936_s6 }
  0x68   : > { %p6940_p2 = pneg %p6939_p12  ;;  %p6946_p9 = por %p6945_p13, %p6944_p4 }
  0x6a   : > { %p6947_p5 = pnand %p6946_p9, %p6940_p2 }
  0x6c   : > { %6950 = shalt.err (!%p6947_p5)
}
  0x6d   : > { %6698 = dma.hbm_to_vmem [thread:$0]  (!%p7431_p0), %s7425_s0, 512, %s7435_s18, %s272_s1  }
  0x6e   : > { %s6628_s21 = sshll.u32 %s7133_s29, 4  ;;  %s6629_s19 = sshll.u32 %s7137_s30, 7 }
  0x6f   : > { %s322_s27 = sadd.s32 %s6629_s19, %s6628_s21  ;;  %s316_s8 = scalar_lea.vmem [#allocation7], %s6627_s26 }
  0x70   : > { %s325_s2 = sshll.u32 %s316_s8, 4  ;;  %s6630_s28 = sshll.u32 %s322_s27, 6  ;;  %s7467_s2 = int_to_ptr.vmem [resolvable:$true] %s325_s2 }
  0x71   : > { %s7472_s17 = scalar_lea.hbm %s13551_s4, %s6630_s28  ;;  %s6956_s18 = scalar_lea.hbm %s13551_s4, 16384 }
  0x72   : > { %s6951_s3 = scalar_lea.hbm %s7472_s17, 4096  ;;  %p6957_p11 = scmp.lt.u32.totalorder %s7472_s17, %s13551_s4 }
  0x73   : > { %p6952_p4 = scmp.ne.s32.totalorder %s7472_s17, %s6951_s3  ;;  %p6958_p7 = scmp.lt.u32.totalorder %s6956_s18, %s6951_s3 }
  0x74   : > { %p6960_p8 = scmp.lt.u32.totalorder %s6951_s3, %s7472_s17 }
  0x75   : > { %p6954_p2 = pnand %p6952_p4, %p7330_p6  ;;  %p6959_p0 = por %p6958_p7, %p6957_p11 }
  0x77   : > { %p6955_p10 = pneg %p6954_p2  ;;  %p6961_p3 = por %p6960_p8, %p6959_p0 }
  0x79   : > { %p6962_p1 = pnand %p6961_p3, %p6955_p10 }
  0x7b   : > { %6965 = shalt.err (!%p6962_p1)
}
  0x7c   : > { %s6966_s19 = scalar_lea.vmem %s7467_s2, 4096  ;;  %s7148_s27 = smov [#allocation7]  }
  0x7d   : > { %p6967_p12 = scmp.ne.s32.totalorder %s7467_s2, %s6966_s19  ;;  %s6971_s8 = sshll.u32 %s7148_s27, 4  ;;  %s6972_s8 = int_to_ptr.vmem [resolvable:$false] %s6971_s8 }
  0x7e   : > { %s6973_s28 = scalar_lea.vmem %s6972_s8, 8192  ;;  %p6974_p5 = scmp.lt.s32.totalorder %s7467_s2, %s6972_s8 }
  0x7f   : > { %p6969_p13 = pnand %p6967_p12, %p7330_p6  ;;  %p6975_p4 = scmp.lt.s32.totalorder %s6973_s28, %s6966_s19 }
  0x81   : > { %p6970_p9 = pneg %p6969_p13  ;;  %p6976_p2 = por %p6975_p4, %p6974_p5 }
  0x83   : > { %p6977_p11 = pnand %p6976_p2, %p6970_p9 }
  0x85   : > { %6980 = shalt.err (!%p6977_p11)
}
  0x86   : > { %s7149_s3 = smov 2048   ;;  %s7150_s6 = smov 1024  }
  0x87   : > { %p14085_p10 = scmp.ne.s32.totalorder %s14066_s20, 0  ;;  %s14086_s23 = smov 64  }
  0x88   : > { %s14087_s0 = sshll.u32 %s7304_s13, 6  ;;  %s14088_s21 = sshll.u32 %s7299_s10, 4 }
  0x89   : > { %6704 = dma.hbm_to_vmem [thread:$0]  (!%p14085_p10), %s7472_s17, 4096, %s7467_s2, %s7324_s11, %s7149_s3, %s7150_s6, %s14086_s23  }
  0x8a   : > { %s7502_s1 = scalar_lea.hbm %s13552_s5, %s14087_s0  ;;  %s339_s19 = scalar_lea.vmem [#allocation8], %s14088_s21 }
  0x8b   : > { %s347_s27 = sshll.u32 %s339_s19, 4  ;;  %s336_s8 = scalar_lea.sflag [#allocation9], %s7299_s10  ;;  %s7506_s27 = int_to_ptr.vmem [resolvable:$true] %s347_s27 }
  0x8c   : > { %s6981_s28 = scalar_lea.hbm %s7502_s1, 256  ;;  %s6986_s11 = scalar_lea.hbm %s13552_s5, 1024 }
  0x8d   : > { %p6982_p7 = scmp.ne.s32.totalorder %s7502_s1, %s6981_s28  ;;  %p6987_p3 = scmp.lt.u32.totalorder %s7502_s1, %s13552_s5 }
  0x8e   : > { %p6988_p1 = scmp.lt.u32.totalorder %s6986_s11, %s6981_s28  ;;  %p6990_p13 = scmp.lt.u32.totalorder %s6981_s28, %s7502_s1 }
  0x8f   : > { %p6984_p0 = pnand %p6982_p7, %p7330_p6 }
  0x90   : > { %p6989_p12 = por %p6988_p1, %p6987_p3 }
  0x91   : > { %p6985_p8 = pneg %p6984_p0 }
  0x92   : > { %p6991_p9 = por %p6990_p13, %p6989_p12 }
  0x94   : > { %p6992_p5 = pnand %p6991_p9, %p6985_p8 }
  0x96   : > { %6995 = shalt.err (!%p6992_p5)
}
  0x97   : > { %s6996_s6 = scalar_lea.vmem %s7506_s27, 256  ;;  %s7151_s0 = smov [#allocation8]  }
  0x98   : > { %p6997_p4 = scmp.ne.s32.totalorder %s7506_s27, %s6996_s6  ;;  %s7001_s26 = sshll.u32 %s7151_s0, 4  ;;  %s7002_s26 = int_to_ptr.vmem [resolvable:$false] %s7001_s26 }
  0x99   : > { %s7003_s18 = scalar_lea.vmem %s7002_s26, 512  ;;  %p7004_p7 = scmp.lt.s32.totalorder %s7506_s27, %s7002_s26 }
  0x9a   : > { %p6999_p2 = pnand %p6997_p4, %p7330_p6  ;;  %p7005_p0 = scmp.lt.s32.totalorder %s7003_s18, %s6996_s6 }
  0x9c   : > { %p7000_p11 = pneg %p6999_p2  ;;  %p7006_p3 = por %p7005_p0, %p7004_p7 }
  0x9e   : > { %p7007_p1 = pnand %p7006_p3, %p7000_p11 }
  0xa0   : > { %7010 = shalt.err (!%p7007_p1)
}
  0xa1   : > { %s14089_s21 = smov 4   ;;  %s14090_s19 = smov 128  }
  0xa2   : > { %6707 = dma.hbm_to_vmem [thread:$0]  (!%p14085_p10), %s7502_s1, 256, %s7506_s27, %s336_s8, %s14090_s19, %s14086_s23, %s14089_s21  }
  0xa3   : > { %p14091_p6 = scmp.ne.s32.totalorder %s14068_s9, 0 }
  0xa5   : > { %359 = sbr.rel (%p14091_p6) target bundleno = 994 (0x3e2), region = 44 }
  0xac   : > { %s361_s16 = sand.u32 1, %s7117_s25   ;;  %p14092_p8 = scmp.ne.s32.totalorder %s14074_s14, 0 }
  0xad   : > { %s6635_s28 = sshll.u32 %s361_s16, 5  ;;  %s362_s2 = scalar_lea.sflag [#allocation3], %s361_s16 }
  0xae   : > { %s7538_s13 = scalar_lea.vmem [#allocation2], %s6635_s28 }
  0xaf   : > { %7084 = dma.done.wait (%p14092_p8), %s362_s2, 512  }
  0xb0   : > { %7086 = vsyncadd (%p14092_p8), %s362_s2, 4294966784  ;;  %s370_s10 = sand.u32 1, %s7364_s12   ;;  %s7546_s20 = sand.u32 1, %s7105_s22  }
  0xb1   : > { %s6636_s9 = sshll.u32 %s7546_s20, 4  ;;  %s371_s23 = scalar_lea.sflag [#allocation6], %s370_s10 }
  0xb2   : > { %s374_s1 = scalar_lea.vmem [#allocation5], %s6636_s9  ;;  %p14093_p10 = scmp.ne.s32.totalorder %s14075_s24, 0 }
  0xb4   : > { %7088 = dma.done.wait (%p14093_p10), %s371_s23, 4352  }
  0xb5   : > { %7090 = vsyncadd (%p14093_p10), %s371_s23, 4294962944  ;;  %s6637_s14 = sshll.u32 %s7546_s20, 8  ;;  %s389_s8 = scalar_lea.sflag [#allocation9], %s7546_s20 }
  0xb6   : > { %s7554_s27 = scalar_lea.vmem [#allocation7], %s6637_s14  ;;  %s7557_s11 = scalar_lea.vmem [#allocation8], %s6636_s9 }
  0xb7   : > { %7092 = dma.done.wait (%p14093_p10), %s389_s8, 256  }
  0xb8   : > { %7094 = vsyncadd (%p14093_p10), %s389_s8, 4294967040  ;;  %v13576_v0 = vmov 0   ;;  %v7153_v1 = vmov 1   ;;  %v514_v2 = vld [vmem:[%s374_s1] sm:$0xf]  ;;  %v456_v6 = vld [vmem:[%s7554_s27 + $0x8] sm:$0xff] }
  0xb9   : > { %6851 = vset.pattern.permute.xlu1 %v13576_v0  ;;  %6852 = vset.pattern.permute.xlu0 %v7153_v1  ;;  %v6664_v3 = vld [vmem:[%s374_s1 + $0x4] sm:$0xf]  ;;  %v6665_v4 = vld [vmem:[%s374_s1 + $0x8] sm:$0xf]  ;;  %v6666_v8 = vld [vmem:[%s374_s1 + $0xc] sm:$0xf] }
  0xba   : > { %v517_v5 = vmax.f32 %v514_v2, %v6664_v3  ;;  %v6641_v7 = vld [vmem:[%s7554_s27 + $0x48] sm:$0xff]  ;;  %v457_v11 = vld [vmem:[%s7554_s27 + $0x10] sm:$0xff]  ;;  %v455_v18 = vld [vmem:[%s7554_s27] sm:$0xff]  ;;  %s7154_s12 = smov 49   ;;  %s14110_s3 = sld [smem:[#allocation178_spill]] }
  0xbb   : > { %v473_v9 = vmax.f32 %v456_v6, %v6641_v7  ;;  %v6649_v10 = vld [vmem:[%s7554_s27 + $0x88] sm:$0xff]  ;;  %v6642_v14 = vld [vmem:[%s7554_s27 + $0x50] sm:$0xff]  ;;  %v6640_v19 = vld [vmem:[%s7554_s27 + $0x40] sm:$0xff]  ;;  %s7156_s6 = smov 48   ;;  %s7160_s0 = smov 47  }
  0xbc   : > { %v520_v12 = vmax.f32 %v517_v5, %v6665_v4  ;;  %v6657_v13 = vld [vmem:[%s7554_s27 + $0xc8] sm:$0xff]  ;;  %v6650_v15 = vld [vmem:[%s7554_s27 + $0x90] sm:$0xff]  ;;  %v474_v17 = vmax.f32 %v457_v11, %v6642_v14  ;;  %v6648_v20 = vld [vmem:[%s7554_s27 + $0x80] sm:$0xff]  ;;  %v472_v23 = vmax.f32 %v455_v18, %v6640_v19  ;;  %v7155_v11 = vmov 2   ;;  %s7165_s26 = smov 1   ;;  %s7172_s18 = smov 127  }
  0xbd   : > { %v490_v16 = vmax.f32 %v473_v9, %v6649_v10  ;;  %v6658_v22 = vld [vmem:[%s7554_s27 + $0xd0] sm:$0xff]  ;;  %v458_v24 = vld [vmem:[%s7554_s27 + $0x18] sm:$0xff]  ;;  %v6656_v28 = vld [vmem:[%s7554_s27 + $0xc0] sm:$0xff]  ;;  %v7159_v14 = vmov 4   ;;  %s7179_s16 = smov 81   ;;  %s7184_s28 = smov 80  }
  0xbe   : > { %v7574_v21 = vmax.f32 %v520_v12, %v6666_v8  ;;  %v6643_v25 = vld [vmem:[%s7554_s27 + $0x58] sm:$0xff]  ;;  %v491_v27 = vmax.f32 %v474_v17, %v6650_v15  ;;  %v459_v31 = vld [vmem:[%s7554_s27 + $0x20] sm:$0xff]  ;;  %v489_v32 = vmax.f32 %v472_v23, %v6648_v20  ;;  %v460_v44 = vld [vmem:[%s7554_s27 + $0x28] sm:$0xff]  ;;  %v7157_v12 = vmov 5   ;;  %s7191_s10 = smov 79   ;;  %s14603_s1 = sld [smem:[#allocation179_spill]] }
  0xbf   : > { %v7579_v26 = vmax.f32 %v490_v16, %v6657_v13  ;;  %v475_v29 = vmax.f32 %v458_v24, %v6643_v25  ;;  %v6651_v30 = vld [vmem:[%s7554_s27 + $0x98] sm:$0xff]  ;;  %v6644_v33 = vld [vmem:[%s7554_s27 + $0x60] sm:$0xff]  ;;  %v6645_v45 = vld [vmem:[%s7554_s27 + $0x68] sm:$0xff]  ;;  %v7158_v13 = vmov 3   ;;  %v7161_v15 = vmov 9   ;;  %s15252_s14 = sld [smem:[#allocation18_spill]] }
  0xc0   : > { %732 = vrot.lane.b32.xlu0 %v7574_v21, %s7154_s12  ;;  %v7589_v34 = vmax.f32 %v491_v27, %v6658_v22  ;;  %v476_v36 = vmax.f32 %v459_v31, %v6644_v33  ;;  %v7591_v37 = vmax.f32 %v489_v32, %v6656_v28  ;;  %v6659_v38 = vld [vmem:[%s7554_s27 + $0xd8] sm:$0xff]  ;;  %v6652_v39 = vld [vmem:[%s7554_s27 + $0xa0] sm:$0xff]  ;;  %v477_v48 = vmax.f32 %v460_v44, %v6645_v45  ;;  %v6653_v49 = vld [vmem:[%s7554_s27 + $0xa8] sm:$0xff]  ;;  %s15261_s21 = sld [smem:[#allocation182_spill]]  ;;  %p15263_p13 = scmp.ne.s32.totalorder %s14079_s15, 0 }
  0xc1   : > { %14094 = vst [vmem:[#allocation25_spill] sm:$0xff] %v7579_v26  ;;  %738 = vrot.lane.b32.xlu1 %v7579_v26, %s7154_s12  ;;  %v492_v35 = vmax.f32 %v475_v29, %v6651_v30  ;;  %v7599_v40 = vcombine.high %v7579_v26, %v7579_v26  ;;  %v6660_v43 = vld [vmem:[%s7554_s27 + $0xe0] sm:$0xff]  ;;  %v461_v50 = vld [vmem:[%s7554_s27 + $0x30] sm:$0xff]  ;;  %v6661_v55 = vld [vmem:[%s7554_s27 + $0xe8] sm:$0xff]  ;;  %v7162_v16 = vmov 6   ;;  %v7163_v17 = vmov 7  }
  0xc2   : > { %14095 = vst [vmem:[#allocation26_spill] sm:$0xff] %v7589_v34  ;;  %14096 = vst [vmem:[#allocation27_spill] sm:$0xff] %v7591_v37  ;;  %v493_v42 = vmax.f32 %v476_v36, %v6652_v39  ;;  %v7612_v46 = vcombine.high %v7589_v34, %v7589_v34  ;;  %v6646_v51 = vld [vmem:[%s7554_s27 + $0x70] sm:$0xff]  ;;  %v7631_v53 = vcombine.high %v7591_v37, %v7591_v37  ;;  %v462_v58 = vld [vmem:[%s7554_s27 + $0x38] sm:$0xff]  ;;  %v7164_v23 = vmov 8  }
  0xc3   : > { %14097 = vst [vmem:[#allocation28_spill] sm:$0xff] %v7599_v40  ;;  %v7603_v41 = vmax.f32 %v492_v35, %v6659_v38  ;;  %v494_v54 = vmax.f32 %v477_v48, %v6653_v49  ;;  %v478_v56 = vmax.f32 %v461_v50, %v6646_v51  ;;  %v6654_v57 = vld [vmem:[%s7554_s27 + $0xb0] sm:$0xff]  ;;  %v6647_v59 = vld [vmem:[%s7554_s27 + $0x78] sm:$0xff]  ;;  %v7681_v10 = vld [vmem:[%s14110_s3] sm:$0xff]  ;;  %v587_v28 = vlaneseq }
  0xc4   : > { %734 = vrot.lane.b32.xlu0 %v7591_v37, %s7154_s12  ;;  %14099 = vst [vmem:[#allocation30_spill] sm:$0xff] %v7612_v46  ;;  %v7616_v47 = vmax.f32 %v493_v42, %v6660_v43  ;;  %14102 = vst [vmem:[#allocation33_spill] sm:$0xff] %v7631_v53  ;;  %v479_v63 = vmax.f32 %v462_v58, %v6647_v59  ;;  %v6662_v1 = vld [vmem:[%s7554_s27 + $0xf0] sm:$0xff]  ;;  %v6655_v2 = vld [vmem:[%s7554_s27 + $0xb8] sm:$0xff]  ;;  %v14116_v31 = vmov 0  ;;  %v14120_v36 = vmov 0 }
  0xc5   : > { %742 = vrot.lane.b32.xlu1 %v7589_v34, %s7154_s12  ;;  %14098 = vst [vmem:[#allocation29_spill] sm:$0xff] %v7603_v41  ;;  %v7625_v52 = vcombine.high %v7603_v41, %v7603_v41  ;;  %v7645_v61 = vmax.f32 %v494_v54, %v6661_v55  ;;  %v495_v62 = vmax.f32 %v478_v56, %v6654_v57  ;;  %v6663_v6 = vld [vmem:[%s7554_s27 + $0xf8] sm:$0xff]  ;;  %v7716_v18 = vld [vmem:[%s7538_s13] sm:$0xff]  ;;  %v7720_v19 = vld [vmem:[%s7538_s13 + $0x8] sm:$0xff]  ;;  %v7765_v32 = vshrl.u32 %v587_v28, 7  ;;  %s15254_s27 = sld [smem:[#allocation19_spill]] }
  0xc6   : > { %14100 = vst [vmem:[#allocation31_spill] sm:$0xff] %v7616_v47  ;;  %v7641_v60 = vcombine.high %v7616_v47, %v7616_v47  ;;  %v496_v5 = vmax.f32 %v479_v63, %v6655_v2  ;;  %14111 = vst [vmem:[#allocation41_spill] sm:$0xff] %v7716_v18  ;;  %vm554_vm0 = vcmp.ge.s32.totalorder %v7716_v18, 1  ;;  %vm555_vm1 = vcmp.ge.s32.totalorder %v7720_v19, 1  ;;  %v7729_v20 = vld [vmem:[%s7538_s13 + $0x10] sm:$0xff]  ;;  %v7745_v25 = vld [vmem:[%s7538_s13 + $0x18] sm:$0xff]  ;;  %s15262_s19 = smov %s15261_s21 }
  0xc7   : > { %14101 = vst [vmem:[#allocation32_spill] sm:$0xff] %v7625_v52  ;;  %14104 = vst [vmem:[#allocation35_spill] sm:$0xff] %v7645_v61  ;;  %v7653_v3 = vcombine.high %v7645_v61, %v7645_v61  ;;  %v7657_v4 = vmax.f32 %v495_v62, %v6662_v1  ;;  %v7734_v22 = vsel %vm554_vm0, 1, %v13576_v0  ;;  %v7741_v24 = vsel %vm555_vm1, 1, %v13576_v0  ;;  %s6679_s8 = sshll.u32 %s15252_s14, 4  ;;  %s7196_s13 = smov [#allocation10]  }
  0xc8   : > { %740 = vrot.lane.b32.xlu0 %v7599_v40, %s7154_s12  ;;  %14103 = vst [vmem:[#allocation34_spill] sm:$0xff] %v7641_v60  ;;  %v7668_v8 = vmax.f32 %v496_v5, %v6663_v6  ;;  %14112 = vst [vmem:[#allocation42_spill] sm:$0xff] %v7720_v19  ;;  %vm556_vm2 = vcmp.ge.s32.totalorder %v7729_v20, 1  ;;  %v6670_v27 = vrot.slane %v7734_v22, 9  ;;  %v6671_v29 = vrot.slane %v7741_v24, 9 }
  0xc9   : > { %746 = vrot.lane.b32.xlu1 %v7603_v41, %s7154_s12  ;;  %14105 = vst [vmem:[#allocation36_spill] sm:$0xff] %v7653_v3  ;;  %14106 = vst [vmem:[#allocation37_spill] sm:$0xff] %v7657_v4  ;;  %v7664_v7 = vcombine.high %v7657_v4, %v7657_v4  ;;  %v7754_v30 = vsel %vm556_vm2, 1, %v13576_v0  ;;  %vm557_vm3 = vcmp.ge.s32.totalorder %v7745_v25, 1  ;;  %v7791_v39 = vsub.s32 6, %v7765_v32 }
  0xca   : > { %14108 = vst [vmem:[#allocation39_spill] sm:$0xff] %v7668_v8  ;;  %v7674_v9 = vcombine.high %v7668_v8, %v7668_v8  ;;  %14113 = vst [vmem:[#allocation43_spill] sm:$0xff] %v7729_v20  ;;  %vm7761_vm4 = vcmp.ne.s32.totalorder %v6670_v27, 0  ;;  %v6672_v33 = vrot.slane %v7754_v30, 9  ;;  %v7771_v35 = vsel %vm557_vm3, 1, %v13576_v0 }
  0xcb   : > { %14107 = vst [vmem:[#allocation38_spill] sm:$0xff] %v7664_v7  ;;  %14114 = vst [vmem:[#allocation44_spill] sm:$0xff] %v7734_v22  ;;  %v14117_v31 = vsel %vm7761_vm4, 4294967295, %v14116_v31  ;;  %vm7773_vm5 = vcmp.ne.s32.totalorder %v6671_v29, 0  ;;  %v6673_v38 = vrot.slane %v7771_v35, 9  ;;  %v14124_v42 = vmov 0 }
  0xcc   : > { %744 = vrot.lane.b32.xlu0 %v7612_v46, %s7154_s12  ;;  %14109 = vst [vmem:[#allocation40_spill] sm:$0xff] %v7674_v9  ;;  %14115 = vst [vmem:[#allocation45_spill] sm:$0xff] %v7745_v25  ;;  %v14121_v36 = vsel %vm7773_vm5, 4294967295, %v14120_v36  ;;  %vm7793_vm8 = vcmp.ne.s32.totalorder %v6672_v33, 0  ;;  %v7801_v44 = vsub.s32 0, %v7765_v32  ;;  %v7804_v45 = vsub.s32 2, %v7765_v32 }
  0xcd   : > { %750 = vrot.lane.b32.xlu1 %v7616_v47, %s7154_s12  ;;  %14118 = vst [vmem:[#allocation46_spill] sm:$0xff] %v14117_v31  ;;  %14119 = vst [vmem:[#allocation47_spill] sm:$0xff] %v7765_v32  ;;  %v14125_v42 = vsel %vm7793_vm8, 4294967295, %v14124_v42  ;;  %v7810_v49 = vsub.s32 4, %v7765_v32  ;;  %vm7816_vm10 = vcmp.ne.s32.totalorder %v6673_v38, 0  ;;  %v14128_v50 = vmov 0 }
  0xce   : > { %14122 = vst [vmem:[#allocation48_spill] sm:$0xff] %v14121_v36  ;;  %vm579_vm6 = vmand %vm554_vm0, %vm7761_vm4  ;;  %v14129_v50 = vsel %vm7816_vm10, 4294967295, %v14128_v50  ;;  %v7834_v58 = vsub.s32 1, %v7765_v32  ;;  %v7837_v59 = vsub.s32 3, %v7765_v32  ;;  %vm13635_vm12 = vcmp.le.s32.totalorder %v7716_v18, 46 }
  0xcf   : > { %vm580_vm7 = vmand %vm555_vm1, %vm7773_vm5  ;;  %14123 = vst [vmem:[#allocation49_spill] sm:$0xff] %v7791_v39  ;;  %v583_v43 = vsel %vm579_vm6, 1, %v13576_v0  ;;  %vm13625_vm13 = vcmp.le.s32.totalorder %v7720_v19, 46  ;;  %vm13624_vm14 = vcmp.le.s32.totalorder %v7729_v20, 46  ;;  %vm13612_vm15 = vcmp.le.s32.totalorder %v7745_v25, 46 }
  0xd0   : > { %748 = vrot.lane.b32.xlu0 %v7625_v52, %s7154_s12  ;;  %14126 = vst [vmem:[#allocation50_spill] sm:$0xff] %v14125_v42  ;;  %v584_v48 = vsel %vm580_vm7, 1, %v13576_v0  ;;  %14127 = vst [vmem:[#allocation51_spill] sm:$0xff] %v7810_v49  ;;  %v590_v51 = vrot.slane %v583_v43, %v7801_v44  ;;  %v602_v54 = vrot.slane %v583_v43, %v7791_v39  ;;  %v14135_v36 = vmov 0  }
  0xd1   : > { %736 = vrot.lane.b32.xlu1 %v7631_v53, %s7154_s12  ;;  %vm581_vm9 = vmand %vm556_vm2, %vm7793_vm8  ;;  %14130 = vst [vmem:[#allocation52_spill] sm:$0xff] %v14129_v50  ;;  %v606_v55 = vrot.slane %v584_v48, %v7801_v44  ;;  %v610_v56 = vrot.slane %v584_v48, %v7804_v45  ;;  %v614_v62 = vrot.slane %v584_v48, %v7810_v49  ;;  %v7166_v50 = vmov 13  }
  0xd2   : > { %v585_v57 = vsel %vm581_vm9, 1, %v13576_v0  ;;  %vm582_vm11 = vmand %vm557_vm3, %vm7816_vm10  ;;  %v7843_v1 = vrot.slane %v590_v51, %v7801_v44  ;;  %v7846_v2 = vrot.slane %v602_v54, %v7801_v44  ;;  %v594_v5 = vrot.slane %v583_v43, %v7804_v45 }
  0xd3   : > { %v630_v27 = vrot.slane %v585_v57, %v7810_v49  ;;  %v634_v28 = vrot.slane %v585_v57, %v7791_v39  ;;  %v1235_v31 = vrot.slane %v7741_v24, %v7801_v44  ;;  %v1243_v32 = vrot.slane %v7741_v24, %v7810_v49 }
  0xd4   : > { %752 = vrot.lane.b32.xlu0 %v7641_v60, %s7154_s12  ;;  %v1251_v18 = vrot.slane %v7754_v30, %v7801_v44  ;;  %v1275_v19 = vrot.slane %v7771_v35, %v7810_v49 }
  0xd5   : > { %754 = vrot.lane.b32.xlu1 %v7645_v61, %s7154_s12 }
  0xd8   : > { %756 = vrot.lane.b32.xlu0 %v7653_v3, %s7154_s12 }
  0xd9   : > { %758 = vrot.lane.b32.xlu1 %v7657_v4, %s7154_s12 }
  0xdc   : > { %760 = vrot.lane.b32.xlu0 %v7664_v7, %s7154_s12 }
  0xdd   : > { %762 = vrot.lane.b32.xlu1 %v7668_v8, %s7154_s12 }
  0xe0   : > { %764 = vrot.lane.b32.xlu0 %v7674_v9, %s7154_s12  ;;  %s6639_s12 = sshll.u32 %s7546_s20, 7 }
  0xe1   : > { %817 = vperm.xlu1 %6851, %v7681_v10  }
  0xe4   : > { %917 = vperm.xlu0 %6852, %v7681_v10  }
  0xe5   : > { %6853 = vset.pattern.permute.xlu1 %v7155_v11  ;;  %v618_v11 = vrot.slane %v584_v48, %v7791_v39  ;;  %v7880_v48 = vsel %vm13635_vm12, 1, %v13576_v0 }
  0xe6   : > { %1017 = vperm.xlu1 %6853, %v7681_v10   ;;  %14131 = vst [vmem:[#allocation53_spill] sm:$0xff] %v7880_v48 }
  0xe7   : > { %v7883_v51 = vrot.slane %v618_v11, %v7801_v44 }
  0xe8   : > { %1360 = vrot.lane.b32.xlu0 %v7574_v21, %s7156_s6 }
  0xe9   : > { %6856 = vset.pattern.permute.xlu0 %v7157_v12  ;;  %v622_v12 = vrot.slane %v585_v57, %v7801_v44 }
  0xea   : > { %6854 = vset.pattern.permute.xlu1 %v7158_v13  ;;  %v586_v13 = vsel %vm582_vm11, 1, %v13576_v0 }
  0xeb   : > { %1117 = vperm.xlu1 %6854, %v7681_v10   ;;  %v638_v33 = vrot.slane %v586_v13, %v7801_v44  ;;  %v642_v38 = vrot.slane %v586_v13, %v7804_v45  ;;  %v7886_v54 = vrot.slane %v622_v12, %v7801_v44  ;;  %v7905_v12 = vsel %vm13625_vm13, 1, %v13576_v0 }
  0xec   : > { %1364 = vrot.lane.b32.xlu0 %v7631_v53, %s7156_s6  ;;  %14132 = vst [vmem:[#allocation54_spill] sm:$0xff] %v7905_v12 }
  0xef   : > { %1362 = vrot.lane.b32.xlu1 %v7591_v37, %s7156_s6 }
  0xf0   : > { %1368 = vrot.lane.b32.xlu0 %v7599_v40, %s7156_s6  ;;  %6855 = vset.pattern.permute.xlu1 %v7159_v14  ;;  %v7857_v14 = vrot.slane %v606_v55, %v7801_v44  ;;  %v650_v55 = vrot.slane %v586_v13, %v7791_v39 }
  0xf2   : > { %v7931_v42 = vrot.slane %v650_v55, %v7801_v44  ;;  %v7946_v55 = vsel %vm13624_vm14, 1, %v14135_v36  ;;  %vm718_vm14 = vcmp.eq.s32.totalorder %v7846_v2, 1  ;;  %vm719_vm13 = vcmp.eq.s32.totalorder %v7857_v14, 1 }
  0xf3   : > { %1366 = vrot.lane.b32.xlu1 %v7579_v26, %s7156_s6  ;;  %14136 = vst [vmem:[#allocation57_spill] sm:$0xff] %v7946_v55 }
  0xf4   : > { %1372 = vrot.lane.b32.xlu0 %v7612_v46, %s7156_s6  ;;  %14134 = vst [vmem:[#allocation56_spill] sm:$0xff] %v7931_v42  ;;  %v1247_v42 = vrot.slane %v7741_v24, %v7791_v39 }
  0xf7   : > { %1370 = vrot.lane.b32.xlu1 %v7589_v34, %s7156_s6 }
  0xf8   : > { %1376 = vrot.lane.b32.xlu0 %v7625_v52, %s7156_s6 }
  0xfb   : > { %1374 = vrot.lane.b32.xlu1 %v7603_v41, %s7156_s6 }
  0xfc   : > { %1380 = vrot.lane.b32.xlu0 %v7641_v60, %s7156_s6 }
  0xff   : > { %1378 = vrot.lane.b32.xlu1 %v7616_v47, %s7156_s6 }
 0x100   : > { %1384 = vrot.lane.b32.xlu0 %v7653_v3, %s7156_s6 }
 0x103   : > { %1382 = vrot.lane.b32.xlu1 %v7645_v61, %s7156_s6 }
 0x104   : > { %1388 = vrot.lane.b32.xlu0 %v7664_v7, %s7156_s6 }
 0x107   : > { %1386 = vrot.lane.b32.xlu1 %v7657_v4, %s7156_s6 }
 0x108   : > { %1392 = vrot.lane.b32.xlu0 %v7674_v9, %s7156_s6 }
 0x10b   : > { %1390 = vrot.lane.b32.xlu1 %v7668_v8, %s7156_s6  ;;  %s443_s6 = scalar_lea.vmem [#allocation10], %s6639_s12 }
 0x10c   : > { %1544 = vperm.xlu0 %6856, %v7681_v10  }
 0x10f   : > { %1444 = vperm.xlu1 %6855, %v7681_v10  }
 0x110   : > { %2011 = vrot.lane.b32.xlu0 %v7574_v21, %s7160_s0 }
 0x111   : > { %6860 = vset.pattern.permute.xlu0 %v7161_v15  ;;  %v7860_v15 = vrot.slane %v610_v56, %v7801_v44 }
 0x113   : > { %6857 = vset.pattern.permute.xlu1 %v7162_v16  ;;  %v598_v16 = vrot.slane %v583_v43, %v7810_v49  ;;  %v646_v43 = vrot.slane %v586_v13, %v7810_v49  ;;  %v7910_v13 = vrot.slane %v630_v27, %v7801_v44  ;;  %v1219_v27 = vrot.slane %v7734_v22, %v7801_v44 }
 0x114   : > { %1644 = vperm.xlu1 %6857, %v7681_v10   ;;  %2015 = vrot.lane.b32.xlu0 %v7631_v53, %s7160_s0  ;;  %vm720_vm12 = vcmp.eq.s32.totalorder %v7860_v15, 1 }
 0x115   : > { %v7924_v0 = vrot.slane %v646_v43, %v7801_v44  ;;  %v1231_v43 = vrot.slane %v7734_v22, %v7791_v39 }
 0x117   : > { %14133 = vst [vmem:[#allocation55_spill] sm:$0xff] %v7924_v0  ;;  %v7987_v0 = vrot.slane %v1231_v43, %v7801_v44 }
 0x118   : > { %6858 = vset.pattern.permute.xlu1 %v7163_v17  ;;  %2019 = vrot.lane.b32.xlu0 %v7599_v40, %s7160_s0  ;;  %v626_v17 = vrot.slane %v585_v57, %v7804_v45  ;;  %v7894_v57 = vrot.slane %v594_v5, %v7801_v44  ;;  %v6674_v5 = vrot.slane %v7880_v48, 9  ;;  %v14137_v48 = vmov 0 }
 0x119   : > { %1744 = vperm.xlu1 %6858, %v7681_v10   ;;  %14147 = vst [vmem:[#allocation64_spill] sm:$0xff] %v7987_v0 }
 0x11a   : > { %v7900_v11 = vrot.slane %v626_v17, %v7801_v44  ;;  %v7921_v17 = vrot.slane %v642_v38, %v7801_v44  ;;  %v6675_v38 = vrot.slane %v7905_v12, 9  ;;  %v1239_v12 = vrot.slane %v7741_v24, %v7804_v45 }
 0x11b   : > { %vm7953_vm6 = vcmp.ne.s32.totalorder %v6674_v5, 0 }
 0x11c   : > { %2023 = vrot.lane.b32.xlu0 %v7612_v46, %s7160_s0  ;;  %v14138_v48 = vsel %vm7953_vm6, 4294967295, %v14137_v48  ;;  %vm7976_vm7 = vcmp.ne.s32.totalorder %v6675_v38, 0  ;;  %vm7993_vm9 = vmand %vm554_vm0, %vm7953_vm6 }
 0x11d   : > { %2013 = vrot.lane.b32.xlu1 %v7591_v37, %s7160_s0  ;;  %14139 = vst [vmem:[#allocation58_spill] sm:$0xff] %v14138_v48  ;;  %v8008_v48 = vrot.slane %v1243_v32, %v7801_v44  ;;  %vm1860_vm0 = vmand %vm555_vm1, %vm7976_vm7  ;;  %v14154_v32 = vmov 0  ;;  %vm715_vm1 = vcmp.eq.s32.totalorder %v7843_v1, 1 }
 0x11e   : > { %6859 = vset.pattern.permute.xlu1 %v7164_v23  ;;  %v7867_v23 = vrot.slane %v614_v62, %v7801_v44  ;;  %v7897_v62 = vrot.slane %v598_v16, %v7801_v44  ;;  %v7918_v16 = vrot.slane %v638_v33, %v7801_v44  ;;  %v1223_v33 = vrot.slane %v7734_v22, %v7804_v45 }
 0x11f   : > { %14152 = vst [vmem:[#allocation67_spill] sm:$0xff] %v8008_v48  ;;  %v8050_v48 = vrot.slane %v1251_v18, %v7801_v44 }
 0x120   : > { %2027 = vrot.lane.b32.xlu0 %v7625_v52, %s7160_s0  ;;  %v7972_v5 = vrot.slane %v1223_v33, %v7801_v44  ;;  %v1271_v33 = vrot.slane %v7771_v35, %v7804_v45 }
 0x121   : > { %2017 = vrot.lane.b32.xlu1 %v7579_v26, %s7160_s0  ;;  %14160 = vst [vmem:[#allocation71_spill] sm:$0xff] %v8050_v48 }
 0x122   : > { %14142 = vst [vmem:[#allocation61_spill] sm:$0xff] %v7972_v5 }
 0x124   : > { %2031 = vrot.lane.b32.xlu0 %v7641_v60, %s7160_s0 }
 0x125   : > { %2021 = vrot.lane.b32.xlu1 %v7589_v34, %s7160_s0 }
 0x128   : > { %2035 = vrot.lane.b32.xlu0 %v7653_v3, %s7160_s0 }
 0x129   : > { %2025 = vrot.lane.b32.xlu1 %v7603_v41, %s7160_s0 }
 0x12c   : > { %2039 = vrot.lane.b32.xlu0 %v7664_v7, %s7160_s0 }
 0x12d   : > { %2029 = vrot.lane.b32.xlu1 %v7616_v47, %s7160_s0  ;;  %v14143_v47 = vmov 0 }
 0x12e   : > { %v14144_v47 = vsel %vm7976_vm7, 4294967295, %v14143_v47 }
 0x12f   : > { %14145 = vst [vmem:[#allocation62_spill] sm:$0xff] %v14144_v47  ;;  %v1267_v47 = vrot.slane %v7771_v35, %v7801_v44 }
 0x130   : > { %2043 = vrot.lane.b32.xlu0 %v7674_v9, %s7160_s0 }
 0x131   : > { %2033 = vrot.lane.b32.xlu1 %v7645_v61, %s7160_s0  ;;  %v7969_v61 = vsel %vm13612_vm15, 1, %v14135_v36  ;;  %vm766_vm15 = vcmask 400384   ;;  %v8084_v48 = vrot.slane %v1267_v47, %v7801_v44  ;;  %v8102_v47 = vrot.slane %v1275_v19, %v7801_v44 }
 0x132   : > { %v7840_v63 = vpop.permute.xlu0 %732  ;;  %14141 = vst [vmem:[#allocation60_spill] sm:$0xff] %v7969_v61  ;;  %v6677_v0 = vrot.slane %v7969_v61, 9  ;;  %v1864_v61 = vsel %vm1860_vm0, 1, %v14135_v36 }
 0x133   : > { %v7849_v6 = vpop.permute.xlu1 %738  ;;  %14165 = vst [vmem:[#allocation74_spill] sm:$0xff] %v8084_v48  ;;  %v1886_v5 = vrot.slane %v1864_v61, %v7801_v44 }
 0x134   : > { %2195 = vperm.xlu0 %6860, %v7681_v10  }
 0x135   : > { %2037 = vrot.lane.b32.xlu1 %v7657_v4, %s7160_s0  ;;  %v524_v4 = vld [vmem:[%s7557_s11] sm:$0xf] }
 0x136   : > { %v7872_v29 = vpop.permute.xlu0 %734 }
 0x137   : > { %v7889_v56 = vpop.permute.xlu1 %742 }
 0x138   : > { %2638 = vrot.lane.b32.xlu0 %v7574_v21, %s7165_s26  ;;  %v7913_v21 = vrot.slane %v634_v28, %v7801_v44 }
 0x139   : > { %2041 = vrot.lane.b32.xlu1 %v7668_v8, %s7160_s0  ;;  %6864 = vset.pattern.permute.xlu0 %v7166_v50  ;;  %v1227_v50 = vrot.slane %v7734_v22, %v7810_v49  ;;  %v7960_v8 = vrot.slane %v1219_v27, %v7801_v44  ;;  %v6667_v22 = vld [vmem:[%s7557_s11 + $0x4] sm:$0xf]  ;;  %v6676_v27 = vrot.slane %v7946_v55, 9  ;;  %v7167_v55 = vmov 10   ;;  %s6423_s0 = sshll.u32 %s443_s6, 4  ;;  %s13486_s0 = int_to_ptr.vmem [resolvable:$true] %s6423_s0 }
 0x13a   : > { %v7928_v28 = vpop.permute.xlu0 %740  ;;  %v527_v43 = vmax.f32 %v524_v4, %v6667_v22  ;;  %v8020_v4 = vrot.slane %v1247_v42, %v7801_v44  ;;  %v1259_v22 = vrot.slane %v7754_v30, %v7810_v49  ;;  %v1263_v42 = vrot.slane %v7754_v30, %v7791_v39  ;;  %s7011_s2 = scalar_lea.vmem %s13486_s0, 2048 }
 0x13b   : > { %14140 = vst [vmem:[#allocation59_spill] sm:$0xff] %v7960_v8  ;;  %v7984_v8 = vrot.slane %v1227_v50, %v7801_v44  ;;  %v8003_v50 = vrot.slane %v1239_v12, %v7801_v44  ;;  %vm8027_vm11 = vcmp.ne.s32.totalorder %v6676_v27, 0  ;;  %p7012_p12 = scmp.ne.s32.totalorder %s13486_s0, %s7011_s2 }
 0x13c   : > { %2642 = vrot.lane.b32.xlu0 %v7631_v53, %s7165_s26  ;;  %v7957_v53 = vpop.permute.xlu1 %746  ;;  %14153 = vst [vmem:[#allocation68_spill] sm:$0xff] %v8020_v4  ;;  %v14155_v32 = vsel %vm8027_vm11, 4294967295, %v14154_v32  ;;  %v14157_v4 = vmov 0  ;;  %vm8063_vm0 = vmand %vm556_vm2, %vm8027_vm11  ;;  %v8073_v18 = vrot.slane %v1259_v22, %v7801_v44  ;;  %v1890_v22 = vrot.slane %v1864_v61, %v7804_v45 }
 0x13d   : > { %2095 = vperm.xlu1 %6859, %v7681_v10   ;;  %14146 = vst [vmem:[#allocation63_spill] sm:$0xff] %v7984_v8  ;;  %14151 = vst [vmem:[#allocation66_spill] sm:$0xff] %v8003_v50  ;;  %v6668_v8 = vld [vmem:[%s7557_s11 + $0x8] sm:$0xf]  ;;  %p7013_p9 = pnand %p7012_p12, %p15263_p13 }
 0x13e   : > { %v7997_v38 = vpop.permute.xlu0 %744  ;;  %14156 = vst [vmem:[#allocation69_spill] sm:$0xff] %v14155_v32  ;;  %v530_v27 = vmax.f32 %v527_v43, %v6668_v8  ;;  %v1279_v8 = vrot.slane %v7771_v35, %v7791_v39  ;;  %14164 = vst [vmem:[#allocation73_spill] sm:$0xff] %v8073_v18 }
 0x13f   : > { %v773_v2 = vsel %vm766_vm15, %v7997_v38, %v7957_v53  ;;  %p7014_p5 = pneg %p7013_p9 }
 0x140   : > { %2646 = vrot.lane.b32.xlu0 %v7599_v40, %s7165_s26  ;;  %v8000_v40 = vrot.slane %v1235_v31, %v7801_v44  ;;  %v1863_v31 = vsel %vm7993_vm9, 1, %v14135_v36  ;;  %v8031_v12 = vpop.permute.xlu1 %750  ;;  %vm8045_vm9 = vcmp.ne.s32.totalorder %v6677_v0, 0  ;;  %v8111_v25 = vrot.slane %v1279_v8, %v7801_v44 }
 0x141   : > { %6861 = vset.pattern.permute.xlu1 %v7167_v55  ;;  %v1255_v55 = vrot.slane %v7754_v30, %v7804_v45  ;;  %v14158_v4 = vsel %vm8045_vm9, 4294967295, %v14157_v4  ;;  %v1870_v43 = vrot.slane %v1863_v31, %v7801_v44  ;;  %v1878_v32 = vrot.slane %v1863_v31, %v7810_v49  ;;  %vm8092_vm2 = vmand %vm557_vm3, %vm8045_vm9 }
 0x142   : > { %14150 = vst [vmem:[#allocation65_spill] sm:$0xff] %v8000_v40  ;;  %2295 = vperm.xlu1 %6861, %v7681_v10   ;;  %14159 = vst [vmem:[#allocation70_spill] sm:$0xff] %v14158_v4  ;;  %v6669_v40 = vld [vmem:[%s7557_s11 + $0xc] sm:$0xf]  ;;  %v1882_v20 = vrot.slane %v1863_v31, %v7791_v39  ;;  %vm721_vm3 = vcmp.eq.s32.totalorder %v7867_v23, 1  ;;  %v8136_v0 = vrot.slane %v1886_v5, %v7801_v44  ;;  %s6680_s11 = sshll.u32 %s15254_s27, 5 }
 0x143   : > { %v8053_v50 = vrot.slane %v1255_v55, %v7801_v44  ;;  %v1874_v55 = vrot.slane %v1863_v31, %v7804_v45  ;;  %v8097_v31 = vrot.slane %v1271_v33, %v7801_v44  ;;  %v8114_v48 = vrot.slane %v1870_v43, %v7801_v44  ;;  %s13474_s24 = sadd.s32 %s6680_s11, %s6679_s8 }
 0x144   : > { %2650 = vrot.lane.b32.xlu0 %v7612_v46, %s7165_s26  ;;  %v7168_v46 = vmov 11   ;;  %v8108_v4 = vpop.permute.xlu1 %736  ;;  %v1898_v33 = vrot.slane %v1864_v61, %v7791_v39  ;;  %v8128_v8 = vrot.slane %v1882_v20, %v7801_v44  ;;  %v1866_v43 = vsel %vm8092_vm2, 1, %v14135_v36  ;;  %14173 = vst [vmem:[#allocation80_spill] sm:$0xff] %v8136_v0  ;;  %s6681_s17 = sshll.u32 %s13474_s24, 7 }
 0x145   : > { %14161 = vst [vmem:[#allocation72_spill] sm:$0xff] %v8053_v50  ;;  %v8081_v50 = vrot.slane %v1263_v42, %v7801_v44  ;;  %v8099_v42 = vmax.f32 %v530_v27, %v6669_v40  ;;  %14169 = vst [vmem:[#allocation76_spill] sm:$0xff] %v8114_v48  ;;  %v1894_v40 = vrot.slane %v1864_v61, %v7810_v49  ;;  %v7169_v61 = vmov 12  }
 0x146   : > { %6862 = vset.pattern.permute.xlu1 %v7168_v46  ;;  %v8069_v46 = vpop.permute.xlu0 %748  ;;  %v8122_v19 = vrot.slane %v1874_v55, %v7801_v44  ;;  %v8125_v27 = vrot.slane %v1878_v32, %v7801_v44  ;;  %14172 = vst [vmem:[#allocation79_spill] sm:$0xff] %v8128_v8  ;;  %v8139_v55 = vrot.slane %v1890_v22, %v7801_v44  ;;  %vm716_vm2 = vcmp.eq.s32.totalorder %v7894_v57, 1 }
 0x147   : > { %2395 = vperm.xlu1 %6862, %v7681_v10   ;;  %14168 = vst [vmem:[#allocation75_spill] sm:$0xff] %v8099_v42  ;;  %v767_v20 = vsel %vm766_vm15, %v7840_v63, %v7872_v29  ;;  %v8153_v22 = vrot.slane %v1894_v40, %v7801_v44  ;;  %v1918_v63 = vrot.slane %v1866_v43, %v7801_v44 }
 0x148   : > { %2654 = vrot.lane.b32.xlu0 %v7625_v52, %s7165_s26  ;;  %v1865_v52 = vsel %vm8063_vm0, 1, %v14135_v36  ;;  %14170 = vst [vmem:[#allocation77_spill] sm:$0xff] %v8122_v19  ;;  %14171 = vst [vmem:[#allocation78_spill] sm:$0xff] %v8125_v27  ;;  %v770_v0 = vsel %vm766_vm15, %v7849_v6, %v7928_v28  ;;  %v771_v8 = vsel %vm766_vm15, %v7928_v28, %v7889_v56  ;;  %v8170_v40 = vsel %vm715_vm1, %v767_v20, 0.0 }
 0x149   : > { %14174 = vst [vmem:[#allocation81_spill] sm:$0xff] %v8139_v55  ;;  %v1902_v32 = vrot.slane %v1865_v52, %v7801_v44  ;;  %v1906_v36 = vrot.slane %v1865_v52, %v7804_v45  ;;  %v1914_v5 = vrot.slane %v1865_v52, %v7791_v39  ;;  %14175 = vst [vmem:[#allocation82_spill] sm:$0xff] %v8153_v22  ;;  %vm717_vm0 = vcmp.eq.s32.totalorder %v7897_v62, 1 }
 0x14a   : > { %v8146_v18 = vpop.permute.xlu0 %752  ;;  %v8156_v55 = vrot.slane %v1898_v33, %v7801_v44  ;;  %14177 = vst [vmem:[#allocation84_spill] sm:$0xff] %v8170_v40  ;;  %v8174_v33 = vpop.permute.xlu1 %754  ;;  %v1930_v22 = vrot.slane %v1866_v43, %v7791_v39  ;;  %v8194_v19 = vsel %vm718_vm14, %v770_v0, 0.0  ;;  %v774_v0 = vsel %vm766_vm15, %v7957_v53, %v8069_v46  ;;  %v14197_v53 = vld [vmem:[#allocation56_spill] sm:$0xff] }
 0x14b   : > { %2640 = vrot.lane.b32.xlu1 %v7591_v37, %s7165_s26  ;;  %v8179_v28 = vrot.slane %v1902_v32, %v7801_v44  ;;  %v8184_v1 = vrot.slane %v1906_v36, %v7801_v44  ;;  %v8190_v27 = vrot.slane %v1914_v5, %v7801_v44  ;;  %14182 = vst [vmem:[#allocation89_spill] sm:$0xff] %v8194_v19  ;;  %v8198_v32 = vsel %vm719_vm13, %v771_v8, 0.0 }
 0x14c   : > { %2658 = vrot.lane.b32.xlu0 %v7641_v60, %s7165_s26  ;;  %6863 = vset.pattern.permute.xlu1 %v7169_v61  ;;  %v1910_v61 = vrot.slane %v1865_v52, %v7810_v49  ;;  %14176 = vst [vmem:[#allocation83_spill] sm:$0xff] %v8156_v55  ;;  %v1922_v52 = vrot.slane %v1866_v43, %v7804_v45  ;;  %14183 = vst [vmem:[#allocation90_spill] sm:$0xff] %v8198_v32  ;;  %vm724_vm13 = vcmp.eq.s32.totalorder %v7900_v11, 1  ;;  %v14199_v11 = vld [vmem:[#allocation44_spill] sm:$0xff]  ;;  %v7170_v62 = vmov 16  }
 0x14d   : > { %14178 = vst [vmem:[#allocation85_spill] sm:$0xff] %v8179_v28  ;;  %v1926_v55 = vrot.slane %v1866_v43, %v7810_v49  ;;  %14179 = vst [vmem:[#allocation86_spill] sm:$0xff] %v8184_v1  ;;  %v772_v43 = vsel %vm766_vm15, %v7889_v56, %v7997_v38  ;;  %v8204_v36 = vrot.slane %v1918_v63, %v7801_v44  ;;  %vm725_vm14 = vcmp.eq.s32.totalorder %v7910_v13, 1 }
 0x14e   : > { %v8187_v20 = vrot.slane %v1910_v61, %v7801_v44  ;;  %14181 = vst [vmem:[#allocation88_spill] sm:$0xff] %v8190_v27  ;;  %v8214_v14 = vpop.permute.xlu0 %756  ;;  %v8219_v56 = vrot.slane %v1922_v52, %v7801_v44  ;;  %v8231_v63 = vrot.slane %v1930_v22, %v7801_v44  ;;  %v8239_v8 = vsel %vm720_vm12, %v772_v43, 0.0  ;;  %v8256_v43 = vpop.permute.xlu1 %758  ;;  %v14195_v22 = vld [vmem:[#allocation55_spill] sm:$0xff] }
 0x14f   : > { %2644 = vrot.lane.b32.xlu1 %v7579_v26, %s7165_s26  ;;  %14184 = vst [vmem:[#allocation91_spill] sm:$0xff] %v8204_v36  ;;  %v8228_v38 = vrot.slane %v1926_v55, %v7801_v44  ;;  %14188 = vst [vmem:[#allocation95_spill] sm:$0xff] %v8239_v8  ;;  %v8251_v5 = vsel %vm721_vm3, %v773_v2, 0.0  ;;  %v775_v15 = vsel %vm766_vm15, %v8069_v46, %v8031_v12  ;;  %vm14190_vm1 = vcmp.eq.s32.totalorder %v7883_v51, 1  ;;  %v14196_v46 = vld [vmem:[#allocation31_spill] sm:$0xff] }
 0x150   : > { %2662 = vrot.lane.b32.xlu0 %v7653_v3, %s7165_s26  ;;  %14180 = vst [vmem:[#allocation87_spill] sm:$0xff] %v8187_v20  ;;  %14185 = vst [vmem:[#allocation92_spill] sm:$0xff] %v8219_v56  ;;  %v8273_v2 = vsel %vm14190_vm1, %v774_v0, 0.0  ;;  %v768_v52 = vsel %vm766_vm15, %v7872_v29, %v8108_v4  ;;  %v769_v23 = vsel %vm766_vm15, %v8108_v4, %v7849_v6  ;;  %vm14192_vm3 = vcmp.eq.s32.totalorder %v7886_v54, 1  ;;  %v14198_v54 = vld [vmem:[#allocation35_spill] sm:$0xff] }
 0x151   : > { %14186 = vst [vmem:[#allocation93_spill] sm:$0xff] %v8228_v38  ;;  %14187 = vst [vmem:[#allocation94_spill] sm:$0xff] %v8231_v63  ;;  %v8291_v0 = vsel %vm14192_vm3, %v775_v15, 0.0  ;;  %vm727_vm1 = vcmp.eq.s32.totalorder %v7918_v16, 1  ;;  %vm728_vm12 = vcmp.eq.s32.totalorder %v7921_v17, 1  ;;  %v8307_v15 = vsel %vm716_vm2, %v768_v52, 0.0 }
 0x152   : > { %14189 = vst [vmem:[#allocation96_spill] sm:$0xff] %v8251_v5  ;;  %14191 = vst [vmem:[#allocation97_spill] sm:$0xff] %v8273_v2  ;;  %v761_v29 = vpop.permute.xlu0 %760  ;;  %v8311_v51 = vsel %vm717_vm0, %v769_v23, 0.0  ;;  %v776_v4 = vsel %vm766_vm15, %v8031_v12, %v8146_v18  ;;  %vm729_vm3 = vcmp.eq.s32.totalorder %v14195_v22, 1  ;;  %v763_v23 = vpop.permute.xlu1 %762  ;;  %v777_v57 = vsel %vm766_vm15, %v8146_v18, %v8174_v33  ;;  %v14210_v22 = vld [vmem:[#allocation39_spill] sm:$0xff] }
 0x153   : > { %2648 = vrot.lane.b32.xlu1 %v7589_v34, %s7165_s26  ;;  %14193 = vst [vmem:[#allocation98_spill] sm:$0xff] %v8307_v15  ;;  %14194 = vst [vmem:[#allocation99_spill] sm:$0xff] %v8311_v51  ;;  %v8345_v12 = vsel %vm724_vm13, %v776_v4, 0.0  ;;  %v778_v18 = vsel %vm766_vm15, %v8174_v33, %v8214_v14  ;;  %vm730_vm0 = vcmp.eq.s32.totalorder %v14197_v53, 1  ;;  %v2497_v4 = vrot.slane %v14199_v11, %v7834_v58 }
 0x154   : > { %2666 = vrot.lane.b32.xlu0 %v7664_v7, %s7165_s26  ;;  %v8365_v55 = vsel %vm725_vm14, %v777_v57, 0.0  ;;  %v2501_v2 = vrot.slane %v14199_v11, %v7837_v59  ;;  %v779_v13 = vsel %vm766_vm15, %v8214_v14, %v8256_v43  ;;  %vm14201_vm2 = vcmp.eq.s32.totalorder %v7913_v21, 1  ;;  %v14202_v57 = vld [vmem:[#allocation37_spill] sm:$0xff] }
 0x155   : > { %v8387_v5 = vsel %vm14201_vm2, %v778_v18, 0.0  ;;  %v780_v61 = vsel %vm766_vm15, %v8256_v43, %v761_v29  ;;  %v781_v8 = vsel %vm766_vm15, %v761_v29, %v763_v23  ;;  %v8401_v21 = vrot.slane %v2497_v4, %v7834_v58  ;;  %v14207_v4 = vld [vmem:[#allocation47_spill] sm:$0xff] }
 0x156   : > { %v765_v52 = vpop.permute.xlu0 %764  ;;  %v8412_v29 = vrot.slane %v2501_v2, %v7834_v58  ;;  %v8422_v18 = vsel %vm728_vm12, %v780_v61, 0.0  ;;  %v7171_v16 = vmov 19   ;;  %v8434_v6 = vsub.s32 5, %v14207_v4 }
 0x157   : > { %2652 = vrot.lane.b32.xlu1 %v7603_v41, %s7165_s26  ;;  %14204 = vst [vmem:[#allocation56_spill] sm:$0xff] %v8401_v21  ;;  %v8437_v17 = vsub.s32 7, %v14207_v4  ;;  %v7173_v19 = vmov 21   ;;  %v2513_v53 = vrot.slane %v7741_v24, %v7834_v58  ;;  %v2533_v40 = vrot.slane %v7754_v30, %v7837_v59 }
 0x158   : > { %2670 = vrot.lane.b32.xlu0 %v7674_v9, %s7165_s26  ;;  %14205 = vst [vmem:[#allocation35_spill] sm:$0xff] %v8412_v29  ;;  %14208 = vst [vmem:[#allocation47_spill] sm:$0xff] %v8434_v6  ;;  %v2537_v39 = vrot.slane %v7754_v30, %v8434_v6  ;;  %v7174_v63 = vmov 14   ;;  %v7175_v27 = vmov 15   ;;  %v14235_v1 = vrot.slane %v8422_v18, %v7801_v44  ;;  %v14240_v9 = vld [vmem:[#allocation63_spill] sm:$0xff] }
 0x159   : > { %14209 = vst [vmem:[#allocation100_spill] sm:$0xff] %v8437_v17  ;;  %v2509_v2 = vrot.slane %v14199_v11, %v8437_v17  ;;  %v2525_v51 = vrot.slane %v7741_v24, %v8437_v17  ;;  %vm1346_vm12 = vcmp.eq.s32.totalorder %v14240_v9, 1 }
 0x15b   : > { %2656 = vrot.lane.b32.xlu1 %v14196_v46, %s7165_s26  ;;  %v8517_v29 = vrot.slane %v2509_v2, %v7834_v58  ;;  %v2545_v2 = vrot.slane %v7771_v35, %v7834_v58 }
 0x15c   : > { %2822 = vperm.xlu0 %6864, %v7681_v10  }
 0x15d   : > { %14214 = vst [vmem:[#allocation104_spill] sm:$0xff] %v8517_v29  ;;  %v8589_v20 = vrot.slane %v2545_v2, %v7834_v58 }
 0x15f   : > { %2660 = vrot.lane.b32.xlu1 %v14198_v54, %s7165_s26 }
 0x160   : > { %v8367_v33 = vpop.permute.xlu1 %817  ;;  %6867 = vset.pattern.permute.xlu0 %v7170_v62  ;;  %v8409_v62 = vsel %vm727_vm1, %v779_v13, 0.0  ;;  %v8430_v13 = vsel %vm729_vm3, %v781_v8, 0.0  ;;  %v782_v8 = vsel %vm766_vm15, %v763_v23, %v765_v52  ;;  %v2505_v52 = vrot.slane %v14199_v11, %v8434_v6 }
 0x161   : > { %14200 = vst [vmem:[#allocation55_spill] sm:$0xff] %v8367_v33  ;;  %3122 = vperm.xlu0 %6867, %v7681_v10   ;;  %v8470_v61 = vsel %vm730_vm0, %v782_v8, 0.0  ;;  %v2517_v8 = vrot.slane %v7741_v24, %v7837_v59  ;;  %v2521_v23 = vrot.slane %v7741_v24, %v8434_v6  ;;  %v2529_v11 = vrot.slane %v7754_v30, %v7834_v58 }
 0x162   : > { %14211 = vst [vmem:[#allocation101_spill] sm:$0xff] %v8470_v61  ;;  %v8510_v15 = vrot.slane %v2505_v52, %v7834_v58  ;;  %vm1394_vm15 = vcmask 392192   ;;  %v8520_v24 = vrot.slane %v2513_v53, %v7834_v58  ;;  %v8538_v53 = vrot.slane %v2533_v40, %v7834_v58 }
 0x163   : > { %2664 = vrot.lane.b32.xlu1 %v14202_v57, %s7165_s26  ;;  %v8398_v32 = vpop.permute.xlu0 %917  ;;  %v8523_v61 = vrot.slane %v2517_v8, %v7834_v58  ;;  %v8526_v52 = vrot.slane %v2521_v23, %v7834_v58  ;;  %v8541_v8 = vrot.slane %v2537_v39, %v7834_v58  ;;  %v2549_v23 = vrot.slane %v7771_v35, %v7837_v59 }
 0x164   : > { %14203 = vst [vmem:[#allocation31_spill] sm:$0xff] %v8398_v32  ;;  %14213 = vst [vmem:[#allocation103_spill] sm:$0xff] %v8510_v15  ;;  %v14226_v40 = vrot.slane %v8291_v0, %v7801_v44  ;;  %v14236_v28 = vrot.slane %v8430_v13, %v7801_v44 }
 0x165   : > { %v8424_v43 = vpop.permute.xlu1 %1017  ;;  %6870 = vset.pattern.permute.xlu0 %v7171_v16  ;;  %14215 = vst [vmem:[#allocation105_spill] sm:$0xff] %v8520_v24  ;;  %14216 = vst [vmem:[#allocation106_spill] sm:$0xff] %v8523_v61  ;;  %v14228_v61 = vrot.slane %v8365_v55, %v7834_v58 }
 0x166   : > { %14206 = vst [vmem:[#allocation44_spill] sm:$0xff] %v8424_v43  ;;  %3662 = vperm.xlu0 %6870, %v7681_v10   ;;  %14217 = vst [vmem:[#allocation107_spill] sm:$0xff] %v8526_v52  ;;  %v14223_v52 = vld [vmem:[#allocation59_spill] sm:$0xff] }
 0x167   : > { %2668 = vrot.lane.b32.xlu1 %v14210_v22, %s7165_s26  ;;  %v8448_v14 = vpop.permute.xlu0 %1360  ;;  %14220 = vst [vmem:[#allocation110_spill] sm:$0xff] %v8538_v53  ;;  %14221 = vst [vmem:[#allocation111_spill] sm:$0xff] %v8541_v8  ;;  %vm1344_vm13 = vcmp.eq.s32.totalorder %v14223_v52, 1  ;;  %v892_v8 = vmul.f32 %v14226_v40, %v8367_v33  ;;  %v994_v24 = vmul.f32 %v14228_v61, %v8398_v32  ;;  %v7177_v52 = vmov 18  }
 0x168   : > { %v14230_v40 = vrot.slane %v8365_v55, %v7801_v44  ;;  %v14232_v61 = vrot.slane %v8387_v5, %v7834_v58 }
 0x16a   : > { %v8472_v16 = vpop.permute.xlu1 %1117  ;;  %3990 = vrot.lane.b32.xlu0 %v7579_v26, %s7172_s18  ;;  %v894_v15 = vmul.f32 %v14230_v40, %v8367_v33  ;;  %v995_v36 = vmul.f32 %v14232_v61, %v8398_v32  ;;  %v8603_v61 = vmul.f32 %v14236_v28, %v8367_v33  ;;  %v14241_v28 = vld [vmem:[#allocation64_spill] sm:$0xff] }
 0x16b   : > { %14212 = vst [vmem:[#allocation102_spill] sm:$0xff] %v8472_v16  ;;  %2722 = vperm.xlu1 %6863, %v7681_v10   ;;  %v8481_v4 = vpop.permute.xlu0 %1364  ;;  %6872 = vset.pattern.permute.xlu0 %v7173_v19  ;;  %v2541_v19 = vrot.slane %v7754_v30, %v8437_v17  ;;  %v8530_v30 = vrot.slane %v2525_v51, %v7834_v58  ;;  %vm1347_vm1 = vcmp.eq.s32.totalorder %v14241_v28, 1 }
 0x16c   : > { %v14222_v51 = vrot.slane %v8291_v0, %v7834_v58 }
 0x16d   : > { %14218 = vst [vmem:[#allocation108_spill] sm:$0xff] %v8530_v30  ;;  %v8556_v39 = vrot.slane %v2541_v19, %v7834_v58  ;;  %v14229_v19 = vrot.slane %v8345_v12, %v7801_v44 }
 0x16e   : > { %v8505_v21 = vpop.permute.xlu1 %1362  ;;  %3994 = vrot.lane.b32.xlu0 %v7589_v34, %s7172_s18  ;;  %v992_v30 = vmul.f32 %v14222_v51, %v8398_v32  ;;  %v14227_v51 = vrot.slane %v8345_v12, %v7834_v58  ;;  %v14249_v34 = vld [vmem:[#allocation65_spill] sm:$0xff] }
 0x16f   : > { %6865 = vset.pattern.permute.xlu1 %v7174_v63  ;;  %v8514_v38 = vpop.permute.xlu0 %1368  ;;  %v8533_v63 = vrot.slane %v2529_v11, %v7834_v58  ;;  %v14224_v11 = vld [vmem:[#allocation61_spill] sm:$0xff]  ;;  %14225 = vst [vmem:[#allocation59_spill] sm:$0xff] %v8556_v39  ;;  %v893_v39 = vmul.f32 %v14229_v19, %v8367_v33  ;;  %v14234_v19 = vrot.slane %v8409_v62, %v7801_v44  ;;  %vm1348_vm3 = vcmp.eq.s32.totalorder %v14249_v34, 1 }
 0x170   : > { %2922 = vperm.xlu1 %6865, %v7681_v10   ;;  %vm1345_vm14 = vcmp.eq.s32.totalorder %v14224_v11, 1  ;;  %v993_v53 = vmul.f32 %v14227_v51, %v8398_v32  ;;  %v14231_v51 = vrot.slane %v8387_v5, %v7801_v44  ;;  %14233 = vst [vmem:[#allocation61_spill] sm:$0xff] %v8589_v20  ;;  %v1008_v2 = vadd.f32 %v992_v30, %v892_v8 }
 0x171   : > { %14219 = vst [vmem:[#allocation109_spill] sm:$0xff] %v8533_v63  ;;  %v896_v40 = vmul.f32 %v14234_v19, %v8367_v33  ;;  %v14238_v19 = vrot.slane %v8291_v0, %v7804_v45  ;;  %v1010_v8 = vadd.f32 %v994_v24, %v894_v15  ;;  %v14244_v15 = vrot.slane %v8387_v5, %v7804_v45 }
 0x172   : > { %v8551_v63 = vpop.permute.xlu1 %1366  ;;  %3998 = vrot.lane.b32.xlu0 %v7603_v41, %s7172_s18  ;;  %v895_v56 = vmul.f32 %v14231_v51, %v8367_v33  ;;  %v897_v51 = vmul.f32 %v14235_v1, %v8367_v33  ;;  %v14239_v1 = vrot.slane %v8409_v62, %v7834_v58  ;;  %v1009_v30 = vadd.f32 %v993_v53, %v893_v39 }
 0x173   : > { %v8570_v29 = vpop.permute.xlu0 %1372  ;;  %v1092_v20 = vmul.f32 %v14238_v19, %v8424_v43  ;;  %v2553_v41 = vrot.slane %v7771_v35, %v8434_v6  ;;  %v1095_v24 = vmul.f32 %v14244_v15, %v8424_v43  ;;  %v14245_v53 = vrot.slane %v8422_v18, %v7834_v58 }
 0x174   : > { %6866 = vset.pattern.permute.xlu1 %v7175_v27  ;;  %v8607_v27 = vrot.slane %v2549_v23, %v7834_v58  ;;  %v996_v49 = vmul.f32 %v14239_v1, %v8398_v32  ;;  %v14242_v23 = vrot.slane %v8345_v12, %v7804_v45  ;;  %v14243_v1 = vrot.slane %v8365_v55, %v7804_v45 }
 0x175   : > { %3022 = vperm.xlu1 %6866, %v7681_v10   ;;  %v1011_v3 = vadd.f32 %v995_v36, %v895_v56  ;;  %v997_v39 = vmul.f32 %v14245_v53, %v8398_v32  ;;  %v14247_v36 = vrot.slane %v8345_v12, %v7837_v59  ;;  %v14248_v15 = vrot.slane %v8365_v55, %v7837_v59 }
 0x176   : > { %14237 = vst [vmem:[#allocation112_spill] sm:$0xff] %v8607_v27  ;;  %v8619_v33 = vpop.permute.xlu1 %1370  ;;  %4002 = vrot.lane.b32.xlu0 %v14196_v46, %s7172_s18  ;;  %v1093_v19 = vmul.f32 %v14242_v23, %v8424_v43  ;;  %v1094_v27 = vmul.f32 %v14243_v1, %v8424_v43  ;;  %v2557_v23 = vrot.slane %v7771_v35, %v8437_v17  ;;  %v7176_v53 = vmov 17  }
 0x177   : > { %v8631_v7 = vpop.permute.xlu0 %1376  ;;  %v14246_v1 = vrot.slane %v8291_v0, %v7837_v59  ;;  %v1193_v56 = vmul.f32 %v14247_v36, %v8472_v16  ;;  %v1194_v6 = vmul.f32 %v14248_v15, %v8472_v16  ;;  %v1108_v35 = vadd.f32 %v1092_v20, %v1008_v2  ;;  %v14252_v2 = vld [vmem:[#allocation66_spill] sm:$0xff] }
 0x178   : > { %v1012_v17 = vadd.f32 %v996_v49, %v896_v40  ;;  %v14250_v0 = vrot.slane %v8409_v62, %v7804_v45  ;;  %v14251_v12 = vrot.slane %v8387_v5, %v7837_v59  ;;  %v1395_v55 = vsel %vm1394_vm15, %v8448_v14, %v8505_v21 }
 0x179   : > { %v1192_v48 = vmul.f32 %v14246_v1, %v8472_v16  ;;  %6868 = vset.pattern.permute.xlu1 %v7176_v53  ;;  %v1396_v15 = vsel %vm1394_vm15, %v8505_v21, %v8481_v4  ;;  %v1109_v20 = vadd.f32 %v1093_v19, %v1009_v30  ;;  %v1110_v40 = vadd.f32 %v1094_v27, %v1010_v8 }
 0x17a   : > { %v1096_v1 = vmul.f32 %v14250_v0, %v8424_v43  ;;  %v1195_v36 = vmul.f32 %v14251_v12, %v8472_v16  ;;  %3302 = vperm.xlu1 %6868, %v7681_v10   ;;  %v8673_v49 = vpop.permute.xlu1 %1374  ;;  %4006 = vrot.lane.b32.xlu0 %v14198_v54, %s7172_s18  ;;  %v8681_v53 = vrot.slane %v2553_v41, %v7834_v58  ;;  %v14258_v12 = vld [vmem:[#allocation68_spill] sm:$0xff] }
 0x17b   : > { %v8678_v5 = vpop.permute.xlu0 %1380  ;;  %v1111_v14 = vadd.f32 %v1095_v24, %v1011_v3  ;;  %v14253_v21 = vrot.slane %v8409_v62, %v7837_v59  ;;  %v14254_v27 = vrot.slane %v8430_v13, %v7834_v58  ;;  %v8692_v8 = vrot.slane %v2557_v23, %v7834_v58  ;;  %v14257_v24 = vld [vmem:[#allocation67_spill] sm:$0xff] }
 0x17c   : > { %v8694_v19 = vadd.f32 %v1192_v48, %v1108_v35  ;;  %v8696_v0 = vadd.f32 %v1193_v56, %v1109_v20  ;;  %v8698_v41 = vadd.f32 %v1194_v6, %v1110_v40  ;;  %v8702_v3 = vsel %vm1344_vm13, %v1395_v55, 0.0  ;;  %v14284_v40 = vld [vmem:[#allocation30_spill] sm:$0xff] }
 0x17d   : > { %v1196_v10 = vmul.f32 %v14253_v21, %v8472_v16  ;;  %v998_v30 = vmul.f32 %v14254_v27, %v8398_v32  ;;  %14255 = vst [vmem:[#allocation63_spill] sm:$0xff] %v8702_v3  ;;  %v8706_v62 = vsel %vm1345_vm14, %v1396_v15, 0.0  ;;  %vm1350_vm2 = vcmp.eq.s32.totalorder %v14257_v24, 1  ;;  %v14304_v32 = vld [vmem:[#allocation54_spill] sm:$0xff] }
 0x17e   : > { %14256 = vst [vmem:[#allocation64_spill] sm:$0xff] %v8706_v62  ;;  %vm1351_vm0 = vcmp.eq.s32.totalorder %v14258_v12, 1  ;;  %v1112_v23 = vadd.f32 %v1096_v1, %v1012_v17  ;;  %v8710_v21 = vadd.f32 %v1195_v36, %v1111_v14  ;;  %v1397_v48 = vsel %vm1394_vm15, %v8481_v4, %v8551_v63  ;;  %6869 = vset.pattern.permute.xlu1 %v7177_v52  ;;  %v1379_v11 = vpop.permute.xlu1 %1378  ;;  %v8727_v17 = vld [vmem:[%s14110_s3] sm:$0xff]  ;;  %v14263_v14 = vld [vmem:[#allocation71_spill] sm:$0xff] }
 0x17f   : > { %v1398_v6 = vsel %vm1394_vm15, %v8551_v63, %v8514_v38  ;;  %v1013_v56 = vadd.f32 %v997_v39, %v897_v51  ;;  %v14260_v35 = vrot.slane %v8422_v18, %v7804_v45  ;;  %4010 = vrot.lane.b32.xlu0 %v14202_v57, %s7172_s18  ;;  %3482 = vperm.xlu1 %6869, %v8727_v17   ;;  %v8730_v4 = vpop.permute.xlu0 %1384  ;;  %vm1352_vm13 = vcmp.eq.s32.totalorder %v14263_v14, 1 }
 0x180   : > { %14259 = vst [vmem:[#allocation65_spill] sm:$0xff] %v8710_v21  ;;  %v8732_v63 = vadd.f32 %v1196_v10, %v1112_v23  ;;  %v1014_v51 = vadd.f32 %v998_v30, %v8603_v61  ;;  %v14262_v39 = vrot.slane %v8430_v13, %v7804_v45  ;;  %v14264_v61 = vld [vmem:[#allocation72_spill] sm:$0xff]  ;;  %v8753_v27 = vsel %vm1346_vm12, %v1397_v48, 0.0  ;;  %v14269_v10 = vld [vmem:[#allocation73_spill] sm:$0xff] }
 0x181   : > { %v1097_v55 = vmul.f32 %v14260_v35, %v8424_v43  ;;  %vm1353_vm14 = vcmp.eq.s32.totalorder %v14264_v61, 1  ;;  %14265 = vst [vmem:[#allocation67_spill] sm:$0xff] %v8753_v27  ;;  %v8757_v30 = vsel %vm1347_vm1, %v1398_v6, 0.0  ;;  %v1399_v23 = vsel %vm1394_vm15, %v8514_v38, %v8619_v33  ;;  %v14299_v27 = vld [vmem:[#allocation76_spill] sm:$0xff] }
 0x182   : > { %14261 = vst [vmem:[#allocation66_spill] sm:$0xff] %v8732_v63  ;;  %v1098_v1 = vmul.f32 %v14262_v39, %v8424_v43  ;;  %14266 = vst [vmem:[#allocation68_spill] sm:$0xff] %v8757_v30  ;;  %v1383_v9 = vpop.permute.xlu1 %1382  ;;  %v1400_v28 = vsel %vm1394_vm15, %v8619_v33, %v8570_v29  ;;  %v14267_v35 = vrot.slane %v8422_v18, %v7837_v59  ;;  %v8789_v52 = vsel %vm1348_vm3, %v1399_v23, 0.0  ;;  %v14273_v23 = vld [vmem:[#allocation74_spill] sm:$0xff] }
 0x183   : > { %v1113_v48 = vadd.f32 %v1097_v55, %v1013_v56  ;;  %4014 = vrot.lane.b32.xlu0 %v14210_v22, %s7172_s18  ;;  %3986 = vrot.lane.b32.xlu1 %v7591_v37, %s7172_s18  ;;  %v8775_v38 = vpop.permute.xlu0 %1388  ;;  %14268 = vst [vmem:[#allocation71_spill] sm:$0xff] %v8789_v52  ;;  %vm1354_vm12 = vcmp.eq.s32.totalorder %v14269_v10, 1  ;;  %v1402_v34 = vsel %vm1394_vm15, %v8673_v49, %v8631_v7  ;;  %vm14270_vm3 = vcmp.eq.s32.totalorder %v14252_v2, 1  ;;  %v14274_v2 = vld [vmem:[#allocation33_spill] sm:$0xff] }
 0x184   : > { %v1114_v6 = vadd.f32 %v1098_v1, %v1014_v51  ;;  %v1197_v39 = vmul.f32 %v14267_v35, %v8472_v16  ;;  %v7178_v51 = vmov 20   ;;  %v1401_v35 = vsel %vm1394_vm15, %v8570_v29, %v8673_v49 }
 0x185   : > { %6871 = vset.pattern.permute.xlu1 %v7178_v51  ;;  %v8809_v18 = vsel %vm14270_vm3, %v1400_v28, 0.0  ;;  %v14272_v1 = vrot.slane %v8430_v13, %v7837_v59  ;;  %vm1356_vm1 = vcmp.eq.s32.totalorder %v14273_v23, 1  ;;  %v8830_v13 = vsel %vm1350_vm2, %v1401_v35, 0.0 }
 0x186   : > { %14271 = vst [vmem:[#allocation72_spill] sm:$0xff] %v8809_v18  ;;  %v1387_v55 = vpop.permute.xlu1 %1386  ;;  %v8826_v51 = vadd.f32 %v1197_v39, %v1113_v48  ;;  %14276 = vst [vmem:[#allocation74_spill] sm:$0xff] %v8830_v13  ;;  %v1403_v49 = vsel %vm1394_vm15, %v8631_v7, %v1379_v11  ;;  %v1404_v33 = vsel %vm1394_vm15, %v1379_v11, %v8678_v5  ;;  %vm1357_vm3 = vcmp.eq.s32.totalorder %v8097_v31, 1  ;;  %v14300_v18 = vld [vmem:[#allocation77_spill] sm:$0xff] }
 0x187   : > { %v1198_v29 = vmul.f32 %v14272_v1, %v8472_v16  ;;  %4018 = vrot.lane.b32.xlu0 %v8099_v42, %s7172_s18  ;;  %3988 = vrot.lane.b32.xlu1 %v14274_v2, %s7172_s18  ;;  %v8824_v28 = vpop.permute.xlu0 %1392  ;;  %v8834_v1 = vsel %vm1351_vm0, %v1402_v34, 0.0  ;;  %v8863_v12 = vsel %vm1352_vm13, %v1403_v49, 0.0  ;;  %v8867_v7 = vsel %vm1353_vm14, %v1404_v33, 0.0 }
 0x188   : > { %14275 = vst [vmem:[#allocation73_spill] sm:$0xff] %v8826_v51  ;;  %14277 = vst [vmem:[#allocation33_spill] sm:$0xff] %v8834_v1  ;;  %vm1358_vm0 = vcmp.eq.s32.totalorder %v8102_v47, 1  ;;  %vm1359_vm2 = vcmp.eq.s32.totalorder %v8111_v25, 1  ;;  %v1405_v61 = vsel %vm1394_vm15, %v8678_v5, %v1383_v9  ;;  %v1406_v33 = vsel %vm1394_vm15, %v1383_v9, %v8730_v4  ;;  %v14294_v47 = vld [vmem:[#allocation26_spill] sm:$0xff]  ;;  %v14298_v25 = vld [vmem:[#allocation47_spill] sm:$0xff] }
 0x189   : > { %v8855_v39 = vadd.f32 %v1198_v29, %v1114_v6  ;;  %v14279_v6 = vld [vmem:[#allocation28_spill] sm:$0xff]  ;;  %v3160_v35 = vrot.slane %v14196_v46, %v7801_v44  ;;  %v3340_v14 = vrot.slane %v14196_v46, %v7834_v58  ;;  %v1482_v9 = vrot.slane %v8863_v12, %v7801_v44 }
 0x18a   : > { %v1391_v34 = vpop.permute.xlu1 %1390  ;;  %v8906_v56 = vsel %vm1354_vm12, %v1405_v61, 0.0  ;;  %vm14282_vm13 = vcmp.eq.s32.totalorder %v8081_v50, 1  ;;  %v1407_v5 = vsel %vm1394_vm15, %v8730_v4, %v1387_v55  ;;  %v1408_v4 = vsel %vm1394_vm15, %v1387_v55, %v8775_v38  ;;  %v14289_v50 = vld [vmem:[#allocation32_spill] sm:$0xff] }
 0x18b   : > { %14278 = vst [vmem:[#allocation113_spill] sm:$0xff] %v8855_v39  ;;  %4170 = vperm.xlu0 %6872, %v8727_v17   ;;  %3992 = vrot.lane.b32.xlu1 %v14279_v6, %s7172_s18  ;;  %v8874_v29 = vpop.permute.xlu0 %1544  ;;  %v8910_v49 = vsel %vm14282_vm13, %v1406_v33, 0.0  ;;  %v7180_v33 = vmov 25   ;;  %v8933_v48 = vrot.slane %v3160_v35, %v7801_v44  ;;  %v8936_v10 = vrot.slane %v3340_v14, %v7834_v58  ;;  %v14302_v35 = vld [vmem:[#allocation36_spill] sm:$0xff] }
 0x18c   : > { %14280 = vst [vmem:[#allocation28_spill] sm:$0xff] %v8874_v29  ;;  %14283 = vst [vmem:[#allocation115_spill] sm:$0xff] %v8910_v49  ;;  %v1490_v61 = vrot.slane %v8906_v56, %v7801_v44  ;;  %v8946_v15 = vsel %vm1356_vm1, %v1407_v5, 0.0  ;;  %v8952_v14 = vsel %vm1357_vm3, %v1408_v4, 0.0  ;;  %v1409_v36 = vsel %vm1394_vm15, %v8775_v38, %v1391_v34  ;;  %v14311_v49 = vld [vmem:[#allocation38_spill] sm:$0xff] }
 0x18d   : > { %14285 = vst [vmem:[#allocation30_spill] sm:$0xff] %v8933_v48  ;;  %14286 = vst [vmem:[#allocation116_spill] sm:$0xff] %v8936_v10  ;;  %v1410_v55 = vsel %vm1394_vm15, %v1391_v34, %v8824_v28  ;;  %v14291_v28 = vld [vmem:[#allocation53_spill] sm:$0xff]  ;;  %v3520_v31 = vrot.slane %v14196_v46, %v7804_v45  ;;  %v8988_v1 = vsel %vm1358_vm0, %v1409_v36, 0.0  ;;  %vm2045_vm15 = vcmask 384000  }
 0x18e   : > { %v8900_v11 = vpop.permute.xlu1 %1444  ;;  %14287 = vst [vmem:[#allocation117_spill] sm:$0xff] %v8946_v15  ;;  %14288 = vst [vmem:[#allocation118_spill] sm:$0xff] %v8952_v14  ;;  %v3844_v34 = vrot.slane %v14291_v28, %v7834_v58  ;;  %v3848_v24 = vrot.slane %v14291_v28, %v7837_v59  ;;  %v8992_v4 = vsel %vm1359_vm2, %v1410_v55, 0.0  ;;  %v3852_v55 = vrot.slane %v14291_v28, %v14298_v25 }
 0x18f   : > { %14281 = vst [vmem:[#allocation114_spill] sm:$0xff] %v8900_v11  ;;  %3996 = vrot.lane.b32.xlu1 %v14284_v40, %s7172_s18  ;;  %v8916_v20 = vpop.permute.xlu0 %2011  ;;  %4621 = vrot.lane.b32.xlu0 %v7591_v37, %s7179_s16  ;;  %14292 = vst [vmem:[#allocation53_spill] sm:$0xff] %v8988_v1  ;;  %v1519_v36 = vmul.f32 %v1482_v9, %v8900_v11  ;;  %vm1995_vm14 = vcmp.eq.s32.totalorder %v14299_v27, 1  ;;  %vm1996_vm12 = vcmp.eq.s32.totalorder %v14300_v18, 1  ;;  %v14301_v9 = vld [vmem:[#allocation100_spill] sm:$0xff] }
 0x190   : > { %6876 = vset.pattern.permute.xlu0 %v7180_v33  ;;  %14293 = vst [vmem:[#allocation119_spill] sm:$0xff] %v8992_v4  ;;  %v9014_v38 = vrot.slane %v3844_v34, %v7834_v58  ;;  %v9021_v52 = vrot.slane %v3848_v24, %v7834_v58  ;;  %v3856_v24 = vrot.slane %v14291_v28, %v14301_v9  ;;  %v14303_v34 = vld [vmem:[#allocation29_spill] sm:$0xff] }
 0x191   : > { %v1535_v16 = vadd.f32 %v1519_v36, %v8694_v19  ;;  %v3860_v39 = vrot.slane %v14304_v32, %v7834_v58  ;;  %v3864_v62 = vrot.slane %v14304_v32, %v7837_v59  ;;  %v14305_v3 = vrot.slane %v8863_v12, %v7834_v58 }
 0x192   : > { %14296 = vst [vmem:[#allocation121_spill] sm:$0xff] %v9014_v38  ;;  %14297 = vst [vmem:[#allocation122_spill] sm:$0xff] %v9021_v52  ;;  %v14306_v1 = vrot.slane %v8867_v7, %v7801_v44  ;;  %v3868_v19 = vrot.slane %v14304_v32, %v14298_v25  ;;  %v3872_v36 = vrot.slane %v14304_v32, %v14301_v9  ;;  %v14308_v38 = vld [vmem:[#allocation79_spill] sm:$0xff] }
 0x193   : > { %4000 = vrot.lane.b32.xlu1 %v14289_v50, %s7172_s18  ;;  %v8960_v33 = vpop.permute.xlu1 %1644  ;;  %v8962_v23 = vpop.permute.xlu0 %2015  ;;  %4625 = vrot.lane.b32.xlu0 %v7579_v26, %s7179_s16  ;;  %v1619_v51 = vmul.f32 %v14305_v3, %v8874_v29  ;;  %v3700_v63 = vrot.slane %v14196_v46, %v7837_v59  ;;  %v1521_v21 = vmul.f32 %v1490_v61, %v8900_v11  ;;  %v14307_v3 = vld [vmem:[#allocation78_spill] sm:$0xff]  ;;  %vm1998_vm3 = vcmp.eq.s32.totalorder %v14308_v38, 1  ;;  %v14312_v61 = vld [vmem:[#allocation57_spill] sm:$0xff] }
 0x194   : > { %14290 = vst [vmem:[#allocation32_spill] sm:$0xff] %v8960_v33  ;;  %v1520_v14 = vmul.f32 %v14306_v1, %v8900_v11  ;;  %vm1997_vm1 = vcmp.eq.s32.totalorder %v14307_v3, 1  ;;  %v9070_v1 = vrot.slane %v3852_v55, %v7834_v58  ;;  %v9073_v15 = vrot.slane %v3856_v24, %v7834_v58 }
 0x195   : > { %v3876_v11 = vrot.slane %v14312_v61, %v7834_v58  ;;  %v1635_v48 = vadd.f32 %v1619_v51, %v1535_v16  ;;  %v14313_v52 = vrot.slane %v8863_v12, %v7804_v45  ;;  %v9086_v55 = vrot.slane %v3520_v31, %v7804_v45 }
 0x196   : > { %14309 = vst [vmem:[#allocation76_spill] sm:$0xff] %v9070_v1  ;;  %14310 = vst [vmem:[#allocation77_spill] sm:$0xff] %v9073_v15  ;;  %v9091_v24 = vrot.slane %v3860_v39, %v7834_v58  ;;  %v9094_v15 = vrot.slane %v3864_v62, %v7834_v58  ;;  %v3880_v16 = vrot.slane %v14312_v61, %v7837_v59 }
 0x197   : > { %4004 = vrot.lane.b32.xlu1 %v7641_v60, %s7172_s18  ;;  %v9000_v5 = vpop.permute.xlu0 %2019  ;;  %4629 = vrot.lane.b32.xlu0 %v14294_v47, %s7179_s16  ;;  %v1719_v4 = vmul.f32 %v14313_v52, %v8960_v33  ;;  %14314 = vst [vmem:[#allocation78_spill] sm:$0xff] %v9086_v55  ;;  %v1536_v51 = vadd.f32 %v1520_v14, %v8696_v0 }
 0x198   : > { %v9011_v13 = vpop.permute.xlu1 %1744  ;;  %14315 = vst [vmem:[#allocation79_spill] sm:$0xff] %v9091_v24  ;;  %14316 = vst [vmem:[#allocation123_spill] sm:$0xff] %v9094_v15  ;;  %v9100_v52 = vrot.slane %v3868_v19, %v7834_v58  ;;  %v9103_v31 = vrot.slane %v3872_v36, %v7834_v58  ;;  %v9106_v55 = vrot.slane %v3700_v63, %v7837_v59  ;;  %v14320_v24 = vld [vmem:[#allocation80_spill] sm:$0xff] }
 0x199   : > { %14295 = vst [vmem:[#allocation120_spill] sm:$0xff] %v9011_v13  ;;  %v1537_v39 = vadd.f32 %v1521_v21, %v8698_v41  ;;  %vm1999_vm0 = vcmp.eq.s32.totalorder %v14320_v24, 1  ;;  %v14321_v0 = vrot.slane %v8863_v12, %v7837_v59  ;;  %v14322_v63 = vrot.slane %v8867_v7, %v7834_v58  ;;  %v14323_v41 = vld [vmem:[#allocation40_spill] sm:$0xff] }
 0x19a   : > { %14317 = vst [vmem:[#allocation124_spill] sm:$0xff] %v9100_v52  ;;  %14318 = vst [vmem:[#allocation125_spill] sm:$0xff] %v9103_v31  ;;  %v3884_v36 = vrot.slane %v14312_v61, %v14298_v25  ;;  %v3888_v12 = vrot.slane %v14312_v61, %v14301_v9  ;;  %v14327_v52 = vrot.slane %v8906_v56, %v7834_v58 }
 0x19b   : > { %4008 = vrot.lane.b32.xlu1 %v14302_v35, %s7172_s18  ;;  %v9041_v30 = vpop.permute.xlu0 %2023  ;;  %4633 = vrot.lane.b32.xlu0 %v14303_v34, %s7179_s16  ;;  %14319 = vst [vmem:[#allocation126_spill] sm:$0xff] %v9106_v55  ;;  %v1819_v14 = vmul.f32 %v14321_v0, %v9011_v13  ;;  %v1620_v19 = vmul.f32 %v14322_v63, %v8874_v29 }
 0x19c   : > { %v2014_v43 = vpop.permute.xlu1 %2013  ;;  %v1735_v0 = vadd.f32 %v1719_v4, %v1635_v48  ;;  %v9137_v63 = vrot.slane %v3880_v16, %v7834_v58  ;;  %v14328_v55 = vrot.slane %v8867_v7, %v7804_v45  ;;  %v14331_v16 = vld [vmem:[#allocation82_spill] sm:$0xff]  ;;  %v14334_v27 = vrot.slane %v8867_v7, %v7837_v59 }
 0x19d   : > { %v2046_v62 = vsel %vm2045_vm15, %v8916_v20, %v2014_v43  ;;  %v2047_v15 = vsel %vm2045_vm15, %v2014_v43, %v8962_v23  ;;  %v14324_v20 = vld [vmem:[#allocation81_spill] sm:$0xff]  ;;  %v9128_v43 = vrot.slane %v3876_v11, %v7834_v58  ;;  %v1621_v11 = vmul.f32 %v14327_v52, %v8874_v29 }
 0x19e   : > { %14326 = vst [vmem:[#allocation81_spill] sm:$0xff] %v9137_v63  ;;  %v1720_v32 = vmul.f32 %v14328_v55, %v8960_v33  ;;  %v9149_v48 = vsel %vm1995_vm14, %v2046_v62, 0.0  ;;  %v9153_v4 = vsel %vm1996_vm12, %v2047_v15, 0.0  ;;  %vm2001_vm13 = vcmp.eq.s32.totalorder %v14331_v16, 1  ;;  %v14332_v63 = vld [vmem:[#allocation83_spill] sm:$0xff] }
 0x19f   : > { %4012 = vrot.lane.b32.xlu1 %v14311_v49, %s7172_s18  ;;  %v9077_v10 = vpop.permute.xlu0 %2027  ;;  %4637 = vrot.lane.b32.xlu0 %v14196_v46, %s7179_s16  ;;  %14325 = vst [vmem:[#allocation80_spill] sm:$0xff] %v9128_v43  ;;  %v1636_v43 = vadd.f32 %v1620_v19, %v1536_v51  ;;  %14329 = vst [vmem:[#allocation127_spill] sm:$0xff] %v9149_v48  ;;  %vm2002_vm2 = vcmp.eq.s32.totalorder %v14332_v63, 1  ;;  %v14333_v51 = vrot.slane %v8906_v56, %v7804_v45  ;;  %v7183_v63 = vmov 24  }
 0x1a0   : > { %v2018_v1 = vpop.permute.xlu1 %2017  ;;  %14330 = vst [vmem:[#allocation128_spill] sm:$0xff] %v9153_v4  ;;  %v9167_v55 = vmul.f32 %v14334_v27, %v9011_v13  ;;  %v9173_v62 = vadd.f32 %v1819_v14, %v1735_v0  ;;  %v9175_v19 = vadd.f32 %v1621_v11, %v1537_v39  ;;  %v9184_v7 = vrot.slane %v3888_v12, %v7834_v58 }
 0x1a1   : > { %v9161_v52 = vmul.f32 %v14333_v51, %v8960_v33  ;;  %v2048_v15 = vsel %vm2045_vm15, %v8962_v23, %v2018_v1  ;;  %v2049_v18 = vsel %vm2045_vm15, %v2018_v1, %v9000_v5  ;;  %v9181_v33 = vrot.slane %v3884_v36, %v7834_v58  ;;  %v14338_v1 = vld [vmem:[#allocation51_spill] sm:$0xff]  ;;  %v14341_v36 = vld [vmem:[#allocation85_spill] sm:$0xff] }
 0x1a2   : > { %14336 = vst [vmem:[#allocation83_spill] sm:$0xff] %v9184_v7  ;;  %v14337_v23 = vrot.slane %v8906_v56, %v7837_v59  ;;  %v9202_v11 = vadd.f32 %v1720_v32, %v1636_v43  ;;  %v9210_v14 = vsel %vm1997_vm1, %v2048_v15, 0.0  ;;  %v9214_v0 = vsel %vm1998_vm3, %v2049_v18, 0.0  ;;  %v14342_v15 = vld [vmem:[#allocation86_spill] sm:$0xff]  ;;  %v14343_v32 = vld [vmem:[#allocation60_spill] sm:$0xff] }
 0x1a3   : > { %4016 = vrot.lane.b32.xlu1 %v14323_v41, %s7172_s18  ;;  %v9124_v21 = vpop.permute.xlu0 %2031  ;;  %4641 = vrot.lane.b32.xlu0 %v14198_v54, %s7179_s16  ;;  %14335 = vst [vmem:[#allocation82_spill] sm:$0xff] %v9181_v33  ;;  %14339 = vst [vmem:[#allocation129_spill] sm:$0xff] %v9210_v14  ;;  %vm2003_vm14 = vcmp.eq.s32.totalorder %v14341_v36, 1  ;;  %v7181_v18 = vmov 22   ;;  %v3892_v39 = vrot.slane %v14343_v32, %v7834_v58  ;;  %v3896_v43 = vrot.slane %v14343_v32, %v7837_v59  ;;  %v14348_v7 = vld [vmem:[#allocation88_spill] sm:$0xff] }
 0x1a4   : > { %v2022_v31 = vpop.permute.xlu1 %2021  ;;  %v9190_v27 = vmul.f32 %v14337_v23, %v9011_v13  ;;  %14340 = vst [vmem:[#allocation130_spill] sm:$0xff] %v9214_v0  ;;  %v3900_v56 = vrot.slane %v14343_v32, %v14298_v25  ;;  %v3904_v48 = vrot.slane %v14343_v32, %v14301_v9  ;;  %vm14345_vm1 = vcmp.eq.s32.totalorder %v14324_v20, 1 }
 0x1a5   : > { %v2050_v3 = vsel %vm2045_vm15, %v9000_v5, %v2022_v31  ;;  %v2051_v38 = vsel %vm2045_vm15, %v2022_v31, %v9041_v30  ;;  %v14349_v31 = vld [vmem:[#allocation91_spill] sm:$0xff]  ;;  %v9275_v32 = vrot.slane %v3892_v39, %v7834_v58  ;;  %v9278_v24 = vrot.slane %v3896_v43, %v7834_v58 }
 0x1a6   : > { %v9249_v33 = vsel %vm1999_vm0, %v2050_v3, 0.0  ;;  %v9265_v3 = vsel %vm14345_vm1, %v2051_v38, 0.0  ;;  %vm2006_vm0 = vcmp.eq.s32.totalorder %v14348_v7, 1  ;;  %vm2007_vm12 = vcmp.eq.s32.totalorder %v14349_v31, 1 }
 0x1a7   : > { %4070 = vperm.xlu1 %6871, %v8727_v17   ;;  %v9178_v51 = vpop.permute.xlu0 %2035  ;;  %4645 = vrot.lane.b32.xlu0 %v14202_v57, %s7179_s16  ;;  %14344 = vst [vmem:[#allocation85_spill] sm:$0xff] %v9249_v33  ;;  %14346 = vst [vmem:[#allocation86_spill] sm:$0xff] %v9265_v3  ;;  %v9281_v20 = vrot.slane %v3900_v56, %v7834_v58  ;;  %v7182_v0 = vmov 23   ;;  %v9295_v43 = vrot.slane %v3904_v48, %v7834_v58  ;;  %v14358_v56 = vld [vmem:[#allocation93_spill] sm:$0xff]  ;;  %v14359_v3 = vld [vmem:[#allocation94_spill] sm:$0xff]  ;;  %vm14360_vm1 = vcmp.eq.s32.totalorder %v14342_v15, 1 }
 0x1a8   : > { %v2026_v12 = vpop.permute.xlu1 %2025  ;;  %14351 = vst [vmem:[#allocation88_spill] sm:$0xff] %v9278_v24  ;;  %v9357_v15 = vadd.f32 %v9167_v55, %v9202_v11  ;;  %v14363_v33 = vld [vmem:[#allocation41_spill] sm:$0xff]  ;;  %v14371_v55 = vmov 0  }
 0x1a9   : > { %v2052_v5 = vsel %vm2045_vm15, %v9041_v30, %v2026_v12  ;;  %v2053_v4 = vsel %vm2045_vm15, %v2026_v12, %v9077_v10  ;;  %v14347_v30 = vld [vmem:[#allocation87_spill] sm:$0xff]  ;;  %14352 = vst [vmem:[#allocation91_spill] sm:$0xff] %v9281_v20 }
 0x1aa   : > { %vm2005_vm3 = vcmp.eq.s32.totalorder %v14347_v30, 1  ;;  %14350 = vst [vmem:[#allocation87_spill] sm:$0xff] %v9275_v32  ;;  %v9287_v14 = vsel %vm2001_vm13, %v2052_v5, 0.0  ;;  %v9291_v12 = vsel %vm2002_vm2, %v2053_v4, 0.0  ;;  %v14355_v32 = vld [vmem:[#allocation92_spill] sm:$0xff]  ;;  %vm2009_vm2 = vcmp.eq.s32.totalorder %v14358_v56, 1 }
 0x1ab   : > { %6873 = vset.pattern.permute.xlu1 %v7181_v18  ;;  %v9228_v23 = vpop.permute.xlu0 %2039  ;;  %4649 = vrot.lane.b32.xlu0 %v14210_v22, %s7179_s16  ;;  %14353 = vst [vmem:[#allocation131_spill] sm:$0xff] %v9287_v14  ;;  %14354 = vst [vmem:[#allocation132_spill] sm:$0xff] %v9291_v12  ;;  %vm2010_vm13 = vcmp.eq.s32.totalorder %v14359_v3, 1 }
 0x1ac   : > { %4270 = vperm.xlu1 %6873, %v8727_v17   ;;  %v2030_v18 = vpop.permute.xlu1 %2029  ;;  %14356 = vst [vmem:[#allocation92_spill] sm:$0xff] %v9295_v43 }
 0x1ad   : > { %v2054_v5 = vsel %vm2045_vm15, %v9077_v10, %v2030_v18 }
 0x1ae   : > { %v9332_v16 = vsel %vm2003_vm14, %v2054_v5, 0.0  ;;  %vm14364_vm14 = vcmp.le.s32.totalorder %v14363_v33, 46 }
 0x1af   : > { %v9271_v22 = vpop.permute.xlu0 %2043  ;;  %4653 = vrot.lane.b32.xlu0 %v8099_v42, %s7179_s16 }
 0x1b0   : > { %6874 = vset.pattern.permute.xlu1 %v7182_v0  ;;  %v2034_v39 = vpop.permute.xlu1 %2033  ;;  %v2055_v0 = vsel %vm2045_vm15, %v2030_v18, %v9124_v21  ;;  %v1737_v18 = vadd.f32 %v9161_v52, %v9175_v19 }
 0x1b1   : > { %4370 = vperm.xlu1 %6874, %v8727_v17   ;;  %v9344_v10 = vsel %vm14360_vm1, %v2055_v0, 0.0  ;;  %v2056_v36 = vsel %vm2045_vm15, %v9124_v21, %v2034_v39  ;;  %v2057_v5 = vsel %vm2045_vm15, %v2034_v39, %v9178_v51  ;;  %v2133_v0 = vrot.slane %v9332_v16, %v7801_v44  ;;  %vm9385_vm1 = vmand %vm14364_vm14, %vm7761_vm4 }
 0x1b2   : > { %v3168_v21 = vrot.slane %v14198_v54, %v7801_v44  ;;  %v14361_v39 = vrot.slane %v14196_v46, %v14338_v1  ;;  %v9414_v7 = vadd.f32 %v9190_v27, %v1737_v18  ;;  %vm14369_vm4 = vcmp.eq.s32.totalorder %v14355_v32, 1 }
 0x1b3   : > { %v9322_v38 = vpop.permute.xlu0 %2195  ;;  %4805 = vperm.xlu0 %6876, %v8727_v17   ;;  %v9425_v31 = vsel %vm9385_vm1, 1, %v14371_v55  ;;  %v14406_v57 = vrot.slane %v9344_v10, %v7804_v45 }
 0x1b4   : > { %14357 = vst [vmem:[#allocation133_spill] sm:$0xff] %v9322_v38  ;;  %v2038_v48 = vpop.permute.xlu1 %2037  ;;  %v9371_v52 = vrot.slane %v14361_v39, %v7801_v44  ;;  %v4480_v27 = vrot.slane %v9425_v31, %v7801_v44  ;;  %v4484_v33 = vrot.slane %v9425_v31, %v7804_v45 }
 0x1b5   : > { %4623 = vrot.lane.b32.xlu1 %v14274_v2, %s7179_s16  ;;  %v2058_v4 = vsel %vm2045_vm15, %v9178_v51, %v2038_v48  ;;  %v2059_v11 = vsel %vm2045_vm15, %v2038_v48, %v9228_v23  ;;  %v9395_v51 = vsel %vm2005_vm3, %v2056_v36, 0.0  ;;  %v9399_v48 = vsel %vm2006_vm0, %v2057_v5, 0.0 }
 0x1b6   : > { %6875 = vset.pattern.permute.xlu1 %v7183_v63  ;;  %14367 = vst [vmem:[#allocation93_spill] sm:$0xff] %v9399_v48  ;;  %v9409_v19 = vsel %vm2007_vm12, %v2058_v4, 0.0  ;;  %v9418_v30 = vsel %vm14369_vm4, %v2059_v11, 0.0  ;;  %v7185_v5 = vmov 29   ;;  %v9428_v4 = vrot.slane %v3168_v21, %v7801_v44 }
 0x1b7   : > { %v9363_v12 = vpop.permute.xlu0 %2638  ;;  %14368 = vst [vmem:[#allocation94_spill] sm:$0xff] %v9409_v19  ;;  %5248 = vrot.lane.b32.xlu0 %v7591_v37, %s7184_s28  ;;  %14370 = vst [vmem:[#allocation46_spill] sm:$0xff] %v9418_v30  ;;  %v2141_v32 = vrot.slane %v9395_v51, %v7801_v44  ;;  %v2249_v18 = vrot.slane %v9409_v19, %v7834_v58  ;;  %v9514_v56 = vrot.slane %v4480_v27, %v7801_v44  ;;  %v14391_v19 = vld [vmem:[#allocation43_spill] sm:$0xff] }
 0x1b8   : > { %v2042_v63 = vpop.permute.xlu1 %2041  ;;  %6880 = vset.pattern.permute.xlu0 %v7185_v5  ;;  %14372 = vst [vmem:[#allocation134_spill] sm:$0xff] %v9428_v4  ;;  %v14387_v37 = vrot.slane %v9344_v10, %v7801_v44  ;;  %v14413_v4 = vld [vmem:[#allocation107_spill] sm:$0xff] }
 0x1b9   : > { %4627 = vrot.lane.b32.xlu1 %v14279_v6, %s7179_s16  ;;  %v2060_v11 = vsel %vm2045_vm15, %v9228_v23, %v2042_v63  ;;  %v2061_v39 = vsel %vm2045_vm15, %v2042_v63, %v9271_v22  ;;  %v2253_v63 = vrot.slane %v9418_v30, %v7834_v58  ;;  %vm2672_vm15 = vcmask 7168   ;;  %14384 = vst [vmem:[#allocation140_spill] sm:$0xff] %v9514_v56 }
 0x1ba   : > { %v9466_v21 = vsel %vm2009_vm2, %v2060_v11, 0.0  ;;  %v9470_v22 = vsel %vm2010_vm13, %v2061_v39, 0.0  ;;  %v14377_v39 = vld [vmem:[#allocation42_spill] sm:$0xff]  ;;  %v9493_v43 = vmul.f32 %v2249_v18, %v9322_v38  ;;  %vm14392_vm2 = vcmp.le.s32.totalorder %v14391_v19, 46 }
 0x1bb   : > { %v9420_v36 = vpop.permute.xlu0 %2642  ;;  %5252 = vrot.lane.b32.xlu0 %v7579_v26, %s7184_s28  ;;  %14374 = vst [vmem:[#allocation136_spill] sm:$0xff] %v9466_v21  ;;  %14375 = vst [vmem:[#allocation137_spill] sm:$0xff] %v9470_v22  ;;  %vm14378_vm12 = vcmp.le.s32.totalorder %v14377_v39, 46  ;;  %v9505_v39 = vmul.f32 %v2253_v63, %v9322_v38  ;;  %v2257_v18 = vrot.slane %v9466_v21, %v7834_v58 }
 0x1bc   : > { %v9440_v5 = vpop.permute.xlu1 %2095  ;;  %vm9488_vm3 = vmand %vm14378_vm12, %vm7773_vm5  ;;  %14381 = vst [vmem:[#allocation48_spill] sm:$0xff] %v9493_v43  ;;  %v2261_v24 = vrot.slane %v9470_v22, %v7834_v58  ;;  %v9522_v63 = vrot.slane %v4484_v33, %v7801_v44  ;;  %v14388_v43 = vld [vmem:[#allocation35_spill] sm:$0xff]  ;;  %v4488_v33 = vrot.slane %v9425_v31, %v14338_v1  ;;  %vm2628_vm12 = vcmp.eq.s32.totalorder %v14413_v4, 1 }
 0x1bd   : > { %14373 = vst [vmem:[#allocation135_spill] sm:$0xff] %v9440_v5  ;;  %4631 = vrot.lane.b32.xlu1 %v14284_v40, %s7179_s16  ;;  %v2170_v3 = vmul.f32 %v2133_v0, %v9440_v5  ;;  %14383 = vst [vmem:[#allocation139_spill] sm:$0xff] %v9505_v39  ;;  %v14385_v0 = vld [vmem:[#allocation56_spill] sm:$0xff]  ;;  %v4474_v39 = vsel %vm9488_vm3, 1, %v14371_v55  ;;  %v2171_v27 = vmul.f32 %v14387_v37, %v9440_v5  ;;  %vm2623_vm0 = vcmp.eq.s32.totalorder %v14388_v43, 1 }
 0x1be   : > { %vm2622_vm5 = vcmp.eq.s32.totalorder %v14385_v0, 1  ;;  %14386 = vst [vmem:[#allocation56_spill] sm:$0xff] %v9522_v63  ;;  %v14389_v63 = vld [vmem:[#allocation49_spill] sm:$0xff]  ;;  %vm4471_vm13 = vmand %vm14392_vm2, %vm7793_vm8  ;;  %v2172_v48 = vmul.f32 %v2141_v32, %v9440_v5  ;;  %v9556_v42 = vmul.f32 %v2261_v24, %v9322_v38  ;;  %v4496_v56 = vrot.slane %v4474_v39, %v7801_v44 }
 0x1bf   : > { %v9472_v23 = vpop.permute.xlu0 %2646  ;;  %5256 = vrot.lane.b32.xlu0 %v14294_v47, %s7184_s28  ;;  %v4492_v14 = vrot.slane %v9425_v31, %v14389_v63  ;;  %v2186_v20 = vadd.f32 %v2170_v3, %v9173_v62  ;;  %v9553_v31 = vmul.f32 %v2257_v18, %v9322_v38  ;;  %v14396_v62 = vld [vmem:[#allocation103_spill] sm:$0xff]  ;;  %v4500_v32 = vrot.slane %v4474_v39, %v7804_v45 }
 0x1c0   : > { %14394 = vst [vmem:[#allocation50_spill] sm:$0xff] %v9556_v42  ;;  %vm2624_vm8 = vcmp.eq.s32.totalorder %v14396_v62, 1  ;;  %v4475_v3 = vsel %vm4471_vm13, 1, %v14371_v55  ;;  %v14397_v24 = vrot.slane %v9332_v16, %v7834_v58  ;;  %v2187_v19 = vadd.f32 %v2171_v27, %v9357_v15  ;;  %v14398_v42 = vld [vmem:[#allocation104_spill] sm:$0xff] }
 0x1c1   : > { %4635 = vrot.lane.b32.xlu1 %v14289_v50, %s7179_s16  ;;  %v9501_v11 = vpop.permute.xlu1 %2295  ;;  %14393 = vst [vmem:[#allocation35_spill] sm:$0xff] %v9553_v31  ;;  %vm2625_vm14 = vcmp.eq.s32.totalorder %v14398_v42, 1  ;;  %v9577_v22 = vrot.slane %v4488_v33, %v7801_v44  ;;  %v9580_v31 = vrot.slane %v4492_v14, %v7801_v44  ;;  %v4504_v5 = vrot.slane %v4474_v39, %v14338_v1 }
 0x1c2   : > { %14382 = vst [vmem:[#allocation138_spill] sm:$0xff] %v9501_v11  ;;  %v2270_v18 = vmul.f32 %v14397_v24, %v9322_v38  ;;  %v4508_v13 = vrot.slane %v4474_v39, %v14389_v63  ;;  %v14401_v15 = vrot.slane %v9332_v16, %v7804_v45  ;;  %v2188_v24 = vadd.f32 %v2172_v48, %v9414_v7 }
 0x1c3   : > { %v9518_v30 = vpop.permute.xlu0 %2650  ;;  %5260 = vrot.lane.b32.xlu0 %v14303_v34, %s7184_s28  ;;  %14399 = vst [vmem:[#allocation103_spill] sm:$0xff] %v9577_v22  ;;  %14400 = vst [vmem:[#allocation104_spill] sm:$0xff] %v9580_v31  ;;  %v14402_v33 = vrot.slane %v9344_v10, %v7834_v58  ;;  %v9598_v39 = vrot.slane %v4496_v56, %v7801_v44  ;;  %v14404_v48 = vrot.slane %v9395_v51, %v7834_v58 }
 0x1c4   : > { %v2286_v29 = vadd.f32 %v2270_v18, %v2186_v20  ;;  %v2370_v27 = vmul.f32 %v14401_v15, %v9501_v11  ;;  %v4512_v20 = vrot.slane %v4475_v3, %v7801_v44  ;;  %v4516_v18 = vrot.slane %v4475_v3, %v7804_v45 }
 0x1c5   : > { %4639 = vrot.lane.b32.xlu1 %v7641_v60, %s7179_s16  ;;  %v2271_v14 = vmul.f32 %v14402_v33, %v9322_v38  ;;  %14403 = vst [vmem:[#allocation142_spill] sm:$0xff] %v9598_v39  ;;  %v2272_v7 = vmul.f32 %v14404_v48, %v9322_v38  ;;  %v14405_v22 = vrot.slane %v9332_v16, %v7837_v59  ;;  %v14407_v48 = vld [vmem:[#allocation105_spill] sm:$0xff]  ;;  %v14408_v38 = vld [vmem:[#allocation106_spill] sm:$0xff] }
 0x1c6   : > { %v9560_v37 = vpop.permute.xlu1 %2395  ;;  %v2371_v61 = vmul.f32 %v14406_v57, %v9501_v11  ;;  %vm2626_vm1 = vcmp.eq.s32.totalorder %v14407_v48, 1  ;;  %vm2627_vm4 = vcmp.eq.s32.totalorder %v14408_v38, 1  ;;  %v4520_v60 = vrot.slane %v4475_v3, %v14338_v1 }
 0x1c7   : > { %14395 = vst [vmem:[#allocation141_spill] sm:$0xff] %v9560_v37  ;;  %v9565_v21 = vpop.permute.xlu0 %2654  ;;  %5264 = vrot.lane.b32.xlu0 %v14196_v46, %s7184_s28  ;;  %v2470_v56 = vmul.f32 %v14405_v22, %v9560_v37  ;;  %v2287_v39 = vadd.f32 %v2271_v14, %v2187_v19  ;;  %v4524_v16 = vrot.slane %v4475_v3, %v14389_v63 }
 0x1c8   : > { %v9630_v19 = vrot.slane %v4504_v5, %v7801_v44  ;;  %v2386_v57 = vadd.f32 %v2370_v27, %v2286_v29  ;;  %v2288_v22 = vadd.f32 %v2272_v7, %v2188_v24  ;;  %v9643_v3 = vrot.slane %v4508_v13, %v7801_v44  ;;  %v14418_v24 = vld [vmem:[#allocation45_spill] sm:$0xff] }
 0x1c9   : > { %4643 = vrot.lane.b32.xlu1 %v14302_v35, %s7179_s16  ;;  %v9646_v29 = vrot.slane %v4512_v20, %v7801_v44  ;;  %v9649_v5 = vrot.slane %v4516_v18, %v7801_v44  ;;  %vm14419_vm3 = vcmp.le.s32.totalorder %v14418_v24, 46  ;;  %v9666_v18 = vadd.f32 %v2371_v61, %v2287_v39 }
 0x1ca   : > { %v2641_v31 = vpop.permute.xlu1 %2640  ;;  %14410 = vst [vmem:[#allocation106_spill] sm:$0xff] %v9630_v19  ;;  %14414 = vst [vmem:[#allocation107_spill] sm:$0xff] %v9643_v3  ;;  %v9664_v20 = vadd.f32 %v2470_v56, %v2386_v57  ;;  %v9671_v27 = vrot.slane %v4520_v60, %v7801_v44  ;;  %v14424_v43 = vrot.slane %v9344_v10, %v7837_v59  ;;  %v7186_v10 = vmov 30   ;;  %v14492_v19 = vld [vmem:[#allocation28_spill] sm:$0xff] }
 0x1cb   : > { %v2673_v15 = vsel %vm2672_vm15, %v9363_v12, %v2641_v31  ;;  %v9608_v33 = vpop.permute.xlu0 %2658  ;;  %v2674_v9 = vsel %vm2672_vm15, %v2641_v31, %v9420_v36  ;;  %v9623_v12 = vrot.slane %v4500_v32, %v7801_v44  ;;  %v14411_v31 = vrot.slane %v9395_v51, %v7804_v45  ;;  %5432 = vperm.xlu0 %6880, %v8727_v17  }
 0x1cc   : > { %v9638_v32 = vsel %vm2622_vm5, %v2673_v15, 0.0  ;;  %14415 = vst [vmem:[#allocation144_spill] sm:$0xff] %v9646_v29  ;;  %14416 = vst [vmem:[#allocation145_spill] sm:$0xff] %v9649_v5  ;;  %v9657_v0 = vsel %vm2623_vm0, %v2674_v9, 0.0  ;;  %v14421_v15 = vld [vmem:[#allocation108_spill] sm:$0xff]  ;;  %v9674_v9 = vrot.slane %v4524_v16, %v7801_v44  ;;  %v14425_v60 = vrot.slane %v9395_v51, %v7837_v59  ;;  %v14429_v16 = vld [vmem:[#allocation110_spill] sm:$0xff] }
 0x1cd   : > { %14409 = vst [vmem:[#allocation105_spill] sm:$0xff] %v9623_v12  ;;  %4647 = vrot.lane.b32.xlu1 %v14311_v49, %s7179_s16  ;;  %v2372_v14 = vmul.f32 %v14411_v31, %v9501_v11  ;;  %14412 = vst [vmem:[#allocation143_spill] sm:$0xff] %v9638_v32  ;;  %vm2629_vm2 = vcmp.eq.s32.totalorder %v14421_v15, 1  ;;  %vm2631_vm0 = vcmp.eq.s32.totalorder %v14429_v16, 1  ;;  %v14430_v32 = vld [vmem:[#allocation111_spill] sm:$0xff]  ;;  %v14488_v29 = vld [vmem:[#allocation122_spill] sm:$0xff] }
 0x1ce   : > { %v2645_v12 = vpop.permute.xlu1 %2644  ;;  %vm4472_vm5 = vmand %vm14419_vm3, %vm7816_vm10  ;;  %14420 = vst [vmem:[#allocation52_spill] sm:$0xff] %v9657_v0  ;;  %vm2632_vm13 = vcmp.eq.s32.totalorder %v14430_v32, 1 }
 0x1cf   : > { %v2675_v7 = vsel %vm2672_vm15, %v9420_v36, %v2645_v12  ;;  %v9661_v13 = vpop.permute.xlu0 %2662  ;;  %v2676_v31 = vsel %vm2672_vm15, %v2645_v12, %v9472_v23  ;;  %14422 = vst [vmem:[#allocation108_spill] sm:$0xff] %v9671_v27  ;;  %14423 = vst [vmem:[#allocation146_spill] sm:$0xff] %v9674_v9  ;;  %v9680_v36 = vmul.f32 %v14424_v43, %v9560_v37  ;;  %v4476_v61 = vsel %vm4472_vm5, 1, %v14371_v55  ;;  %v14433_v9 = vld [vmem:[#allocation59_spill] sm:$0xff] }
 0x1d0   : > { %v9687_v39 = vadd.f32 %v2372_v14, %v2288_v22  ;;  %v9693_v12 = vmul.f32 %v14425_v60, %v9560_v37  ;;  %v9703_v43 = vsel %vm2624_vm8, %v2675_v7, 0.0  ;;  %5270 = vrot.lane.b32.xlu0 %v14302_v35, %s7184_s28  ;;  %v9715_v57 = vsel %vm2625_vm14, %v2676_v31, 0.0  ;;  %v14428_v7 = vld [vmem:[#allocation109_spill] sm:$0xff] }
 0x1d1   : > { %4651 = vrot.lane.b32.xlu1 %v14323_v41, %s7179_s16  ;;  %14426 = vst [vmem:[#allocation147_spill] sm:$0xff] %v9703_v43  ;;  %14427 = vst [vmem:[#allocation148_spill] sm:$0xff] %v9715_v57  ;;  %vm2630_vm10 = vcmp.eq.s32.totalorder %v14428_v7, 1  ;;  %6881 = vset.pattern.permute.xlu0 %v7186_v10  ;;  %v4528_v42 = vrot.slane %v4476_v61, %v7801_v44  ;;  %v4532_v56 = vrot.slane %v4476_v61, %v7804_v45  ;;  %v9846_v7 = vld [vmem:[%s14110_s3] sm:$0xff]  ;;  %s13484_s16 = scalar_lea.hbm %s15261_s21, %s6681_s17 }
 0x1d2   : > { %v2649_v22 = vpop.permute.xlu1 %2648  ;;  %v4536_v10 = vrot.slane %v4476_v61, %v14338_v1  ;;  %v4540_v24 = vrot.slane %v4476_v61, %v14389_v63  ;;  %vm2633_vm8 = vcmp.eq.s32.totalorder %v14433_v9, 1  ;;  %vm3970_vm5 = vcmp.eq.s32.totalorder %v14488_v29, 1 }
 0x1d3   : > { %v9717_v62 = vpop.permute.xlu0 %2666  ;;  %v2677_v14 = vsel %vm2672_vm15, %v9472_v23, %v2649_v22  ;;  %v2678_v60 = vsel %vm2672_vm15, %v2649_v22, %v9518_v30  ;;  %v9775_v5 = vrot.slane %v4532_v56, %v7801_v44 }
 0x1d4   : > { %5274 = vrot.lane.b32.xlu0 %v14311_v49, %s7184_s28  ;;  %v9747_v61 = vsel %vm2626_vm1, %v2677_v14, 0.0  ;;  %v9751_v51 = vsel %vm2627_vm4, %v2678_v60, 0.0  ;;  %v9767_v14 = vrot.slane %v4528_v42, %v7801_v44  ;;  %v14436_v60 = vld [vmem:[#allocation61_spill] sm:$0xff]  ;;  %v9778_v27 = vrot.slane %v4536_v10, %v7801_v44  ;;  %v14441_v10 = vld [vmem:[#allocation112_spill] sm:$0xff] }
 0x1d5   : > { %4705 = vperm.xlu1 %6875, %v8727_v17   ;;  %14431 = vst [vmem:[#allocation109_spill] sm:$0xff] %v9747_v61  ;;  %14432 = vst [vmem:[#allocation110_spill] sm:$0xff] %v9751_v51  ;;  %vm2634_vm14 = vcmp.eq.s32.totalorder %v14436_v60, 1  ;;  %v9781_v48 = vrot.slane %v4540_v24, %v7801_v44  ;;  %vm2635_vm1 = vcmp.eq.s32.totalorder %v14441_v10, 1  ;;  %vm2636_vm4 = vcmp.eq.s32.totalorder %v8681_v53, 1 }
 0x1d6   : > { %v2653_v0 = vpop.permute.xlu1 %2652  ;;  %14434 = vst [vmem:[#allocation111_spill] sm:$0xff] %v9767_v14  ;;  %14437 = vst [vmem:[#allocation61_spill] sm:$0xff] %v9775_v5 }
 0x1d7   : > { %v2679_v22 = vsel %vm2672_vm15, %v9518_v30, %v2653_v0  ;;  %v2680_v31 = vsel %vm2672_vm15, %v2653_v0, %v9565_v21  ;;  %v9757_v23 = vpop.permute.xlu0 %2670  ;;  %v7187_v0 = vmov 26   ;;  %14438 = vst [vmem:[#allocation149_spill] sm:$0xff] %v9778_v27  ;;  %14439 = vst [vmem:[#allocation150_spill] sm:$0xff] %v9781_v48 }
 0x1d8   : > { %v9771_v30 = vsel %vm2628_vm12, %v2679_v22, 0.0  ;;  %5278 = vrot.lane.b32.xlu0 %v14323_v41, %s7184_s28  ;;  %vm2637_vm12 = vcmp.eq.s32.totalorder %v8692_v8, 1 }
 0x1d9   : > { %14435 = vst [vmem:[#allocation59_spill] sm:$0xff] %v9771_v30  ;;  %6877 = vset.pattern.permute.xlu1 %v7187_v0  ;;  %v9791_v0 = vsel %vm2629_vm2, %v2680_v31, 0.0 }
 0x1da   : > { %14440 = vst [vmem:[#allocation151_spill] sm:$0xff] %v9791_v0  ;;  %4905 = vperm.xlu1 %6877, %v8727_v17   ;;  %v2657_v56 = vpop.permute.xlu1 %2656  ;;  %v7189_v0 = vmov 28  }
 0x1db   : > { %v2681_v4 = vsel %vm2672_vm15, %v9565_v21, %v2657_v56  ;;  %v2682_v22 = vsel %vm2672_vm15, %v2657_v56, %v9608_v33  ;;  %v9813_v24 = vpop.permute.xlu0 %2822  ;;  %v7188_v56 = vmov 27  }
 0x1dc   : > { %14442 = vst [vmem:[#allocation112_spill] sm:$0xff] %v9813_v24  ;;  %v9831_v21 = vsel %vm2630_vm10, %v2681_v4, 0.0  ;;  %v9835_v17 = vsel %vm2631_vm0, %v2682_v22, 0.0  ;;  %5532 = vperm.xlu0 %6881, %v9846_v7   ;;  %v9854_v4 = vadd.f32 %v9680_v36, %v9666_v18  ;;  %v7190_v22 = vmov 33  }
 0x1dd   : > { %v2860_v36 = vrot.slane %v9831_v21, %v7834_v58 }
 0x1de   : > { %6878 = vset.pattern.permute.xlu1 %v7188_v56  ;;  %v2661_v15 = vpop.permute.xlu1 %2660 }
 0x1df   : > { %v2683_v42 = vsel %vm2672_vm15, %v9608_v33, %v2661_v15  ;;  %v2684_v31 = vsel %vm2672_vm15, %v2661_v15, %v9661_v13  ;;  %5005 = vperm.xlu1 %6878, %v9846_v7   ;;  %v9858_v33 = vadd.f32 %v9693_v12, %v9687_v39  ;;  %v14444_v15 = vrot.slane %v14196_v46, %v14298_v25  ;;  %v14504_v25 = vld [vmem:[#allocation93_spill] sm:$0xff] }
 0x1e0   : > { %v9850_v16 = vpop.permute.xlu0 %3122  ;;  %v9876_v39 = vsel %vm2632_vm13, %v2683_v42, 0.0  ;;  %v9886_v38 = vsel %vm2633_vm8, %v2684_v31, 0.0  ;;  %6884 = vset.pattern.permute.xlu0 %v7190_v22 }
 0x1e1   : > { %14443 = vst [vmem:[#allocation152_spill] sm:$0xff] %v9850_v16  ;;  %v9866_v56 = vrot.slane %v14444_v15, %v7834_v58  ;;  %v2868_v9 = vrot.slane %v9876_v39, %v7834_v58  ;;  %v2768_v32 = vrot.slane %v9876_v39, %v7801_v44  ;;  %v2872_v15 = vrot.slane %v9886_v38, %v7834_v58 }
 0x1e2   : > { %v2665_v18 = vpop.permute.xlu1 %2664  ;;  %6067 = vperm.xlu0 %6884, %v9846_v7  }
 0x1e3   : > { %v2685_v42 = vsel %vm2672_vm15, %v9661_v13, %v2665_v18  ;;  %v2686_v12 = vsel %vm2672_vm15, %v2665_v18, %v9717_v62  ;;  %5250 = vrot.lane.b32.xlu1 %v14274_v2, %s7184_s28  ;;  %v5107_v13 = vrot.slane %v14291_v28, %v7801_v44  ;;  %v5111_v18 = vrot.slane %v14291_v28, %v7804_v45 }
 0x1e4   : > { %v9902_v31 = vsel %vm2634_vm14, %v2685_v42, 0.0  ;;  %6879 = vset.pattern.permute.xlu1 %v7189_v0  ;;  %v9914_v60 = vsel %vm2635_vm1, %v2686_v12, 0.0  ;;  %v2897_v0 = vmul.f32 %v2860_v36, %v9813_v24  ;;  %v2899_v51 = vmul.f32 %v2868_v9, %v9813_v24 }
 0x1e5   : > { %14445 = vst [vmem:[#allocation153_spill] sm:$0xff] %v9914_v60  ;;  %v9916_v42 = vpop.permute.xlu0 %3662  ;;  %v2876_v57 = vrot.slane %v9902_v31, %v7834_v58  ;;  %v2880_v10 = vrot.slane %v9914_v60, %v7834_v58  ;;  %v9959_v53 = vrot.slane %v5107_v13, %v7801_v44  ;;  %v9962_v9 = vrot.slane %v5111_v18, %v7801_v44 }
 0x1e6   : > { %14446 = vst [vmem:[#allocation154_spill] sm:$0xff] %v9916_v42  ;;  %v2669_v12 = vpop.permute.xlu1 %2668  ;;  %5887 = vrot.lane.b32.xlu0 %v7579_v26, %s7191_s10  ;;  %v7192_v26 = vmov 35   ;;  %v14453_v18 = vrot.slane %v9831_v21, %v7801_v44  ;;  %v14529_v29 = vrot.slane %v9902_v31, %v7804_v45 }
 0x1e7   : > { %v2687_v36 = vsel %vm2672_vm15, %v9717_v62, %v2669_v12  ;;  %v2688_v22 = vsel %vm2672_vm15, %v2669_v12, %v9757_v23  ;;  %5254 = vrot.lane.b32.xlu1 %v14279_v6, %s7184_s28  ;;  %v9950_v62 = vmul.f32 %v2872_v15, %v9813_v24  ;;  %14449 = vst [vmem:[#allocation157_spill] sm:$0xff] %v9959_v53  ;;  %14450 = vst [vmem:[#allocation158_spill] sm:$0xff] %v9962_v9  ;;  %vm4020_vm15 = vcmask 1039360  }
 0x1e8   : > { %v9943_v61 = vsel %vm2636_vm4, %v2687_v36, 0.0  ;;  %v9947_v30 = vsel %vm2637_vm12, %v2688_v22, 0.0  ;;  %6886 = vset.pattern.permute.xlu0 %v7192_v26  ;;  %v9975_v13 = vmul.f32 %v2876_v57, %v9813_v24  ;;  %v9986_v22 = vmul.f32 %v2880_v10, %v9813_v24  ;;  %v14455_v10 = vld [vmem:[#allocation54_spill] sm:$0xff] }
 0x1e9   : > { %14447 = vst [vmem:[#allocation155_spill] sm:$0xff] %v9943_v61  ;;  %14448 = vst [vmem:[#allocation156_spill] sm:$0xff] %v9947_v30  ;;  %v9954_v12 = vpop.permute.xlu0 %3990  ;;  %v2884_v8 = vrot.slane %v9943_v61, %v7834_v58  ;;  %v2888_v15 = vrot.slane %v9947_v30, %v7834_v58  ;;  %v5115_v26 = vrot.slane %v14291_v28, %v14338_v1 }
 0x1ea   : > { %v9972_v23 = vpop.permute.xlu1 %2722  ;;  %14452 = vst [vmem:[#allocation160_spill] sm:$0xff] %v9986_v22  ;;  %v5119_v57 = vrot.slane %v14291_v28, %v14389_v63  ;;  %5891 = vrot.lane.b32.xlu0 %v14294_v47, %s7191_s10  ;;  %v14454_v28 = vrot.slane %v9835_v17, %v7801_v44  ;;  %v5123_v53 = vrot.slane %v14455_v10, %v7801_v44 }
 0x1eb   : > { %14451 = vst [vmem:[#allocation159_spill] sm:$0xff] %v9972_v23  ;;  %5258 = vrot.lane.b32.xlu1 %v14284_v40, %s7184_s28  ;;  %v2797_v36 = vmul.f32 %v14453_v18, %v9972_v23  ;;  %v10019_v48 = vmul.f32 %v2884_v8, %v9813_v24  ;;  %v10022_v47 = vmul.f32 %v2888_v15, %v9813_v24  ;;  %v14461_v15 = vld [vmem:[#allocation30_spill] sm:$0xff] }
 0x1ec   : > { %v2798_v9 = vmul.f32 %v14454_v28, %v9972_v23  ;;  %v2799_v43 = vmul.f32 %v2768_v32, %v9972_v23  ;;  %v10031_v60 = vrot.slane %v5115_v26, %v7801_v44  ;;  %v10034_v30 = vrot.slane %v5119_v57, %v7801_v44 }
 0x1ed   : > { %v10002_v22 = vpop.permute.xlu0 %3994  ;;  %14456 = vst [vmem:[#allocation54_spill] sm:$0xff] %v10019_v48  ;;  %14457 = vst [vmem:[#allocation161_spill] sm:$0xff] %v10022_v47  ;;  %v2813_v18 = vadd.f32 %v2797_v36, %v9664_v20  ;;  %v5127_v8 = vrot.slane %v14455_v10, %v7804_v45  ;;  %v3277_v47 = vmul.f32 %v14461_v15, %v9850_v16  ;;  %v14464_v15 = vld [vmem:[#allocation126_spill] sm:$0xff] }
 0x1ee   : > { %14459 = vst [vmem:[#allocation163_spill] sm:$0xff] %v10031_v60  ;;  %14460 = vst [vmem:[#allocation164_spill] sm:$0xff] %v10034_v30  ;;  %5895 = vrot.lane.b32.xlu0 %v14303_v34, %s7191_s10  ;;  %v14462_v32 = vrot.slane %v9831_v21, %v7804_v45  ;;  %v2814_v26 = vadd.f32 %v2798_v9, %v9854_v4  ;;  %v2815_v57 = vadd.f32 %v2799_v43, %v9858_v33 }
 0x1ef   : > { %5262 = vrot.lane.b32.xlu1 %v14289_v50, %s7184_s28  ;;  %v10026_v28 = vpop.permute.xlu1 %2922  ;;  %v2913_v20 = vadd.f32 %v2897_v0, %v2813_v18  ;;  %v10051_v61 = vrot.slane %v5123_v53, %v7801_v44  ;;  %v10055_v30 = vmul.f32 %v14464_v15, %v9916_v42  ;;  %v14465_v0 = vrot.slane %v9835_v17, %v7834_v58 }
 0x1f0   : > { %14458 = vst [vmem:[#allocation162_spill] sm:$0xff] %v10026_v28  ;;  %v2997_v36 = vmul.f32 %v14462_v32, %v10026_v28  ;;  %v14466_v32 = vrot.slane %v9835_v17, %v7804_v45  ;;  %v5131_v43 = vrot.slane %v14455_v10, %v14338_v1  ;;  %v5135_v4 = vrot.slane %v14455_v10, %v14389_v63 }
 0x1f1   : > { %v10040_v48 = vpop.permute.xlu0 %3998  ;;  %14463 = vst [vmem:[#allocation30_spill] sm:$0xff] %v10051_v61  ;;  %v2898_v18 = vmul.f32 %v14465_v0, %v9813_v24  ;;  %v2915_v33 = vadd.f32 %v2899_v51, %v2815_v57  ;;  %v14467_v53 = vrot.slane %v9876_v39, %v7804_v45  ;;  %v14469_v61 = vld [vmem:[#allocation134_spill] sm:$0xff]  ;;  %v14470_v51 = vrot.slane %v9831_v21, %v7837_v59 }
 0x1f2   : > { %v2998_v34 = vmul.f32 %v14466_v32, %v10026_v28  ;;  %v3013_v0 = vadd.f32 %v2997_v36, %v2913_v20  ;;  %v3278_v32 = vmul.f32 %v9371_v52, %v9850_v16  ;;  %v3279_v60 = vmul.f32 %v14469_v61, %v9850_v16  ;;  %5899 = vrot.lane.b32.xlu0 %v14196_v46, %s7191_s10 }
 0x1f3   : > { %5332 = vperm.xlu1 %6879, %v9846_v7   ;;  %v2999_v9 = vmul.f32 %v14467_v53, %v10026_v28  ;;  %v2914_v24 = vadd.f32 %v2898_v18, %v2814_v26  ;;  %v14471_v20 = vrot.slane %v9835_v17, %v7837_v59  ;;  %v14472_v52 = vrot.slane %v9876_v39, %v7837_v59  ;;  %v14474_v17 = vld [vmem:[#allocation34_spill] sm:$0xff] }
 0x1f4   : > { %v10074_v15 = vpop.permute.xlu1 %3022  ;;  %v14473_v18 = vrot.slane %v14198_v54, %v7834_v58  ;;  %v3524_v21 = vrot.slane %v14196_v46, %v14389_v63  ;;  %v10117_v5 = vrot.slane %v5135_v4, %v7801_v44  ;;  %v14503_v63 = vld [vmem:[#allocation135_spill] sm:$0xff] }
 0x1f5   : > { %14468 = vst [vmem:[#allocation126_spill] sm:$0xff] %v10074_v15  ;;  %v10080_v27 = vpop.permute.xlu0 %4002  ;;  %v3097_v10 = vmul.f32 %v14470_v51, %v10074_v15  ;;  %v3015_v57 = vadd.f32 %v2999_v9, %v2915_v33  ;;  %v3098_v36 = vmul.f32 %v14471_v20, %v10074_v15  ;;  %v3099_v61 = vmul.f32 %v14472_v52, %v10074_v15  ;;  %v14475_v20 = vld [vmem:[#allocation100_spill] sm:$0xff] }
 0x1f6   : > { %v3014_v26 = vadd.f32 %v2998_v34, %v2914_v24  ;;  %v3428_v53 = vrot.slane %v14473_v18, %v7834_v58  ;;  %v3528_v33 = vrot.slane %v14198_v54, %v7804_v45  ;;  %v3704_v39 = vrot.slane %v14196_v46, %v14475_v20  ;;  %14478 = vst [vmem:[#allocation166_spill] sm:$0xff] %v10117_v5 }
 0x1f7   : > { %5266 = vrot.lane.b32.xlu1 %v14474_v17, %s7184_s28  ;;  %v3113_v9 = vadd.f32 %v3097_v10, %v3013_v0  ;;  %v3115_v51 = vadd.f32 %v3099_v61, %v3015_v57  ;;  %v3708_v34 = vrot.slane %v14198_v54, %v7837_v59  ;;  %v7193_v24 = vmov 31   ;;  %5903 = vrot.lane.b32.xlu0 %v14198_v54, %s7191_s10 }
 0x1f8   : > { %6882 = vset.pattern.permute.xlu1 %v7193_v24  ;;  %v10111_v52 = vrot.slane %v5127_v8, %v7801_v44  ;;  %v10114_v18 = vrot.slane %v5131_v43, %v7801_v44  ;;  %v3114_v14 = vadd.f32 %v3098_v36, %v3014_v26  ;;  %v3784_v61 = vrot.slane %v3704_v39, %v7837_v59  ;;  %v14480_v43 = vld [vmem:[#allocation116_spill] sm:$0xff] }
 0x1f9   : > { %v10119_v0 = vpop.permute.xlu1 %3302  ;;  %v10121_v10 = vpop.permute.xlu0 %4006  ;;  %v3293_v46 = vadd.f32 %v3277_v47, %v3113_v9  ;;  %v3295_v57 = vadd.f32 %v3279_v60, %v3115_v51  ;;  %v3788_v8 = vrot.slane %v3708_v34, %v7837_v59  ;;  %v3604_v26 = vrot.slane %v3524_v21, %v7804_v45  ;;  %v14481_v60 = vld [vmem:[#allocation114_spill] sm:$0xff]  ;;  %v14482_v9 = vld [vmem:[#allocation115_spill] sm:$0xff]  ;;  %v14484_v34 = vld [vmem:[#allocation117_spill] sm:$0xff] }
 0x1fa   : > { %14476 = vst [vmem:[#allocation134_spill] sm:$0xff] %v10111_v52  ;;  %14477 = vst [vmem:[#allocation165_spill] sm:$0xff] %v10114_v18  ;;  %v3457_v24 = vmul.f32 %v14480_v43, %v10119_v0  ;;  %v3294_v18 = vadd.f32 %v3278_v32, %v3114_v14  ;;  %v3458_v4 = vmul.f32 %v9866_v56, %v10119_v0  ;;  %v14487_v52 = vld [vmem:[#allocation121_spill] sm:$0xff] }
 0x1fb   : > { %14479 = vst [vmem:[#allocation167_spill] sm:$0xff] %v10119_v0  ;;  %v3459_v36 = vmul.f32 %v3428_v53, %v10119_v0  ;;  %5268 = vrot.lane.b32.xlu1 %v14198_v54, %s7184_s28  ;;  %v3608_v47 = vrot.slane %v3528_v33, %v7804_v45  ;;  %v14483_v51 = vrot.slane %v14482_v9, %v7801_v44  ;;  %v14486_v53 = vld [vmem:[#allocation57_spill] sm:$0xff]  ;;  %vm3969_vm3 = vcmp.eq.s32.totalorder %v14487_v52, 1  ;;  %v14496_v0 = vld [vmem:[#allocation32_spill] sm:$0xff] }
 0x1fc   : > { %v14485_v14 = vrot.slane %v14484_v34, %v7801_v44  ;;  %v3473_v56 = vadd.f32 %v3457_v24, %v3293_v46  ;;  %v5139_v43 = vrot.slane %v14486_v53, %v7801_v44  ;;  %v3818_v5 = vmul.f32 %v3784_v61, %v9916_v42  ;;  %v14491_v46 = vld [vmem:[#allocation66_spill] sm:$0xff] }
 0x1fd   : > { %v1522_v39 = vmul.f32 %v14483_v51, %v14481_v60  ;;  %v3819_v21 = vmul.f32 %v3788_v8, %v9916_v42  ;;  %v10148_v33 = vpop.permute.xlu0 %4010  ;;  %v14489_v51 = vld [vmem:[#allocation37_spill] sm:$0xff]  ;;  %v3474_v3 = vadd.f32 %v3458_v4, %v3294_v18  ;;  %v14493_v61 = vrot.slane %v14482_v9, %v7834_v58 }
 0x1fe   : > { %v1523_v32 = vmul.f32 %v14485_v14, %v14481_v60  ;;  %5907 = vrot.lane.b32.xlu0 %v14489_v51, %s7191_s10  ;;  %v14490_v14 = vld [vmem:[#allocation65_spill] sm:$0xff]  ;;  %v10160_v8 = vpop.permute.xlu1 %3482  ;;  %v3475_v42 = vadd.f32 %v3459_v36, %v3295_v57  ;;  %v14495_v49 = vrot.slane %v14484_v34, %v7834_v58  ;;  %v14497_v18 = vrot.slane %v14482_v9, %v7804_v45  ;;  %v14499_v57 = vld [vmem:[#allocation78_spill] sm:$0xff] }
 0x1ff   : > { %v1538_v60 = vadd.f32 %v1522_v39, %v14490_v14  ;;  %v1622_v41 = vmul.f32 %v14493_v61, %v14492_v19  ;;  %14494 = vst [vmem:[#allocation116_spill] sm:$0xff] %v10160_v8  ;;  %v14498_v39 = vrot.slane %v14484_v34, %v7804_v45  ;;  %5272 = vrot.lane.b32.xlu1 %v14489_v51, %s7184_s28 }
 0x200   : > { %v1539_v24 = vadd.f32 %v1523_v32, %v14491_v46  ;;  %v1623_v20 = vmul.f32 %v14495_v49, %v14492_v19  ;;  %v1722_v4 = vmul.f32 %v14497_v18, %v14496_v0  ;;  %v3637_v36 = vmul.f32 %v14499_v57, %v10160_v8  ;;  %v14500_v19 = vld [vmem:[#allocation120_spill] sm:$0xff] }
 0x201   : > { %v1723_v32 = vmul.f32 %v14498_v39, %v14496_v0  ;;  %v3638_v14 = vmul.f32 %v3604_v26, %v10160_v8  ;;  %v3639_v49 = vmul.f32 %v3608_v47, %v10160_v8  ;;  %v1638_v46 = vadd.f32 %v1622_v41, %v1538_v60  ;;  %v10192_v26 = vpop.permute.xlu0 %4014  ;;  %v14506_v47 = vld [vmem:[#allocation76_spill] sm:$0xff]  ;;  %v14507_v41 = vld [vmem:[#allocation77_spill] sm:$0xff]  ;;  %v14509_v8 = vld [vmem:[#allocation94_spill] sm:$0xff] }
 0x202   : > { %v1639_v61 = vadd.f32 %v1623_v20, %v1539_v24  ;;  %v14501_v18 = vrot.slane %v14482_v9, %v7837_v59  ;;  %v14502_v39 = vrot.slane %v14484_v34, %v7837_v59  ;;  %v14505_v57 = vrot.slane %v14504_v25, %v7801_v44  ;;  %v14508_v20 = vld [vmem:[#allocation39_spill] sm:$0xff] }
 0x203   : > { %vm3971_vm2 = vcmp.eq.s32.totalorder %v14506_v47, 1  ;;  %vm3972_vm10 = vcmp.eq.s32.totalorder %v14507_v41, 1  ;;  %5911 = vrot.lane.b32.xlu0 %v14508_v20, %s7191_s10  ;;  %v3653_v60 = vadd.f32 %v3637_v36, %v3473_v56  ;;  %v3654_v9 = vadd.f32 %v3638_v14, %v3474_v3  ;;  %5276 = vrot.lane.b32.xlu1 %v14508_v20, %s7184_s28 }
 0x204   : > { %v1822_v35 = vmul.f32 %v14501_v18, %v14500_v19  ;;  %v1823_v0 = vmul.f32 %v14502_v39, %v14500_v19  ;;  %v2173_v16 = vmul.f32 %v14505_v57, %v14503_v63  ;;  %v3655_v24 = vadd.f32 %v3639_v49, %v3475_v42  ;;  %v3987_v18 = vpop.permute.xlu1 %3986  ;;  %v14512_v42 = vld [vmem:[#allocation133_spill] sm:$0xff] }
 0x205   : > { %v5143_v34 = vrot.slane %v14486_v53, %v7804_v45  ;;  %v5147_v39 = vrot.slane %v14486_v53, %v14338_v1  ;;  %v1738_v57 = vadd.f32 %v1722_v4, %v1638_v46  ;;  %v1739_v19 = vadd.f32 %v1723_v32, %v1639_v61  ;;  %v10228_v20 = vpop.permute.xlu0 %4018 }
 0x206   : > { %v14510_v17 = vrot.slane %v14509_v8, %v7801_v44  ;;  %v10209_v3 = vrot.slane %v5139_v43, %v7801_v44  ;;  %v14513_v56 = vrot.slane %v14504_v25, %v7834_v58  ;;  %v14514_v4 = vrot.slane %v14504_v25, %v7804_v45 }
 0x207   : > { %v10224_v49 = vadd.f32 %v10055_v30, %v3653_v60  ;;  %v10226_v43 = vadd.f32 %v3818_v5, %v3654_v9  ;;  %v1838_v46 = vadd.f32 %v1822_v35, %v1738_v57  ;;  %v1839_v61 = vadd.f32 %v1823_v0, %v1739_v19 }
 0x208   : > { %v2174_v51 = vmul.f32 %v14510_v17, %v14503_v63  ;;  %14511 = vst [vmem:[#allocation115_spill] sm:$0xff] %v10209_v3  ;;  %v2273_v36 = vmul.f32 %v14513_v56, %v14512_v42  ;;  %v2373_v32 = vmul.f32 %v14514_v4, %v9501_v11  ;;  %v14515_v17 = vrot.slane %v14509_v8, %v7804_v45  ;;  %v14516_v56 = vld [vmem:[#allocation79_spill] sm:$0xff]  ;;  %v3989_v5 = vpop.permute.xlu1 %3988 }
 0x209   : > { %vm3973_vm0 = vcmp.eq.s32.totalorder %v14516_v56, 1  ;;  %v14517_v42 = vld [vmem:[#allocation123_spill] sm:$0xff]  ;;  %v10234_v3 = vadd.f32 %v3819_v21, %v3655_v24  ;;  %v10240_v30 = vrot.slane %v5147_v39, %v7801_v44  ;;  %v14519_v35 = vrot.slane %v14504_v25, %v7837_v59 }
 0x20a   : > { %v2374_v14 = vmul.f32 %v14515_v17, %v9501_v11  ;;  %vm3974_vm13 = vcmp.eq.s32.totalorder %v14517_v42, 1  ;;  %v14518_v4 = vld [vmem:[#allocation75_spill] sm:$0xff]  ;;  %v10237_v17 = vrot.slane %v5143_v34, %v7801_v44  ;;  %v2189_v0 = vadd.f32 %v2173_v16, %v1838_v46 }
 0x20b   : > { %5915 = vrot.lane.b32.xlu0 %v14518_v4, %s7191_s10  ;;  %v10246_v19 = vmul.f32 %v14519_v35, %v9560_v37  ;;  %v2190_v60 = vadd.f32 %v2174_v51, %v1839_v61  ;;  %v14520_v21 = vrot.slane %v14509_v8, %v7837_v59  ;;  %v14521_v24 = vrot.slane %v9886_v38, %v7801_v44 }
 0x20c   : > { %v4021_v39 = vsel %vm4020_vm15, %v3987_v18, %v3989_v5  ;;  %v4022_v25 = vsel %vm4020_vm15, %v3989_v5, %v9954_v12  ;;  %5280 = vrot.lane.b32.xlu1 %v14518_v4, %s7184_s28  ;;  %v14522_v16 = vrot.slane %v9902_v31, %v7801_v44  ;;  %v14523_v8 = vrot.slane %v9886_v38, %v7804_v45  ;;  %v14526_v4 = vld [vmem:[#allocation48_spill] sm:$0xff]  ;;  %s6405_s28 = scalar_lea.sflag [#allocation4], %s7546_s20 }
 0x20d   : > { %v2474_v9 = vmul.f32 %v14520_v21, %v9560_v37  ;;  %v10256_v34 = vmul.f32 %v14521_v24, %v9972_v23  ;;  %v10277_v18 = vsel %vm3969_vm3, %v4021_v39, 0.0  ;;  %v10281_v46 = vsel %vm3970_vm5, %v4022_v25, 0.0  ;;  %v14527_v24 = vld [vmem:[#allocation124_spill] sm:$0xff] }
 0x20e   : > { %v10267_v51 = vmul.f32 %v14522_v16, %v9972_v23  ;;  %v10273_v57 = vmul.f32 %v14523_v8, %v10026_v28  ;;  %14524 = vst [vmem:[#allocation117_spill] sm:$0xff] %v10277_v18  ;;  %14525 = vst [vmem:[#allocation57_spill] sm:$0xff] %v10281_v46  ;;  %v2289_v61 = vadd.f32 %v2273_v36, %v2189_v0  ;;  %vm3975_vm8 = vcmp.eq.s32.totalorder %v14527_v24, 1  ;;  %v14528_v16 = vld [vmem:[#allocation125_spill] sm:$0xff]  ;;  %v14534_v5 = vld [vmem:[#allocation80_spill] sm:$0xff] }
 0x20f   : > { %v2290_v35 = vadd.f32 %v14526_v4, %v2190_v60  ;;  %vm3976_vm14 = vcmp.eq.s32.totalorder %v14528_v16, 1  ;;  %6267 = vperm.xlu0 %6886, %v9846_v7   ;;  %v10295_v52 = vmul.f32 %v14529_v29, %v10026_v28  ;;  %v14530_v36 = vrot.slane %v9886_v38, %v7837_v59  ;;  %v10311_v4 = vpop.permute.xlu0 %4170  ;;  %v3993_v29 = vpop.permute.xlu1 %3992 }
 0x210   : > { %14531 = vst [vmem:[#allocation121_spill] sm:$0xff] %v10311_v4  ;;  %v4023_v60 = vsel %vm4020_vm15, %v9954_v12, %v3993_v29  ;;  %v4024_v39 = vsel %vm4020_vm15, %v3993_v29, %v10002_v22  ;;  %5632 = vperm.xlu1 %6882, %v9846_v7   ;;  %v2389_v38 = vadd.f32 %v2373_v32, %v2289_v61  ;;  %vm3977_vm1 = vcmp.eq.s32.totalorder %v14534_v5, 1  ;;  %v14535_v29 = vld [vmem:[#allocation81_spill] sm:$0xff] }
 0x211   : > { %v10301_v0 = vmul.f32 %v14530_v36, %v10074_v15  ;;  %v10324_v8 = vsel %vm3971_vm2, %v4023_v60, 0.0  ;;  %v10328_v25 = vsel %vm3972_vm10, %v4024_v39, 0.0  ;;  %v2390_v21 = vadd.f32 %v2374_v14, %v2290_v35 }
 0x212   : > { %14532 = vst [vmem:[#allocation122_spill] sm:$0xff] %v10324_v8  ;;  %14533 = vst [vmem:[#allocation65_spill] sm:$0xff] %v10328_v25  ;;  %v4184_v36 = vrot.slane %v10324_v8, %v7834_v58  ;;  %v4188_v12 = vrot.slane %v10328_v25, %v7834_v58  ;;  %vm3978_vm4 = vcmp.eq.s32.totalorder %v14535_v29, 1  ;;  %v14536_v47 = vrot.slane %v9902_v31, %v7837_v59 }
 0x213   : > { %6888 = vset.pattern.permute.xlu0 %v14371_v55  ;;  %v3997_v31 = vpop.permute.xlu1 %3996  ;;  %v10353_v39 = vpop.permute.xlu0 %4621  ;;  %v7194_v46 = vmov 32   ;;  %v2489_v56 = vadd.f32 %v10246_v19, %v2389_v38  ;;  %v14547_v19 = vld [vmem:[#allocation27_spill] sm:$0xff]  ;;  %v7195_v24 = vmov 34  }
 0x214   : > { %v10340_v60 = vmul.f32 %v14536_v47, %v10074_v15  ;;  %v4025_v32 = vsel %vm4020_vm15, %v10002_v22, %v3997_v31  ;;  %v4026_v14 = vsel %vm4020_vm15, %v3997_v31, %v10040_v48  ;;  %6883 = vset.pattern.permute.xlu1 %v7194_v46  ;;  %v10364_v61 = vmul.f32 %v4184_v36, %v10311_v4  ;;  %v14541_v36 = vld [vmem:[#allocation82_spill] sm:$0xff] }
 0x215   : > { %v10367_v35 = vmul.f32 %v4188_v12, %v10311_v4  ;;  %v10371_v47 = vsel %vm3973_vm0, %v4025_v32, 0.0  ;;  %v10375_v41 = vsel %vm3974_vm13, %v4026_v14, 0.0  ;;  %5967 = vperm.xlu1 %6883, %v9846_v7   ;;  %vm3979_vm12 = vcmp.eq.s32.totalorder %v14541_v36, 1  ;;  %v14542_v12 = vld [vmem:[#allocation83_spill] sm:$0xff] }
 0x216   : > { %14537 = vst [vmem:[#allocation66_spill] sm:$0xff] %v10364_v61  ;;  %14539 = vst [vmem:[#allocation93_spill] sm:$0xff] %v10371_v47  ;;  %v4192_v22 = vrot.slane %v10371_v47, %v7834_v58  ;;  %v4196_v46 = vrot.slane %v10375_v41, %v7834_v58  ;;  %vm3980_vm3 = vcmp.eq.s32.totalorder %v14542_v12, 1  ;;  %v2490_v32 = vadd.f32 %v2474_v9, %v2390_v21 }
 0x217   : > { %14538 = vst [vmem:[#allocation78_spill] sm:$0xff] %v10367_v35  ;;  %14540 = vst [vmem:[#allocation76_spill] sm:$0xff] %v10375_v41  ;;  %v4001_v61 = vpop.permute.xlu1 %4000  ;;  %v10393_v25 = vpop.permute.xlu0 %4625 }
 0x218   : > { %v4027_v9 = vsel %vm4020_vm15, %v10040_v48, %v4001_v61  ;;  %v4028_v21 = vsel %vm4020_vm15, %v4001_v61, %v10080_v27  ;;  %v10404_v38 = vmul.f32 %v4192_v22, %v10311_v4  ;;  %v10407_v35 = vmul.f32 %v4196_v46, %v10311_v4  ;;  %v14548_v22 = vld [vmem:[#allocation87_spill] sm:$0xff]  ;;  %v14549_v46 = vld [vmem:[#allocation88_spill] sm:$0xff] }
 0x219   : > { %v10411_v31 = vsel %vm3975_vm8, %v4027_v9, 0.0  ;;  %v10415_v8 = vsel %vm3976_vm14, %v4028_v21, 0.0  ;;  %5883 = vrot.lane.b32.xlu1 %v14547_v19, %s7191_s10  ;;  %vm3981_vm5 = vcmp.eq.s32.totalorder %v14548_v22, 1  ;;  %vm3982_vm2 = vcmp.eq.s32.totalorder %v14549_v46, 1 }
 0x21a   : > { %14543 = vst [vmem:[#allocation77_spill] sm:$0xff] %v10404_v38  ;;  %14544 = vst [vmem:[#allocation94_spill] sm:$0xff] %v10407_v35  ;;  %v4200_v48 = vrot.slane %v10411_v31, %v7834_v58  ;;  %v4204_v61 = vrot.slane %v10415_v8, %v7834_v58  ;;  %6885 = vset.pattern.permute.xlu1 %v7195_v24  ;;  %v2816_v9 = vadd.f32 %v10256_v34, %v2489_v56 }
 0x21b   : > { %14545 = vst [vmem:[#allocation79_spill] sm:$0xff] %v10411_v31  ;;  %14546 = vst [vmem:[#allocation123_spill] sm:$0xff] %v10415_v8  ;;  %v2817_v16 = vadd.f32 %v10267_v51, %v2490_v32  ;;  %v4005_v38 = vpop.permute.xlu1 %4004  ;;  %v10435_v41 = vpop.permute.xlu0 %4629  ;;  %v14563_v8 = vld [vmem:[#allocation152_spill] sm:$0xff] }
 0x21c   : > { %v4029_v56 = vsel %vm4020_vm15, %v10080_v27, %v4005_v38  ;;  %v4030_v32 = vsel %vm4020_vm15, %v4005_v38, %v10121_v10  ;;  %v10446_v24 = vmul.f32 %v4200_v48, %v10311_v4  ;;  %v10449_v35 = vmul.f32 %v4204_v61, %v10311_v4  ;;  %v14552_v48 = vld [vmem:[#allocation91_spill] sm:$0xff]  ;;  %v14553_v61 = vld [vmem:[#allocation92_spill] sm:$0xff] }
 0x21d   : > { %v10453_v42 = vsel %vm3977_vm1, %v4029_v56, 0.0  ;;  %v10457_v34 = vsel %vm3978_vm4, %v4030_v32, 0.0  ;;  %5885 = vrot.lane.b32.xlu1 %v14274_v2, %s7191_s10  ;;  %vm3983_vm10 = vcmp.eq.s32.totalorder %v14552_v48, 1  ;;  %vm3984_vm0 = vcmp.eq.s32.totalorder %v14553_v61, 1 }
 0x21e   : > { %14550 = vst [vmem:[#allocation75_spill] sm:$0xff] %v10446_v24  ;;  %14551 = vst [vmem:[#allocation48_spill] sm:$0xff] %v10449_v35  ;;  %v4208_v27 = vrot.slane %v10453_v42, %v7834_v58  ;;  %v4212_v38 = vrot.slane %v10457_v34, %v7834_v58  ;;  %v2916_v5 = vadd.f32 %v9950_v62, %v2816_v9  ;;  %v14562_v35 = vld [vmem:[#allocation34_spill] sm:$0xff] }
 0x21f   : > { %v2917_v56 = vadd.f32 %v9975_v13, %v2817_v16  ;;  %v4108_v29 = vrot.slane %v10453_v42, %v7801_v44  ;;  %v4009_v14 = vpop.permute.xlu1 %4008  ;;  %v10477_v21 = vpop.permute.xlu0 %4633 }
 0x220   : > { %v4031_v9 = vsel %vm4020_vm15, %v10121_v10, %v4009_v14  ;;  %v4032_v16 = vsel %vm4020_vm15, %v4009_v14, %v10148_v33  ;;  %v10488_v32 = vmul.f32 %v4208_v27, %v10311_v4  ;;  %v10491_v51 = vmul.f32 %v4212_v38, %v10311_v4 }
 0x221   : > { %v10495_v2 = vsel %vm3979_vm12, %v4031_v9, 0.0  ;;  %v10499_v62 = vsel %vm3980_vm3, %v4032_v16, 0.0  ;;  %5889 = vrot.lane.b32.xlu1 %v14279_v6, %s7191_s10  ;;  %v3016_v27 = vadd.f32 %v10273_v57, %v2916_v5  ;;  %v3017_v38 = vadd.f32 %v10295_v52, %v2917_v56 }
 0x222   : > { %v4216_v10 = vrot.slane %v10495_v2, %v7834_v58  ;;  %v4220_v14 = vrot.slane %v10499_v62, %v7834_v58  ;;  %v4116_v36 = vrot.slane %v10495_v2, %v7801_v44 }
 0x223   : > { %v4013_v16 = vpop.permute.xlu1 %4012  ;;  %v10517_v13 = vpop.permute.xlu0 %4637 }
 0x224   : > { %v4033_v5 = vsel %vm4020_vm15, %v10148_v33, %v4013_v16  ;;  %v4034_v56 = vsel %vm4020_vm15, %v4013_v16, %v10192_v26  ;;  %v4247_v12 = vmul.f32 %v4216_v10, %v10311_v4  ;;  %v10529_v9 = vmul.f32 %v4220_v14, %v10311_v4 }
 0x225   : > { %v10533_v6 = vsel %vm3981_vm5, %v4033_v5, 0.0  ;;  %v10537_v57 = vsel %vm3982_vm2, %v4034_v56, 0.0  ;;  %5893 = vrot.lane.b32.xlu1 %v14284_v40, %s7191_s10  ;;  %v3116_v14 = vadd.f32 %v10301_v0, %v3016_v27  ;;  %v3117_v16 = vadd.f32 %v10340_v60, %v3017_v38  ;;  %v14557_v0 = vld [vmem:[#allocation37_spill] sm:$0xff] }
 0x226   : > { %14554 = vst [vmem:[#allocation124_spill] sm:$0xff] %v10537_v57  ;;  %v4224_v33 = vrot.slane %v10533_v6, %v7834_v58  ;;  %v4228_v10 = vrot.slane %v10537_v57, %v7834_v58  ;;  %v3176_v60 = vrot.slane %v14557_v0, %v7801_v44  ;;  %v3356_v19 = vrot.slane %v14557_v0, %v7834_v58 }
 0x227   : > { %v4017_v56 = vpop.permute.xlu1 %4016  ;;  %v10555_v52 = vpop.permute.xlu0 %4641 }
 0x228   : > { %v4035_v27 = vsel %vm4020_vm15, %v10192_v26, %v4017_v56  ;;  %v4036_v38 = vsel %vm4020_vm15, %v4017_v56, %v10228_v20  ;;  %v14558_v26 = vrot.slane %v14198_v54, %v14338_v1  ;;  %v10582_v20 = vmul.f32 %v4224_v33, %v10311_v4 }
 0x229   : > { %v10567_v46 = vsel %vm3983_vm10, %v4035_v27, 0.0  ;;  %v10571_v40 = vsel %vm3984_vm0, %v4036_v38, 0.0  ;;  %5897 = vrot.lane.b32.xlu1 %v14289_v50, %s7191_s10  ;;  %v10585_v48 = vmul.f32 %v4228_v10, %v10311_v4  ;;  %v14561_v38 = vrot.slane %v10457_v34, %v7801_v44  ;;  %v14564_v50 = vld [vmem:[#allocation47_spill] sm:$0xff] }
 0x22a   : > { %14555 = vst [vmem:[#allocation125_spill] sm:$0xff] %v10567_v46  ;;  %14556 = vst [vmem:[#allocation80_spill] sm:$0xff] %v10571_v40  ;;  %v3252_v5 = vrot.slane %v14558_v26, %v7801_v44  ;;  %v4232_v56 = vrot.slane %v10567_v46, %v7834_v58  ;;  %v4236_v27 = vrot.slane %v10571_v40, %v7834_v58  ;;  %vm4655_vm15 = vcmask 662528  }
 0x22b   : > { %14559 = vst [vmem:[#allocation81_spill] sm:$0xff] %v10585_v48  ;;  %v10599_v10 = vpop.permute.xlu1 %4070  ;;  %v10601_v26 = vpop.permute.xlu0 %4645  ;;  %v3256_v61 = vrot.slane %v3176_v60, %v7801_v44  ;;  %v3352_v47 = vrot.slane %v14198_v54, %v14564_v50  ;;  %v3436_v57 = vrot.slane %v3356_v19, %v7834_v58  ;;  %v14572_v19 = vrot.slane %v10495_v2, %v7804_v45 }
 0x22c   : > { %14560 = vst [vmem:[#allocation82_spill] sm:$0xff] %v10599_v10  ;;  %v4145_v22 = vmul.f32 %v4108_v29, %v10599_v10  ;;  %v4146_v33 = vmul.f32 %v14561_v38, %v10599_v10  ;;  %v4147_v24 = vmul.f32 %v4116_v36, %v10599_v10  ;;  %v3280_v31 = vmul.f32 %v3252_v5, %v14563_v8  ;;  %v14565_v38 = vld [vmem:[#allocation49_spill] sm:$0xff] }
 0x22d   : > { %5901 = vrot.lane.b32.xlu1 %v14562_v35, %s7191_s10  ;;  %v3532_v40 = vrot.slane %v14198_v54, %v14565_v38  ;;  %v3281_v5 = vmul.f32 %v3256_v61, %v14563_v8  ;;  %v3432_v48 = vrot.slane %v3352_v47, %v7834_v58  ;;  %v14570_v47 = vrot.slane %v10453_v42, %v7804_v45 }
 0x22e   : > { %v4161_v18 = vadd.f32 %v4145_v22, %v10224_v49  ;;  %v4162_v29 = vadd.f32 %v4146_v33, %v10226_v43  ;;  %v4163_v36 = vadd.f32 %v4147_v24, %v10234_v3  ;;  %v3296_v60 = vadd.f32 %v3280_v31, %v3116_v14  ;;  %v14567_v49 = vld [vmem:[#allocation140_spill] sm:$0xff] }
 0x22f   : > { %v10628_v35 = vpop.permute.xlu0 %4649  ;;  %v10633_v46 = vpop.permute.xlu1 %4270  ;;  %vm4605_vm13 = vcmp.eq.s32.totalorder %v14567_v49, 1  ;;  %v14568_v43 = vld [vmem:[#allocation56_spill] sm:$0xff]  ;;  %v3536_v3 = vrot.slane %v14557_v0, %v7804_v45  ;;  %v3297_v61 = vadd.f32 %v3281_v5, %v3117_v16  ;;  %v3612_v50 = vrot.slane %v3532_v40, %v7804_v45  ;;  %v14576_v16 = vld [vmem:[#allocation103_spill] sm:$0xff] }
 0x230   : > { %14566 = vst [vmem:[#allocation83_spill] sm:$0xff] %v10633_v46  ;;  %vm4606_vm8 = vcmp.eq.s32.totalorder %v14568_v43, 1  ;;  %v4261_v22 = vadd.f32 %v10488_v32, %v4161_v18  ;;  %v4262_v33 = vadd.f32 %v10491_v51, %v4162_v29  ;;  %v14569_v24 = vld [vmem:[#allocation36_spill] sm:$0xff]  ;;  %v4345_v31 = vmul.f32 %v14570_v47, %v10633_v46  ;;  %v14573_v29 = vld [vmem:[#allocation167_spill] sm:$0xff] }
 0x231   : > { %5905 = vrot.lane.b32.xlu1 %v14569_v24, %s7191_s10  ;;  %v4263_v14 = vadd.f32 %v4247_v12, %v4163_v36  ;;  %v14571_v18 = vrot.slane %v10457_v34, %v7804_v45  ;;  %v4347_v51 = vmul.f32 %v14572_v19, %v10633_v46  ;;  %v3460_v8 = vmul.f32 %v3432_v48, %v14573_v29  ;;  %v14577_v48 = vld [vmem:[#allocation104_spill] sm:$0xff]  ;;  %v14600_v49 = vld [vmem:[#allocation107_spill] sm:$0xff] }
 0x232   : > { %v3461_v24 = vmul.f32 %v3436_v57, %v14573_v29  ;;  %v4361_v12 = vadd.f32 %v4345_v31, %v4261_v22  ;;  %v3616_v15 = vrot.slane %v3536_v3, %v7804_v45  ;;  %v10666_v28 = vmul.f32 %v4236_v27, %v10311_v4  ;;  %v14578_v57 = vld [vmem:[#allocation116_spill] sm:$0xff]  ;;  %v14580_v22 = vld [vmem:[#allocation38_spill] sm:$0xff] }
 0x233   : > { %v4346_v32 = vmul.f32 %v14571_v18, %v10633_v46  ;;  %v10659_v1 = vpop.permute.xlu0 %4653  ;;  %v4363_v47 = vadd.f32 %v4347_v51, %v4263_v14  ;;  %v10663_v18 = vmul.f32 %v4232_v56, %v10311_v4  ;;  %vm4607_vm14 = vcmp.eq.s32.totalorder %v14576_v16, 1  ;;  %v14579_v40 = vld [vmem:[#allocation100_spill] sm:$0xff] }
 0x234   : > { %14575 = vst [vmem:[#allocation88_spill] sm:$0xff] %v10666_v28  ;;  %vm4608_vm1 = vcmp.eq.s32.totalorder %v14577_v48, 1  ;;  %v3640_v5 = vmul.f32 %v3612_v50, %v14578_v57  ;;  %v3712_v19 = vrot.slane %v14198_v54, %v14579_v40  ;;  %v3476_v3 = vadd.f32 %v3460_v8, %v3296_v60 }
 0x235   : > { %v4362_v36 = vadd.f32 %v4346_v32, %v4262_v33  ;;  %14574 = vst [vmem:[#allocation87_spill] sm:$0xff] %v10663_v18  ;;  %5909 = vrot.lane.b32.xlu1 %v14580_v22, %s7191_s10  ;;  %v10675_v33 = vpop.permute.xlu1 %4370  ;;  %v3477_v56 = vadd.f32 %v3461_v24, %v3297_v61  ;;  %v3641_v31 = vmul.f32 %v3616_v15, %v14578_v57  ;;  %vm4612_vm5 = vcmp.eq.s32.totalorder %v14600_v49, 1  ;;  %v14617_v49 = vld [vmem:[#allocation61_spill] sm:$0xff] }
 0x236   : > { %14581 = vst [vmem:[#allocation91_spill] sm:$0xff] %v10675_v33  ;;  %v3716_v27 = vrot.slane %v14557_v0, %v7837_v59  ;;  %v14582_v14 = vrot.slane %v10453_v42, %v7837_v59  ;;  %v14583_v54 = vrot.slane %v10457_v34, %v7837_v59  ;;  %v14584_v8 = vrot.slane %v10495_v2, %v7837_v59 }
 0x237   : > { %v14585_v15 = vrot.slane %v10499_v62, %v7801_v44  ;;  %v3656_v61 = vadd.f32 %v3640_v5, %v3476_v3  ;;  %v3792_v24 = vrot.slane %v3712_v19, %v7837_v59  ;;  %v14586_v34 = vrot.slane %v10533_v6, %v7801_v44  ;;  %v14589_v19 = vld [vmem:[#allocation40_spill] sm:$0xff] }
 0x238   : > { %v4445_v50 = vmul.f32 %v14582_v14, %v10675_v33  ;;  %v4446_v32 = vmul.f32 %v14583_v54, %v10675_v33  ;;  %v4447_v60 = vmul.f32 %v14584_v8, %v10675_v33  ;;  %v3796_v42 = vrot.slane %v3716_v27, %v7837_v59  ;;  %v14587_v14 = vld [vmem:[#allocation142_spill] sm:$0xff]  ;;  %v14588_v54 = vld [vmem:[#allocation105_spill] sm:$0xff]  ;;  %v10712_v27 = vpop.permute.xlu0 %4805 }
 0x239   : > { %v4148_v51 = vmul.f32 %v14585_v15, %v10599_v10  ;;  %v4149_v22 = vmul.f32 %v14586_v34, %v10599_v10  ;;  %vm4609_vm4 = vcmp.eq.s32.totalorder %v14587_v14, 1  ;;  %vm4610_vm12 = vcmp.eq.s32.totalorder %v14588_v54, 1  ;;  %5913 = vrot.lane.b32.xlu1 %v14589_v19, %s7191_s10  ;;  %v4624_v3 = vpop.permute.xlu1 %4623  ;;  %14590 = vst [vmem:[#allocation92_spill] sm:$0xff] %v10712_v27  ;;  %v14591_v15 = vld [vmem:[#allocation154_spill] sm:$0xff]  ;;  %s7015_s10 = sshll.u32 %s7196_s13, 4  ;;  %s7016_s10 = int_to_ptr.vmem [resolvable:$false] %s7015_s10 }
 0x23a   : > { %v10704_v2 = vadd.f32 %v4445_v50, %v4361_v12  ;;  %v10706_v8 = vadd.f32 %v4446_v32, %v4362_v36  ;;  %v10708_v28 = vadd.f32 %v4447_v60, %v4363_v47  ;;  %v3657_v5 = vadd.f32 %v3641_v31, %v3477_v56  ;;  %v14611_v54 = vld [vmem:[#allocation146_spill] sm:$0xff]  ;;  %s7017_s9 = scalar_lea.vmem %s7016_s10, 4096  ;;  %p7018_p4 = scmp.lt.s32.totalorder %s13486_s0, %s7016_s10 }
 0x23b   : > { %v3820_v4 = vmul.f32 %v3792_v24, %v14591_v15  ;;  %v3821_v34 = vmul.f32 %v3796_v42, %v14591_v15  ;;  %v14592_v12 = vrot.slane %v10499_v62, %v7804_v45  ;;  %v14593_v36 = vrot.slane %v10533_v6, %v7804_v45  ;;  %p7019_p2 = scmp.lt.s32.totalorder %s7017_s9, %s7011_s2 }
 0x23c   : > { %v4656_v56 = vsel %vm4655_vm15, %v10353_v39, %v4624_v3  ;;  %v4657_v31 = vsel %vm4655_vm15, %v4624_v3, %v10393_v25  ;;  %v14594_v32 = vrot.slane %v10499_v62, %v7837_v59  ;;  %v14595_v24 = vrot.slane %v10533_v6, %v7837_v59  ;;  %v14598_v62 = vld [vmem:[#allocation60_spill] sm:$0xff]  ;;  %v10771_v18 = vpop.permute.xlu0 %5248 }
 0x23d   : > { %v10720_v50 = vmul.f32 %v14592_v12, %v10633_v46  ;;  %v10726_v47 = vmul.f32 %v14593_v36, %v10633_v46  ;;  %v10746_v19 = vsel %vm4605_vm13, %v4656_v56, 0.0  ;;  %v10750_v39 = vsel %vm4606_vm8, %v4657_v31, 0.0  ;;  %6167 = vperm.xlu1 %6885, %v9846_v7   ;;  %v4628_v6 = vpop.permute.xlu1 %4627  ;;  %p7020_p11 = por %p7019_p2, %p7018_p4 }
 0x23e   : > { %v10736_v60 = vmul.f32 %v14594_v32, %v10675_v33  ;;  %v10742_v42 = vmul.f32 %v14595_v24, %v10675_v33  ;;  %14596 = vst [vmem:[#allocation37_spill] sm:$0xff] %v10746_v19  ;;  %14597 = vst [vmem:[#allocation34_spill] sm:$0xff] %v10750_v39  ;;  %v5151_v3 = vrot.slane %v14486_v53, %v14565_v38  ;;  %v14599_v32 = vld [vmem:[#allocation106_spill] sm:$0xff]  ;;  %vm4616_vm13 = vcmp.eq.s32.totalorder %v14611_v54, 1  ;;  %v14631_v19 = vld [vmem:[#allocation73_spill] sm:$0xff] }
 0x23f   : > { %v5155_v12 = vrot.slane %v14598_v62, %v7801_v44  ;;  %vm4611_vm3 = vcmp.eq.s32.totalorder %v14599_v32, 1  ;;  %v3836_v56 = vadd.f32 %v3820_v4, %v3656_v61  ;;  %v3837_v43 = vadd.f32 %v3821_v34, %v3657_v5  ;;  %v14624_v54 = vld [vmem:[#allocation118_spill] sm:$0xff]  ;;  %p7021_p7 = pnand %p7020_p11, %p7014_p5 }
 0x240   : > { %v4658_v4 = vsel %vm4655_vm15, %v10393_v25, %v4628_v6  ;;  %v4659_v61 = vsel %vm4655_vm15, %v4628_v6, %v10435_v41  ;;  %v6366_v25 = vld [vmem:[%s14603_s1] sm:$0xff]  ;;  %v14604_v6 = vld [vmem:[#allocation144_spill] sm:$0xff]  ;;  %v10799_v16 = vrot.slane %v5151_v3, %v7801_v44  ;;  %v10813_v3 = vpop.permute.xlu0 %5252 }
 0x241   : > { %v4164_v5 = vadd.f32 %v4148_v51, %v3836_v56  ;;  %v4165_v34 = vadd.f32 %v4149_v22, %v3837_v43  ;;  %v10783_v7 = vsel %vm4607_vm14, %v4658_v4, 0.0  ;;  %v10787_v36 = vsel %vm4608_vm1, %v4659_v61, 0.0  ;;  %v14605_v56 = vld [vmem:[#allocation145_spill] sm:$0xff]  ;;  %v4632_v53 = vpop.permute.xlu1 %4631  ;;  %6887 = vset.pattern.permute.xlu1 %v14371_v55 }
 0x242   : > { %14601 = vst [vmem:[#allocation49_spill] sm:$0xff] %v10783_v7  ;;  %14602 = vst [vmem:[#allocation140_spill] sm:$0xff] %v10787_v36  ;;  %v4819_v51 = vrot.slane %v10783_v7, %v7834_v58  ;;  %v4823_v22 = vrot.slane %v10787_v36, %v7834_v58  ;;  %vm4613_vm2 = vcmp.eq.s32.totalorder %v14604_v6, 1  ;;  %vm4614_vm10 = vcmp.eq.s32.totalorder %v14605_v56, 1  ;;  %6369 = vperm.xlu1 %6887, %v6366_v25   ;;  %v14610_v25 = vld [vmem:[#allocation108_spill] sm:$0xff] }
 0x243   : > { %v10802_v48 = vrot.slane %v5155_v12, %v7801_v44  ;;  %v4660_v4 = vsel %vm4655_vm15, %v10435_v41, %v4632_v53  ;;  %v4661_v61 = vsel %vm4655_vm15, %v4632_v53, %v10477_v21  ;;  %v4264_v12 = vadd.f32 %v10529_v9, %v4164_v5 }
 0x244   : > { %v10825_v24 = vsel %vm4609_vm4, %v4660_v4, 0.0  ;;  %v10829_v31 = vsel %vm4610_vm12, %v4661_v61, 0.0  ;;  %v4265_v7 = vadd.f32 %v10582_v20, %v4165_v34  ;;  %v10834_v43 = vmul.f32 %v4819_v51, %v10712_v27  ;;  %v10861_v20 = vpop.permute.xlu0 %5256 }
 0x245   : > { %14606 = vst [vmem:[#allocation56_spill] sm:$0xff] %v10825_v24  ;;  %14607 = vst [vmem:[#allocation36_spill] sm:$0xff] %v10829_v31  ;;  %v10837_v41 = vmul.f32 %v4823_v22, %v10712_v27  ;;  %v4827_v53 = vrot.slane %v10825_v24, %v7834_v58  ;;  %v4831_v14 = vrot.slane %v10829_v31, %v7834_v58  ;;  %vm4615_vm0 = vcmp.eq.s32.totalorder %v14610_v25, 1  ;;  %v4636_v51 = vpop.permute.xlu1 %4635 }
 0x246   : > { %14608 = vst [vmem:[#allocation167_spill] sm:$0xff] %v10834_v43  ;;  %v4662_v61 = vsel %vm4655_vm15, %v10477_v21, %v4636_v51  ;;  %v4663_v9 = vsel %vm4655_vm15, %v4636_v51, %v10517_v13  ;;  %v4364_v22 = vadd.f32 %v10720_v50, %v4264_v12  ;;  %v4365_v4 = vadd.f32 %v10726_v47, %v4265_v7 }
 0x247   : > { %14609 = vst [vmem:[#allocation103_spill] sm:$0xff] %v10837_v41  ;;  %v10865_v5 = vsel %vm4611_vm3, %v4662_v61, 0.0  ;;  %v10869_v34 = vsel %vm4612_vm5, %v4663_v9, 0.0  ;;  %v10874_v31 = vmul.f32 %v4827_v53, %v10712_v27  ;;  %v10877_v21 = vmul.f32 %v4831_v14, %v10712_v27  ;;  %v14616_v61 = vld [vmem:[#allocation111_spill] sm:$0xff] }
 0x248   : > { %14612 = vst [vmem:[#allocation104_spill] sm:$0xff] %v10865_v5  ;;  %14613 = vst [vmem:[#allocation100_spill] sm:$0xff] %v10869_v34  ;;  %v4835_v51 = vrot.slane %v10865_v5, %v7834_v58  ;;  %v4839_v32 = vrot.slane %v10869_v34, %v7834_v58  ;;  %vm4617_vm8 = vcmp.eq.s32.totalorder %v14616_v61, 1  ;;  %vm4618_vm14 = vcmp.eq.s32.totalorder %v14617_v49, 1 }
 0x249   : > { %14614 = vst [vmem:[#allocation38_spill] sm:$0xff] %v10874_v31  ;;  %14615 = vst [vmem:[#allocation142_spill] sm:$0xff] %v10877_v21  ;;  %v4640_v53 = vpop.permute.xlu1 %4639 }
 0x24a   : > { %v10894_v14 = vmul.f32 %v4835_v51, %v10712_v27  ;;  %v10897_v9 = vmul.f32 %v4839_v32, %v10712_v27  ;;  %v4664_v21 = vsel %vm4655_vm15, %v10517_v13, %v4640_v53  ;;  %v4665_v50 = vsel %vm4655_vm15, %v4640_v53, %v10555_v52 }
 0x24b   : > { %v10905_v47 = vsel %vm4613_vm2, %v4664_v21, 0.0  ;;  %v10909_v12 = vsel %vm4614_vm10, %v4665_v50, 0.0  ;;  %v10912_v51 = vadd.f32 %v10736_v60, %v4364_v22  ;;  %v10915_v32 = vadd.f32 %v10742_v42, %v4365_v4  ;;  %v10925_v21 = vpop.permute.xlu0 %5260  ;;  %v14620_v50 = vld [vmem:[#allocation149_spill] sm:$0xff]  ;;  %v14621_v60 = vld [vmem:[#allocation150_spill] sm:$0xff] }
 0x24c   : > { %14618 = vst [vmem:[#allocation105_spill] sm:$0xff] %v10894_v14  ;;  %14619 = vst [vmem:[#allocation40_spill] sm:$0xff] %v10897_v9  ;;  %v4843_v6 = vrot.slane %v10905_v47, %v7834_v58  ;;  %v4847_v56 = vrot.slane %v10909_v12, %v7834_v58  ;;  %vm4619_vm1 = vcmp.eq.s32.totalorder %v14620_v50, 1  ;;  %vm4620_vm4 = vcmp.eq.s32.totalorder %v14621_v60, 1 }
 0x24d   : > { %v4743_v42 = vrot.slane %v10905_v47, %v7801_v44  ;;  %v4747_v22 = vrot.slane %v10909_v12, %v7801_v44  ;;  %v4644_v13 = vpop.permute.xlu1 %4643  ;;  %v14637_v60 = vrot.slane %v14624_v54, %v7834_v58 }
 0x24e   : > { %v10938_v7 = vmul.f32 %v4843_v6, %v10712_v27  ;;  %v10941_v9 = vmul.f32 %v4847_v56, %v10712_v27  ;;  %v4666_v14 = vsel %vm4655_vm15, %v10555_v52, %v4644_v13  ;;  %v4667_v34 = vsel %vm4655_vm15, %v4644_v13, %v10601_v26 }
 0x24f   : > { %v10953_v53 = vsel %vm4615_vm0, %v4666_v14, 0.0  ;;  %v10957_v6 = vsel %vm4616_vm13, %v4667_v34, 0.0  ;;  %v10983_v43 = vpop.permute.xlu0 %5264 }
 0x250   : > { %v4751_v52 = vrot.slane %v10953_v53, %v7801_v44  ;;  %v4755_v13 = vrot.slane %v10957_v6, %v7801_v44  ;;  %v4851_v56 = vrot.slane %v10953_v53, %v7834_v58  ;;  %v4855_v4 = vrot.slane %v10957_v6, %v7834_v58 }
 0x251   : > { %v4648_v5 = vpop.permute.xlu1 %4647 }
 0x252   : > { %v4882_v31 = vmul.f32 %v4851_v56, %v10712_v27  ;;  %v10977_v24 = vmul.f32 %v4855_v4, %v10712_v27  ;;  %v4668_v41 = vsel %vm4655_vm15, %v10601_v26, %v4648_v5  ;;  %v4669_v25 = vsel %vm4655_vm15, %v4648_v5, %v10628_v35  ;;  %v14623_v56 = vld [vmem:[#allocation114_spill] sm:$0xff]  ;;  %v14626_v26 = vld [vmem:[#allocation53_spill] sm:$0xff] }
 0x253   : > { %v10987_v34 = vsel %vm4617_vm8, %v4668_v41, 0.0  ;;  %v10991_v14 = vsel %vm4618_vm14, %v4669_v25, 0.0  ;;  %v14625_v4 = vrot.slane %v14624_v54, %v7801_v44  ;;  %v14627_v55 = vrot.slane %v14626_v26, %v7801_v44  ;;  %v11043_v50 = vpop.permute.xlu0 %5432 }
 0x254   : > { %14622 = vst [vmem:[#allocation106_spill] sm:$0xff] %v10991_v14  ;;  %v4759_v39 = vrot.slane %v10987_v34, %v7801_v44  ;;  %v4859_v61 = vrot.slane %v10987_v34, %v7834_v58  ;;  %v4863_v49 = vrot.slane %v10991_v14, %v7834_v58  ;;  %v4959_v25 = vrot.slane %v10987_v34, %v7804_v45 }
 0x255   : > { %v1524_v36 = vmul.f32 %v14625_v4, %v14623_v56  ;;  %v1525_v5 = vmul.f32 %v14627_v55, %v14623_v56  ;;  %v4652_v56 = vpop.permute.xlu1 %4651 }
 0x256   : > { %v4884_v41 = vmul.f32 %v4859_v61, %v10712_v27  ;;  %v11019_v62 = vmul.f32 %v4863_v49, %v10712_v27  ;;  %v4670_v33 = vsel %vm4655_vm15, %v10628_v35, %v4652_v56  ;;  %v4671_v46 = vsel %vm4655_vm15, %v4652_v56, %v10659_v1  ;;  %v14632_v61 = vld [vmem:[#allocation113_spill] sm:$0xff] }
 0x257   : > { %v11027_v4 = vsel %vm4619_vm1, %v4670_v33, 0.0  ;;  %v11031_v55 = vsel %vm4620_vm4, %v4671_v46, 0.0  ;;  %v1540_v14 = vadd.f32 %v1524_v36, %v14631_v19  ;;  %v1541_v10 = vadd.f32 %v1525_v5, %v14632_v61 }
 0x258   : > { %14628 = vst [vmem:[#allocation107_spill] sm:$0xff] %v11019_v62  ;;  %14629 = vst [vmem:[#allocation144_spill] sm:$0xff] %v11027_v4  ;;  %v4867_v1 = vrot.slane %v11027_v4, %v7834_v58  ;;  %v4871_v33 = vrot.slane %v11031_v55, %v7834_v58  ;;  %v14636_v62 = vld [vmem:[#allocation28_spill] sm:$0xff]  ;;  %vm5282_vm15 = vcmask 654336   ;;  %vm5241_vm1 = vcmp.eq.s32.totalorder %v10237_v17, 1 }
 0x259   : > { %14630 = vst [vmem:[#allocation145_spill] sm:$0xff] %v11031_v55  ;;  %v11053_v56 = vpop.permute.xlu1 %4705  ;;  %v1624_v55 = vmul.f32 %v14637_v60, %v14636_v62  ;;  %vm5242_vm4 = vcmp.eq.s32.totalorder %v10240_v30, 1 }
 0x25a   : > { %14633 = vst [vmem:[#allocation108_spill] sm:$0xff] %v11053_v56  ;;  %v11056_v5 = vmul.f32 %v4867_v1, %v10712_v27  ;;  %v11059_v61 = vmul.f32 %v4871_v33, %v10712_v27  ;;  %v4780_v35 = vmul.f32 %v4743_v42, %v11053_v56  ;;  %v4781_v46 = vmul.f32 %v4747_v22, %v11053_v56 }
 0x25b   : > { %v4782_v19 = vmul.f32 %v4751_v52, %v11053_v56  ;;  %v4783_v49 = vmul.f32 %v4755_v13, %v11053_v56  ;;  %v4784_v36 = vmul.f32 %v4759_v39, %v11053_v56  ;;  %v14638_v42 = vrot.slane %v14626_v26, %v7834_v58 }
 0x25c   : > { %14634 = vst [vmem:[#allocation146_spill] sm:$0xff] %v11056_v5  ;;  %14635 = vst [vmem:[#allocation111_spill] sm:$0xff] %v11059_v61  ;;  %v4796_v1 = vadd.f32 %v4780_v35, %v10704_v2  ;;  %v4797_v33 = vadd.f32 %v4781_v46, %v10706_v8  ;;  %v14639_v61 = vld [vmem:[#allocation32_spill] sm:$0xff]  ;;  %v14640_v52 = vrot.slane %v14624_v54, %v7804_v45  ;;  %v11085_v8 = vpop.permute.xlu0 %5270  ;;  %v14642_v46 = vld [vmem:[#allocation157_spill] sm:$0xff] }
 0x25d   : > { %v1625_v22 = vmul.f32 %v14638_v42, %v14636_v62  ;;  %v4798_v39 = vadd.f32 %v4782_v19, %v10708_v28  ;;  %v4799_v27 = vadd.f32 %v4783_v49, %v10912_v51  ;;  %v4800_v60 = vadd.f32 %v4784_v36, %v10915_v32  ;;  %v11083_v35 = vpop.permute.xlu1 %4905  ;;  %v14643_v42 = vld [vmem:[#allocation158_spill] sm:$0xff] }
 0x25e   : > { %v1724_v13 = vmul.f32 %v14640_v52, %v14639_v61  ;;  %v1640_v2 = vadd.f32 %v1624_v55, %v1540_v14  ;;  %14641 = vst [vmem:[#allocation61_spill] sm:$0xff] %v11083_v35  ;;  %vm5232_vm12 = vcmp.eq.s32.totalorder %v14642_v46, 1  ;;  %vm5233_vm3 = vcmp.eq.s32.totalorder %v14643_v42, 1 }
 0x25f   : > { %v4896_v5 = vadd.f32 %v10938_v7, %v4796_v1  ;;  %v4897_v52 = vadd.f32 %v10941_v9, %v4797_v33  ;;  %v1641_v62 = vadd.f32 %v1625_v22, %v1541_v10  ;;  %v14644_v28 = vrot.slane %v14626_v26, %v7804_v45 }
 0x260   : > { %v14645_v32 = vrot.slane %v10905_v47, %v7804_v45  ;;  %v4898_v55 = vadd.f32 %v4882_v31, %v4798_v39  ;;  %v14646_v49 = vrot.slane %v10909_v12, %v7804_v45  ;;  %v14647_v10 = vrot.slane %v10953_v53, %v7804_v45 }
 0x261   : > { %v1725_v51 = vmul.f32 %v14644_v28, %v14639_v61  ;;  %v4899_v9 = vadd.f32 %v10977_v24, %v4799_v27  ;;  %v4900_v36 = vadd.f32 %v4884_v41, %v4800_v60  ;;  %v14648_v1 = vrot.slane %v10957_v6, %v7804_v45  ;;  %v14650_v61 = vld [vmem:[#allocation164_spill] sm:$0xff]  ;;  %v11119_v60 = vpop.permute.xlu1 %5005 }
 0x262   : > { %v4980_v14 = vmul.f32 %v14645_v32, %v11083_v35  ;;  %v4981_v19 = vmul.f32 %v14646_v49, %v11083_v35  ;;  %v4982_v7 = vmul.f32 %v14647_v10, %v11083_v35  ;;  %v4984_v31 = vmul.f32 %v4959_v25, %v11083_v35  ;;  %v14649_v49 = vld [vmem:[#allocation163_spill] sm:$0xff]  ;;  %v14651_v27 = vld [vmem:[#allocation120_spill] sm:$0xff]  ;;  %14653 = vst [vmem:[#allocation149_spill] sm:$0xff] %v11119_v60 }
 0x263   : > { %v4983_v33 = vmul.f32 %v14648_v1, %v11083_v35  ;;  %v1740_v32 = vadd.f32 %v1724_v13, %v1640_v2  ;;  %vm5234_vm5 = vcmp.eq.s32.totalorder %v14649_v49, 1  ;;  %vm5235_vm2 = vcmp.eq.s32.totalorder %v14650_v61, 1  ;;  %v14655_v13 = vld [vmem:[#allocation46_spill] sm:$0xff] }
 0x264   : > { %v4996_v22 = vadd.f32 %v4980_v14, %v4896_v5  ;;  %v4997_v39 = vadd.f32 %v4981_v19, %v4897_v52  ;;  %v4998_v28 = vadd.f32 %v4982_v7, %v4898_v55  ;;  %v5000_v10 = vadd.f32 %v4984_v31, %v4900_v36  ;;  %v14657_v14 = vld [vmem:[#allocation136_spill] sm:$0xff]  ;;  %v11137_v19 = vpop.permute.xlu0 %5274 }
 0x265   : > { %v4999_v4 = vadd.f32 %v4983_v33, %v4899_v9  ;;  %v1741_v56 = vadd.f32 %v1725_v51, %v1641_v62  ;;  %v14652_v24 = vrot.slane %v14624_v54, %v7837_v59  ;;  %v14654_v25 = vrot.slane %v14626_v26, %v7837_v59 }
 0x266   : > { %v14656_v2 = vrot.slane %v14655_v13, %v7801_v44  ;;  %v14658_v62 = vrot.slane %v14657_v14, %v7801_v44  ;;  %v14659_v54 = vrot.slane %v14655_v13, %v7804_v45  ;;  %v14660_v26 = vrot.slane %v10905_v47, %v7837_v59 }
 0x267   : > { %v1824_v41 = vmul.f32 %v14652_v24, %v14651_v27  ;;  %v1825_v5 = vmul.f32 %v14654_v25, %v14651_v27  ;;  %v14661_v9 = vrot.slane %v10909_v12, %v7837_v59  ;;  %v14662_v1 = vrot.slane %v10953_v53, %v7837_v59  ;;  %v14667_v53 = vld [vmem:[#allocation134_spill] sm:$0xff] }
 0x268   : > { %v2175_v52 = vmul.f32 %v14656_v2, %v14503_v63  ;;  %v2176_v51 = vmul.f32 %v14658_v62, %v14503_v63  ;;  %v2375_v55 = vmul.f32 %v14659_v54, %v9501_v11  ;;  %v5080_v7 = vmul.f32 %v14660_v26, %v11119_v60  ;;  %v14666_v26 = vld [vmem:[#allocation30_spill] sm:$0xff] }
 0x269   : > { %v5081_v36 = vmul.f32 %v14661_v9, %v11119_v60  ;;  %v5082_v33 = vmul.f32 %v14662_v1, %v11119_v60  ;;  %v14663_v31 = vrot.slane %v10957_v6, %v7837_v59  ;;  %v14664_v47 = vrot.slane %v10987_v34, %v7837_v59  ;;  %v5251_v34 = vpop.permute.xlu1 %5250 }
 0x26a   : > { %v1840_v2 = vadd.f32 %v1824_v41, %v1740_v32  ;;  %v1841_v62 = vadd.f32 %v1825_v5, %v1741_v56  ;;  %v14665_v12 = vrot.slane %v14657_v14, %v7804_v45  ;;  %vm5236_vm10 = vcmp.eq.s32.totalorder %v14666_v26, 1 }
 0x26b   : > { %v5083_v24 = vmul.f32 %v14663_v31, %v11119_v60  ;;  %v5084_v25 = vmul.f32 %v14664_v47, %v11119_v60  ;;  %vm5237_vm0 = vcmp.eq.s32.totalorder %v14667_v53, 1  ;;  %v11165_v9 = vadd.f32 %v5080_v7, %v4996_v22  ;;  %v14674_v7 = vld [vmem:[#allocation139_spill] sm:$0xff] }
 0x26c   : > { %v2376_v54 = vmul.f32 %v14665_v12, %v9501_v11  ;;  %v11167_v6 = vadd.f32 %v5081_v36, %v4997_v39  ;;  %v11169_v1 = vadd.f32 %v5082_v33, %v4998_v28  ;;  %v2191_v56 = vadd.f32 %v2175_v52, %v1840_v2  ;;  %v14675_v33 = vld [vmem:[#allocation35_spill] sm:$0xff]  ;;  %v14678_v12 = vld [vmem:[#allocation166_spill] sm:$0xff] }
 0x26d   : > { %v11171_v31 = vadd.f32 %v5083_v24, %v4999_v4  ;;  %v11173_v32 = vadd.f32 %v5084_v25, %v5000_v10  ;;  %v2192_v41 = vadd.f32 %v2176_v51, %v1841_v62  ;;  %v14668_v5 = vrot.slane %v14655_v13, %v7837_v59  ;;  %v14670_v10 = vld [vmem:[#allocation153_spill] sm:$0xff]  ;;  %v11207_v24 = vpop.permute.xlu0 %5278 }
 0x26e   : > { %v5283_v22 = vsel %vm5282_vm15, %v10771_v18, %v5251_v34  ;;  %v5284_v39 = vsel %vm5282_vm15, %v5251_v34, %v10813_v3  ;;  %v14669_v4 = vrot.slane %v14657_v14, %v7837_v59  ;;  %v14671_v52 = vrot.slane %v14670_v10, %v7801_v44  ;;  %14676 = vst [vmem:[#allocation53_spill] sm:$0xff] %v11207_v24  ;;  %v14677_v62 = vld [vmem:[#allocation165_spill] sm:$0xff] }
 0x26f   : > { %v11179_v47 = vmul.f32 %v14668_v5, %v9560_v37  ;;  %v11199_v13 = vsel %vm5232_vm12, %v5283_v22, 0.0  ;;  %v11203_v18 = vsel %vm5233_vm3, %v5284_v39, 0.0  ;;  %v2291_v36 = vadd.f32 %v14674_v7, %v2191_v56  ;;  %v5255_v22 = vpop.permute.xlu1 %5254 }
 0x270   : > { %v11189_v28 = vmul.f32 %v14669_v4, %v9560_v37  ;;  %v11195_v51 = vmul.f32 %v14671_v52, %v9972_v23  ;;  %14672 = vst [vmem:[#allocation150_spill] sm:$0xff] %v11199_v13  ;;  %14673 = vst [vmem:[#allocation118_spill] sm:$0xff] %v11203_v18  ;;  %v2292_v14 = vadd.f32 %v14675_v33, %v2192_v41  ;;  %vm5238_vm13 = vcmp.eq.s32.totalorder %v14677_v62, 1 }
 0x271   : > { %v5438_v46 = vrot.slane %v11199_v13, %v7834_v58  ;;  %v5442_v42 = vrot.slane %v11203_v18, %v7834_v58  ;;  %vm5239_vm8 = vcmp.eq.s32.totalorder %v14678_v12, 1  ;;  %v5285_v52 = vsel %vm5282_vm15, %v10813_v3, %v5255_v22 }
 0x272   : > { %v5286_v7 = vsel %vm5282_vm15, %v5255_v22, %v10861_v20  ;;  %v11239_v33 = vsel %vm5234_vm5, %v5285_v52, 0.0  ;;  %v2391_v41 = vadd.f32 %v2375_v55, %v2291_v36  ;;  %vm5243_vm12 = vcmp.eq.s32.totalorder %v10799_v16, 1 }
 0x273   : > { %v11228_v39 = vmul.f32 %v5438_v46, %v11043_v50  ;;  %v11231_v4 = vmul.f32 %v5442_v42, %v11043_v50  ;;  %14681 = vst [vmem:[#allocation157_spill] sm:$0xff] %v11239_v33  ;;  %v11243_v5 = vsel %vm5235_vm2, %v5286_v7, 0.0  ;;  %v2392_v46 = vadd.f32 %v2376_v54, %v2292_v14  ;;  %v5259_v36 = vpop.permute.xlu1 %5258  ;;  %v11261_v14 = vpop.permute.xlu0 %5532 }
 0x274   : > { %14682 = vst [vmem:[#allocation158_spill] sm:$0xff] %v11243_v5  ;;  %v5446_v3 = vrot.slane %v11239_v33, %v7834_v58  ;;  %v5450_v49 = vrot.slane %v11243_v5, %v7834_v58  ;;  %v5546_v22 = vrot.slane %v11239_v33, %v7804_v45  ;;  %v5550_v61 = vrot.slane %v11243_v5, %v7804_v45 }
 0x275   : > { %14679 = vst [vmem:[#allocation73_spill] sm:$0xff] %v11228_v39  ;;  %14680 = vst [vmem:[#allocation113_spill] sm:$0xff] %v11231_v4  ;;  %v5287_v56 = vsel %vm5282_vm15, %v10861_v20, %v5259_v36  ;;  %v5288_v42 = vsel %vm5282_vm15, %v5259_v36, %v10925_v21  ;;  %v14689_v36 = vld [vmem:[#allocation115_spill] sm:$0xff]  ;;  %vm5244_vm3 = vcmp.eq.s32.totalorder %v10802_v48, 1 }
 0x276   : > { %v11264_v52 = vmul.f32 %v5446_v3, %v11043_v50  ;;  %v11267_v7 = vmul.f32 %v5450_v49, %v11043_v50  ;;  %v11274_v55 = vmul.f32 %v5546_v22, %v11261_v14  ;;  %v11277_v54 = vmul.f32 %v5550_v61, %v11261_v14 }
 0x277   : > { %v11281_v34 = vsel %vm5236_vm10, %v5287_v56, 0.0  ;;  %v11285_v3 = vsel %vm5237_vm0, %v5288_v42, 0.0  ;;  %vm5240_vm14 = vcmp.eq.s32.totalorder %v14689_v36, 1  ;;  %v5263_v49 = vpop.permute.xlu1 %5262 }
 0x278   : > { %14683 = vst [vmem:[#allocation163_spill] sm:$0xff] %v11264_v52  ;;  %14684 = vst [vmem:[#allocation164_spill] sm:$0xff] %v11267_v7  ;;  %v5454_v22 = vrot.slane %v11281_v34, %v7834_v58  ;;  %v5458_v61 = vrot.slane %v11285_v3, %v7834_v58  ;;  %v5554_v26 = vrot.slane %v11281_v34, %v7804_v45 }
 0x279   : > { %14685 = vst [vmem:[#allocation46_spill] sm:$0xff] %v11274_v55  ;;  %14686 = vst [vmem:[#allocation136_spill] sm:$0xff] %v11277_v54  ;;  %v5558_v53 = vrot.slane %v11285_v3, %v7804_v45  ;;  %v5289_v25 = vsel %vm5282_vm15, %v10925_v21, %v5263_v49  ;;  %v5290_v54 = vsel %vm5282_vm15, %v5263_v49, %v10983_v43 }
 0x27a   : > { %14687 = vst [vmem:[#allocation30_spill] sm:$0xff] %v11281_v34  ;;  %14688 = vst [vmem:[#allocation134_spill] sm:$0xff] %v11285_v3  ;;  %v11305_v20 = vmul.f32 %v5454_v22, %v11043_v50  ;;  %v11308_v2 = vmul.f32 %v5458_v61, %v11043_v50  ;;  %v11315_v55 = vmul.f32 %v5554_v26, %v11261_v14  ;;  %v11322_v42 = vsel %vm5238_vm13, %v5289_v25, 0.0  ;;  %v14711_v3 = vld [vmem:[#allocation47_spill] sm:$0xff] }
 0x27b   : > { %v11318_v56 = vmul.f32 %v5558_v53, %v11261_v14  ;;  %14694 = vst [vmem:[#allocation166_spill] sm:$0xff] %v11322_v42  ;;  %v11326_v22 = vsel %vm5239_vm8, %v5290_v54, 0.0  ;;  %v5462_v61 = vrot.slane %v11322_v42, %v7834_v58  ;;  %v5562_v25 = vrot.slane %v11322_v42, %v7804_v45  ;;  %v11345_v53 = vpop.permute.xlu1 %5332  ;;  %v14701_v54 = vld [vmem:[#allocation155_spill] sm:$0xff] }
 0x27c   : > { %14690 = vst [vmem:[#allocation153_spill] sm:$0xff] %v11305_v20  ;;  %14691 = vst [vmem:[#allocation139_spill] sm:$0xff] %v11308_v2  ;;  %v5466_v26 = vrot.slane %v11326_v22, %v7834_v58  ;;  %v5566_v62 = vrot.slane %v11326_v22, %v7804_v45 }
 0x27d   : > { %14692 = vst [vmem:[#allocation35_spill] sm:$0xff] %v11315_v55  ;;  %14693 = vst [vmem:[#allocation165_spill] sm:$0xff] %v11318_v56  ;;  %v11349_v49 = vmul.f32 %v5462_v61, %v11043_v50  ;;  %v2491_v56 = vadd.f32 %v11179_v47, %v2391_v41  ;;  %v2492_v55 = vadd.f32 %v11189_v28, %v2392_v46  ;;  %v14703_v61 = vld [vmem:[#allocation162_spill] sm:$0xff] }
 0x27e   : > { %14695 = vst [vmem:[#allocation115_spill] sm:$0xff] %v11326_v22  ;;  %14696 = vst [vmem:[#allocation168_spill] sm:$0xff] %v11345_v53  ;;  %v11352_v21 = vmul.f32 %v5466_v26, %v11043_v50  ;;  %v11357_v2 = vmul.f32 %v5562_v25, %v11261_v14  ;;  %v11360_v12 = vmul.f32 %v5566_v62, %v11261_v14  ;;  %v14706_v46 = vld [vmem:[#allocation126_spill] sm:$0xff] }
 0x27f   : > { %14697 = vst [vmem:[#allocation169_spill] sm:$0xff] %v11349_v49  ;;  %v14702_v22 = vrot.slane %v14701_v54, %v7801_v44  ;;  %v14704_v26 = vrot.slane %v14670_v10, %v7804_v45  ;;  %v2818_v47 = vadd.f32 %v11195_v51, %v2491_v56  ;;  %v14705_v28 = vrot.slane %v14701_v54, %v7804_v45  ;;  %v14710_v56 = vld [vmem:[#allocation39_spill] sm:$0xff] }
 0x280   : > { %14698 = vst [vmem:[#allocation170_spill] sm:$0xff] %v11352_v21  ;;  %14699 = vst [vmem:[#allocation171_spill] sm:$0xff] %v11357_v2  ;;  %v14707_v25 = vrot.slane %v14670_v10, %v7837_v59  ;;  %v5267_v2 = vpop.permute.xlu1 %5266  ;;  %v3184_v20 = vrot.slane %v14710_v56, %v7801_v44 }
 0x281   : > { %14700 = vst [vmem:[#allocation172_spill] sm:$0xff] %v11360_v12  ;;  %v2803_v42 = vmul.f32 %v14702_v22, %v9972_v23  ;;  %v3002_v21 = vmul.f32 %v14704_v26, %v14703_v61  ;;  %v3003_v41 = vmul.f32 %v14705_v28, %v14703_v61  ;;  %v14708_v22 = vrot.slane %v14701_v54, %v7837_v59  ;;  %v14709_v26 = vld [vmem:[#allocation51_spill] sm:$0xff] }
 0x282   : > { %v3102_v62 = vmul.f32 %v14707_v25, %v14706_v46  ;;  %v3180_v51 = vrot.slane %v14557_v0, %v14709_v26  ;;  %v5291_v10 = vsel %vm5282_vm15, %v10983_v43, %v5267_v2  ;;  %v14712_v25 = vld [vmem:[#allocation160_spill] sm:$0xff]  ;;  %v3264_v7 = vrot.slane %v3184_v20, %v7801_v44 }
 0x283   : > { %v3103_v12 = vmul.f32 %v14708_v22, %v14706_v46  ;;  %v2819_v49 = vadd.f32 %v2803_v42, %v2492_v55  ;;  %v2918_v34 = vadd.f32 %v14712_v25, %v2818_v47  ;;  %v11399_v42 = vsel %vm5240_vm14, %v5291_v10, 0.0  ;;  %v14714_v22 = vld [vmem:[#allocation54_spill] sm:$0xff] }
 0x284   : > { %14713 = vst [vmem:[#allocation155_spill] sm:$0xff] %v11399_v42  ;;  %v3260_v43 = vrot.slane %v3180_v51, %v7801_v44  ;;  %v5370_v47 = vrot.slane %v11399_v42, %v7801_v44  ;;  %v5470_v25 = vrot.slane %v11399_v42, %v7834_v58  ;;  %v5570_v55 = vrot.slane %v11399_v42, %v7804_v45  ;;  %v5269_v10 = vpop.permute.xlu1 %5268  ;;  %v14755_v42 = vld [vmem:[#allocation44_spill] sm:$0xff] }
 0x285   : > { %v2919_v28 = vadd.f32 %v14714_v22, %v2819_v49  ;;  %v3018_v54 = vadd.f32 %v3002_v21, %v2918_v34  ;;  %v14715_v49 = vld [vmem:[#allocation152_spill] sm:$0xff]  ;;  %v5292_v4 = vsel %vm5282_vm15, %v5267_v2, %v5269_v10  ;;  %v5293_v39 = vsel %vm5282_vm15, %v5269_v10, %v11085_v8 }
 0x286   : > { %v3282_v22 = vmul.f32 %v3260_v43, %v14715_v49  ;;  %v3283_v51 = vmul.f32 %v3264_v7, %v14715_v49  ;;  %v5407_v20 = vmul.f32 %v5370_v47, %v11345_v53  ;;  %v5507_v5 = vmul.f32 %v5470_v25, %v11043_v50 }
 0x287   : > { %v3019_v52 = vadd.f32 %v3003_v41, %v2919_v28  ;;  %v5607_v33 = vmul.f32 %v5570_v55, %v11261_v14  ;;  %v11423_v36 = vsel %vm5241_vm1, %v5292_v4, 0.0  ;;  %v3118_v34 = vadd.f32 %v3102_v62, %v3018_v54 }
 0x288   : > { %14716 = vst [vmem:[#allocation39_spill] sm:$0xff] %v11423_v36  ;;  %v5423_v41 = vadd.f32 %v5407_v20, %v11165_v9  ;;  %v11428_v7 = vsel %vm5242_vm4, %v5293_v39, 0.0  ;;  %v5374_v28 = vrot.slane %v11423_v36, %v7801_v44  ;;  %v5474_v2 = vrot.slane %v11423_v36, %v7834_v58  ;;  %v5273_v9 = vpop.permute.xlu1 %5272 }
 0x289   : > { %v3119_v21 = vadd.f32 %v3103_v12, %v3019_v52  ;;  %14717 = vst [vmem:[#allocation160_spill] sm:$0xff] %v11428_v7  ;;  %v5378_v55 = vrot.slane %v11428_v7, %v7801_v44  ;;  %v5478_v17 = vrot.slane %v11428_v7, %v7834_v58  ;;  %v5574_v4 = vrot.slane %v11423_v36, %v7804_v45 }
 0x28a   : > { %v5578_v30 = vrot.slane %v11428_v7, %v7804_v45  ;;  %v5523_v39 = vadd.f32 %v5507_v5, %v5423_v41  ;;  %v5408_v52 = vmul.f32 %v5374_v28, %v11345_v53  ;;  %v5508_v12 = vmul.f32 %v5474_v2, %v11043_v50 }
 0x28b   : > { %v5409_v54 = vmul.f32 %v5378_v55, %v11345_v53  ;;  %v5509_v43 = vmul.f32 %v5478_v17, %v11043_v50  ;;  %v5608_v47 = vmul.f32 %v5574_v4, %v11261_v14  ;;  %v5294_v41 = vsel %vm5282_vm15, %v11085_v8, %v5273_v9 }
 0x28c   : > { %v5609_v25 = vmul.f32 %v5578_v30, %v11261_v14  ;;  %v11450_v10 = vadd.f32 %v5607_v33, %v5523_v39  ;;  %v5424_v20 = vadd.f32 %v5408_v52, %v11167_v6  ;;  %v5295_v2 = vsel %vm5282_vm15, %v5273_v9, %v11137_v19  ;;  %v5277_v62 = vpop.permute.xlu1 %5276 }
 0x28d   : > { %v5425_v28 = vadd.f32 %v5409_v54, %v11169_v1  ;;  %v11462_v55 = vsel %vm5243_vm12, %v5294_v41, 0.0  ;;  %v3298_v17 = vadd.f32 %v3282_v22, %v3118_v34  ;;  %v11466_v6 = vsel %vm5244_vm3, %v5295_v2, 0.0 }
 0x28e   : > { %14718 = vst [vmem:[#allocation54_spill] sm:$0xff] %v11450_v10  ;;  %14719 = vst [vmem:[#allocation152_spill] sm:$0xff] %v11462_v55  ;;  %v5524_v33 = vadd.f32 %v5508_v12, %v5424_v20  ;;  %v5382_v4 = vrot.slane %v11462_v55, %v7801_v44  ;;  %v5482_v8 = vrot.slane %v11462_v55, %v7834_v58  ;;  %v14754_v10 = vld [vmem:[#allocation81_spill] sm:$0xff] }
 0x28f   : > { %14720 = vst [vmem:[#allocation173_spill] sm:$0xff] %v11466_v6  ;;  %v5525_v1 = vadd.f32 %v5509_v43, %v5425_v28  ;;  %v5386_v30 = vrot.slane %v11466_v6, %v7801_v44  ;;  %v5486_v16 = vrot.slane %v11466_v6, %v7834_v58  ;;  %v5582_v22 = vrot.slane %v11462_v55, %v7804_v45  ;;  %v14729_v28 = vld [vmem:[#allocation124_spill] sm:$0xff] }
 0x290   : > { %v11478_v34 = vadd.f32 %v5608_v47, %v5524_v33  ;;  %v5410_v48 = vmul.f32 %v5382_v4, %v11345_v53  ;;  %v5510_v9 = vmul.f32 %v5482_v8, %v11043_v50  ;;  %v5586_v39 = vrot.slane %v11466_v6, %v7804_v45 }
 0x291   : > { %v11484_v52 = vadd.f32 %v5609_v25, %v5525_v1  ;;  %v5411_v12 = vmul.f32 %v5386_v30, %v11345_v53  ;;  %v5511_v54 = vmul.f32 %v5486_v16, %v11043_v50  ;;  %v5610_v43 = vmul.f32 %v5582_v22, %v11261_v14 }
 0x292   : > { %14721 = vst [vmem:[#allocation174_spill] sm:$0xff] %v11478_v34  ;;  %v5426_v20 = vadd.f32 %v5410_v48, %v11171_v31  ;;  %v5611_v47 = vmul.f32 %v5586_v39, %v11261_v14  ;;  %v3299_v25 = vadd.f32 %v3283_v51, %v3119_v21  ;;  %v14723_v33 = vrot.slane %v14557_v0, %v14711_v3  ;;  %v14752_v34 = vld [vmem:[#allocation31_spill] sm:$0xff] }
 0x293   : > { %14722 = vst [vmem:[#allocation175_spill] sm:$0xff] %v11484_v52  ;;  %v5427_v2 = vadd.f32 %v5411_v12, %v11173_v32  ;;  %v14724_v31 = vrot.slane %v14710_v56, %v7834_v58  ;;  %v3544_v30 = vrot.slane %v14710_v56, %v7804_v45  ;;  %v14725_v16 = vrot.slane %v14557_v0, %v14565_v38 }
 0x294   : > { %v3440_v4 = vrot.slane %v14723_v33, %v7834_v58  ;;  %v5526_v1 = vadd.f32 %v5510_v9, %v5426_v20  ;;  %v3720_v51 = vrot.slane %v14557_v0, %v14579_v40  ;;  %v3724_v39 = vrot.slane %v14710_v56, %v7837_v59 }
 0x295   : > { %v3444_v8 = vrot.slane %v14724_v31, %v7834_v58  ;;  %v3620_v32 = vrot.slane %v14725_v16, %v7804_v45  ;;  %v5527_v21 = vadd.f32 %v5511_v54, %v5427_v2  ;;  %v3624_v12 = vrot.slane %v3544_v30, %v7804_v45  ;;  %v14731_v30 = vld [vmem:[#allocation125_spill] sm:$0xff] }
 0x296   : > { %v3462_v22 = vmul.f32 %v3440_v4, %v14573_v29  ;;  %v11516_v9 = vadd.f32 %v5610_v43, %v5526_v1  ;;  %v3800_v33 = vrot.slane %v3720_v51, %v7837_v59  ;;  %v3804_v54 = vrot.slane %v3724_v39, %v7837_v59 }
 0x297   : > { %v3463_v48 = vmul.f32 %v3444_v8, %v14573_v29  ;;  %v3642_v20 = vmul.f32 %v3620_v32, %v14578_v57  ;;  %v11521_v31 = vadd.f32 %v5611_v47, %v5527_v21  ;;  %v3643_v2 = vmul.f32 %v3624_v12, %v14578_v57  ;;  %v14728_v8 = vld [vmem:[#allocation82_spill] sm:$0xff] }
 0x298   : > { %14726 = vst [vmem:[#allocation176_spill] sm:$0xff] %v11516_v9  ;;  %v3478_v16 = vadd.f32 %v3462_v22, %v3298_v17  ;;  %v3822_v4 = vmul.f32 %v3800_v33, %v14591_v15  ;;  %v14730_v43 = vrot.slane %v14729_v28, %v7801_v44  ;;  %v14732_v32 = vrot.slane %v14731_v30, %v7801_v44  ;;  %v14736_v33 = vld [vmem:[#allocation91_spill] sm:$0xff]  ;;  %v14748_v9 = vld [vmem:[#allocation60_spill] sm:$0xff] }
 0x299   : > { %14727 = vst [vmem:[#allocation177_spill] sm:$0xff] %v11521_v31  ;;  %v3479_v0 = vadd.f32 %v3463_v48, %v3299_v25  ;;  %v3823_v17 = vmul.f32 %v3804_v54, %v14591_v15  ;;  %v14733_v25 = vld [vmem:[#allocation83_spill] sm:$0xff]  ;;  %v14734_v21 = vrot.slane %v14729_v28, %v7804_v45  ;;  %v14735_v48 = vrot.slane %v14731_v30, %v7804_v45  ;;  %v14739_v54 = vld [vmem:[#allocation108_spill] sm:$0xff] }
 0x29a   : > { %v4150_v1 = vmul.f32 %v14730_v43, %v14728_v8  ;;  %v4151_v51 = vmul.f32 %v14732_v32, %v14728_v8  ;;  %v3658_v47 = vadd.f32 %v3642_v20, %v3478_v16  ;;  %v14737_v43 = vrot.slane %v14729_v28, %v7837_v59  ;;  %v14740_v32 = vld [vmem:[#allocation106_spill] sm:$0xff] }
 0x29b   : > { %v4350_v22 = vmul.f32 %v14734_v21, %v14733_v25  ;;  %v4351_v39 = vmul.f32 %v14735_v48, %v14733_v25  ;;  %v3659_v12 = vadd.f32 %v3643_v2, %v3479_v0  ;;  %v14738_v20 = vrot.slane %v14731_v30, %v7837_v59  ;;  %v14742_v48 = vld [vmem:[#allocation144_spill] sm:$0xff] }
 0x29c   : > { %v4450_v41 = vmul.f32 %v14737_v43, %v14736_v33  ;;  %v14741_v21 = vrot.slane %v14740_v32, %v7801_v44  ;;  %v3838_v31 = vadd.f32 %v3822_v4, %v3658_v47  ;;  %v14743_v0 = vrot.slane %v14742_v48, %v7801_v44 }
 0x29d   : > { %v4451_v16 = vmul.f32 %v14738_v20, %v14736_v33  ;;  %v14744_v28 = vrot.slane %v14740_v32, %v7804_v45  ;;  %v14745_v30 = vrot.slane %v14742_v48, %v7804_v45  ;;  %v3839_v6 = vadd.f32 %v3823_v17, %v3659_v12 }
 0x29e   : > { %v4785_v5 = vmul.f32 %v14741_v21, %v14739_v54  ;;  %v4786_v2 = vmul.f32 %v14743_v0, %v14739_v54  ;;  %v14746_v4 = vrot.slane %v14740_v32, %v7837_v59  ;;  %v14747_v21 = vrot.slane %v14742_v48, %v7837_v59  ;;  %v14750_v48 = vld [vmem:[#allocation101_spill] sm:$0xff] }
 0x29f   : > { %v4985_v43 = vmul.f32 %v14744_v28, %v11083_v35  ;;  %v4986_v20 = vmul.f32 %v14745_v30, %v11083_v35  ;;  %v5159_v28 = vrot.slane %v14748_v9, %v7804_v45  ;;  %v4166_v52 = vadd.f32 %v4150_v1, %v3838_v31 }
 0x2a0   : > { %v5085_v47 = vmul.f32 %v14746_v4, %v11119_v60  ;;  %v11575_v0 = vmul.f32 %v14747_v21, %v11119_v60  ;;  %v5163_v55 = vrot.slane %v14748_v9, %v14709_v26  ;;  %v5296_v17 = vsel %vm5282_vm15, %v11137_v19, %v5277_v62  ;;  %v14749_v4 = vld [vmem:[#allocation55_spill] sm:$0xff]  ;;  %v14764_v9 = vld [vmem:[#allocation28_spill] sm:$0xff] }
 0x2a1   : > { %v5297_v12 = vsel %vm5282_vm15, %v5277_v62, %v11207_v24  ;;  %v4167_v32 = vadd.f32 %v4151_v51, %v3839_v6  ;;  %v5223_v30 = vrot.slane %v5159_v28, %v7801_v44  ;;  %v14751_v21 = vrot.slane %v14750_v48, %v7801_v44  ;;  %v14757_v51 = vld [vmem:[#allocation102_spill] sm:$0xff] }
 0x2a2   : > { %v14753_v31 = vrot.slane %v14750_v48, %v7834_v58  ;;  %v4266_v36 = vadd.f32 %v14754_v10, %v4166_v52  ;;  %v5227_v19 = vrot.slane %v5163_v55, %v7801_v44  ;;  %v14756_v62 = vrot.slane %v14750_v48, %v7804_v45  ;;  %v14760_v24 = vld [vmem:[#allocation114_spill] sm:$0xff] }
 0x2a3   : > { %v899_v7 = vmul.f32 %v14751_v21, %v14749_v4  ;;  %v14758_v28 = vrot.slane %v14750_v48, %v7837_v59  ;;  %v14759_v21 = vld [vmem:[#allocation87_spill] sm:$0xff]  ;;  %vm5245_vm5 = vcmp.eq.s32.totalorder %v5223_v30, 1 }
 0x2a4   : > { %v999_v1 = vmul.f32 %v14753_v31, %v14752_v34  ;;  %v1099_v6 = vmul.f32 %v14756_v62, %v14755_v42  ;;  %v4267_v13 = vadd.f32 %v14759_v21, %v4167_v32  ;;  %v14761_v31 = vld [vmem:[#allocation119_spill] sm:$0xff]  ;;  %v4366_v55 = vadd.f32 %v4350_v22, %v4266_v36 }
 0x2a5   : > { %v1199_v18 = vmul.f32 %v14758_v28, %v14757_v51  ;;  %v14762_v10 = vrot.slane %v14761_v31, %v7801_v44  ;;  %vm5246_vm2 = vcmp.eq.s32.totalorder %v5227_v19, 1  ;;  %v11609_v34 = vsel %vm5245_vm5, %v5296_v17, 0.0 }
 0x2a6   : > { %v1015_v4 = vadd.f32 %v999_v1, %v899_v7  ;;  %14763 = vst [vmem:[#allocation124_spill] sm:$0xff] %v11609_v34  ;;  %v14765_v62 = vrot.slane %v14761_v31, %v7834_v58  ;;  %v4367_v48 = vadd.f32 %v4351_v39, %v4267_v13  ;;  %v11615_v28 = vsel %vm5246_vm2, %v5297_v12, 0.0 }
 0x2a7   : > { %v1526_v52 = vmul.f32 %v14762_v10, %v14760_v24  ;;  %14766 = vst [vmem:[#allocation125_spill] sm:$0xff] %v11615_v28  ;;  %v5390_v7 = vrot.slane %v11609_v34, %v7801_v44  ;;  %v5490_v32 = vrot.slane %v11609_v34, %v7834_v58  ;;  %v4466_v30 = vadd.f32 %v4450_v41, %v4366_v55  ;;  %v14768_v24 = vld [vmem:[#allocation32_spill] sm:$0xff] }
 0x2a8   : > { %v1626_v42 = vmul.f32 %v14765_v62, %v14764_v9  ;;  %v5394_v36 = vrot.slane %v11615_v28, %v7801_v44  ;;  %v5494_v22 = vrot.slane %v11615_v28, %v7834_v58  ;;  %v5590_v17 = vrot.slane %v11609_v34, %v7804_v45 }
 0x2a9   : > { %v4467_v1 = vadd.f32 %v4451_v16, %v4367_v48  ;;  %v5412_v13 = vmul.f32 %v5390_v7, %v11345_v53  ;;  %v5512_v39 = vmul.f32 %v5490_v32, %v11043_v50  ;;  %v5594_v12 = vrot.slane %v11615_v28, %v7804_v45  ;;  %v14767_v7 = vld [vmem:[#allocation107_spill] sm:$0xff] }
 0x2aa   : > { %v4801_v19 = vadd.f32 %v4785_v5, %v4466_v30  ;;  %v5413_v41 = vmul.f32 %v5394_v36, %v11345_v53  ;;  %v5513_v21 = vmul.f32 %v5494_v22, %v11043_v50  ;;  %v5612_v10 = vmul.f32 %v5590_v17, %v11261_v14  ;;  %v11648_v22 = vpop.permute.xlu0 %6067  ;;  %v14772_v17 = vld [vmem:[#allocation146_spill] sm:$0xff] }
 0x2ab   : > { %v4802_v55 = vadd.f32 %v4786_v2, %v4467_v1  ;;  %v5613_v62 = vmul.f32 %v5594_v12, %v11261_v14  ;;  %v1115_v9 = vadd.f32 %v1099_v6, %v1015_v4  ;;  %v14769_v5 = vrot.slane %v14761_v31, %v7804_v45  ;;  %14771 = vst [vmem:[#allocation106_spill] sm:$0xff] %v11648_v22  ;;  %v14773_v12 = vld [vmem:[#allocation137_spill] sm:$0xff] }
 0x2ac   : > { %v4901_v32 = vadd.f32 %v14767_v7, %v4801_v19  ;;  %v14770_v2 = vrot.slane %v14761_v31, %v7837_v59  ;;  %v14774_v48 = vrot.slane %v14773_v12, %v7801_v44  ;;  %v14775_v4 = vrot.slane %v14773_v12, %v7804_v45 }
 0x2ad   : > { %v1726_v30 = vmul.f32 %v14769_v5, %v14768_v24  ;;  %v4902_v1 = vadd.f32 %v14772_v17, %v4802_v55  ;;  %v14776_v7 = vrot.slane %v14773_v12, %v7837_v59  ;;  %v14777_v55 = vld [vmem:[#allocation156_spill] sm:$0xff] }
 0x2ae   : > { %v1826_v36 = vmul.f32 %v14770_v2, %v14651_v27  ;;  %v2177_v19 = vmul.f32 %v14774_v48, %v14503_v63  ;;  %v2377_v6 = vmul.f32 %v14775_v4, %v9501_v11  ;;  %v5001_v5 = vadd.f32 %v4985_v43, %v4901_v32 }
 0x2af   : > { %v11663_v31 = vmul.f32 %v14776_v7, %v9560_v37  ;;  %v1215_v2 = vadd.f32 %v1199_v18, %v1115_v9  ;;  %v14778_v17 = vrot.slane %v14777_v55, %v7801_v44  ;;  %v14779_v48 = vrot.slane %v14777_v55, %v7804_v45 }
 0x2b0   : > { %v5002_v4 = vadd.f32 %v4986_v20, %v4902_v1  ;;  %v14780_v12 = vrot.slane %v14777_v55, %v7837_v59  ;;  %v3188_v18 = vrot.slane %v14710_v56, %v14709_v26  ;;  %v3368_v9 = vrot.slane %v14710_v56, %v14711_v3  ;;  %v11702_v3 = vpop.permute.xlu0 %5887 }
 0x2b1   : > { %v11669_v16 = vmul.f32 %v14778_v17, %v9972_v23  ;;  %v11675_v28 = vmul.f32 %v14779_v48, %v14703_v61  ;;  %v5101_v43 = vadd.f32 %v5085_v47, %v5001_v5  ;;  %v1542_v32 = vadd.f32 %v1526_v52, %v1215_v2  ;;  %14783 = vst [vmem:[#allocation144_spill] sm:$0xff] %v11702_v3 }
 0x2b2   : > { %v11681_v7 = vmul.f32 %v14780_v12, %v14706_v46  ;;  %v3548_v17 = vrot.slane %v14710_v56, %v14565_v38  ;;  %v3728_v20 = vrot.slane %v14710_v56, %v14579_v40  ;;  %v5102_v1 = vadd.f32 %v11575_v0, %v5002_v4  ;;  %v14781_v12 = vld [vmem:[#allocation80_spill] sm:$0xff] }
 0x2b3   : > { %v3268_v55 = vrot.slane %v3188_v18, %v7801_v44  ;;  %v3448_v48 = vrot.slane %v3368_v9, %v7834_v58  ;;  %v14782_v34 = vrot.slane %v14781_v12, %v7801_v44  ;;  %v5428_v47 = vadd.f32 %v5412_v13, %v5101_v43 }
 0x2b4   : > { %v1642_v52 = vadd.f32 %v1626_v42, %v1542_v32  ;;  %v3628_v5 = vrot.slane %v3548_v17, %v7804_v45  ;;  %v3808_v2 = vrot.slane %v3728_v20, %v7837_v59  ;;  %v5429_v56 = vadd.f32 %v5413_v41, %v5102_v1  ;;  %v5281_v41 = vpop.permute.xlu1 %5280  ;;  %v14787_v1 = vld [vmem:[#allocation145_spill] sm:$0xff] }
 0x2b5   : > { %v11698_v22 = vmul.f32 %v14782_v34, %v14728_v8  ;;  %v11705_v0 = vmul.f32 %v3268_v55, %v14715_v49  ;;  %v11708_v4 = vmul.f32 %v3448_v48, %v14573_v29  ;;  %v14784_v34 = vrot.slane %v14781_v12, %v7804_v45 }
 0x2b6   : > { %v5528_v42 = vadd.f32 %v5512_v39, %v5428_v47  ;;  %v1742_v13 = vadd.f32 %v1726_v30, %v1642_v52  ;;  %v11717_v9 = vmul.f32 %v3628_v5, %v14578_v57  ;;  %v11720_v43 = vmul.f32 %v3808_v2, %v14591_v15  ;;  %v14795_v5 = vld [vmem:[#allocation60_spill] sm:$0xff] }
 0x2b7   : > { %v11714_v18 = vmul.f32 %v14784_v34, %v14733_v25  ;;  %v5529_v32 = vadd.f32 %v5513_v21, %v5429_v56  ;;  %v14785_v17 = vrot.slane %v14781_v12, %v7837_v59  ;;  %v14788_v55 = vrot.slane %v14787_v1, %v7801_v44  ;;  %v14797_v34 = vld [vmem:[#allocation53_spill] sm:$0xff] }
 0x2b8   : > { %v14790_v30 = vrot.slane %v14787_v1, %v7804_v45  ;;  %v11740_v47 = vadd.f32 %v5612_v10, %v5528_v42  ;;  %v1842_v21 = vadd.f32 %v1826_v36, %v1742_v13  ;;  %v14793_v12 = vrot.slane %v14787_v1, %v7837_v59  ;;  %v14801_v36 = vld [vmem:[#allocation98_spill] sm:$0xff] }
 0x2b9   : > { %v11726_v20 = vmul.f32 %v14785_v17, %v14736_v33  ;;  %v11732_v39 = vmul.f32 %v14788_v55, %v14739_v54  ;;  %v5167_v2 = vrot.slane %v14795_v5, %v14565_v38  ;;  %v11750_v56 = vadd.f32 %v5613_v62, %v5529_v32  ;;  %v14798_v55 = vld [vmem:[#allocation55_spill] sm:$0xff] }
 0x2ba   : > { %v11738_v48 = vmul.f32 %v14790_v30, %v11083_v35  ;;  %14792 = vst [vmem:[#allocation87_spill] sm:$0xff] %v11740_v47  ;;  %v11746_v52 = vmul.f32 %v14793_v12, %v11119_v60  ;;  %v5298_v17 = vsel %vm5282_vm15, %v14797_v34, %v5281_v41  ;;  %v14799_v30 = vld [vmem:[#allocation84_spill] sm:$0xff]  ;;  %v14802_v13 = vrot.slane %v14801_v36, %v7801_v44  ;;  %v11771_v34 = vpop.permute.xlu0 %5891  ;;  %v14815_v60 = vld [vmem:[#allocation63_spill] sm:$0xff] }
 0x2bb   : > { %14786 = vst [vmem:[#allocation101_spill] sm:$0xff] %v11726_v20  ;;  %14789 = vst [vmem:[#allocation81_spill] sm:$0xff] %v11732_v39  ;;  %v14800_v10 = vrot.slane %v14799_v30, %v7801_v44  ;;  %v2193_v12 = vadd.f32 %v2177_v19, %v1842_v21  ;;  %v5231_v47 = vrot.slane %v5167_v2, %v7801_v44  ;;  %v14814_v39 = vld [vmem:[#allocation114_spill] sm:$0xff]  ;;  %v14819_v35 = vld [vmem:[#allocation28_spill] sm:$0xff] }
 0x2bc   : > { %14791 = vst [vmem:[#allocation102_spill] sm:$0xff] %v11738_v48  ;;  %14794 = vst [vmem:[#allocation119_spill] sm:$0xff] %v11746_v52  ;;  %v885_v1 = vmul.f32 %v14802_v13, %v14798_v55  ;;  %v14803_v52 = vld [vmem:[#allocation31_spill] sm:$0xff]  ;;  %v14804_v62 = vrot.slane %v14799_v30, %v7834_v58  ;;  %v14805_v41 = vrot.slane %v14801_v36, %v7834_v58 }
 0x2bd   : > { %14796 = vst [vmem:[#allocation107_spill] sm:$0xff] %v11750_v56  ;;  %v884_v42 = vmul.f32 %v14800_v10, %v14798_v55  ;;  %14806 = vst [vmem:[#allocation32_spill] sm:$0xff] %v11771_v34  ;;  %v14807_v10 = vld [vmem:[#allocation44_spill] sm:$0xff]  ;;  %v14808_v56 = vrot.slane %v14799_v30, %v7804_v45  ;;  %v14809_v19 = vrot.slane %v14801_v36, %v7804_v45  ;;  %vm5247_vm15 = vcmp.eq.s32.totalorder %v5231_v47, 1 }
 0x2be   : > { %v984_v32 = vmul.f32 %v14804_v62, %v14803_v52  ;;  %v985_v5 = vmul.f32 %v14805_v41, %v14803_v52  ;;  %v14810_v2 = vrot.slane %v14799_v30, %v7837_v59  ;;  %v14811_v41 = vrot.slane %v14801_v36, %v7837_v59  ;;  %v14812_v52 = vld [vmem:[#allocation50_spill] sm:$0xff]  ;;  %v14817_v30 = vld [vmem:[#allocation64_spill] sm:$0xff] }
 0x2bf   : > { %v1084_v13 = vmul.f32 %v14808_v56, %v14807_v10  ;;  %v1085_v21 = vmul.f32 %v14809_v19, %v14807_v10  ;;  %v2293_v55 = vadd.f32 %v14812_v52, %v2193_v12  ;;  %v11790_v3 = vsel %vm5247_vm15, %v5298_v17, 0.0  ;;  %v14831_v12 = vld [vmem:[#allocation133_spill] sm:$0xff] }
 0x2c0   : > { %v1184_v62 = vmul.f32 %v14810_v2, %v14757_v51  ;;  %v1185_v34 = vmul.f32 %v14811_v41, %v14757_v51  ;;  %v1000_v48 = vadd.f32 %v984_v32, %v884_v42  ;;  %v1001_v56 = vadd.f32 %v985_v5, %v885_v1  ;;  %14813 = vst [vmem:[#allocation146_spill] sm:$0xff] %v11790_v3 }
 0x2c1   : > { %v14816_v19 = vrot.slane %v14815_v60, %v7801_v44  ;;  %v14818_v2 = vrot.slane %v14817_v30, %v7801_v44  ;;  %v14820_v36 = vrot.slane %v14815_v60, %v7834_v58  ;;  %v2393_v47 = vadd.f32 %v2377_v6, %v2293_v55 }
 0x2c2   : > { %v5398_v17 = vrot.slane %v11790_v3, %v7801_v44  ;;  %v5498_v42 = vrot.slane %v11790_v3, %v7834_v58  ;;  %v5598_v1 = vrot.slane %v11790_v3, %v7804_v45  ;;  %v1100_v32 = vadd.f32 %v1084_v13, %v1000_v48  ;;  %v14833_v3 = vld [vmem:[#allocation161_spill] sm:$0xff] }
 0x2c3   : > { %v1511_v10 = vmul.f32 %v14816_v19, %v14814_v39  ;;  %v1512_v20 = vmul.f32 %v14818_v2, %v14814_v39  ;;  %v1611_v52 = vmul.f32 %v14820_v36, %v14819_v35  ;;  %v1101_v5 = vadd.f32 %v1085_v21, %v1001_v56  ;;  %v11826_v39 = vpop.permute.xlu0 %5895 }
 0x2c4   : > { %v14821_v41 = vrot.slane %v14817_v30, %v7834_v58  ;;  %v2493_v6 = vadd.f32 %v11663_v31, %v2393_v47  ;;  %v11818_v55 = vmul.f32 %v5398_v17, %v11345_v53  ;;  %v11821_v2 = vmul.f32 %v5498_v42, %v11043_v50  ;;  %14822 = vst [vmem:[#allocation137_spill] sm:$0xff] %v11826_v39 }
 0x2c5   : > { %v11824_v36 = vmul.f32 %v5598_v1, %v11261_v14  ;;  %v1200_v48 = vadd.f32 %v1184_v62, %v1100_v32  ;;  %v1201_v13 = vadd.f32 %v1185_v34, %v1101_v5  ;;  %v14823_v21 = vrot.slane %v14815_v60, %v7804_v45  ;;  %v14827_v1 = vld [vmem:[#allocation127_spill] sm:$0xff] }
 0x2c6   : > { %v1612_v19 = vmul.f32 %v14821_v41, %v14819_v35  ;;  %v14824_v31 = vrot.slane %v14817_v30, %v7804_v45  ;;  %v2820_v50 = vadd.f32 %v11669_v16, %v2493_v6  ;;  %v14825_v17 = vrot.slane %v14815_v60, %v7837_v59 }
 0x2c7   : > { %v1711_v56 = vmul.f32 %v14823_v21, %v14768_v24  ;;  %v14826_v34 = vrot.slane %v14817_v30, %v7837_v59  ;;  %v14828_v32 = vrot.slane %v14827_v1, %v7801_v44  ;;  %v1527_v41 = vadd.f32 %v1511_v10, %v1200_v48 }
 0x2c8   : > { %v1712_v47 = vmul.f32 %v14824_v31, %v14768_v24  ;;  %v1811_v42 = vmul.f32 %v14825_v17, %v14651_v27  ;;  %v1528_v21 = vadd.f32 %v1512_v20, %v1201_v13  ;;  %v14829_v31 = vld [vmem:[#allocation128_spill] sm:$0xff]  ;;  %v14832_v60 = vrot.slane %v14827_v1, %v7834_v58 }
 0x2c9   : > { %v1812_v62 = vmul.f32 %v14826_v34, %v14651_v27  ;;  %v2162_v5 = vmul.f32 %v14828_v32, %v14503_v63  ;;  %v14830_v16 = vrot.slane %v14829_v31, %v7801_v44  ;;  %v2920_v30 = vadd.f32 %v14833_v3, %v2820_v50 }
 0x2ca   : > { %v2262_v17 = vmul.f32 %v14832_v60, %v14831_v12  ;;  %v14834_v34 = vrot.slane %v14829_v31, %v7834_v58  ;;  %v14835_v20 = vrot.slane %v14827_v1, %v7804_v45  ;;  %v14836_v48 = vrot.slane %v14829_v31, %v7804_v45 }
 0x2cb   : > { %v2163_v6 = vmul.f32 %v14830_v16, %v14503_v63  ;;  %v1627_v32 = vadd.f32 %v1611_v52, %v1527_v41  ;;  %v1628_v16 = vadd.f32 %v1612_v19, %v1528_v21  ;;  %v14837_v3 = vrot.slane %v14827_v1, %v7837_v59  ;;  %v14841_v52 = vld [vmem:[#allocation52_spill] sm:$0xff] }
 0x2cc   : > { %v2263_v39 = vmul.f32 %v14834_v34, %v14831_v12  ;;  %v2362_v10 = vmul.f32 %v14835_v20, %v9501_v11  ;;  %v2363_v13 = vmul.f32 %v14836_v48, %v9501_v11  ;;  %v14838_v60 = vrot.slane %v14829_v31, %v7837_v59  ;;  %v14839_v20 = vld [vmem:[#allocation143_spill] sm:$0xff]  ;;  %v14843_v21 = vld [vmem:[#allocation112_spill] sm:$0xff]  ;;  %v11893_v31 = vpop.permute.xlu0 %5899 }
 0x2cd   : > { %v2462_v50 = vmul.f32 %v14837_v3, %v9560_v37  ;;  %v3020_v12 = vadd.f32 %v11675_v28, %v2920_v30  ;;  %v14840_v63 = vrot.slane %v14839_v20, %v7801_v44  ;;  %v14842_v19 = vrot.slane %v14841_v52, %v7801_v44  ;;  %14845 = vst [vmem:[#allocation156_spill] sm:$0xff] %v11893_v31 }
 0x2ce   : > { %v2463_v34 = vmul.f32 %v14838_v60, %v9560_v37  ;;  %v14844_v1 = vrot.slane %v14839_v20, %v7834_v58  ;;  %v1727_v3 = vadd.f32 %v1711_v56, %v1627_v32  ;;  %v1728_v28 = vadd.f32 %v1712_v47, %v1628_v16  ;;  %v11906_v37 = vpop.permute.xlu1 %5632 }
 0x2cf   : > { %v2789_v27 = vmul.f32 %v14840_v63, %v9972_v23  ;;  %v2790_v41 = vmul.f32 %v14842_v19, %v9972_v23  ;;  %v14846_v30 = vrot.slane %v14841_v52, %v7834_v58  ;;  %v14847_v60 = vrot.slane %v14839_v20, %v7804_v45  ;;  %14848 = vst [vmem:[#allocation80_spill] sm:$0xff] %v11906_v37 }
 0x2d0   : > { %v11891_v48 = vmul.f32 %v14844_v1, %v14843_v21  ;;  %v3120_v23 = vadd.f32 %v11681_v7, %v3020_v12  ;;  %v14849_v56 = vrot.slane %v14841_v52, %v7804_v45  ;;  %v14850_v32 = vrot.slane %v14839_v20, %v7837_v59 }
 0x2d1   : > { %v2890_v63 = vmul.f32 %v14846_v30, %v14843_v21  ;;  %v11903_v19 = vmul.f32 %v14847_v60, %v14703_v61  ;;  %v14851_v1 = vrot.slane %v14841_v52, %v7837_v59  ;;  %v1827_v7 = vadd.f32 %v1811_v42, %v1727_v3  ;;  %v14852_v60 = vld [vmem:[#allocation27_spill] sm:$0xff] }
 0x2d2   : > { %v11912_v47 = vmul.f32 %v14849_v56, %v14703_v61  ;;  %v11918_v16 = vmul.f32 %v14850_v32, %v14706_v46  ;;  %v1828_v12 = vadd.f32 %v1812_v62, %v1728_v28  ;;  %v3128_v31 = vrot.slane %v14852_v60, %v7801_v44  ;;  %v14853_v32 = vld [vmem:[#allocation47_spill] sm:$0xff] }
 0x2d3   : > { %v11924_v30 = vmul.f32 %v14851_v1, %v14706_v46  ;;  %v3132_v56 = vrot.slane %v14852_v60, %v14709_v26  ;;  %v3300_v61 = vadd.f32 %v11705_v0, %v3120_v23  ;;  %v3308_v20 = vrot.slane %v14852_v60, %v7834_v58  ;;  %v11944_v46 = vpop.permute.xlu0 %5903 }
 0x2d4   : > { %v3312_v21 = vrot.slane %v14852_v60, %v14853_v32  ;;  %v3488_v52 = vrot.slane %v14852_v60, %v7804_v45  ;;  %v2178_v1 = vadd.f32 %v2162_v5, %v1827_v7  ;;  %v2179_v42 = vadd.f32 %v2163_v6, %v1828_v12  ;;  %14854 = vst [vmem:[#allocation145_spill] sm:$0xff] %v11944_v46  ;;  %v11949_v7 = vpop.permute.xlu1 %5967 }
 0x2d5   : > { %v3208_v62 = vrot.slane %v3128_v31, %v7801_v44  ;;  %v3212_v3 = vrot.slane %v3132_v56, %v7801_v44  ;;  %v3480_v28 = vadd.f32 %v11708_v4, %v3300_v61  ;;  %v3388_v26 = vrot.slane %v3308_v20, %v7834_v58 }
 0x2d6   : > { %v3392_v23 = vrot.slane %v3312_v21, %v7834_v58  ;;  %v3492_v0 = vrot.slane %v14852_v60, %v14565_v38  ;;  %v2278_v32 = vadd.f32 %v2262_v17, %v2178_v1  ;;  %v2279_v11 = vadd.f32 %v2263_v39, %v2179_v42  ;;  %v14855_v1 = vld [vmem:[#allocation117_spill] sm:$0xff] }
 0x2d7   : > { %v3269_v5 = vmul.f32 %v3208_v62, %v14715_v49  ;;  %v3270_v6 = vmul.f32 %v3212_v3, %v14715_v49  ;;  %v3660_v31 = vadd.f32 %v11717_v9, %v3480_v28  ;;  %v11952_v61 = vmul.f32 %v3388_v26, %v14573_v29  ;;  %v14857_v3 = vld [vmem:[#allocation57_spill] sm:$0xff] }
 0x2d8   : > { %v11955_v4 = vmul.f32 %v3392_v23, %v14573_v29  ;;  %v3568_v21 = vrot.slane %v3488_v52, %v7804_v45  ;;  %v2378_v12 = vadd.f32 %v2362_v10, %v2278_v32  ;;  %v2379_v56 = vadd.f32 %v2363_v13, %v2279_v11  ;;  %v14859_v23 = vld [vmem:[#allocation121_spill] sm:$0xff] }
 0x2d9   : > { %v3572_v39 = vrot.slane %v3492_v0, %v7804_v45  ;;  %v3668_v17 = vrot.slane %v14852_v60, %v7837_v59  ;;  %v3840_v20 = vadd.f32 %v11720_v43, %v3660_v31  ;;  %v3672_v26 = vrot.slane %v14852_v60, %v14579_v40 }
 0x2da   : > { %v11963_v9 = vmul.f32 %v3568_v21, %v14578_v57  ;;  %v14856_v42 = vrot.slane %v14855_v1, %v7801_v44  ;;  %v2478_v11 = vadd.f32 %v2462_v50, %v2378_v12  ;;  %v2479_v10 = vadd.f32 %v2463_v34, %v2379_v56  ;;  %v11989_v34 = vpop.permute.xlu0 %5907 }
 0x2db   : > { %v3630_v13 = vmul.f32 %v3572_v39, %v14578_v57  ;;  %v3748_v32 = vrot.slane %v3668_v17, %v7837_v59  ;;  %v4168_v43 = vadd.f32 %v11698_v22, %v3840_v20  ;;  %v3752_v62 = vrot.slane %v3672_v26, %v7837_v59  ;;  %14861 = vst [vmem:[#allocation60_spill] sm:$0xff] %v11989_v34  ;;  %v14863_v39 = vld [vmem:[#allocation88_spill] sm:$0xff]  ;;  %v5884_v20 = vpop.permute.xlu1 %5883  ;;  %v14877_v34 = vld [vmem:[#allocation101_spill] sm:$0xff] }
 0x2dc   : > { %v11971_v52 = vmul.f32 %v14856_v42, %v14728_v8  ;;  %v14858_v60 = vrot.slane %v14857_v3, %v7801_v44  ;;  %v14860_v0 = vrot.slane %v14855_v1, %v7834_v58  ;;  %v2805_v31 = vadd.f32 %v2789_v27, %v2478_v11 }
 0x2dd   : > { %v2806_v21 = vadd.f32 %v2790_v41, %v2479_v10  ;;  %v3809_v22 = vmul.f32 %v3748_v32, %v14591_v15  ;;  %v14862_v12 = vrot.slane %v14857_v3, %v7834_v58  ;;  %v4268_v17 = vadd.f32 %v14863_v39, %v4168_v43 }
 0x2de   : > { %v11981_v28 = vmul.f32 %v14858_v60, %v14728_v8  ;;  %v11987_v50 = vmul.f32 %v14860_v0, %v14859_v23  ;;  %v3810_v26 = vmul.f32 %v3752_v62, %v14591_v15  ;;  %v14864_v42 = vrot.slane %v14855_v1, %v7804_v45 }
 0x2df   : > { %v11996_v56 = vmul.f32 %v14862_v12, %v14859_v23  ;;  %v14865_v27 = vrot.slane %v14857_v3, %v7804_v45  ;;  %v2905_v11 = vadd.f32 %v11891_v48, %v2805_v31  ;;  %v2906_v10 = vadd.f32 %v2890_v63, %v2806_v21  ;;  %v14868_v12 = vld [vmem:[#allocation37_spill] sm:$0xff]  ;;  %v14870_v63 = vld [vmem:[#allocation34_spill] sm:$0xff]  ;;  %v14872_v21 = vld [vmem:[#allocation92_spill] sm:$0xff] }
 0x2e0   : > { %v12004_v60 = vmul.f32 %v14864_v42, %v14733_v25  ;;  %v14866_v32 = vrot.slane %v14855_v1, %v7837_v59  ;;  %v14867_v62 = vrot.slane %v14857_v3, %v7837_v59  ;;  %v4368_v0 = vadd.f32 %v11714_v18, %v4268_v17 }
 0x2e1   : > { %v12010_v41 = vmul.f32 %v14865_v27, %v14733_v25  ;;  %v14869_v39 = vrot.slane %v14868_v12, %v7801_v44  ;;  %v14871_v1 = vrot.slane %v14870_v63, %v7801_v44  ;;  %v14873_v3 = vrot.slane %v14868_v12, %v7834_v58 }
 0x2e2   : > { %v12017_v43 = vmul.f32 %v14866_v32, %v14736_v33  ;;  %v12023_v23 = vmul.f32 %v14867_v62, %v14736_v33  ;;  %v3005_v18 = vadd.f32 %v11903_v19, %v2905_v11  ;;  %v3006_v17 = vadd.f32 %v11912_v47, %v2906_v10  ;;  %v14875_v62 = vld [vmem:[#allocation61_spill] sm:$0xff] }
 0x2e3   : > { %v12030_v48 = vmul.f32 %v14869_v39, %v14739_v54  ;;  %v12036_v31 = vmul.f32 %v14871_v1, %v14739_v54  ;;  %v12042_v42 = vmul.f32 %v14873_v3, %v14872_v21  ;;  %v14874_v27 = vrot.slane %v14870_v63, %v7834_v58  ;;  %v14879_v47 = vld [vmem:[#allocation149_spill] sm:$0xff] }
 0x2e4   : > { %v14876_v39 = vrot.slane %v14868_v12, %v7804_v45  ;;  %v4468_v46 = vadd.f32 %v14877_v34, %v4368_v0  ;;  %v14878_v19 = vrot.slane %v14870_v63, %v7804_v45  ;;  %v14880_v10 = vrot.slane %v14868_v12, %v7837_v59  ;;  %v14883_v34 = vld [vmem:[#allocation41_spill] sm:$0xff]  ;;  %v12081_v0 = vpop.permute.xlu0 %5911  ;;  %v14886_v12 = vld [vmem:[#allocation150_spill] sm:$0xff] }
 0x2e5   : > { %v12050_v32 = vmul.f32 %v14874_v27, %v14872_v21  ;;  %v14881_v3 = vrot.slane %v14870_v63, %v7837_v59  ;;  %vm14884_vm10 = vcmp.le.s32.totalorder %v14883_v34, 46  ;;  %14885 = vst [vmem:[#allocation53_spill] sm:$0xff] %v12081_v0  ;;  %v14888_v63 = vld [vmem:[#allocation118_spill] sm:$0xff]  ;;  %v14890_v34 = vld [vmem:[#allocation81_spill] sm:$0xff]  ;;  %v5886_v0 = vpop.permute.xlu1 %5885  ;;  %v14895_v33 = vmov 0  }
 0x2e6   : > { %v12056_v1 = vmul.f32 %v14876_v39, %v14875_v62  ;;  %v12063_v11 = vmul.f32 %v14878_v19, %v14875_v62  ;;  %v12069_v21 = vmul.f32 %v14880_v10, %v14879_v47  ;;  %vm5731_vm0 = vmand %vm14884_vm10, %vm7953_vm6  ;;  %v3105_v19 = vadd.f32 %v11918_v16, %v3005_v18 }
 0x2e7   : > { %v12075_v27 = vmul.f32 %v14881_v3, %v14879_v47  ;;  %v3106_v62 = vadd.f32 %v11924_v30, %v3006_v17  ;;  %v14887_v10 = vrot.slane %v14886_v12, %v7801_v44  ;;  %v14889_v3 = vrot.slane %v14888_v63, %v7801_v44 }
 0x2e8   : > { %v4803_v47 = vadd.f32 %v14890_v34, %v4468_v46  ;;  %v14891_v16 = vrot.slane %v14886_v12, %v7804_v45  ;;  %v14892_v30 = vrot.slane %v14888_v63, %v7804_v45  ;;  %v3285_v46 = vadd.f32 %v3269_v5, %v3105_v19  ;;  %v14898_v19 = vld [vmem:[#allocation144_spill] sm:$0xff]  ;;  %v12142_v8 = vpop.permute.xlu0 %5915 }
 0x2e9   : > { %v12089_v54 = vmul.f32 %v14887_v10, %v11345_v53  ;;  %v12095_v39 = vmul.f32 %v14889_v3, %v11345_v53  ;;  %v14893_v10 = vrot.slane %v14886_v12, %v7837_v59  ;;  %v3286_v34 = vadd.f32 %v3270_v6, %v3106_v62  ;;  %14903 = vst [vmem:[#allocation98_spill] sm:$0xff] %v12142_v8 }
 0x2ea   : > { %v12102_v18 = vmul.f32 %v14891_v16, %v11261_v14  ;;  %v12108_v17 = vmul.f32 %v14892_v30, %v11261_v14  ;;  %v14894_v16 = vrot.slane %v14888_v63, %v7837_v59  ;;  %v12123_v25 = vsel %vm5731_vm0, 1, %v14895_v33  ;;  %v14897_v14 = vld [vmem:[#allocation111_spill] sm:$0xff] }
 0x2eb   : > { %v12114_v3 = vmul.f32 %v14893_v10, %v11906_v37  ;;  %14896 = vst [vmem:[#allocation84_spill] sm:$0xff] %v12123_v25  ;;  %v4903_v30 = vadd.f32 %v14897_v14, %v4803_v47  ;;  %v5742_v15 = vrot.slane %v12123_v25, %v7801_v44  ;;  %v5746_v12 = vrot.slane %v12123_v25, %v7804_v45  ;;  %v14899_v10 = vld [vmem:[#allocation102_spill] sm:$0xff]  ;;  %v14900_v33 = vld [vmem:[#allocation55_spill] sm:$0xff] }
 0x2ec   : > { %v12120_v53 = vmul.f32 %v14894_v16, %v11906_v37  ;;  %vm5917_vm6 = vcmask 646144   ;;  %v3465_v5 = vadd.f32 %v11952_v61, %v3285_v46  ;;  %v3466_v6 = vadd.f32 %v11955_v4, %v3286_v34  ;;  %v14901_v37 = vld [vmem:[#allocation99_spill] sm:$0xff] }
 0x2ed   : > { %v5918_v62 = vsel %vm5917_vm6, %v5884_v20, %v5886_v0  ;;  %v5919_v63 = vsel %vm5917_vm6, %v5886_v0, %v14898_v19  ;;  %v5003_v16 = vadd.f32 %v14899_v10, %v4903_v30  ;;  %v5806_v47 = vrot.slane %v5742_v15, %v7801_v44  ;;  %v14904_v20 = vld [vmem:[#allocation89_spill] sm:$0xff]  ;;  %v14906_v34 = vld [vmem:[#allocation31_spill] sm:$0xff] }
 0x2ee   : > { %v5810_v14 = vrot.slane %v5746_v12, %v7801_v44  ;;  %v14902_v25 = vrot.slane %v14901_v37, %v7801_v44  ;;  %v3645_v61 = vadd.f32 %v11963_v9, %v3465_v5  ;;  %v3646_v4 = vadd.f32 %v3630_v13, %v3466_v6  ;;  %v14908_v12 = vld [vmem:[#allocation119_spill] sm:$0xff] }
 0x2ef   : > { %v14905_v0 = vrot.slane %v14904_v20, %v7801_v44  ;;  %v14907_v15 = vrot.slane %v14901_v37, %v7834_v58  ;;  %v5103_v10 = vadd.f32 %v14908_v12, %v5003_v16  ;;  %vm5867_vm13 = vcmp.eq.s32.totalorder %v5806_v47, 1 }
 0x2f0   : > { %v886_v57 = vmul.f32 %v14902_v25, %v14900_v33  ;;  %vm5868_vm8 = vcmp.eq.s32.totalorder %v5810_v14, 1  ;;  %v14909_v25 = vrot.slane %v14904_v20, %v7834_v58  ;;  %v3825_v13 = vadd.f32 %v3809_v22, %v3645_v61 }
 0x2f1   : > { %v887_v46 = vmul.f32 %v14905_v0, %v14900_v33  ;;  %v986_v30 = vmul.f32 %v14907_v15, %v14906_v34  ;;  %v3826_v5 = vadd.f32 %v3810_v26, %v3646_v4  ;;  %v12158_v6 = vsel %vm5867_vm13, %v5918_v62, 0.0  ;;  %v14912_v4 = vld [vmem:[#allocation106_spill] sm:$0xff]  ;;  %v14924_v62 = vld [vmem:[#allocation68_spill] sm:$0xff] }
 0x2f2   : > { %v987_v9 = vmul.f32 %v14909_v25, %v14906_v34  ;;  %14910 = vst [vmem:[#allocation50_spill] sm:$0xff] %v12158_v6  ;;  %v12160_v8 = vsel %vm5868_vm8, %v5919_v63, 0.0  ;;  %v5430_v0 = vadd.f32 %v11818_v55, %v5103_v10  ;;  %v5973_v15 = vrot.slane %v12158_v6, %v7801_v44 }
 0x2f3   : > { %14911 = vst [vmem:[#allocation63_spill] sm:$0xff] %v12160_v8  ;;  %v5977_v16 = vrot.slane %v12160_v8, %v7801_v44  ;;  %v6073_v47 = vrot.slane %v12158_v6, %v7834_v58  ;;  %v4153_v14 = vadd.f32 %v11971_v52, %v3825_v13  ;;  %v4154_v22 = vadd.f32 %v11981_v28, %v3826_v5 }
 0x2f4   : > { %v6077_v26 = vrot.slane %v12160_v8, %v7834_v58  ;;  %v5530_v55 = vadd.f32 %v11821_v2, %v5430_v0  ;;  %v12177_v63 = vmul.f32 %v5973_v15, %v11949_v7  ;;  %v12192_v2 = vpop.permute.xlu0 %6267  ;;  %v6273_v5 = vrot.slane %v12158_v6, %v7837_v59  ;;  %v14948_v6 = vld [vmem:[#allocation147_spill] sm:$0xff] }
 0x2f5   : > { %v12180_v61 = vmul.f32 %v5977_v16, %v11949_v7  ;;  %v12183_v12 = vmul.f32 %v6073_v47, %v14912_v4  ;;  %v4253_v52 = vadd.f32 %v11987_v50, %v4153_v14  ;;  %v4254_v28 = vadd.f32 %v11996_v56, %v4154_v22  ;;  %v14914_v47 = vld [vmem:[#allocation44_spill] sm:$0xff] }
 0x2f6   : > { %v12188_v10 = vmul.f32 %v6077_v26, %v14912_v4  ;;  %v12195_v13 = vadd.f32 %v11824_v36, %v5530_v55  ;;  %v6277_v0 = vrot.slane %v12160_v8, %v7837_v59  ;;  %v1002_v50 = vadd.f32 %v986_v30, %v886_v57 }
 0x2f7   : > { %v4353_v56 = vadd.f32 %v12004_v60, %v4253_v52  ;;  %v4354_v15 = vadd.f32 %v12010_v41, %v4254_v28  ;;  %v1003_v16 = vadd.f32 %v987_v9, %v887_v46  ;;  %v14915_v14 = vrot.slane %v14901_v37, %v7804_v45 }
 0x2f8   : > { %14913 = vst [vmem:[#allocation64_spill] sm:$0xff] %v12195_v13  ;;  %v12208_v36 = vmul.f32 %v6273_v5, %v12192_v2  ;;  %v12211_v26 = vmul.f32 %v6277_v0, %v12192_v2  ;;  %v14918_v57 = vrot.slane %v14904_v20, %v7804_v45  ;;  %v14919_v60 = vrot.slane %v14901_v37, %v7837_v59  ;;  %v14921_v0 = vld [vmem:[#allocation114_spill] sm:$0xff] }
 0x2f9   : > { %v1086_v22 = vmul.f32 %v14915_v14, %v14914_v47  ;;  %v4453_v46 = vadd.f32 %v12017_v43, %v4353_v56  ;;  %v4454_v9 = vadd.f32 %v12023_v23, %v4354_v15  ;;  %v14920_v52 = vrot.slane %v14904_v20, %v7837_v59  ;;  %v14922_v14 = vld [vmem:[#allocation67_spill] sm:$0xff] }
 0x2fa   : > { %14916 = vst [vmem:[#allocation28_spill] sm:$0xff] %v12208_v36  ;;  %14917 = vst [vmem:[#allocation127_spill] sm:$0xff] %v12211_v26  ;;  %v1087_v30 = vmul.f32 %v14918_v57, %v14914_v47  ;;  %v1186_v41 = vmul.f32 %v14919_v60, %v14757_v51  ;;  %v14923_v57 = vrot.slane %v14922_v14, %v7801_v44  ;;  %v14936_v36 = vld [vmem:[#allocation130_spill] sm:$0xff] }
 0x2fb   : > { %v1102_v55 = vadd.f32 %v1086_v22, %v1002_v50  ;;  %v1187_v28 = vmul.f32 %v14920_v52, %v14757_v51  ;;  %v14925_v37 = vrot.slane %v14924_v62, %v7801_v44  ;;  %v14926_v43 = vrot.slane %v14922_v14, %v7834_v58 }
 0x2fc   : > { %v1103_v5 = vadd.f32 %v1087_v30, %v1003_v16  ;;  %v1513_v25 = vmul.f32 %v14923_v57, %v14921_v0  ;;  %v4788_v50 = vadd.f32 %v12030_v48, %v4453_v46  ;;  %v4789_v20 = vadd.f32 %v12036_v31, %v4454_v9  ;;  %v14930_v48 = vld [vmem:[#allocation120_spill] sm:$0xff] }
 0x2fd   : > { %v1514_v60 = vmul.f32 %v14925_v37, %v14921_v0  ;;  %v1613_v23 = vmul.f32 %v14926_v43, %v14819_v35  ;;  %v1202_v56 = vadd.f32 %v1186_v41, %v1102_v55  ;;  %v14927_v15 = vrot.slane %v14924_v62, %v7834_v58 }
 0x2fe   : > { %v1203_v22 = vadd.f32 %v1187_v28, %v1103_v5  ;;  %v14928_v30 = vrot.slane %v14922_v14, %v7804_v45  ;;  %v14929_v57 = vrot.slane %v14924_v62, %v7804_v45  ;;  %v14931_v31 = vrot.slane %v14922_v14, %v7837_v59 }
 0x2ff   : > { %v1614_v16 = vmul.f32 %v14927_v15, %v14819_v35  ;;  %v4888_v46 = vadd.f32 %v12042_v42, %v4788_v50  ;;  %v4889_v9 = vadd.f32 %v12050_v32, %v4789_v20  ;;  %v1529_v55 = vadd.f32 %v1513_v25, %v1202_v56  ;;  %v14933_v15 = vld [vmem:[#allocation135_spill] sm:$0xff]  ;;  %v14938_v42 = vld [vmem:[#allocation133_spill] sm:$0xff] }
 0x300   : > { %v1713_v52 = vmul.f32 %v14928_v30, %v14768_v24  ;;  %v1714_v37 = vmul.f32 %v14929_v57, %v14768_v24  ;;  %v1813_v41 = vmul.f32 %v14931_v31, %v14930_v48  ;;  %v14932_v28 = vrot.slane %v14924_v62, %v7837_v59  ;;  %v14934_v30 = vld [vmem:[#allocation129_spill] sm:$0xff] }
 0x301   : > { %v1530_v43 = vadd.f32 %v1514_v60, %v1203_v22  ;;  %v14935_v57 = vrot.slane %v14934_v30, %v7801_v44  ;;  %v14937_v14 = vrot.slane %v14936_v36, %v7801_v44  ;;  %v14939_v32 = vrot.slane %v14934_v30, %v7834_v58 }
 0x302   : > { %v1814_v5 = vmul.f32 %v14932_v28, %v14930_v48  ;;  %v4988_v50 = vadd.f32 %v12056_v1, %v4888_v46  ;;  %v4989_v62 = vadd.f32 %v12063_v11, %v4889_v9  ;;  %v1629_v60 = vadd.f32 %v1613_v23, %v1529_v55  ;;  %v14941_v28 = vld [vmem:[#allocation138_spill] sm:$0xff]  ;;  %v14944_v1 = vld [vmem:[#allocation141_spill] sm:$0xff] }
 0x303   : > { %v2164_v26 = vmul.f32 %v14935_v57, %v14933_v15  ;;  %v2165_v31 = vmul.f32 %v14937_v14, %v14933_v15  ;;  %v2264_v25 = vmul.f32 %v14939_v32, %v14938_v42  ;;  %v14940_v20 = vrot.slane %v14936_v36, %v7834_v58 }
 0x304   : > { %v1630_v22 = vadd.f32 %v1614_v16, %v1530_v43  ;;  %v14942_v57 = vrot.slane %v14934_v30, %v7804_v45  ;;  %v14943_v32 = vrot.slane %v14936_v36, %v7804_v45  ;;  %v14945_v11 = vrot.slane %v14934_v30, %v7837_v59 }
 0x305   : > { %v2265_v56 = vmul.f32 %v14940_v20, %v14938_v42  ;;  %v5088_v46 = vadd.f32 %v12069_v21, %v4988_v50  ;;  %v5089_v9 = vadd.f32 %v12075_v27, %v4989_v62  ;;  %v1729_v16 = vadd.f32 %v1713_v52, %v1629_v60  ;;  %v14952_v21 = vld [vmem:[#allocation112_spill] sm:$0xff] }
 0x306   : > { %v2364_v14 = vmul.f32 %v14942_v57, %v14941_v28  ;;  %v2365_v8 = vmul.f32 %v14943_v32, %v14941_v28  ;;  %v2464_v23 = vmul.f32 %v14945_v11, %v14944_v1  ;;  %v14946_v55 = vrot.slane %v14936_v36, %v7837_v59  ;;  %v14947_v57 = vld [vmem:[#allocation159_spill] sm:$0xff]  ;;  %v14950_v28 = vld [vmem:[#allocation148_spill] sm:$0xff] }
 0x307   : > { %v1730_v20 = vadd.f32 %v1714_v37, %v1630_v22  ;;  %v14949_v32 = vrot.slane %v14948_v6, %v7801_v44  ;;  %v14951_v30 = vrot.slane %v14950_v28, %v7801_v44  ;;  %v14953_v27 = vrot.slane %v14948_v6, %v7834_v58 }
 0x308   : > { %v2465_v43 = vmul.f32 %v14946_v55, %v14944_v1  ;;  %v5415_v50 = vadd.f32 %v12089_v54, %v5088_v46  ;;  %v5416_v36 = vadd.f32 %v12095_v39, %v5089_v9  ;;  %v1829_v37 = vadd.f32 %v1813_v41, %v1729_v16  ;;  %v14955_v55 = vld [vmem:[#allocation162_spill] sm:$0xff]  ;;  %v14960_v46 = vld [vmem:[#allocation73_spill] sm:$0xff] }
 0x309   : > { %v2791_v13 = vmul.f32 %v14949_v32, %v14947_v57  ;;  %v2792_v11 = vmul.f32 %v14951_v30, %v14947_v57  ;;  %v2891_v52 = vmul.f32 %v14953_v27, %v14952_v21  ;;  %v14954_v62 = vrot.slane %v14950_v28, %v7834_v58  ;;  %v14958_v54 = vld [vmem:[#allocation126_spill] sm:$0xff]  ;;  %v14961_v16 = vld [vmem:[#allocation113_spill] sm:$0xff] }
 0x30a   : > { %v1830_v22 = vadd.f32 %v1814_v5, %v1730_v20  ;;  %v14956_v32 = vrot.slane %v14948_v6, %v7804_v45  ;;  %v14957_v27 = vrot.slane %v14950_v28, %v7804_v45  ;;  %v14959_v39 = vrot.slane %v14948_v6, %v7837_v59  ;;  %v14963_v1 = vld [vmem:[#allocation25_spill] sm:$0xff] }
 0x30b   : > { %v2892_v60 = vmul.f32 %v14954_v62, %v14952_v21  ;;  %v5515_v9 = vadd.f32 %v14960_v46, %v5415_v50  ;;  %v5516_v62 = vadd.f32 %v14961_v16, %v5416_v36  ;;  %v2180_v5 = vadd.f32 %v2164_v26, %v1829_v37  ;;  %v14965_v37 = vld [vmem:[#allocation47_spill] sm:$0xff] }
 0x30c   : > { %v2991_v30 = vmul.f32 %v14956_v32, %v14955_v55  ;;  %v2992_v57 = vmul.f32 %v14957_v27, %v14955_v55  ;;  %v3091_v41 = vmul.f32 %v14959_v39, %v14958_v54  ;;  %v14962_v20 = vrot.slane %v14950_v28, %v7837_v59  ;;  %v14964_v27 = vld [vmem:[#allocation51_spill] sm:$0xff] }
 0x30d   : > { %v2181_v21 = vadd.f32 %v2165_v31, %v1830_v22  ;;  %v3136_v42 = vrot.slane %v14963_v1, %v7801_v44  ;;  %v3140_v55 = vrot.slane %v14963_v1, %v14964_v27  ;;  %v3316_v6 = vrot.slane %v14963_v1, %v7834_v58 }
 0x30e   : > { %v3092_v32 = vmul.f32 %v14962_v20, %v14958_v54  ;;  %v5615_v50 = vadd.f32 %v12102_v18, %v5515_v9  ;;  %v5616_v36 = vadd.f32 %v12108_v17, %v5516_v62  ;;  %v2280_v26 = vadd.f32 %v2264_v25, %v2180_v5 }
 0x30f   : > { %v3320_v39 = vrot.slane %v14963_v1, %v14965_v37  ;;  %v2281_v28 = vadd.f32 %v2265_v56, %v2181_v21  ;;  %v3216_v31 = vrot.slane %v3136_v42, %v7801_v44  ;;  %v3220_v22 = vrot.slane %v3140_v55, %v7801_v44 }
 0x310   : > { %v3396_v46 = vrot.slane %v3316_v6, %v7834_v58  ;;  %v5715_v16 = vadd.f32 %v12114_v3, %v5615_v50  ;;  %v5716_v20 = vadd.f32 %v12120_v53, %v5616_v36  ;;  %v2380_v54 = vadd.f32 %v2364_v14, %v2280_v26 }
 0x311   : > { %v3400_v18 = vrot.slane %v3320_v39, %v7834_v58  ;;  %v2381_v9 = vadd.f32 %v2365_v8, %v2281_v28  ;;  %v3271_v17 = vmul.f32 %v3216_v31, %v14715_v49  ;;  %v3272_v25 = vmul.f32 %v3220_v22, %v14715_v49  ;;  %v14968_v39 = vld [vmem:[#allocation82_spill] sm:$0xff]  ;;  %v14973_v22 = vld [vmem:[#allocation116_spill] sm:$0xff] }
 0x312   : > { %v3451_v56 = vmul.f32 %v3396_v46, %v14573_v29  ;;  %v6050_v42 = vadd.f32 %v12177_v63, %v5715_v16  ;;  %v6051_v21 = vadd.f32 %v12180_v61, %v5716_v20  ;;  %v2480_v55 = vadd.f32 %v2464_v23, %v2380_v54  ;;  %v14974_v20 = vld [vmem:[#allocation154_spill] sm:$0xff] }
 0x313   : > { %v3452_v62 = vmul.f32 %v3400_v18, %v14573_v29  ;;  %v2481_v3 = vadd.f32 %v2465_v43, %v2381_v9  ;;  %v3496_v53 = vrot.slane %v14963_v1, %v7804_v45  ;;  %v3500_v8 = vrot.slane %v14963_v1, %v14565_v38 }
 0x314   : > { %v3676_v14 = vrot.slane %v14963_v1, %v7837_v59  ;;  %v12364_v5 = vadd.f32 %v12183_v12, %v6050_v42  ;;  %v12367_v63 = vadd.f32 %v12188_v10, %v6051_v21  ;;  %v2807_v61 = vadd.f32 %v2791_v13, %v2480_v55  ;;  %v14969_v12 = vld [vmem:[#allocation122_spill] sm:$0xff]  ;;  %v14971_v13 = vld [vmem:[#allocation65_spill] sm:$0xff]  ;;  %v14975_v42 = vld [vmem:[#allocation83_spill] sm:$0xff] }
 0x315   : > { %v3680_v23 = vrot.slane %v14963_v1, %v14579_v40  ;;  %v2808_v43 = vadd.f32 %v2792_v11, %v2481_v3  ;;  %v3576_v54 = vrot.slane %v3496_v53, %v7804_v45  ;;  %v3580_v6 = vrot.slane %v3500_v8, %v7804_v45  ;;  %v14978_v8 = vld [vmem:[#allocation91_spill] sm:$0xff] }
 0x316   : > { %14966 = vst [vmem:[#allocation128_spill] sm:$0xff] %v12364_v5  ;;  %14967 = vst [vmem:[#allocation161_spill] sm:$0xff] %v12367_v63  ;;  %v3756_v50 = vrot.slane %v3676_v14, %v7837_v59  ;;  %v2907_v36 = vadd.f32 %v2891_v52, %v2807_v61  ;;  %v14970_v28 = vrot.slane %v14969_v12, %v7801_v44  ;;  %v14993_v63 = vld [vmem:[#allocation157_spill] sm:$0xff] }
 0x317   : > { %v3760_v26 = vrot.slane %v3680_v23, %v7837_v59  ;;  %v14972_v31 = vrot.slane %v14971_v13, %v7801_v44  ;;  %v2908_v11 = vadd.f32 %v2892_v60, %v2808_v43  ;;  %v3631_v46 = vmul.f32 %v3576_v54, %v14973_v22  ;;  %v14981_v43 = vld [vmem:[#allocation108_spill] sm:$0xff]  ;;  %v14982_v54 = vld [vmem:[#allocation49_spill] sm:$0xff] }
 0x318   : > { %v4139_v10 = vmul.f32 %v14970_v28, %v14968_v39  ;;  %v3632_v16 = vmul.f32 %v3580_v6, %v14973_v22  ;;  %v3811_v18 = vmul.f32 %v3756_v50, %v14974_v20  ;;  %v3007_v52 = vadd.f32 %v2991_v30, %v2907_v36  ;;  %v14986_v28 = vld [vmem:[#allocation61_spill] sm:$0xff] }
 0x319   : > { %v4140_v1 = vmul.f32 %v14972_v31, %v14968_v39  ;;  %v3812_v9 = vmul.f32 %v3760_v26, %v14974_v20  ;;  %v14976_v21 = vrot.slane %v14969_v12, %v7804_v45  ;;  %v14977_v3 = vrot.slane %v14971_v13, %v7804_v45 }
 0x31a   : > { %v3008_v53 = vadd.f32 %v2992_v57, %v2908_v11  ;;  %v14979_v14 = vrot.slane %v14969_v12, %v7837_v59  ;;  %v14980_v61 = vrot.slane %v14971_v13, %v7837_v59  ;;  %v14983_v6 = vrot.slane %v14982_v54, %v7801_v44  ;;  %v14984_v57 = vld [vmem:[#allocation140_spill] sm:$0xff] }
 0x31b   : > { %v12391_v55 = vmul.f32 %v14976_v21, %v14975_v42  ;;  %v12397_v60 = vmul.f32 %v14977_v3, %v14975_v42  ;;  %v3107_v36 = vadd.f32 %v3091_v41, %v3007_v52  ;;  %v14985_v26 = vrot.slane %v14984_v57, %v7801_v44  ;;  %v5890_v3 = vpop.permute.xlu1 %5889  ;;  %v14989_v52 = vld [vmem:[#allocation149_spill] sm:$0xff]  ;;  %v15002_v42 = vld [vmem:[#allocation90_spill] sm:$0xff] }
 0x31c   : > { %v12403_v30 = vmul.f32 %v14979_v14, %v14978_v8  ;;  %v12409_v23 = vmul.f32 %v14980_v61, %v14978_v8  ;;  %v12415_v50 = vmul.f32 %v14983_v6, %v14981_v43  ;;  %v14987_v31 = vrot.slane %v14982_v54, %v7804_v45 }
 0x31d   : > { %v12421_v12 = vmul.f32 %v14985_v26, %v14981_v43  ;;  %v14988_v11 = vrot.slane %v14984_v57, %v7804_v45  ;;  %v3108_v41 = vadd.f32 %v3092_v32, %v3008_v53  ;;  %v14990_v14 = vrot.slane %v14982_v54, %v7837_v59  ;;  %v14995_v32 = vld [vmem:[#allocation158_spill] sm:$0xff] }
 0x31e   : > { %v12427_v13 = vmul.f32 %v14987_v31, %v14986_v28  ;;  %v14991_v6 = vrot.slane %v14984_v57, %v7837_v59  ;;  %v14992_v31 = vld [vmem:[#allocation168_spill] sm:$0xff]  ;;  %v14994_v5 = vrot.slane %v14993_v63, %v7801_v44  ;;  %v14996_v53 = vrot.slane %v14995_v32, %v7801_v44 }
 0x31f   : > { %v12433_v21 = vmul.f32 %v14988_v11, %v14986_v28  ;;  %v12439_v61 = vmul.f32 %v14990_v14, %v14989_v52  ;;  %v3287_v28 = vadd.f32 %v3271_v17, %v3107_v36  ;;  %v14997_v14 = vld [vmem:[#allocation80_spill] sm:$0xff]  ;;  %v14998_v43 = vrot.slane %v14993_v63, %v7837_v59 }
 0x320   : > { %v12445_v26 = vmul.f32 %v14991_v6, %v14989_v52  ;;  %v12451_v11 = vmul.f32 %v14994_v5, %v14992_v31  ;;  %v12457_v54 = vmul.f32 %v14996_v53, %v14992_v31  ;;  %v14999_v6 = vrot.slane %v14995_v32, %v7837_v59  ;;  %v15000_v17 = vld [vmem:[#allocation84_spill] sm:$0xff] }
 0x321   : > { %v12463_v57 = vmul.f32 %v14998_v43, %v14997_v14  ;;  %v3288_v5 = vadd.f32 %v3272_v25, %v3108_v41  ;;  %v5750_v36 = vrot.slane %v15000_v17, %v14964_v27  ;;  %v5754_v53 = vrot.slane %v15000_v17, %v14565_v38  ;;  %v15001_v63 = vld [vmem:[#allocation32_spill] sm:$0xff]  ;;  %v15004_v25 = vld [vmem:[#allocation95_spill] sm:$0xff] }
 0x322   : > { %v12469_v52 = vmul.f32 %v14999_v6, %v14997_v14  ;;  %v5920_v31 = vsel %vm5917_vm6, %v14898_v19, %v5890_v3  ;;  %v3467_v8 = vadd.f32 %v3451_v56, %v3287_v28  ;;  %v5921_v43 = vsel %vm5917_vm6, %v5890_v3, %v15001_v63 }
 0x323   : > { %v15003_v32 = vrot.slane %v15002_v42, %v7801_v44  ;;  %v15005_v41 = vrot.slane %v15004_v25, %v7801_v44  ;;  %v3468_v39 = vadd.f32 %v3452_v62, %v3288_v5  ;;  %v5814_v17 = vrot.slane %v5750_v36, %v7801_v44 }
 0x324   : > { %v5818_v20 = vrot.slane %v5754_v53, %v7801_v44  ;;  %v15006_v19 = vrot.slane %v15002_v42, %v7834_v58  ;;  %v3647_v28 = vadd.f32 %v3631_v46, %v3467_v8  ;;  %v15007_v3 = vrot.slane %v15004_v25, %v7834_v58 }
 0x325   : > { %v888_v6 = vmul.f32 %v15003_v32, %v14900_v33  ;;  %v889_v14 = vmul.f32 %v15005_v41, %v14900_v33  ;;  %v15008_v41 = vrot.slane %v15002_v42, %v7804_v45  ;;  %v15009_v5 = vrot.slane %v15004_v25, %v7804_v45 }
 0x326   : > { %v988_v56 = vmul.f32 %v15006_v19, %v14906_v34  ;;  %v989_v32 = vmul.f32 %v15007_v3, %v14906_v34  ;;  %v3648_v53 = vadd.f32 %v3632_v16, %v3468_v39  ;;  %vm5869_vm14 = vcmp.eq.s32.totalorder %v5814_v17, 1 }
 0x327   : > { %v1088_v62 = vmul.f32 %v15008_v41, %v14914_v47  ;;  %v1089_v36 = vmul.f32 %v15009_v5, %v14914_v47  ;;  %vm5870_vm1 = vcmp.eq.s32.totalorder %v5818_v20, 1  ;;  %v3827_v46 = vadd.f32 %v3811_v18, %v3647_v28  ;;  %v15037_v18 = vld [vmem:[#allocation138_spill] sm:$0xff] }
 0x328   : > { %v1004_v19 = vadd.f32 %v988_v56, %v888_v6  ;;  %v12505_v8 = vsel %vm5869_vm14, %v5920_v31, 0.0  ;;  %v12507_v33 = vsel %vm5870_vm1, %v5921_v43, 0.0  ;;  %v1005_v3 = vadd.f32 %v989_v32, %v889_v14 }
 0x329   : > { %15010 = vst [vmem:[#allocation143_spill] sm:$0xff] %v12505_v8  ;;  %15011 = vst [vmem:[#allocation52_spill] sm:$0xff] %v12507_v33  ;;  %v3828_v34 = vadd.f32 %v3812_v9, %v3648_v53  ;;  %v5981_v63 = vrot.slane %v12505_v8, %v7801_v44  ;;  %v5985_v41 = vrot.slane %v12507_v33, %v7801_v44 }
 0x32a   : > { %v6081_v5 = vrot.slane %v12505_v8, %v7834_v58  ;;  %v4155_v39 = vadd.f32 %v4139_v10, %v3827_v46  ;;  %v6085_v16 = vrot.slane %v12507_v33, %v7834_v58  ;;  %v15012_v10 = vld [vmem:[#allocation66_spill] sm:$0xff]  ;;  %v6281_v56 = vrot.slane %v12505_v8, %v7837_v59 }
 0x32b   : > { %v4156_v9 = vadd.f32 %v4140_v1, %v3828_v34  ;;  %v12522_v31 = vmul.f32 %v5981_v63, %v11949_v7  ;;  %v12525_v14 = vmul.f32 %v5985_v41, %v11949_v7  ;;  %v6285_v34 = vrot.slane %v12507_v33, %v7837_v59  ;;  %v15013_v1 = vld [vmem:[#allocation78_spill] sm:$0xff] }
 0x32c   : > { %v12528_v43 = vmul.f32 %v6081_v5, %v14912_v4  ;;  %v4255_v6 = vadd.f32 %v15012_v10, %v4155_v39  ;;  %v12532_v17 = vmul.f32 %v6085_v16, %v14912_v4  ;;  %v1104_v28 = vadd.f32 %v1088_v62, %v1004_v19  ;;  %v15018_v19 = vld [vmem:[#allocation71_spill] sm:$0xff] }
 0x32d   : > { %v4256_v63 = vadd.f32 %v15013_v1, %v4156_v9  ;;  %v1105_v32 = vadd.f32 %v1089_v36, %v1005_v3  ;;  %v15014_v53 = vrot.slane %v15002_v42, %v7837_v59  ;;  %v12545_v5 = vmul.f32 %v6281_v56, %v12192_v2 }
 0x32e   : > { %v4355_v41 = vadd.f32 %v12391_v55, %v4255_v6  ;;  %v12548_v39 = vmul.f32 %v6285_v34, %v12192_v2  ;;  %v15017_v16 = vrot.slane %v15004_v25, %v7837_v59  ;;  %v15019_v42 = vrot.slane %v15018_v19, %v7801_v44  ;;  %v15020_v55 = vld [vmem:[#allocation72_spill] sm:$0xff] }
 0x32f   : > { %v1188_v46 = vmul.f32 %v15014_v53, %v14757_v51  ;;  %15015 = vst [vmem:[#allocation27_spill] sm:$0xff] %v12545_v5  ;;  %v4356_v62 = vadd.f32 %v12397_v60, %v4256_v63  ;;  %v15021_v10 = vrot.slane %v15020_v55, %v7801_v44  ;;  %v15022_v25 = vrot.slane %v15018_v19, %v7834_v58  ;;  %v15044_v5 = vld [vmem:[#allocation109_spill] sm:$0xff] }
 0x330   : > { %15016 = vst [vmem:[#allocation117_spill] sm:$0xff] %v12548_v39  ;;  %v1189_v9 = vmul.f32 %v15017_v16, %v14757_v51  ;;  %v1515_v3 = vmul.f32 %v15019_v42, %v14921_v0  ;;  %v4455_v56 = vadd.f32 %v12403_v30, %v4355_v41  ;;  %v15023_v60 = vrot.slane %v15020_v55, %v7834_v58 }
 0x331   : > { %v1204_v36 = vadd.f32 %v1188_v46, %v1104_v28  ;;  %v1516_v6 = vmul.f32 %v15021_v10, %v14921_v0  ;;  %v1615_v1 = vmul.f32 %v15022_v25, %v14819_v35  ;;  %v4456_v28 = vadd.f32 %v12409_v23, %v4356_v62  ;;  %v15028_v25 = vld [vmem:[#allocation85_spill] sm:$0xff] }
 0x332   : > { %v1205_v34 = vadd.f32 %v1189_v9, %v1105_v32  ;;  %v1616_v63 = vmul.f32 %v15023_v60, %v14819_v35  ;;  %v15024_v46 = vrot.slane %v15018_v19, %v7804_v45  ;;  %v15025_v30 = vrot.slane %v15020_v55, %v7804_v45 }
 0x333   : > { %v1531_v53 = vadd.f32 %v1515_v3, %v1204_v36  ;;  %v4790_v41 = vadd.f32 %v12415_v50, %v4455_v56  ;;  %v15026_v42 = vrot.slane %v15018_v19, %v7837_v59  ;;  %v15027_v23 = vrot.slane %v15020_v55, %v7837_v59  ;;  %v15030_v50 = vld [vmem:[#allocation86_spill] sm:$0xff]  ;;  %v15032_v19 = vld [vmem:[#allocation167_spill] sm:$0xff] }
 0x334   : > { %v1715_v16 = vmul.f32 %v15024_v46, %v14768_v24  ;;  %v1716_v32 = vmul.f32 %v15025_v30, %v14768_v24  ;;  %v1532_v9 = vadd.f32 %v1516_v6, %v1205_v34  ;;  %v4791_v36 = vadd.f32 %v12421_v12, %v4456_v28  ;;  %v15036_v28 = vld [vmem:[#allocation103_spill] sm:$0xff] }
 0x335   : > { %v1815_v10 = vmul.f32 %v15026_v42, %v14930_v48  ;;  %v1816_v62 = vmul.f32 %v15027_v23, %v14930_v48  ;;  %v1631_v3 = vadd.f32 %v1615_v1, %v1531_v53  ;;  %v15029_v60 = vrot.slane %v15028_v25, %v7801_v44  ;;  %v15033_v42 = vld [vmem:[#allocation133_spill] sm:$0xff] }
 0x336   : > { %v15031_v6 = vrot.slane %v15030_v50, %v7801_v44  ;;  %v4890_v34 = vadd.f32 %v15032_v19, %v4790_v41  ;;  %v1632_v30 = vadd.f32 %v1616_v63, %v1532_v9  ;;  %v15034_v55 = vrot.slane %v15028_v25, %v7834_v58 }
 0x337   : > { %v2166_v46 = vmul.f32 %v15029_v60, %v14933_v15  ;;  %v15035_v12 = vrot.slane %v15030_v50, %v7834_v58  ;;  %v4891_v53 = vadd.f32 %v15036_v28, %v4791_v36  ;;  %v1731_v60 = vadd.f32 %v1715_v16, %v1631_v3 }
 0x338   : > { %v2167_v56 = vmul.f32 %v15031_v6, %v14933_v15  ;;  %v2266_v23 = vmul.f32 %v15034_v55, %v15033_v42  ;;  %v15038_v6 = vrot.slane %v15028_v25, %v7804_v45  ;;  %v15039_v63 = vrot.slane %v15030_v50, %v7804_v45  ;;  %v15040_v55 = vld [vmem:[#allocation141_spill] sm:$0xff] }
 0x339   : > { %v2267_v1 = vmul.f32 %v15035_v12, %v15033_v42  ;;  %v4990_v9 = vadd.f32 %v12427_v13, %v4890_v34  ;;  %v1732_v19 = vadd.f32 %v1716_v32, %v1632_v30  ;;  %v15041_v12 = vrot.slane %v15028_v25, %v7837_v59  ;;  %v15046_v13 = vld [vmem:[#allocation110_spill] sm:$0xff] }
 0x33a   : > { %v2366_v20 = vmul.f32 %v15038_v6, %v15037_v18  ;;  %v2367_v41 = vmul.f32 %v15039_v63, %v15037_v18  ;;  %v15042_v16 = vrot.slane %v15030_v50, %v7837_v59  ;;  %v4991_v3 = vadd.f32 %v12433_v21, %v4891_v53  ;;  %v15043_v6 = vld [vmem:[#allocation159_spill] sm:$0xff] }
 0x33b   : > { %v2466_v39 = vmul.f32 %v15041_v12, %v15040_v55  ;;  %v1831_v28 = vadd.f32 %v1815_v10, %v1731_v60  ;;  %v15045_v63 = vrot.slane %v15044_v5, %v7801_v44  ;;  %v15047_v32 = vrot.slane %v15046_v13, %v7801_v44  ;;  %v15048_v12 = vld [vmem:[#allocation112_spill] sm:$0xff] }
 0x33c   : > { %v2467_v36 = vmul.f32 %v15042_v16, %v15040_v55  ;;  %v5090_v25 = vadd.f32 %v12439_v61, %v4990_v9  ;;  %v1832_v30 = vadd.f32 %v1816_v62, %v1732_v19  ;;  %v15049_v50 = vrot.slane %v15044_v5, %v7834_v58 }
 0x33d   : > { %v2793_v33 = vmul.f32 %v15045_v63, %v15043_v6  ;;  %v2794_v34 = vmul.f32 %v15047_v32, %v15043_v6  ;;  %v15050_v21 = vrot.slane %v15046_v13, %v7834_v58  ;;  %v5091_v53 = vadd.f32 %v12445_v26, %v4991_v3  ;;  %v15051_v63 = vld [vmem:[#allocation162_spill] sm:$0xff] }
 0x33e   : > { %v2893_v16 = vmul.f32 %v15049_v50, %v15048_v12  ;;  %v2182_v60 = vadd.f32 %v2166_v46, %v1831_v28  ;;  %v15052_v32 = vrot.slane %v15044_v5, %v7804_v45  ;;  %v15053_v61 = vrot.slane %v15046_v13, %v7804_v45  ;;  %v15054_v50 = vld [vmem:[#allocation126_spill] sm:$0xff] }
 0x33f   : > { %v2894_v10 = vmul.f32 %v15050_v21, %v15048_v12  ;;  %v5417_v9 = vadd.f32 %v12451_v11, %v5090_v25  ;;  %v2183_v19 = vadd.f32 %v2167_v56, %v1832_v30  ;;  %v15055_v21 = vrot.slane %v15044_v5, %v7837_v59  ;;  %v15058_v56 = vld [vmem:[#allocation163_spill] sm:$0xff] }
 0x340   : > { %v2993_v8 = vmul.f32 %v15052_v32, %v15051_v63  ;;  %v2994_v62 = vmul.f32 %v15053_v61, %v15051_v63  ;;  %v15056_v26 = vrot.slane %v15046_v13, %v7837_v59  ;;  %v5418_v3 = vadd.f32 %v12457_v54, %v5091_v53  ;;  %v15057_v32 = vld [vmem:[#allocation26_spill] sm:$0xff]  ;;  %v15059_v13 = vld [vmem:[#allocation164_spill] sm:$0xff] }
 0x341   : > { %v3093_v12 = vmul.f32 %v15055_v21, %v15054_v50  ;;  %v2282_v28 = vadd.f32 %v2266_v23, %v2182_v60  ;;  %v3144_v6 = vrot.slane %v15057_v32, %v7801_v44  ;;  %v3148_v11 = vrot.slane %v15057_v32, %v14964_v27  ;;  %v15060_v53 = vld [vmem:[#allocation46_spill] sm:$0xff] }
 0x342   : > { %v3094_v46 = vmul.f32 %v15056_v26, %v15054_v50  ;;  %v5517_v25 = vadd.f32 %v15058_v56, %v5417_v9  ;;  %v2283_v30 = vadd.f32 %v2267_v1, %v2183_v19  ;;  %v3324_v5 = vrot.slane %v15057_v32, %v7834_v58  ;;  %v15061_v9 = vld [vmem:[#allocation136_spill] sm:$0xff] }
 0x343   : > { %v3328_v61 = vrot.slane %v15057_v32, %v14965_v37  ;;  %v5518_v21 = vadd.f32 %v15059_v13, %v5418_v3  ;;  %v2382_v26 = vadd.f32 %v2366_v20, %v2282_v28  ;;  %v3224_v54 = vrot.slane %v3144_v6, %v7801_v44 }
 0x344   : > { %v3228_v23 = vrot.slane %v3148_v11, %v7801_v44  ;;  %v5617_v60 = vadd.f32 %v15060_v53, %v5517_v25  ;;  %v2383_v50 = vadd.f32 %v2367_v41, %v2283_v30  ;;  %v3404_v27 = vrot.slane %v3324_v5, %v7834_v58 }
 0x345   : > { %v3408_v1 = vrot.slane %v3328_v61, %v7834_v58  ;;  %v5618_v19 = vadd.f32 %v15061_v9, %v5518_v21  ;;  %v2482_v56 = vadd.f32 %v2466_v39, %v2382_v26  ;;  %v3273_v63 = vmul.f32 %v3224_v54, %v14715_v49  ;;  %v15064_v54 = vld [vmem:[#allocation154_spill] sm:$0xff] }
 0x346   : > { %v3274_v37 = vmul.f32 %v3228_v23, %v14715_v49  ;;  %v5717_v20 = vadd.f32 %v12463_v57, %v5617_v60  ;;  %v2483_v3 = vadd.f32 %v2467_v36, %v2383_v50  ;;  %v3453_v6 = vmul.f32 %v3404_v27, %v14573_v29  ;;  %v15066_v60 = vld [vmem:[#allocation93_spill] sm:$0xff] }
 0x347   : > { %v3454_v28 = vmul.f32 %v3408_v1, %v14573_v29  ;;  %v5718_v41 = vadd.f32 %v12469_v52, %v5618_v19  ;;  %v2809_v11 = vadd.f32 %v2793_v33, %v2482_v56  ;;  %v3504_v25 = vrot.slane %v15057_v32, %v7804_v45  ;;  %v15068_v19 = vld [vmem:[#allocation76_spill] sm:$0xff]  ;;  %v15070_v56 = vld [vmem:[#allocation83_spill] sm:$0xff] }
 0x348   : > { %v3508_v39 = vrot.slane %v15057_v32, %v14565_v38  ;;  %v6052_v30 = vadd.f32 %v12522_v31, %v5717_v20  ;;  %v2810_v5 = vadd.f32 %v2794_v34, %v2483_v3  ;;  %v3684_v57 = vrot.slane %v15057_v32, %v7837_v59 }
 0x349   : > { %v3688_v27 = vrot.slane %v15057_v32, %v14579_v40  ;;  %v6053_v36 = vadd.f32 %v12525_v14, %v5718_v41  ;;  %v2909_v50 = vadd.f32 %v2893_v16, %v2809_v11  ;;  %v3584_v33 = vrot.slane %v3504_v25, %v7804_v45  ;;  %v15073_v25 = vld [vmem:[#allocation91_spill] sm:$0xff] }
 0x34a   : > { %v3588_v52 = vrot.slane %v3508_v39, %v7804_v45  ;;  %v12698_v61 = vadd.f32 %v12528_v43, %v6052_v30  ;;  %v2910_v13 = vadd.f32 %v2894_v10, %v2810_v5  ;;  %v3764_v31 = vrot.slane %v3684_v57, %v7837_v59  ;;  %v15065_v43 = vld [vmem:[#allocation82_spill] sm:$0xff]  ;;  %v15076_v57 = vld [vmem:[#allocation108_spill] sm:$0xff] }
 0x34b   : > { %v3768_v34 = vrot.slane %v3688_v27, %v7837_v59  ;;  %v12703_v21 = vadd.f32 %v12532_v17, %v6053_v36  ;;  %v3009_v26 = vadd.f32 %v2993_v8, %v2909_v50  ;;  %v3633_v32 = vmul.f32 %v3584_v33, %v14973_v22  ;;  %v15077_v27 = vld [vmem:[#allocation56_spill] sm:$0xff] }
 0x34c   : > { %15062 = vst [vmem:[#allocation57_spill] sm:$0xff] %v12698_v61  ;;  %v3634_v14 = vmul.f32 %v3588_v52, %v14973_v22  ;;  %v3010_v16 = vadd.f32 %v2994_v62, %v2910_v13  ;;  %v3813_v23 = vmul.f32 %v3764_v31, %v15064_v54  ;;  %v15067_v10 = vrot.slane %v15066_v60, %v7801_v44  ;;  %v15081_v31 = vld [vmem:[#allocation61_spill] sm:$0xff]  ;;  %v15100_v61 = vld [vmem:[#allocation32_spill] sm:$0xff] }
 0x34d   : > { %15063 = vst [vmem:[#allocation121_spill] sm:$0xff] %v12703_v21  ;;  %v3814_v53 = vmul.f32 %v3768_v34, %v15064_v54  ;;  %v3109_v9 = vadd.f32 %v3093_v12, %v3009_v26  ;;  %v15069_v17 = vrot.slane %v15068_v19, %v7801_v44  ;;  %v15071_v20 = vrot.slane %v15066_v60, %v7804_v45 }
 0x34e   : > { %v4141_v1 = vmul.f32 %v15067_v10, %v15065_v43  ;;  %v15072_v3 = vrot.slane %v15068_v19, %v7804_v45  ;;  %v3110_v11 = vadd.f32 %v3094_v46, %v3010_v16  ;;  %v15074_v12 = vrot.slane %v15066_v60, %v7837_v59  ;;  %v15079_v46 = vld [vmem:[#allocation36_spill] sm:$0xff] }
 0x34f   : > { %v4142_v8 = vmul.f32 %v15069_v17, %v15065_v43  ;;  %v4341_v62 = vmul.f32 %v15071_v20, %v15070_v56  ;;  %v15075_v30 = vrot.slane %v15068_v19, %v7837_v59  ;;  %v15078_v36 = vrot.slane %v15077_v27, %v7801_v44  ;;  %v15087_v17 = vld [vmem:[#allocation149_spill] sm:$0xff] }
 0x350   : > { %v4342_v41 = vmul.f32 %v15072_v3, %v15070_v56  ;;  %v4441_v39 = vmul.f32 %v15074_v12, %v15073_v25  ;;  %v3289_v33 = vadd.f32 %v3273_v63, %v3109_v9  ;;  %v15080_v52 = vrot.slane %v15079_v46, %v7801_v44  ;;  %v15085_v63 = vld [vmem:[#allocation42_spill] sm:$0xff]  ;;  %v5894_v9 = vpop.permute.xlu1 %5893 }
 0x351   : > { %v12733_v5 = vmul.f32 %v15075_v30, %v15073_v25  ;;  %v12739_v50 = vmul.f32 %v15078_v36, %v15076_v57  ;;  %v15082_v34 = vrot.slane %v15077_v27, %v7804_v45  ;;  %v15083_v16 = vrot.slane %v15079_v46, %v7804_v45  ;;  %v15090_v36 = vld [vmem:[#allocation168_spill] sm:$0xff]  ;;  %v15107_v25 = vld [vmem:[#allocation31_spill] sm:$0xff] }
 0x352   : > { %v12745_v13 = vmul.f32 %v15080_v52, %v15076_v57  ;;  %vm15086_vm4 = vcmp.le.s32.totalorder %v15085_v63, 46  ;;  %v3290_v19 = vadd.f32 %v3274_v37, %v3110_v11  ;;  %v15088_v20 = vrot.slane %v15077_v27, %v7837_v59  ;;  %v15091_v52 = vld [vmem:[#allocation30_spill] sm:$0xff]  ;;  %v15095_v63 = vld [vmem:[#allocation80_spill] sm:$0xff] }
 0x353   : > { %v12751_v26 = vmul.f32 %v15082_v34, %v15081_v31  ;;  %v12757_v60 = vmul.f32 %v15083_v16, %v15081_v31  ;;  %vm5732_vm12 = vmand %vm15086_vm4, %vm7976_vm7  ;;  %v15089_v12 = vrot.slane %v15079_v46, %v7837_v59  ;;  %v15092_v34 = vrot.slane %v15091_v52, %v7801_v44  ;;  %v15093_v37 = vld [vmem:[#allocation134_spill] sm:$0xff] }
 0x354   : > { %v12767_v3 = vmul.f32 %v15088_v20, %v15087_v17  ;;  %v3469_v10 = vadd.f32 %v3453_v6, %v3289_v33  ;;  %v15094_v11 = vrot.slane %v15093_v37, %v7801_v44  ;;  %v15096_v20 = vrot.slane %v15091_v52, %v7837_v59 }
 0x355   : > { %v12773_v30 = vmul.f32 %v15089_v12, %v15087_v17  ;;  %v12779_v16 = vmul.f32 %v15092_v34, %v15090_v36  ;;  %v15097_v12 = vrot.slane %v15093_v37, %v7837_v59  ;;  %v3470_v34 = vadd.f32 %v3454_v28, %v3290_v19  ;;  %v15102_v37 = vld [vmem:[#allocation55_spill] sm:$0xff] }
 0x356   : > { %v12785_v27 = vmul.f32 %v15094_v11, %v15090_v36  ;;  %v12791_v46 = vmul.f32 %v15096_v20, %v15095_v63  ;;  %v15098_v6 = vmov 0   ;;  %v5922_v11 = vsel %vm5917_vm6, %v15100_v61, %v5894_v9  ;;  %v15101_v36 = vld [vmem:[#allocation137_spill] sm:$0xff] }
 0x357   : > { %v12797_v21 = vmul.f32 %v15097_v12, %v15095_v63  ;;  %v12800_v33 = vsel %vm5732_vm12, 1, %v15098_v6  ;;  %v5923_v17 = vsel %vm5917_vm6, %v5894_v9, %v15101_v36  ;;  %v3649_v31 = vadd.f32 %v3633_v32, %v3469_v10  ;;  %v15103_v12 = vld [vmem:[#allocation96_spill] sm:$0xff]  ;;  %v15105_v63 = vld [vmem:[#allocation97_spill] sm:$0xff] }
 0x358   : > { %15099 = vst [vmem:[#allocation88_spill] sm:$0xff] %v12800_v33  ;;  %v5758_v52 = vrot.slane %v12800_v33, %v7801_v44  ;;  %v5762_v20 = vrot.slane %v12800_v33, %v7804_v45  ;;  %v15104_v28 = vrot.slane %v15103_v12, %v7801_v44  ;;  %v3650_v6 = vadd.f32 %v3634_v14, %v3470_v34 }
 0x359   : > { %v15106_v61 = vrot.slane %v15105_v63, %v7801_v44  ;;  %v15108_v32 = vrot.slane %v15103_v12, %v7834_v58  ;;  %v15109_v10 = vrot.slane %v15105_v63, %v7834_v58  ;;  %v3829_v33 = vadd.f32 %v3813_v23, %v3649_v31 }
 0x35a   : > { %v890_v19 = vmul.f32 %v15104_v28, %v15102_v37  ;;  %v5822_v56 = vrot.slane %v5758_v52, %v7801_v44  ;;  %v5826_v14 = vrot.slane %v5762_v20, %v7801_v44  ;;  %v15110_v34 = vrot.slane %v15103_v12, %v7804_v45 }
 0x35b   : > { %v891_v57 = vmul.f32 %v15106_v61, %v15102_v37  ;;  %v990_v9 = vmul.f32 %v15108_v32, %v15107_v25  ;;  %v991_v36 = vmul.f32 %v15109_v10, %v15107_v25  ;;  %v3830_v28 = vadd.f32 %v3814_v53, %v3650_v6 }
 0x35c   : > { %v1090_v37 = vmul.f32 %v15110_v34, %v14914_v47  ;;  %v15111_v32 = vrot.slane %v15105_v63, %v7804_v45  ;;  %v4157_v43 = vadd.f32 %v4141_v1, %v3829_v33  ;;  %vm5871_vm7 = vcmp.eq.s32.totalorder %v5822_v56, 1  ;;  %v15114_v56 = vld [vmem:[#allocation94_spill] sm:$0xff] }
 0x35d   : > { %v1006_v61 = vadd.f32 %v990_v9, %v890_v19  ;;  %v1007_v54 = vadd.f32 %v991_v36, %v891_v57  ;;  %vm5872_vm3 = vcmp.eq.s32.totalorder %v5826_v14, 1  ;;  %v15112_v23 = vrot.slane %v15103_v12, %v7837_v59  ;;  %v15113_v57 = vld [vmem:[#allocation77_spill] sm:$0xff] }
 0x35e   : > { %v1091_v22 = vmul.f32 %v15111_v32, %v14914_v47  ;;  %v4158_v31 = vadd.f32 %v4142_v8, %v3830_v28  ;;  %v12840_v52 = vsel %vm5871_vm7, %v5922_v11, 0.0  ;;  %v12842_v20 = vsel %vm5872_vm3, %v5923_v17, 0.0 }
 0x35f   : > { %v1190_v25 = vmul.f32 %v15112_v23, %v14757_v51  ;;  %v1106_v53 = vadd.f32 %v1090_v37, %v1006_v61  ;;  %v4257_v36 = vadd.f32 %v15113_v57, %v4157_v43  ;;  %v5989_v6 = vrot.slane %v12840_v52, %v7801_v44 }
 0x360   : > { %v5993_v47 = vrot.slane %v12842_v20, %v7801_v44  ;;  %v6089_v1 = vrot.slane %v12840_v52, %v7834_v58  ;;  %v4258_v33 = vadd.f32 %v15114_v56, %v4158_v31  ;;  %v6093_v8 = vrot.slane %v12842_v20, %v7834_v58 }
 0x361   : > { %v6189_v17 = vrot.slane %v12840_v52, %v7804_v45  ;;  %v6193_v43 = vrot.slane %v12842_v20, %v7804_v45  ;;  %v4357_v11 = vadd.f32 %v4341_v62, %v4257_v36  ;;  %v12859_v12 = vmul.f32 %v5989_v6, %v11949_v7  ;;  %v15116_v36 = vld [vmem:[#allocation74_spill] sm:$0xff] }
 0x362   : > { %v12862_v19 = vmul.f32 %v5993_v47, %v11949_v7  ;;  %v12865_v9 = vmul.f32 %v6089_v1, %v14912_v4  ;;  %v4358_v10 = vadd.f32 %v4342_v41, %v4258_v33  ;;  %v12868_v14 = vmul.f32 %v6093_v8, %v14912_v4 }
 0x363   : > { %v6289_v34 = vrot.slane %v12840_v52, %v7837_v59  ;;  %v6293_v37 = vrot.slane %v12842_v20, %v7837_v59  ;;  %v4457_v62 = vadd.f32 %v4441_v39, %v4357_v11  ;;  %v1107_v28 = vadd.f32 %v1091_v22, %v1007_v54  ;;  %v15123_v11 = vld [vmem:[#allocation38_spill] sm:$0xff] }
 0x364   : > { %v15115_v61 = vrot.slane %v15105_v63, %v7837_v59  ;;  %v1206_v23 = vadd.f32 %v1190_v25, %v1106_v53  ;;  %v4458_v31 = vadd.f32 %v12733_v5, %v4358_v10  ;;  %v15117_v6 = vrot.slane %v15116_v36, %v7801_v44  ;;  %v15118_v63 = vld [vmem:[#allocation33_spill] sm:$0xff] }
 0x365   : > { %v12880_v41 = vmul.f32 %v6289_v34, %v12192_v2  ;;  %v12883_v57 = vmul.f32 %v6293_v37, %v12192_v2  ;;  %v4792_v22 = vadd.f32 %v12739_v50, %v4457_v62  ;;  %v15120_v5 = vrot.slane %v15116_v36, %v7834_v58 }
 0x366   : > { %v1191_v32 = vmul.f32 %v15115_v61, %v14757_v51  ;;  %v1517_v39 = vmul.f32 %v15117_v6, %v14921_v0  ;;  %v15119_v51 = vrot.slane %v15118_v63, %v7801_v44  ;;  %v4793_v47 = vadd.f32 %v12745_v13, %v4458_v31  ;;  %v15128_v31 = vld [vmem:[#allocation131_spill] sm:$0xff] }
 0x367   : > { %v1617_v53 = vmul.f32 %v15120_v5, %v14819_v35  ;;  %v15121_v56 = vrot.slane %v15118_v63, %v7834_v58  ;;  %v15122_v50 = vrot.slane %v15116_v36, %v7804_v45  ;;  %v15124_v34 = vrot.slane %v15118_v63, %v7804_v45 }
 0x368   : > { %v1207_v54 = vadd.f32 %v1191_v32, %v1107_v28  ;;  %v1518_v25 = vmul.f32 %v15119_v51, %v14921_v0  ;;  %v1533_v1 = vadd.f32 %v1517_v39, %v1206_v23  ;;  %v4892_v0 = vadd.f32 %v15123_v11, %v4792_v22  ;;  %v15126_v28 = vld [vmem:[#allocation142_spill] sm:$0xff] }
 0x369   : > { %v1618_v33 = vmul.f32 %v15121_v56, %v14819_v35  ;;  %v1717_v8 = vmul.f32 %v15122_v50, %v14768_v24  ;;  %v1718_v37 = vmul.f32 %v15124_v34, %v14768_v24  ;;  %v15125_v13 = vrot.slane %v15116_v36, %v7837_v59  ;;  %v15139_v34 = vld [vmem:[#allocation59_spill] sm:$0xff] }
 0x36a   : > { %v1534_v10 = vadd.f32 %v1518_v25, %v1207_v54  ;;  %v4893_v35 = vadd.f32 %v15126_v28, %v4793_v47  ;;  %v1633_v61 = vadd.f32 %v1617_v53, %v1533_v1  ;;  %v15127_v32 = vrot.slane %v15118_v63, %v7837_v59  ;;  %v15130_v54 = vld [vmem:[#allocation132_spill] sm:$0xff] }
 0x36b   : > { %v1817_v62 = vmul.f32 %v15125_v13, %v14930_v48  ;;  %v15129_v6 = vrot.slane %v15128_v31, %v7801_v44  ;;  %v4992_v24 = vadd.f32 %v12751_v26, %v4892_v0  ;;  %v15131_v36 = vrot.slane %v15130_v54, %v7801_v44 }
 0x36c   : > { %v1818_v23 = vmul.f32 %v15127_v32, %v14930_v48  ;;  %v1634_v22 = vadd.f32 %v1618_v33, %v1534_v10  ;;  %v15132_v25 = vrot.slane %v15128_v31, %v7834_v58  ;;  %v4993_v48 = vadd.f32 %v12757_v60, %v4893_v35  ;;  %v15141_v35 = vld [vmem:[#allocation151_spill] sm:$0xff] }
 0x36d   : > { %v2168_v39 = vmul.f32 %v15129_v6, %v14933_v15  ;;  %v2169_v51 = vmul.f32 %v15131_v36, %v14933_v15  ;;  %v1733_v63 = vadd.f32 %v1717_v8, %v1633_v61  ;;  %v15133_v53 = vrot.slane %v15130_v54, %v7834_v58  ;;  %v15148_v36 = vld [vmem:[#allocation153_spill] sm:$0xff] }
 0x36e   : > { %v2268_v5 = vmul.f32 %v15132_v25, %v15033_v42  ;;  %v15134_v26 = vrot.slane %v15128_v31, %v7804_v45  ;;  %v5092_v15 = vadd.f32 %v12767_v3, %v4992_v24  ;;  %v1734_v56 = vadd.f32 %v1718_v37, %v1634_v22  ;;  %v15138_v3 = vld [vmem:[#allocation159_spill] sm:$0xff] }
 0x36f   : > { %v2269_v47 = vmul.f32 %v15133_v53, %v15033_v42  ;;  %v15135_v33 = vrot.slane %v15130_v54, %v7804_v45  ;;  %v15136_v60 = vrot.slane %v15128_v31, %v7837_v59  ;;  %v5093_v42 = vadd.f32 %v12773_v30, %v4993_v48  ;;  %v15143_v30 = vld [vmem:[#allocation112_spill] sm:$0xff] }
 0x370   : > { %v2368_v1 = vmul.f32 %v15134_v26, %v15037_v18  ;;  %v1833_v11 = vadd.f32 %v1817_v62, %v1733_v63  ;;  %v15137_v0 = vrot.slane %v15130_v54, %v7837_v59  ;;  %v15140_v37 = vrot.slane %v15139_v34, %v7801_v44 }
 0x371   : > { %v2369_v50 = vmul.f32 %v15135_v33, %v15037_v18  ;;  %v2468_v8 = vmul.f32 %v15136_v60, %v15040_v55  ;;  %v5419_v18 = vadd.f32 %v12779_v16, %v5092_v15  ;;  %v1834_v28 = vadd.f32 %v1818_v23, %v1734_v56  ;;  %v15146_v16 = vld [vmem:[#allocation162_spill] sm:$0xff]  ;;  %v15152_v15 = vld [vmem:[#allocation139_spill] sm:$0xff] }
 0x372   : > { %v2469_v10 = vmul.f32 %v15137_v0, %v15040_v55  ;;  %v2795_v13 = vmul.f32 %v15140_v37, %v15138_v3  ;;  %v15142_v61 = vrot.slane %v15141_v35, %v7801_v44  ;;  %v15144_v62 = vrot.slane %v15139_v34, %v7834_v58  ;;  %v15155_v0 = vld [vmem:[#allocation35_spill] sm:$0xff] }
 0x373   : > { %v5420_v55 = vadd.f32 %v12785_v27, %v5093_v42  ;;  %v2184_v6 = vadd.f32 %v2168_v39, %v1833_v11  ;;  %v15145_v24 = vrot.slane %v15141_v35, %v7834_v58  ;;  %v15147_v23 = vrot.slane %v15139_v34, %v7804_v45  ;;  %v15150_v27 = vld [vmem:[#allocation126_spill] sm:$0xff] }
 0x374   : > { %v2796_v32 = vmul.f32 %v15142_v61, %v15138_v3  ;;  %v2895_v31 = vmul.f32 %v15144_v62, %v15143_v30  ;;  %v5519_v25 = vadd.f32 %v15148_v36, %v5419_v18  ;;  %v2185_v48 = vadd.f32 %v2169_v51, %v1834_v28  ;;  %v15154_v51 = vld [vmem:[#allocation29_spill] sm:$0xff]  ;;  %v15156_v18 = vld [vmem:[#allocation51_spill] sm:$0xff] }
 0x375   : > { %v2896_v22 = vmul.f32 %v15145_v24, %v15143_v30  ;;  %v2995_v54 = vmul.f32 %v15147_v23, %v15146_v16  ;;  %v15149_v63 = vrot.slane %v15141_v35, %v7804_v45  ;;  %v15151_v39 = vrot.slane %v15139_v34, %v7837_v59  ;;  %v15157_v61 = vld [vmem:[#allocation165_spill] sm:$0xff] }
 0x376   : > { %v5520_v56 = vadd.f32 %v15152_v15, %v5420_v55  ;;  %v2284_v33 = vadd.f32 %v2268_v5, %v2184_v6  ;;  %v15153_v60 = vrot.slane %v15141_v35, %v7837_v59  ;;  %v3152_v11 = vrot.slane %v15154_v51, %v7801_v44  ;;  %v15158_v55 = vld [vmem:[#allocation47_spill] sm:$0xff] }
 0x377   : > { %v2996_v53 = vmul.f32 %v15149_v63, %v15146_v16  ;;  %v3095_v26 = vmul.f32 %v15151_v39, %v15150_v27  ;;  %v5619_v3 = vadd.f32 %v15155_v0, %v5519_v25  ;;  %v2285_v37 = vadd.f32 %v2269_v47, %v2185_v48 }
 0x378   : > { %v3096_v42 = vmul.f32 %v15153_v60, %v15150_v27  ;;  %v3156_v28 = vrot.slane %v15154_v51, %v15156_v18  ;;  %v3332_v34 = vrot.slane %v15154_v51, %v7834_v58  ;;  %v5620_v30 = vadd.f32 %v15157_v61, %v5520_v56  ;;  %v15159_v60 = vld [vmem:[#allocation82_spill] sm:$0xff] }
 0x379   : > { %v2384_v5 = vadd.f32 %v2368_v1, %v2284_v33  ;;  %v3232_v62 = vrot.slane %v3152_v11, %v7801_v44  ;;  %v3336_v35 = vrot.slane %v15154_v51, %v15158_v55  ;;  %v5719_v6 = vadd.f32 %v12791_v46, %v5619_v3  ;;  %v15160_v11 = vld [vmem:[#allocation79_spill] sm:$0xff] }
 0x37a   : > { %v2385_v24 = vadd.f32 %v2369_v50, %v2285_v37  ;;  %v3236_v16 = vrot.slane %v3156_v28, %v7801_v44  ;;  %v3412_v47 = vrot.slane %v3332_v34, %v7834_v58  ;;  %v5720_v23 = vadd.f32 %v12797_v21, %v5620_v30  ;;  %v15162_v28 = vld [vmem:[#allocation116_spill] sm:$0xff]  ;;  %v15163_v34 = vld [vmem:[#allocation123_spill] sm:$0xff] }
 0x37b   : > { %v2484_v36 = vadd.f32 %v2468_v8, %v2384_v5  ;;  %v3275_v25 = vmul.f32 %v3232_v62, %v14715_v49  ;;  %v3416_v48 = vrot.slane %v3336_v35, %v7834_v58  ;;  %v6054_v1 = vadd.f32 %v12859_v12, %v5719_v6  ;;  %v15165_v5 = vld [vmem:[#allocation154_spill] sm:$0xff]  ;;  %v15166_v55 = vld [vmem:[#allocation83_spill] sm:$0xff] }
 0x37c   : > { %v2485_v63 = vadd.f32 %v2469_v10, %v2385_v24  ;;  %v3276_v27 = vmul.f32 %v3236_v16, %v14715_v49  ;;  %v3455_v39 = vmul.f32 %v3412_v47, %v14573_v29  ;;  %v6055_v46 = vadd.f32 %v12862_v19, %v5720_v23  ;;  %v15169_v23 = vld [vmem:[#allocation91_spill] sm:$0xff] }
 0x37d   : > { %v2811_v50 = vadd.f32 %v2795_v13, %v2484_v36  ;;  %v3456_v15 = vmul.f32 %v3416_v48, %v14573_v29  ;;  %v3512_v21 = vrot.slane %v15154_v51, %v7804_v45  ;;  %v13018_v8 = vadd.f32 %v12865_v9, %v6054_v1 }
 0x37e   : > { %v2812_v56 = vadd.f32 %v2796_v32, %v2485_v63  ;;  %v3516_v12 = vrot.slane %v15154_v51, %v14565_v38  ;;  %v3692_v49 = vrot.slane %v15154_v51, %v7837_v59  ;;  %v13025_v10 = vadd.f32 %v12868_v14, %v6055_v46  ;;  %v15173_v46 = vld [vmem:[#allocation104_spill] sm:$0xff] }
 0x37f   : > { %v2911_v19 = vadd.f32 %v2895_v31, %v2811_v50  ;;  %v3592_v13 = vrot.slane %v3512_v21, %v7804_v45  ;;  %v3696_v29 = vrot.slane %v15154_v51, %v14579_v40  ;;  %v15161_v0 = vrot.slane %v15160_v11, %v7801_v44 }
 0x380   : > { %v2912_v33 = vadd.f32 %v2896_v22, %v2812_v56  ;;  %v3596_v9 = vrot.slane %v3516_v12, %v7804_v45  ;;  %v3772_v32 = vrot.slane %v3692_v49, %v7837_v59  ;;  %v15164_v61 = vrot.slane %v15163_v34, %v7801_v44  ;;  %v5898_v22 = vpop.permute.xlu1 %5897  ;;  %v15175_v56 = vld [vmem:[#allocation100_spill] sm:$0xff] }
 0x381   : > { %v4143_v3 = vmul.f32 %v15161_v0, %v15159_v60  ;;  %v3011_v37 = vadd.f32 %v2995_v54, %v2911_v19  ;;  %v3635_v14 = vmul.f32 %v3592_v13, %v15162_v28  ;;  %v3776_v31 = vrot.slane %v3696_v29, %v7837_v59 }
 0x382   : > { %v4144_v40 = vmul.f32 %v15164_v61, %v15159_v60  ;;  %v3012_v51 = vadd.f32 %v2996_v53, %v2912_v33  ;;  %v3636_v30 = vmul.f32 %v3596_v9, %v15162_v28  ;;  %v3815_v62 = vmul.f32 %v3772_v32, %v15165_v5  ;;  %v15180_v32 = vld [vmem:[#allocation149_spill] sm:$0xff]  ;;  %v15183_v28 = vld [vmem:[#allocation168_spill] sm:$0xff] }
 0x383   : > { %v15167_v35 = vrot.slane %v15160_v11, %v7804_v45  ;;  %v3111_v6 = vadd.f32 %v3095_v26, %v3011_v37  ;;  %v3816_v24 = vmul.f32 %v3776_v31, %v15165_v5  ;;  %v15168_v16 = vrot.slane %v15163_v34, %v7804_v45  ;;  %v15172_v26 = vld [vmem:[#allocation108_spill] sm:$0xff]  ;;  %v15184_v31 = vld [vmem:[#allocation166_spill] sm:$0xff] }
 0x384   : > { %v15170_v53 = vrot.slane %v15160_v11, %v7837_v59  ;;  %v3112_v48 = vadd.f32 %v3096_v42, %v3012_v51  ;;  %v15171_v1 = vrot.slane %v15163_v34, %v7837_v59  ;;  %v15174_v50 = vrot.slane %v15173_v46, %v7801_v44  ;;  %v15177_v42 = vld [vmem:[#allocation61_spill] sm:$0xff]  ;;  %v15186_v51 = vld [vmem:[#allocation115_spill] sm:$0xff] }
 0x385   : > { %v4343_v54 = vmul.f32 %v15167_v35, %v15166_v55  ;;  %v4344_v47 = vmul.f32 %v15168_v16, %v15166_v55  ;;  %v15176_v12 = vrot.slane %v15175_v56, %v7801_v44  ;;  %v3291_v19 = vadd.f32 %v3275_v25, %v3111_v6 }
 0x386   : > { %v13057_v36 = vmul.f32 %v15170_v53, %v15169_v23  ;;  %v13063_v63 = vmul.f32 %v15171_v1, %v15169_v23  ;;  %v13069_v21 = vmul.f32 %v15174_v50, %v15172_v26  ;;  %v15178_v13 = vrot.slane %v15173_v46, %v7804_v45 }
 0x387   : > { %v13075_v49 = vmul.f32 %v15176_v12, %v15172_v26  ;;  %v15179_v33 = vrot.slane %v15175_v56, %v7804_v45  ;;  %v15181_v60 = vrot.slane %v15173_v46, %v7837_v59  ;;  %v3292_v0 = vadd.f32 %v3276_v27, %v3112_v48  ;;  %v15188_v27 = vld [vmem:[#allocation80_spill] sm:$0xff]  ;;  %v15193_v46 = vld [vmem:[#allocation43_spill] sm:$0xff]  ;;  %v15195_v12 = vld [vmem:[#allocation137_spill] sm:$0xff] }
 0x388   : > { %v13081_v29 = vmul.f32 %v15178_v13, %v15177_v42  ;;  %v15182_v25 = vrot.slane %v15175_v56, %v7837_v59  ;;  %v15185_v34 = vrot.slane %v15184_v31, %v7801_v44  ;;  %v15187_v5 = vrot.slane %v15186_v51, %v7801_v44  ;;  %v15191_v48 = vld [vmem:[#allocation88_spill] sm:$0xff] }
 0x389   : > { %v13087_v9 = vmul.f32 %v15179_v33, %v15177_v42  ;;  %v13093_v11 = vmul.f32 %v15181_v60, %v15180_v32  ;;  %v3471_v35 = vadd.f32 %v3455_v39, %v3291_v19  ;;  %v15189_v6 = vrot.slane %v15184_v31, %v7837_v59  ;;  %v5902_v39 = vpop.permute.xlu1 %5901  ;;  %v15196_v42 = vld [vmem:[#allocation156_spill] sm:$0xff]  ;;  %v15197_v60 = vld [vmem:[#allocation155_spill] sm:$0xff] }
 0x38a   : > { %v13099_v37 = vmul.f32 %v15182_v25, %v15180_v32  ;;  %v13105_v61 = vmul.f32 %v15185_v34, %v15183_v28  ;;  %v13111_v55 = vmul.f32 %v15187_v5, %v15183_v28  ;;  %v15190_v23 = vrot.slane %v15186_v51, %v7837_v59  ;;  %v15199_v31 = vld [vmem:[#allocation39_spill] sm:$0xff] }
 0x38b   : > { %v13117_v16 = vmul.f32 %v15189_v6, %v15188_v27  ;;  %v5766_v1 = vrot.slane %v15191_v48, %v15156_v18  ;;  %vm15194_vm5 = vcmp.le.s32.totalorder %v15193_v46, 46  ;;  %v3472_v50 = vadd.f32 %v3456_v15, %v3292_v0 }
 0x38c   : > { %v13123_v53 = vmul.f32 %v15190_v23, %v15188_v27  ;;  %vm5733_vm2 = vmand %vm15194_vm5, %vm8027_vm11  ;;  %v5770_v56 = vrot.slane %v15191_v48, %v14565_v38  ;;  %v5924_v19 = vsel %vm5917_vm6, %v15195_v12, %v5898_v22  ;;  %v5925_v13 = vsel %vm5917_vm6, %v5898_v22, %v15196_v42  ;;  %v15203_v48 = vld [vmem:[#allocation174_spill] sm:$0xff] }
 0x38d   : > { %v3651_v33 = vadd.f32 %v3635_v14, %v3471_v35  ;;  %v5830_v32 = vrot.slane %v5766_v1, %v7801_v44  ;;  %v15198_v25 = vrot.slane %v15197_v60, %v7837_v59  ;;  %v15200_v15 = vrot.slane %v15199_v31, %v7837_v59  ;;  %v15202_v35 = vld [vmem:[#allocation54_spill] sm:$0xff] }
 0x38e   : > { %v3652_v34 = vadd.f32 %v3636_v30, %v3472_v50  ;;  %v5834_v51 = vrot.slane %v5770_v56, %v7801_v44  ;;  %v15201_v5 = vmov 0   ;;  %v5926_v14 = vsel %vm5917_vm6, %v15196_v42, %v5902_v39 }
 0x38f   : > { %v5707_v28 = vmul.f32 %v15198_v25, %v15188_v27  ;;  %v5708_v0 = vmul.f32 %v15200_v15, %v15188_v27  ;;  %v13148_v6 = vsel %vm5733_vm2, 1, %v15201_v5  ;;  %v3831_v22 = vadd.f32 %v3815_v62, %v3651_v33  ;;  %v15205_v25 = vld [vmem:[#allocation48_spill] sm:$0xff] }
 0x390   : > { %vm5873_vm11 = vcmp.eq.s32.totalorder %v5830_v32, 1  ;;  %v3832_v26 = vadd.f32 %v3816_v24, %v3652_v34  ;;  %vm5874_vm15 = vcmp.eq.s32.totalorder %v5834_v51, 1  ;;  %v5774_v30 = vrot.slane %v13148_v6, %v7801_v44  ;;  %v15204_v32 = vld [vmem:[#allocation75_spill] sm:$0xff] }
 0x391   : > { %v5723_v23 = vadd.f32 %v5707_v28, %v15202_v35  ;;  %v13154_v1 = vadd.f32 %v5708_v0, %v15203_v48  ;;  %v13156_v46 = vsel %vm5873_vm11, %v5924_v19, 0.0  ;;  %v4159_v50 = vadd.f32 %v4143_v3, %v3831_v22  ;;  %v15243_v19 = vld [vmem:[#allocation52_spill] sm:$0xff] }
 0x392   : > { %v13160_v56 = vsel %vm5874_vm15, %v5925_v13, 0.0  ;;  %v5997_v12 = vrot.slane %v13156_v46, %v7801_v44  ;;  %v6097_v62 = vrot.slane %v13156_v46, %v7834_v58  ;;  %v4160_v42 = vadd.f32 %v4144_v40, %v3832_v26 }
 0x393   : > { %v6001_v33 = vrot.slane %v13160_v56, %v7801_v44  ;;  %v6101_v24 = vrot.slane %v13160_v56, %v7834_v58  ;;  %v4259_v3 = vadd.f32 %v15204_v32, %v4159_v50  ;;  %v6297_v0 = vrot.slane %v13156_v46, %v7837_v59  ;;  %v15206_v50 = vld [vmem:[#allocation145_spill] sm:$0xff] }
 0x394   : > { %v13174_v13 = vmul.f32 %v5997_v12, %v11949_v7  ;;  %v13177_v60 = vmul.f32 %v6097_v62, %v14912_v4  ;;  %v4260_v28 = vadd.f32 %v15205_v25, %v4160_v42  ;;  %v6301_v51 = vrot.slane %v13160_v56, %v7837_v59  ;;  %v15207_v62 = vld [vmem:[#allocation160_spill] sm:$0xff] }
 0x395   : > { %v13183_v31 = vmul.f32 %v6001_v33, %v11949_v7  ;;  %v13186_v15 = vmul.f32 %v6101_v24, %v14912_v4  ;;  %v4359_v34 = vadd.f32 %v4343_v54, %v4259_v3  ;;  %v5778_v22 = vrot.slane %v13148_v6, %v7804_v45  ;;  %v15209_v3 = vld [vmem:[#allocation152_spill] sm:$0xff] }
 0x396   : > { %v5838_v35 = vrot.slane %v5774_v30, %v7801_v44  ;;  %v4360_v48 = vadd.f32 %v4344_v47, %v4260_v28  ;;  %v13196_v26 = vmul.f32 %v6297_v0, %v12192_v2  ;;  %v5927_v12 = vsel %vm5917_vm6, %v5902_v39, %v15206_v50  ;;  %v15211_v28 = vld [vmem:[#allocation175_spill] sm:$0xff] }
 0x397   : > { %v15208_v42 = vrot.slane %v15207_v62, %v7837_v59  ;;  %v4459_v33 = vadd.f32 %v13057_v36, %v4359_v34  ;;  %v13206_v24 = vmul.f32 %v6301_v51, %v12192_v2  ;;  %v5842_v32 = vrot.slane %v5778_v22, %v7801_v44 }
 0x398   : > { %vm5875_vm10 = vcmp.eq.s32.totalorder %v5838_v35, 1  ;;  %v4460_v47 = vadd.f32 %v13063_v63, %v4360_v48  ;;  %v15210_v39 = vrot.slane %v15209_v3, %v7837_v59  ;;  %v15212_v48 = vld [vmem:[#allocation105_spill] sm:$0xff] }
 0x399   : > { %v5709_v54 = vmul.f32 %v15208_v42, %v15188_v27  ;;  %v13210_v30 = vsel %vm5875_vm10, %v5926_v14, 0.0  ;;  %v4794_v36 = vadd.f32 %v13069_v21, %v4459_v33  ;;  %vm5876_vm0 = vcmp.eq.s32.totalorder %v5842_v32, 1  ;;  %v15213_v33 = vld [vmem:[#allocation40_spill] sm:$0xff] }
 0x39a   : > { %v5710_v25 = vmul.f32 %v15210_v39, %v15188_v27  ;;  %v6005_v34 = vrot.slane %v13210_v30, %v7801_v44  ;;  %v6105_v51 = vrot.slane %v13210_v30, %v7834_v58  ;;  %v4795_v63 = vadd.f32 %v13075_v49, %v4460_v47 }
 0x39b   : > { %v13217_v0 = vadd.f32 %v5709_v54, %v15211_v28  ;;  %v13225_v14 = vsel %vm5876_vm0, %v5927_v12, 0.0  ;;  %v6305_v35 = vrot.slane %v13210_v30, %v7837_v59  ;;  %v4894_v62 = vadd.f32 %v15212_v48, %v4794_v36 }
 0x39c   : > { %v6009_v21 = vrot.slane %v13225_v14, %v7801_v44  ;;  %v6042_v42 = vmul.f32 %v6005_v34, %v11949_v7  ;;  %v6109_v54 = vrot.slane %v13225_v14, %v7834_v58  ;;  %v4895_v49 = vadd.f32 %v15213_v33, %v4795_v63  ;;  %v5906_v34 = vpop.permute.xlu1 %5905  ;;  %v15214_v33 = vld [vmem:[#allocation176_spill] sm:$0xff] }
 0x39d   : > { %v6142_v12 = vmul.f32 %v6105_v51, %v14912_v4  ;;  %v6309_v47 = vrot.slane %v13225_v14, %v7837_v59  ;;  %v4994_v3 = vadd.f32 %v13081_v29, %v4894_v62  ;;  %v13248_v63 = vmul.f32 %v6305_v35, %v12192_v2 }
 0x39e   : > { %v6043_v39 = vmul.f32 %v6009_v21, %v11949_v7  ;;  %v6058_v28 = vadd.f32 %v6042_v42, %v5723_v23  ;;  %v6143_v36 = vmul.f32 %v6109_v54, %v14912_v4  ;;  %v4995_v48 = vadd.f32 %v13087_v9, %v4895_v49  ;;  %v15216_v9 = vld [vmem:[#allocation45_spill] sm:$0xff] }
 0x39f   : > { %v13251_v51 = vmul.f32 %v6309_v47, %v12192_v2  ;;  %v5726_v32 = vadd.f32 %v5710_v25, %v15214_v33  ;;  %v5094_v22 = vadd.f32 %v13093_v11, %v4994_v3  ;;  %v5782_v23 = vrot.slane %v13148_v6, %v15156_v18  ;;  %v15218_v25 = vld [vmem:[#allocation60_spill] sm:$0xff]  ;;  %v15219_v47 = vld [vmem:[#allocation173_spill] sm:$0xff] }
 0x3a0   : > { %v6059_v29 = vadd.f32 %v6043_v39, %v13154_v1  ;;  %v13256_v62 = vadd.f32 %v6142_v12, %v6058_v28  ;;  %vm15217_vm13 = vcmp.le.s32.totalorder %v15216_v9, 46  ;;  %v5095_v35 = vadd.f32 %v13099_v37, %v4995_v48  ;;  %v15224_v48 = vld [vmem:[#allocation177_spill] sm:$0xff]  ;;  %v15226_v9 = vld [vmem:[#allocation87_spill] sm:$0xff] }
 0x3a1   : > { %vm5734_vm8 = vmand %vm15217_vm13, %vm8045_vm9  ;;  %v5786_v42 = vrot.slane %v13148_v6, %v14565_v38  ;;  %v5928_v11 = vsel %vm5917_vm6, %v15206_v50, %v5906_v34  ;;  %v5929_v1 = vsel %vm5917_vm6, %v5906_v34, %v15218_v25  ;;  %v5421_v54 = vadd.f32 %v13105_v61, %v5094_v22  ;;  %v15221_v50 = vld [vmem:[#allocation124_spill] sm:$0xff]  ;;  %v15223_v22 = vld [vmem:[#allocation169_spill] sm:$0xff] }
 0x3a2   : > { %v13272_v49 = vadd.f32 %v6143_v36, %v6059_v29  ;;  %v5846_v12 = vrot.slane %v5782_v23, %v7801_v44  ;;  %v15220_v3 = vrot.slane %v15219_v47, %v7837_v59  ;;  %v5422_v39 = vadd.f32 %v13111_v55, %v5095_v35  ;;  %v15225_v23 = vld [vmem:[#allocation170_spill] sm:$0xff] }
 0x3a3   : > { %v5850_v6 = vrot.slane %v5786_v42, %v7801_v44  ;;  %v15222_v28 = vrot.slane %v15221_v50, %v7837_v59  ;;  %v13286_v61 = vsel %vm5734_vm8, 1, %v15201_v5  ;;  %v5521_v36 = vadd.f32 %v15223_v22, %v5421_v54  ;;  %v15227_v42 = vld [vmem:[#allocation171_spill] sm:$0xff] }
 0x3a4   : > { %v5711_v37 = vmul.f32 %v15220_v3, %v15188_v27  ;;  %vm5877_vm9 = vcmp.eq.s32.totalorder %v5846_v12, 1  ;;  %v5790_v29 = vrot.slane %v13286_v61, %v7801_v44  ;;  %v5522_v55 = vadd.f32 %v15225_v23, %v5422_v39  ;;  %v5910_v12 = vpop.permute.xlu1 %5909 }
 0x3a5   : > { %v5712_v34 = vmul.f32 %v15222_v28, %v15188_v27  ;;  %vm5878_vm14 = vcmp.eq.s32.totalorder %v5850_v6, 1  ;;  %v13293_v21 = vsel %vm5877_vm9, %v5928_v11, 0.0  ;;  %v5621_v47 = vadd.f32 %v15227_v42, %v5521_v36 }
 0x3a6   : > { %v5727_v33 = vadd.f32 %v5711_v37, %v15224_v48  ;;  %v13297_v3 = vsel %vm5878_vm14, %v5929_v1, 0.0  ;;  %v6013_v5 = vrot.slane %v13293_v21, %v7801_v44  ;;  %v6113_v54 = vrot.slane %v13293_v21, %v7834_v58  ;;  %v15228_v37 = vld [vmem:[#allocation172_spill] sm:$0xff] }
 0x3a7   : > { %v5728_v35 = vadd.f32 %v5712_v34, %v15226_v9  ;;  %v5622_v50 = vadd.f32 %v15228_v37, %v5522_v55  ;;  %v6017_v39 = vrot.slane %v13297_v3, %v7801_v44  ;;  %v6117_v11 = vrot.slane %v13297_v3, %v7834_v58 }
 0x3a8   : > { %v5721_v1 = vadd.f32 %v13117_v16, %v5621_v47  ;;  %v6044_v28 = vmul.f32 %v6013_v5, %v11949_v7  ;;  %v6144_v34 = vmul.f32 %v6113_v54, %v14912_v4  ;;  %v6313_v55 = vrot.slane %v13293_v21, %v7837_v59 }
 0x3a9   : > { %v5722_v36 = vadd.f32 %v13123_v53, %v5622_v50  ;;  %v6045_v48 = vmul.f32 %v6017_v39, %v11949_v7  ;;  %v6145_v23 = vmul.f32 %v6117_v11, %v14912_v4  ;;  %v6317_v42 = vrot.slane %v13297_v3, %v7837_v59  ;;  %v5914_v11 = vpop.permute.xlu1 %5913 }
 0x3aa   : > { %v6056_v9 = vadd.f32 %v13174_v13, %v5721_v1  ;;  %v6060_v16 = vadd.f32 %v6044_v28, %v13217_v0  ;;  %v5794_v47 = vrot.slane %v13286_v61, %v7804_v45  ;;  %v13328_v54 = vmul.f32 %v6313_v55, %v12192_v2 }
 0x3ab   : > { %v6057_v5 = vadd.f32 %v13183_v31, %v5722_v36  ;;  %v6061_v53 = vadd.f32 %v6045_v48, %v5726_v32  ;;  %v5854_v37 = vrot.slane %v5790_v29, %v7801_v44  ;;  %v13337_v0 = vmul.f32 %v6317_v42, %v12192_v2 }
 0x3ac   : > { %v13332_v50 = vadd.f32 %v13177_v60, %v6056_v9  ;;  %v13334_v13 = vadd.f32 %v6144_v34, %v6060_v16  ;;  %v5858_v39 = vrot.slane %v5794_v47, %v7801_v44  ;;  %v5930_v32 = vsel %vm5917_vm6, %v15218_v25, %v5910_v12  ;;  %v15229_v60 = vld [vmem:[#allocation53_spill] sm:$0xff] }
 0x3ad   : > { %v13341_v1 = vadd.f32 %v13186_v15, %v6057_v5  ;;  %v13343_v31 = vadd.f32 %v6145_v23, %v6061_v53  ;;  %vm5879_vm1 = vcmp.eq.s32.totalorder %v5854_v37, 1  ;;  %v5931_v29 = vsel %vm5917_vm6, %v5910_v12, %v15229_v60  ;;  %v15230_v34 = vld [vmem:[#allocation125_spill] sm:$0xff]  ;;  %v15232_v37 = vld [vmem:[#allocation146_spill] sm:$0xff] }
 0x3ae   : > { %vm5880_vm4 = vcmp.eq.s32.totalorder %v5858_v39, 1  ;;  %v13349_v28 = vsel %vm5879_vm1, %v5930_v32, 0.0  ;;  %v15231_v36 = vrot.slane %v15230_v34, %v7837_v59  ;;  %v15233_v39 = vrot.slane %v15232_v37, %v7837_v59 }
 0x3af   : > { %v13355_v55 = vsel %vm5880_vm4, %v5931_v29, 0.0  ;;  %v6021_v15 = vrot.slane %v13349_v28, %v7801_v44  ;;  %v6121_v23 = vrot.slane %v13349_v28, %v7834_v58  ;;  %v6221_v25 = vrot.slane %v13349_v28, %v7804_v45 }
 0x3b0   : > { %v5713_v48 = vmul.f32 %v15231_v36, %v15188_v27  ;;  %v6025_v12 = vrot.slane %v13355_v55, %v7801_v44  ;;  %v6125_v9 = vrot.slane %v13355_v55, %v7834_v58  ;;  %v6225_v16 = vrot.slane %v13355_v55, %v7804_v45 }
 0x3b1   : > { %v6321_v42 = vrot.slane %v13349_v28, %v7837_v59  ;;  %v6046_v47 = vmul.f32 %v6021_v15, %v11949_v7  ;;  %v6146_v5 = vmul.f32 %v6121_v23, %v14912_v4  ;;  %v6325_v53 = vrot.slane %v13355_v55, %v7837_v59  ;;  %v15234_v28 = vld [vmem:[#allocation107_spill] sm:$0xff]  ;;  %v6168_v15 = vpop.permute.xlu1 %6167  ;;  %v15235_v55 = vld [vmem:[#allocation64_spill] sm:$0xff] }
 0x3b2   : > { %v5714_v32 = vmul.f32 %v15233_v39, %v15188_v27  ;;  %v6047_v29 = vmul.f32 %v6025_v12, %v11949_v7  ;;  %v6147_v34 = vmul.f32 %v6125_v9, %v14912_v4  ;;  %v5729_v22 = vadd.f32 %v5713_v48, %v15234_v28  ;;  %v15239_v28 = vld [vmem:[#allocation63_spill] sm:$0xff] }
 0x3b3   : > { %v13382_v36 = vmul.f32 %v6321_v42, %v12192_v2  ;;  %v6062_v6 = vadd.f32 %v6046_v47, %v5727_v33  ;;  %v13386_v23 = vmul.f32 %v6325_v53, %v12192_v2  ;;  %v5798_v37 = vrot.slane %v13286_v61, %v15156_v18  ;;  %v15236_v42 = vld [vmem:[#allocation98_spill] sm:$0xff] }
 0x3b4   : > { %v5730_v40 = vadd.f32 %v5714_v32, %v15235_v55  ;;  %v6063_v27 = vadd.f32 %v6047_v29, %v5728_v35  ;;  %v5802_v12 = vrot.slane %v13286_v61, %v14565_v38  ;;  %v5932_v9 = vsel %vm5917_vm6, %v15229_v60, %v5914_v11  ;;  %v15237_v47 = vld [vmem:[#allocation50_spill] sm:$0xff]  ;;  %v15241_v61 = vld [vmem:[#allocation143_spill] sm:$0xff] }
 0x3b5   : > { %v5933_v48 = vsel %vm5917_vm6, %v5914_v11, %v15236_v42  ;;  %v6162_v39 = vadd.f32 %v6146_v5, %v6062_v6  ;;  %v5862_v33 = vrot.slane %v5798_v37, %v7801_v44  ;;  %v15238_v53 = vrot.slane %v15237_v47, %v7804_v45 }
 0x3b6   : > { %v15240_v18 = vrot.slane %v15239_v28, %v7804_v45  ;;  %v6163_v29 = vadd.f32 %v6147_v34, %v6063_v27  ;;  %v5866_v38 = vrot.slane %v5802_v12, %v7801_v44  ;;  %v15242_v60 = vrot.slane %v15241_v61, %v7804_v45 }
 0x3b7   : > { %v6234_v32 = vmul.f32 %v15238_v53, %v6168_v15  ;;  %v15244_v6 = vrot.slane %v15243_v19, %v7804_v45  ;;  %vm5881_vm6 = vcmp.eq.s32.totalorder %v5862_v33, 1  ;;  %v6238_v5 = vmul.f32 %v6189_v17, %v6168_v15 }
 0x3b8   : > { %v6235_v35 = vmul.f32 %v15240_v18, %v6168_v15  ;;  %v6236_v55 = vmul.f32 %v15242_v60, %v6168_v15  ;;  %v6239_v37 = vmul.f32 %v6193_v43, %v6168_v15  ;;  %v15245_v34 = vrot.slane %v13156_v46, %v7804_v45 }
 0x3b9   : > { %v6237_v11 = vmul.f32 %v15244_v6, %v6168_v15  ;;  %vm5882_vm12 = vcmp.eq.s32.totalorder %v5866_v38, 1  ;;  %v5964_v12 = vsel %vm5881_vm6, %v5932_v9, 0.0  ;;  %v15246_v42 = vrot.slane %v13160_v56, %v7804_v45 }
 0x3ba   : > { %v6240_v27 = vmul.f32 %v15245_v34, %v6168_v15  ;;  %v15247_v33 = vrot.slane %v13210_v30, %v7804_v45  ;;  %v5965_v52 = vsel %vm5882_vm12, %v5933_v48, 0.0  ;;  %v6029_v17 = vrot.slane %v5964_v12, %v7801_v44 }
 0x3bb   : > { %v6241_v19 = vmul.f32 %v15246_v42, %v6168_v15  ;;  %v6129_v20 = vrot.slane %v5964_v12, %v7834_v58  ;;  %v6229_v43 = vrot.slane %v5964_v12, %v7804_v45  ;;  %v6033_v46 = vrot.slane %v5965_v52, %v7801_v44 }
 0x3bc   : > { %v6242_v47 = vmul.f32 %v15247_v33, %v6168_v15  ;;  %v6133_v53 = vrot.slane %v5965_v52, %v7834_v58  ;;  %v6233_v9 = vrot.slane %v5965_v52, %v7804_v45  ;;  %v6329_v56 = vrot.slane %v5964_v12, %v7837_v59 }
 0x3bd   : > { %v6048_v28 = vmul.f32 %v6029_v17, %v11949_v7  ;;  %v6148_v30 = vmul.f32 %v6129_v20, %v14912_v4  ;;  %v6333_v48 = vrot.slane %v5965_v52, %v7837_v59  ;;  %v15248_v18 = vrot.slane %v13225_v14, %v7804_v45 }
 0x3be   : > { %v6049_v61 = vmul.f32 %v6033_v46, %v11949_v7  ;;  %v6149_v44 = vmul.f32 %v6133_v53, %v14912_v4  ;;  %v6348_v58 = vmul.f32 %v6329_v56, %v12192_v2  ;;  %v15249_v60 = vrot.slane %v13293_v21, %v7804_v45  ;;  %v15251_v4 = vld [vmem:[#allocation128_spill] sm:$0xff]  ;;  %v15253_v53 = vld [vmem:[#allocation161_spill] sm:$0xff] }
 0x3bf   : > { %v6243_v38 = vmul.f32 %v15248_v18, %v6168_v15  ;;  %v6064_v34 = vadd.f32 %v6048_v28, %v5729_v22  ;;  %v6349_v12 = vmul.f32 %v6333_v48, %v12192_v2  ;;  %v15250_v59 = vrot.slane %v13297_v3, %v7804_v45  ;;  %v15255_v56 = vld [vmem:[#allocation57_spill] sm:$0xff] }
 0x3c0   : > { %v6244_v6 = vmul.f32 %v15249_v60, %v6168_v15  ;;  %v6246_v33 = vmul.f32 %v6221_v25, %v6168_v15  ;;  %v6065_v14 = vadd.f32 %v6049_v61, %v5730_v40  ;;  %v6247_v52 = vmul.f32 %v6225_v16, %v6168_v15  ;;  %v15256_v28 = vld [vmem:[#allocation121_spill] sm:$0xff] }
 0x3c1   : > { %v6245_v42 = vmul.f32 %v15250_v59, %v6168_v15  ;;  %v6248_v17 = vmul.f32 %v6229_v43, %v6168_v15  ;;  %v6249_v7 = vmul.f32 %v6233_v9, %v6168_v15  ;;  %v6164_v20 = vadd.f32 %v6148_v30, %v6064_v34 }
 0x3c2   : > { %v6250_v46 = vadd.f32 %v6234_v32, %v15251_v4  ;;  %v6251_v21 = vadd.f32 %v6235_v35, %v15253_v53  ;;  %v6252_v22 = vadd.f32 %v6236_v55, %v15255_v56  ;;  %v6165_v2 = vadd.f32 %v6149_v44, %v6065_v14 }
 0x3c3   : > { %v6253_v48 = vadd.f32 %v6237_v11, %v15256_v28  ;;  %v6254_v45 = vadd.f32 %v6238_v5, %v13018_v8  ;;  %v6255_v40 = vadd.f32 %v6239_v37, %v13025_v10  ;;  %v6256_v3 = vadd.f32 %v6240_v27, %v13332_v50  ;;  %v15257_v10 = vld [vmem:[#allocation28_spill] sm:$0xff]  ;;  %v15258_v50 = vld [vmem:[#allocation127_spill] sm:$0xff] }
 0x3c4   : > { %v6257_v25 = vadd.f32 %v6241_v19, %v13341_v1  ;;  %v6258_v16 = vadd.f32 %v6242_v47, %v13256_v62  ;;  %v6259_v15 = vadd.f32 %v6243_v38, %v13272_v49  ;;  %v6260_v32 = vadd.f32 %v6244_v6, %v13334_v13  ;;  %v15259_v1 = vld [vmem:[#allocation27_spill] sm:$0xff]  ;;  %v15260_v62 = vld [vmem:[#allocation117_spill] sm:$0xff] }
 0x3c5   : > { %v6261_v35 = vadd.f32 %v6245_v42, %v13343_v31  ;;  %v6262_v55 = vadd.f32 %v6246_v33, %v6162_v39  ;;  %v6263_v43 = vadd.f32 %v6247_v52, %v6163_v29  ;;  %v6264_v8 = vadd.f32 %v6248_v17, %v6164_v20  ;;  %v6370_v31 = vpop.permute.xlu1 %6369 }
 0x3c6   : > { %v6265_v11 = vadd.f32 %v6249_v7, %v6165_v2  ;;  %v6350_v5 = vadd.f32 %v15257_v10, %v6250_v46  ;;  %v6351_v37 = vadd.f32 %v15258_v50, %v6251_v21  ;;  %v6352_v27 = vadd.f32 %v15259_v1, %v6252_v22 }
 0x3c7   : > { %v6353_v19 = vadd.f32 %v15260_v62, %v6253_v48  ;;  %v6354_v49 = vadd.f32 %v12880_v41, %v6254_v45  ;;  %v6355_v13 = vadd.f32 %v12883_v57, %v6255_v40  ;;  %v6356_v39 = vadd.f32 %v13196_v26, %v6256_v3 }
 0x3c8   : > { %v6357_v29 = vadd.f32 %v13206_v24, %v6257_v25  ;;  %v6358_v47 = vadd.f32 %v13248_v63, %v6258_v16  ;;  %v6359_v9 = vadd.f32 %v13251_v51, %v6259_v15  ;;  %v6360_v30 = vadd.f32 %v13328_v54, %v6260_v32 }
 0x3c9   : > { %v6361_v18 = vadd.f32 %v13337_v0, %v6261_v35  ;;  %v6362_v41 = vadd.f32 %v13382_v36, %v6262_v55  ;;  %v6363_v57 = vadd.f32 %v13386_v23, %v6263_v43  ;;  %v6364_v38 = vadd.f32 %v6348_v58, %v6264_v8 }
 0x3ca   : > { %v6365_v61 = vadd.f32 %v6349_v12, %v6265_v11  ;;  %v6372_v26 = vadd.f32 %v6370_v31, %v6350_v5  ;;  %v6373_v44 = vadd.f32 %v6370_v31, %v6351_v37  ;;  %v6374_v24 = vadd.f32 %v6370_v31, %v6352_v27 }
 0x3cb   : > { %v6375_v60 = vadd.f32 %v6370_v31, %v6353_v19  ;;  %v6376_v63 = vadd.f32 %v6370_v31, %v6354_v49  ;;  %v6377_v6 = vadd.f32 %v6370_v31, %v6355_v13  ;;  %v6378_v51 = vadd.f32 %v6370_v31, %v6356_v39 }
 0x3cc   : > { %v6379_v34 = vadd.f32 %v6370_v31, %v6357_v29  ;;  %v6380_v54 = vadd.f32 %v6370_v31, %v6358_v47  ;;  %v6381_v59 = vadd.f32 %v6370_v31, %v6359_v9  ;;  %6388 = vst [vmem:[%s443_s6] sm:$0xff] %v6372_v26  ;;  %6389 = vst [vmem:[%s443_s6 + $0x8] sm:$0xff] %v6373_v44 }
 0x3cd   : > { %v6382_v0 = vadd.f32 %v6370_v31, %v6360_v30  ;;  %v6383_v36 = vadd.f32 %v6370_v31, %v6361_v18  ;;  %v6384_v23 = vadd.f32 %v6370_v31, %v6362_v41  ;;  %v6385_v58 = vadd.f32 %v6370_v31, %v6363_v57  ;;  %6390 = vst [vmem:[%s443_s6 + $0x10] sm:$0xff] %v6374_v24 }
 0x3ce   : > { %6391 = vst [vmem:[%s443_s6 + $0x18] sm:$0xff] %v6375_v60  ;;  %6392 = vst [vmem:[%s443_s6 + $0x20] sm:$0xff] %v6376_v63  ;;  %v6386_v12 = vadd.f32 %v6370_v31, %v6364_v38  ;;  %v6387_v42 = vadd.f32 %v6370_v31, %v6365_v61 }
 0x3cf   : > { %6393 = vst [vmem:[%s443_s6 + $0x28] sm:$0xff] %v6377_v6  ;;  %6394 = vst [vmem:[%s443_s6 + $0x30] sm:$0xff] %v6378_v51 }
 0x3d0   : > { %6395 = vst [vmem:[%s443_s6 + $0x38] sm:$0xff] %v6379_v34  ;;  %6396 = vst [vmem:[%s443_s6 + $0x40] sm:$0xff] %v6380_v54 }
 0x3d1   : > { %6397 = vst [vmem:[%s443_s6 + $0x48] sm:$0xff] %v6381_v59  ;;  %6398 = vst [vmem:[%s443_s6 + $0x50] sm:$0xff] %v6382_v0 }
 0x3d2   : > { %6399 = vst [vmem:[%s443_s6 + $0x58] sm:$0xff] %v6383_v36  ;;  %6400 = vst [vmem:[%s443_s6 + $0x60] sm:$0xff] %v6384_v23 }
 0x3d3   : > { %6401 = vst [vmem:[%s443_s6 + $0x68] sm:$0xff] %v6385_v58  ;;  %6402 = vst [vmem:[%s443_s6 + $0x70] sm:$0xff] %v6386_v12 }
 0x3d4   : > { %6403 = vst [vmem:[%s443_s6 + $0x78] sm:$0xff] %v6387_v42 }
 0x3d5   : > { %7024 = shalt.err (!%p7021_p7)
}
 0x3d6   : > { %s7025_s20 = scalar_lea.hbm %s13484_s16, 2048  ;;  %s7029_s14 = scalar_lea.hbm %s15262_s19, 8192 }
 0x3d7   : > { %p7026_p0 = scmp.ne.s32.totalorder %s13484_s16, %s7025_s20  ;;  %p7030_p6 = scmp.lt.u32.totalorder %s13484_s16, %s15262_s19 }
 0x3d8   : > { %p7031_p8 = scmp.lt.u32.totalorder %s7029_s14, %s7025_s20  ;;  %p7033_p12 = scmp.lt.u32.totalorder %s7025_s20, %s13484_s16 }
 0x3d9   : > { %p7027_p3 = pnand %p7026_p0, %p15263_p13 }
 0x3da   : > { %p7032_p10 = por %p7031_p8, %p7030_p6 }
 0x3db   : > { %p7028_p1 = pneg %p7027_p3 }
 0x3dc   : > { %p7034_p9 = por %p7033_p12, %p7032_p10 }
 0x3de   : > { %p7035_p5 = pnand %p7034_p9, %p7028_p1 }
 0x3e0   : > { %7038 = shalt.err (!%p7035_p5)
}
 0x3e1   : > { %6693 = dma.vmem_to_hbm [thread:$0]  (%p15263_p13), %s13486_s0, 2048, %s13484_s16, %s6405_s28  }
 0x3e2 PF: > { %s15264_s11 = sld [smem:[#allocation15_spill]]  ;;  %s15265_s12 = sld [smem:[#allocation24_spill]] }
 0x3e3   : > { %p6713_p4 = scmp.ge.s32.totalorder %s7141_s7, 2 }
 0x3e8   : > { %s6435_s24 = sand.u32 1, %s15264_s11   ;;  %p15266_p2 = scmp.ne.s32.totalorder %s15265_s12, 0 }
 0x3e9   : > { %s6436_s17 = scalar_lea.sflag [#allocation4], %s6435_s24 }
 0x3ea   : > { %p6709_p11 = pnand %p6713_p4, %p15266_p2 }
 0x3ec   : > { %7096 = dma.done.wait (!%p6709_p11), %s6436_s17, 2048  }
 0x3ed   : > { %7098 = vsyncadd (!%p6709_p11), %s6436_s17, 4294965248  ;;  %s28_s7 = sadd.s32 1, %s7141_s7   ;;  %s15267_s6 = sld [smem:[#allocation16_spill]] }
 0x3ee   : > { %p25_p7 = scmp.ge.s32.totalorder %s28_s7, 6   ;;  %s15268_s23 = sld [smem:[#allocation23_spill]] }
 0x3ef   : > { %s15269_s15 = sld [smem:[#allocation17_spill]]  ;;  %s15270_s26 = sld [smem:[#allocation22_spill]] }
 0x3f0   : > { %s15271_s0 = sld [smem:[#allocation20_spill]]  ;;  %s15272_s18 = sld [smem:[#allocation21_spill]] }
 0x3f1   : > { %s15273_s21 = smov %s7105_s22  ;;  %s15275_s24 = smov %s7117_s25 }
 0x3f2   : > { %s15277_s27 = smov %s7133_s29  ;;  %s15278_s28 = smov %s7137_s30 }
 0x3f3   : > { %s15274_s22 = smov %s15267_s6  ;;  %27 = sbr.rel (!%p25_p7) target bundleno = 19 (0x13), region = 141 }
 0x3f5   : > { %s15276_s25 = smov %s15269_s15 }
 0x3f6   : > { %s15279_s29 = smov %s15271_s0  ;;  %s15280_s30 = smov %s15272_s18 }
 0x3fa   :  { %6441 = vsyncpa [#allocation3], 1 }
 0x3fb   :  { %6443 = vsyncpa [#allocation3 + $0x1], 1 }
 0x3fc   :  { %6444 = vsyncpa [#allocation6], 1 }
 0x3fd   :  { %6446 = vsyncpa [#allocation6 + $0x1], 1 }
 0x3fe   :  { %6447 = vsyncpa [#allocation9], 1 }
 0x3ff   :  { %6449 = vsyncpa [#allocation9 + $0x1], 1 }
 0x400   :  { %6450 = vsyncpa [#allocation4], 1 }
 0x401   :  { %6452 = vsyncpa [#allocation4 + $0x1], 1 }

</bundles_post_ra>
